<compile_context>
chip_gen: v7x
topology: tpu7x:2x2x1
jax: 0.10.0
libtpu: 0.0.40
codegen_flags: <defaults>
</compile_context>

<pallas_src>
import jax
import jax.numpy as jnp
from jax.experimental import pallas as pl
from jax.experimental.pallas import tpu as pltpu


# ----------------------------------------------------------------------------
# Pallas kernels
# ----------------------------------------------------------------------------
def _conv_affine_relu_kernel(p_ref, w_ref, s_ref, sh_ref, o_ref):
    """conv (im2col matmul) + per-channel scale/shift + ReLU for one image.

    p_ref : (1, P, K)   bf16 im2col patches (P padded to a multiple of 8).
    w_ref : (K, 128)    bf16 weights (Cout zero-padded to 128 lanes).
    s_ref, sh_ref : (1, 128) f32.
    o_ref : (1, P, 128)
    """
    y = jnp.dot(p_ref[0], w_ref[...], preferred_element_type=jnp.float32)
    y = jnp.maximum(y * s_ref[...] + sh_ref[...], 0.0)
    o_ref[0] = y.astype(o_ref.dtype)


def _conv_affine_pool_relu_kernel(p_ref, w_ref, s_ref, sh_ref, o_ref):
    """conv (im2col matmul) + scale/shift + 2x2 maxpool + ReLU for one image.

    p_ref : (1, 4*Pp, K) bf16 patches, member-major: row = member*Pp + pos.
    o_ref : (1, Pp, 128)
    Single matmul over all 4 pool members, then a max-reduce over the member
    axis (leading-dim reduce; Pp is a multiple of 8 so the reshape is free).
    """
    pp = o_ref.shape[1]
    y = jnp.dot(p_ref[0], w_ref[...], preferred_element_type=jnp.float32)
    y = y * s_ref[...] + sh_ref[...]
    y = jnp.max(y.reshape(4, pp, o_ref.shape[2]), axis=0)
    o_ref[0] = jnp.maximum(y, 0.0).astype(o_ref.dtype)


def _tail_kernel(a_ref, w3_ref, w4_ref, w5_ref, w6_ref, wfc_ref, ssv_ref,
                 ss6_ref, o_ref, a3_ref, p4_ref, a4_ref, a5_ref):
    """Fused blocks 3..6 + fc for one image; activations stay in VMEM.

    a_ref  : (88, 128) f32 block2 output; rows = 9x9 row-major (81 valid),
             channels 0..63 valid (rest zero).
    w{3,4,5}_ref : (1152, 128) bf16; rows ordered (kh, kw, cin padded to 128).
    w6_ref : (3200, 512) bf16; rows ordered (kh, kw, cin=128).
    wfc_ref: (512, 128) bf16 (10 valid output columns).
    ssv_ref: (8, 128) f32 rows = [s3, sh3, s4, sh4, s5, sh5, fc_bias, 0].
    ss6_ref: (2, 512) f32 rows = [s6, sh6].
    o_ref  : (8, 128) f32; row 0 holds the logits (10 valid columns).
    a3_ref, p4_ref, a4_ref, a5_ref : VMEM scratch (f32).

    Convs use the shifted-slice formulation in a width-9 row space:
        out[h*9 + w] = sum_{kh,kw} in[(h+kh)*9 + (w+kw)] @ W[kh, kw]
    Invalid rows/columns are carried along and never read by valid outputs.
    """

    def conv3x3(read, w_ref_, nrows):
        acc = None
        for kh in range(3):
            for kw in range(3):
                off = kh * 9 + kw
                wt = w_ref_[(kh * 3 + kw) * 128:(kh * 3 + kw + 1) * 128, :]
                d = jnp.dot(read(off, nrows), wt,
                            preferred_element_type=jnp.float32)
                acc = d if acc is None else acc + d
        return acc

    # ---- block3: 9x9 -> 7x7 (pad 0) -----------------------------------------
    y3 = conv3x3(lambda o, n: a_ref[o:o + n, :].astype(jnp.bfloat16),
                 w3_ref, 64)
    a3_ref[...] = jnp.maximum(y3 * ssv_ref[0:1, :] + ssv_ref[1:2, :], 0.0)

    # ---- block4: pad=1 -> build zero-padded 9x9 input, then 9x9 -> 7x7 -------
    p4_ref[...] = jnp.zeros_like(p4_ref)
    for h in range(7):
        p4_ref[(h + 1) * 9 + 1:(h + 1) * 9 + 8, :] = a3_ref[h * 9:h * 9 + 7, :]
    y4 = conv3x3(lambda o, n: p4_ref[o:o + n, :].astype(jnp.bfloat16),
                 w4_ref, 72)
    a4_ref[...] = jnp.maximum(y4 * ssv_ref[2:3, :] + ssv_ref[3:4, :], 0.0)

    # ---- block5: 7x7 -> 5x5 (pad 0) ------------------------------------------
    y5 = conv3x3(lambda o, n: a4_ref[o:o + n, :].astype(jnp.bfloat16),
                 w5_ref, 48)
    a5_ref[...] = jnp.maximum(y5 * ssv_ref[4:5, :] + ssv_ref[5:6, :], 0.0)

    # ---- block6: Dropout2d (identity, eval) -> 5x5 conv -> BN -> ReLU --------
    acc6 = None
    for kh in range(5):
        for kw in range(5):
            off = kh * 9 + kw
            wt = w6_ref[(kh * 5 + kw) * 128:(kh * 5 + kw + 1) * 128, :]
            d = jnp.dot(a5_ref[off:off + 8, :].astype(jnp.bfloat16), wt,
                        preferred_element_type=jnp.float32)
            acc6 = d if acc6 is None else acc6 + d
    y6 = jnp.maximum(acc6 * ss6_ref[0:1, :] + ss6_ref[1:2, :], 0.0)  # (8, 512)

    # ---- block7: ReshapeBatch(-1) -> Linear(512, 10) -------------------------
    logits = jnp.dot(y6.astype(jnp.bfloat16), wfc_ref[...],
                     preferred_element_type=jnp.float32) + ssv_ref[6:7, :]
    o_ref[...] = logits


# ----------------------------------------------------------------------------
# Pallas call wrappers
# ----------------------------------------------------------------------------
def _conv_call(patches, wmat, scale, shift, out_dtype):
    n, p, k = patches.shape
    return pl.pallas_call(
        _conv_affine_relu_kernel,
        out_shape=jax.ShapeDtypeStruct((n, p, 128), out_dtype),
        grid=(n,),
        in_specs=[pl.BlockSpec((1, p, k), lambda i: (i, 0, 0)),
                  pl.BlockSpec((k, 128), lambda i: (0, 0)),
                  pl.BlockSpec((1, 128), lambda i: (0, 0)),
                  pl.BlockSpec((1, 128), lambda i: (0, 0))],
        out_specs=pl.BlockSpec((1, p, 128), lambda i: (i, 0, 0)),
        compiler_params=pltpu.CompilerParams(dimension_semantics=("parallel",)),
    )(patches, wmat, scale, shift)


def _pooled_conv_call(patches, wmat, scale, shift, pp, out_dtype):
    n, mp, k = patches.shape  # mp = 4 * pp
    return pl.pallas_call(
        _conv_affine_pool_relu_kernel,
        out_shape=jax.ShapeDtypeStruct((n, pp, 128), out_dtype),
        grid=(n,),
        in_specs=[pl.BlockSpec((1, mp, k), lambda i: (i, 0, 0)),
                  pl.BlockSpec((k, 128), lambda i: (0, 0)),
                  pl.BlockSpec((1, 128), lambda i: (0, 0)),
                  pl.BlockSpec((1, 128), lambda i: (0, 0))],
        out_specs=pl.BlockSpec((1, pp, 128), lambda i: (i, 0, 0)),
        compiler_params=pltpu.CompilerParams(dimension_semantics=("parallel",)),
    )(patches, wmat, scale, shift)


# ----------------------------------------------------------------------------
# Glue helpers (padding / im2col / weight packing; plain XLA on tiny tensors)
# ----------------------------------------------------------------------------
def _im2col(xp, kh, kw):
    """xp: (N, Hp, Wp, C) -> (N, Ho, Wo, kh*kw*C); K ordered (kh, kw, c)."""
    _, hp, wp, _ = xp.shape
    ho, wo = hp - kh + 1, wp - kw + 1
    cols = [xp[:, i:i + ho, j:j + wo, :] for i in range(kh) for j in range(kw)]
    return jnp.concatenate(cols, axis=-1)


def _conv_weight(w_oihw, cin_pad=None, cout_pad=None):
    """(O, I, KH, KW) -> (KH*KW*cin, cout) bf16; rows ordered (kh, kw, cin)."""
    o, i, kh, kw = w_oihw.shape
    w = jnp.transpose(w_oihw, (2, 3, 1, 0))                  # (KH, KW, I, O)
    if cin_pad is not None and cin_pad > i:
        w = jnp.pad(w, ((0, 0), (0, 0), (0, cin_pad - i), (0, 0)))
        i = cin_pad
    w = w.reshape(kh * kw * i, o)
    if cout_pad is not None and cout_pad > o:
        w = jnp.pad(w, ((0, 0), (0, cout_pad - o)))
    return w.astype(jnp.bfloat16)


def _pad128(v):
    return jnp.pad(v.astype(jnp.float32), (0, 128 - v.shape[0]))


def _vec128(v):
    return _pad128(v).reshape(1, 128)


# ----------------------------------------------------------------------------
# ConvNet8 forward (separate_activations=True, use_batchnorm=True,
# use_dropout=True, input_shape=(3, 40, 40), nonlin=ReLU)
# ----------------------------------------------------------------------------
def convnet8_forward(x_nchw, P):
    n = x_nchw.shape[0]
    x = jnp.transpose(x_nchw, (0, 2, 3, 1)).astype(jnp.float32)  # NCHW -> NHWC

    # ---- block0: conv0 (3->48, k5, p0, bias) -> maxpool2 -> ReLU -------------
    p0 = _im2col(x, 5, 5)                                         # (N,36,36,75)
    p0 = p0.reshape(n, 18, 2, 18, 2, 75).transpose(0, 2, 4, 1, 3, 5)
    p0 = p0.reshape(n, 4, 324, 75)
    p0 = jnp.pad(p0, ((0, 0), (0, 0), (0, 4), (0, 53)))           # (N,4,328,128)
    p0 = p0.reshape(n, 4 * 328, 128).astype(jnp.bfloat16)
    w0 = jnp.pad(_conv_weight(P["w0"], cout_pad=128), ((0, 53), (0, 0)))
    ones = jnp.ones((1, 128), jnp.float32)
    a0 = _pooled_conv_call(p0, w0, ones, _vec128(P["sh0"]), pp=328,
                           out_dtype=jnp.bfloat16)                # (N,328,128)

    # ---- block1: conv1 (48->64, k3, p1) -> BN -> ReLU ------------------------
    a0v = a0[:, :324, :48].reshape(n, 18, 18, 48)
    xp1 = jnp.pad(a0v, ((0, 0), (1, 1), (1, 1), (0, 0)))
    p1 = _im2col(xp1, 3, 3).reshape(n, 324, 432)
    p1 = jnp.pad(p1, ((0, 0), (0, 4), (0, 0))).astype(jnp.bfloat16)
    a1 = _conv_call(p1, _conv_weight(P["w1"], cout_pad=128),
                    _vec128(P["s1"]), _vec128(P["sh1"]),
                    out_dtype=jnp.bfloat16)                       # (N,328,128)

    # ---- block2: conv2 (64->64, k3, p1) -> BN -> maxpool2 -> ReLU ------------
    a1v = a1[:, :324, :64].reshape(n, 18, 18, 64)
    xp2 = jnp.pad(a1v, ((0, 0), (1, 1), (1, 1), (0, 0)))
    p2 = _im2col(xp2, 3, 3)                                       # (N,18,18,576)
    p2 = p2.reshape(n, 9, 2, 9, 2, 576).transpose(0, 2, 4, 1, 3, 5)
    p2 = p2.reshape(n, 4, 81, 576)
    p2 = jnp.pad(p2, ((0, 0), (0, 0), (0, 7), (0, 0)))            # (N,4,88,576)
    p2 = p2.reshape(n, 4 * 88, 576).astype(jnp.bfloat16)
    a2 = _pooled_conv_call(p2, _conv_weight(P["w2"], cout_pad=128),
                           _vec128(P["s2"]), _vec128(P["sh2"]), pp=88,
                           out_dtype=jnp.float32)                 # (N,88,128)

    # ---- blocks 3..6 + fc: one fused kernel, weights resident in VMEM --------
    w3 = _conv_weight(P["w3"], cin_pad=128)                       # (1152,128)
    w4 = _conv_weight(P["w4"])                                    # (1152,128)
    w5 = _conv_weight(P["w5"])                                    # (1152,128)
    w6 = _conv_weight(P["w6"])                                    # (3200,512)
    wfc = jnp.pad(P["wfc"], ((0, 0), (0, 118))).astype(jnp.bfloat16)
    ssv = jnp.stack([_pad128(P["s3"]), _pad128(P["sh3"]),
                     _pad128(P["s4"]), _pad128(P["sh4"]),
                     _pad128(P["s5"]), _pad128(P["sh5"]),
                     _pad128(P["bfc"]), jnp.zeros((128,), jnp.float32)])
    ss6 = jnp.stack([P["s6"], P["sh6"]]).astype(jnp.float32)      # (2,512)

    out = pl.pallas_call(
        _tail_kernel,
        out_shape=jax.ShapeDtypeStruct((n, 8, 128), jnp.float32),
        grid=(n,),
        in_specs=[
            pl.BlockSpec((None, 88, 128), lambda i: (i, 0, 0)),
            pl.BlockSpec((1152, 128), lambda i: (0, 0)),
            pl.BlockSpec((1152, 128), lambda i: (0, 0)),
            pl.BlockSpec((1152, 128), lambda i: (0, 0)),
            pl.BlockSpec((3200, 512), lambda i: (0, 0)),
            pl.BlockSpec((512, 128), lambda i: (0, 0)),
            pl.BlockSpec((8, 128), lambda i: (0, 0)),
            pl.BlockSpec((2, 512), lambda i: (0, 0)),
        ],
        out_specs=pl.BlockSpec((None, 8, 128), lambda i: (i, 0, 0)),
        scratch_shapes=[
            pltpu.VMEM((64, 128), jnp.float32),   # a3
            pltpu.VMEM((96, 128), jnp.float32),   # padded block4 input
            pltpu.VMEM((72, 128), jnp.float32),   # a4
            pltpu.VMEM((48, 128), jnp.float32),   # a5
        ],
        compiler_params=pltpu.CompilerParams(dimension_semantics=("parallel",)),
    )(a2, w3, w4, w5, w6, wfc, ssv, ss6)

    return out[:, 0, :10]


# ----------------------------------------------------------------------------
# Deterministic parameter init (synthetic; shapes from the module __init__)
# ----------------------------------------------------------------------------
def init_params(key):
    keys = iter(jax.random.split(key, 64))
    eps = 1e-4

    def conv_w(cout, cin, k):
        bound = 1.0 / (cin * k * k) ** 0.5
        return jax.random.uniform(next(keys), (cout, cin, k, k), jnp.float32,
                                  -bound, bound)

    def bn_fold(c):
        gamma = jax.random.uniform(next(keys), (c,), jnp.float32, 0.8, 1.2)
        beta = 0.1 * jax.random.normal(next(keys), (c,), jnp.float32)
        mean = 0.1 * jax.random.normal(next(keys), (c,), jnp.float32)
        var = jax.random.uniform(next(keys), (c,), jnp.float32, 0.8, 1.2)
        scale = gamma / jnp.sqrt(var + eps)
        shift = beta - mean * scale
        return scale, shift

    P = {}
    # block0: conv0 has a real bias (no BN in block0)
    P["w0"] = conv_w(48, 3, 5)
    b0 = jax.random.uniform(next(keys), (48,), jnp.float32,
                            -1.0 / 75 ** 0.5, 1.0 / 75 ** 0.5)
    P["s0"], P["sh0"] = jnp.ones((48,), jnp.float32), b0
    # blocks 1..6: conv (no bias) + BN folded to scale/shift
    P["w1"] = conv_w(64, 48, 3);  P["s1"], P["sh1"] = bn_fold(64)
    P["w2"] = conv_w(64, 64, 3);  P["s2"], P["sh2"] = bn_fold(64)
    P["w3"] = conv_w(128, 64, 3); P["s3"], P["sh3"] = bn_fold(128)
    P["w4"] = conv_w(128, 128, 3); P["s4"], P["sh4"] = bn_fold(128)
    P["w5"] = conv_w(128, 128, 3); P["s5"], P["sh5"] = bn_fold(128)
    P["w6"] = conv_w(512, 128, 5); P["s6"], P["sh6"] = bn_fold(512)
    # block7: Linear(512, 10); stored as (in, out)
    bound = 1.0 / 512 ** 0.5
    P["wfc"] = jax.random.uniform(next(keys), (512, 10), jnp.float32, -bound, bound)
    P["bfc"] = jax.random.uniform(next(keys), (10,), jnp.float32, -bound, bound)
    return P


# ----------------------------------------------------------------------------
# Pure-JAX reference (for correctness check)
# ----------------------------------------------------------------------------
def ref_forward(x_nchw, P):
    x = jnp.transpose(x_nchw, (0, 2, 3, 1)).astype(jnp.float32)

    def conv(x, w, pad):
        return jax.lax.conv_general_dilated(
            x, jnp.transpose(w, (2, 3, 1, 0)), (1, 1),
            [(pad, pad), (pad, pad)],
            dimension_numbers=("NHWC", "HWIO", "NHWC"))

    def pool(x):
        return jax.lax.reduce_window(x, -jnp.inf, jax.lax.max,
                                     (1, 2, 2, 1), (1, 2, 2, 1), "VALID")

    relu = jax.nn.relu
    y = relu(pool(conv(x, P["w0"], 0) + P["sh0"]))
    y = relu(conv(y, P["w1"], 1) * P["s1"] + P["sh1"])
    y = relu(pool(conv(y, P["w2"], 1) * P["s2"] + P["sh2"]))
    y = relu(conv(y, P["w3"], 0) * P["s3"] + P["sh3"])
    y = relu(conv(y, P["w4"], 1) * P["s4"] + P["sh4"])
    y = relu(conv(y, P["w5"], 0) * P["s5"] + P["sh5"])
    y = relu(conv(y, P["w6"], 0) * P["s6"] + P["sh6"])
    y = y.reshape(y.shape[0], -1)
    return y @ P["wfc"] + P["bfc"]


# ----------------------------------------------------------------------------
if __name__ == "__main__":
    key = jax.random.PRNGKey(0)
    kx, kp = jax.random.split(key)
    # ConvNet8 only supports 40x40 (or 32x32) inputs with 3 channels.
    x = jax.random.normal(kx, (2, 3, 40, 40), jnp.float32)
    params = init_params(kp)

    out = jax.block_until_ready(jax.jit(convnet8_forward)(x, params))
    ref = jax.block_until_ready(ref_forward(x, params))

    assert out.shape == (2, 10), out.shape
    max_err = float(jnp.max(jnp.abs(out - ref)))
    # bf16 MXU operands (f32 accumulation) -> slightly looser tolerance.
    assert max_err < 6e-2, f"mismatch vs reference: {max_err}"
    print("KERNEL_OK")
</pallas_src>

<mosaic_0001>
module attributes {stable_mosaic.version = 11 : i64} {
  func.func @_conv_affine_pool_relu_kernel(%arg0: i32, %arg1: memref<1x1312x128xbf16, #tpu.memory_space<vmem>>, %arg2: memref<128x128xbf16, #tpu.memory_space<vmem>>, %arg3: memref<1x128xf32, #tpu.memory_space<vmem>>, %arg4: memref<1x128xf32, #tpu.memory_space<vmem>>, %arg5: memref<1x328x128xbf16, #tpu.memory_space<vmem>>) attributes {dimension_semantics = [#tpu.dimension_semantics<parallel>], iteration_bounds = array<i64: 2>, scalar_prefetch = 0 : i64, scratch_operands = 0 : i64, tpu.core_type = #tpu.core_type<tc>, window_params = [{transform_indices = @transform_0, window_bounds = array<i64: 1, 1312, 128>}, {pipeline_mode = #tpu.pipeline_mode<synchronous>, transform_indices = @transform_1, window_bounds = array<i64: 128, 128>}, {pipeline_mode = #tpu.pipeline_mode<synchronous>, transform_indices = @transform_2, window_bounds = array<i64: 1, 128>}, {pipeline_mode = #tpu.pipeline_mode<synchronous>, transform_indices = @transform_3, window_bounds = array<i64: 1, 128>}, {transform_indices = @transform_4, window_bounds = array<i64: 1, 328, 128>}]} {
    %c0 = arith.constant 0 : index
    %c0_0 = arith.constant 0 : index
    %c0_1 = arith.constant 0 : index
    %0 = vector.load %arg1[%c0, %c0_0, %c0_1] : memref<1x1312x128xbf16, #tpu.memory_space<vmem>>, vector<1x1312x128xbf16>
    %1 = vector.shape_cast %0 : vector<1x1312x128xbf16> to vector<1312x128xbf16>
    %c0_2 = arith.constant 0 : index
    %c0_3 = arith.constant 0 : index
    %2 = vector.load %arg2[%c0_2, %c0_3] : memref<128x128xbf16, #tpu.memory_space<vmem>>, vector<128x128xbf16>
    %cst = arith.constant dense<0.000000e+00> : vector<1312x128xf32>
    %3 = tpu.matmul %1, %2, %cst {dimension_numbers = #tpu.dot_dimension_numbers<[1], [0], [0], [1], [0, 0, 1, 1], [], []>} : vector<1312x128xbf16>, vector<128x128xbf16>, vector<1312x128xf32> -> vector<1312x128xf32>
    %c0_4 = arith.constant 0 : index
    %c0_5 = arith.constant 0 : index
    %4 = vector.load %arg3[%c0_4, %c0_5] : memref<1x128xf32, #tpu.memory_space<vmem>>, vector<1x128xf32>
    %5 = vector.broadcast %4 : vector<1x128xf32> to vector<1312x128xf32>
    %6 = arith.mulf %3, %5 : vector<1312x128xf32>
    %c0_6 = arith.constant 0 : index
    %c0_7 = arith.constant 0 : index
    %7 = vector.load %arg4[%c0_6, %c0_7] : memref<1x128xf32, #tpu.memory_space<vmem>>, vector<1x128xf32>
    %8 = vector.broadcast %7 : vector<1x128xf32> to vector<1312x128xf32>
    %9 = arith.addf %6, %8 : vector<1312x128xf32>
    %10 = vector.shape_cast %9 : vector<1312x128xf32> to vector<4x328x128xf32>
    %cst_8 = arith.constant dense<0xFF800000> : vector<328x128xf32>
    %11 = vector.multi_reduction <maximumf>, %10, %cst_8 [0] : vector<4x328x128xf32> to vector<328x128xf32>
    %cst_9 = arith.constant 0.000000e+00 : f32
    %12 = vector.broadcast %cst_9 : f32 to vector<328x128xf32>
    %13 = arith.maximumf %11, %12 : vector<328x128xf32>
    %14 = arith.truncf %13 : vector<328x128xf32> to vector<328x128xbf16>
    %c0_10 = arith.constant 0 : index
    %c0_11 = arith.constant 0 : index
    %c0_12 = arith.constant 0 : index
    %15 = vector.load %arg5[%c0_10, %c0_11, %c0_12] : memref<1x328x128xbf16, #tpu.memory_space<vmem>>, vector<1x328x128xbf16>
    %16 = vector.shape_cast %15 : vector<1x328x128xbf16> to vector<328x128xbf16>
    %17 = vector.shape_cast %14 : vector<328x128xbf16> to vector<1x328x128xbf16>
    tpu.vector_store %arg5[%c0_10, %c0_11, %c0_12], %17 {strides = array<i32>} : memref<1x328x128xbf16, #tpu.memory_space<vmem>>, vector<1x328x128xbf16>,
    return
  }
  func.func @transform_0(%arg0: i32) -> (i32, i32, i32) {
    %c0_i32 = arith.constant 0 : i32
    %c0_i32_0 = arith.constant 0 : i32
    %c0_i32_1 = arith.constant 0 : i32
    return %arg0, %c0_i32, %c0_i32_0 : i32, i32, i32
  }
  func.func @transform_1(%arg0: i32) -> (i32, i32) {
    %c0_i32 = arith.constant 0 : i32
    %c0_i32_0 = arith.constant 0 : i32
    %c0_i32_1 = arith.constant 0 : i32
    return %c0_i32, %c0_i32_0 : i32, i32
  }
  func.func @transform_2(%arg0: i32) -> (i32, i32) {
    %c0_i32 = arith.constant 0 : i32
    %c0_i32_0 = arith.constant 0 : i32
    %c0_i32_1 = arith.constant 0 : i32
    return %c0_i32, %c0_i32_0 : i32, i32
  }
  func.func @transform_3(%arg0: i32) -> (i32, i32) {
    %c0_i32 = arith.constant 0 : i32
    %c0_i32_0 = arith.constant 0 : i32
    %c0_i32_1 = arith.constant 0 : i32
    return %c0_i32, %c0_i32_0 : i32, i32
  }
  func.func @transform_4(%arg0: i32) -> (i32, i32, i32) {
    %c0_i32 = arith.constant 0 : i32
    %c0_i32_0 = arith.constant 0 : i32
    %c0_i32_1 = arith.constant 0 : i32
    return %arg0, %c0_i32, %c0_i32_0 : i32, i32, i32
  }
}

module attributes {stable_mosaic.version = 11 : i64} {
  func.func @_conv_affine_relu_kernel(%arg0: i32, %arg1: memref<1x328x432xbf16, #tpu.memory_space<vmem>>, %arg2: memref<432x128xbf16, #tpu.memory_space<vmem>>, %arg3: memref<1x128xf32, #tpu.memory_space<vmem>>, %arg4: memref<1x128xf32, #tpu.memory_space<vmem>>, %arg5: memref<1x328x128xbf16, #tpu.memory_space<vmem>>) attributes {dimension_semantics = [#tpu.dimension_semantics<parallel>], iteration_bounds = array<i64: 2>, scalar_prefetch = 0 : i64, scratch_operands = 0 : i64, tpu.core_type = #tpu.core_type<tc>, window_params = [{transform_indices = @transform_0, window_bounds = array<i64: 1, 328, 432>}, {pipeline_mode = #tpu.pipeline_mode<synchronous>, transform_indices = @transform_1, window_bounds = array<i64: 432, 128>}, {pipeline_mode = #tpu.pipeline_mode<synchronous>, transform_indices = @transform_2, window_bounds = array<i64: 1, 128>}, {pipeline_mode = #tpu.pipeline_mode<synchronous>, transform_indices = @transform_3, window_bounds = array<i64: 1, 128>}, {transform_indices = @transform_4, window_bounds = array<i64: 1, 328, 128>}]} {
    %c0 = arith.constant 0 : index
    %c0_0 = arith.constant 0 : index
    %c0_1 = arith.constant 0 : index
    %0 = vector.load %arg1[%c0, %c0_0, %c0_1] : memref<1x328x432xbf16, #tpu.memory_space<vmem>>, vector<1x328x432xbf16>
    %1 = vector.shape_cast %0 : vector<1x328x432xbf16> to vector<328x432xbf16>
    %c0_2 = arith.constant 0 : index
    %c0_3 = arith.constant 0 : index
    %2 = vector.load %arg2[%c0_2, %c0_3] : memref<432x128xbf16, #tpu.memory_space<vmem>>, vector<432x128xbf16>
    %cst = arith.constant dense<0.000000e+00> : vector<328x128xf32>
    %3 = tpu.matmul %1, %2, %cst {dimension_numbers = #tpu.dot_dimension_numbers<[1], [0], [0], [1], [0, 0, 1, 1], [], []>} : vector<328x432xbf16>, vector<432x128xbf16>, vector<328x128xf32> -> vector<328x128xf32>
    %c0_4 = arith.constant 0 : index
    %c0_5 = arith.constant 0 : index
    %4 = vector.load %arg3[%c0_4, %c0_5] : memref<1x128xf32, #tpu.memory_space<vmem>>, vector<1x128xf32>
    %5 = vector.broadcast %4 : vector<1x128xf32> to vector<328x128xf32>
    %6 = arith.mulf %3, %5 : vector<328x128xf32>
    %c0_6 = arith.constant 0 : index
    %c0_7 = arith.constant 0 : index
    %7 = vector.load %arg4[%c0_6, %c0_7] : memref<1x128xf32, #tpu.memory_space<vmem>>, vector<1x128xf32>
    %8 = vector.broadcast %7 : vector<1x128xf32> to vector<328x128xf32>
    %9 = arith.addf %6, %8 : vector<328x128xf32>
    %cst_8 = arith.constant 0.000000e+00 : f32
    %10 = vector.broadcast %cst_8 : f32 to vector<328x128xf32>
    %11 = arith.maximumf %9, %10 : vector<328x128xf32>
    %12 = arith.truncf %11 : vector<328x128xf32> to vector<328x128xbf16>
    %c0_9 = arith.constant 0 : index
    %c0_10 = arith.constant 0 : index
    %c0_11 = arith.constant 0 : index
    %13 = vector.load %arg5[%c0_9, %c0_10, %c0_11] : memref<1x328x128xbf16, #tpu.memory_space<vmem>>, vector<1x328x128xbf16>
    %14 = vector.shape_cast %13 : vector<1x328x128xbf16> to vector<328x128xbf16>
    %15 = vector.shape_cast %12 : vector<328x128xbf16> to vector<1x328x128xbf16>
    tpu.vector_store %arg5[%c0_9, %c0_10, %c0_11], %15 {strides = array<i32>} : memref<1x328x128xbf16, #tpu.memory_space<vmem>>, vector<1x328x128xbf16>,
    return
  }
  func.func @transform_0(%arg0: i32) -> (i32, i32, i32) {
    %c0_i32 = arith.constant 0 : i32
    %c0_i32_0 = arith.constant 0 : i32
    %c0_i32_1 = arith.constant 0 : i32
    return %arg0, %c0_i32, %c0_i32_0 : i32, i32, i32
  }
  func.func @transform_1(%arg0: i32) -> (i32, i32) {
    %c0_i32 = arith.constant 0 : i32
    %c0_i32_0 = arith.constant 0 : i32
    %c0_i32_1 = arith.constant 0 : i32
    return %c0_i32, %c0_i32_0 : i32, i32
  }
  func.func @transform_2(%arg0: i32) -> (i32, i32) {
    %c0_i32 = arith.constant 0 : i32
    %c0_i32_0 = arith.constant 0 : i32
    %c0_i32_1 = arith.constant 0 : i32
    return %c0_i32, %c0_i32_0 : i32, i32
  }
  func.func @transform_3(%arg0: i32) -> (i32, i32) {
    %c0_i32 = arith.constant 0 : i32
    %c0_i32_0 = arith.constant 0 : i32
    %c0_i32_1 = arith.constant 0 : i32
    return %c0_i32, %c0_i32_0 : i32, i32
  }
  func.func @transform_4(%arg0: i32) -> (i32, i32, i32) {
    %c0_i32 = arith.constant 0 : i32
    %c0_i32_0 = arith.constant 0 : i32
    %c0_i32_1 = arith.constant 0 : i32
    return %arg0, %c0_i32, %c0_i32_0 : i32, i32, i32
  }
}

module attributes {stable_mosaic.version = 11 : i64} {
  func.func @_conv_affine_pool_relu_kernel(%arg0: i32, %arg1: memref<1x352x576xbf16, #tpu.memory_space<vmem>>, %arg2: memref<576x128xbf16, #tpu.memory_space<vmem>>, %arg3: memref<1x128xf32, #tpu.memory_space<vmem>>, %arg4: memref<1x128xf32, #tpu.memory_space<vmem>>, %arg5: memref<1x88x128xf32, #tpu.memory_space<vmem>>) attributes {dimension_semantics = [#tpu.dimension_semantics<parallel>], iteration_bounds = array<i64: 2>, scalar_prefetch = 0 : i64, scratch_operands = 0 : i64, tpu.core_type = #tpu.core_type<tc>, window_params = [{transform_indices = @transform_0, window_bounds = array<i64: 1, 352, 576>}, {pipeline_mode = #tpu.pipeline_mode<synchronous>, transform_indices = @transform_1, window_bounds = array<i64: 576, 128>}, {pipeline_mode = #tpu.pipeline_mode<synchronous>, transform_indices = @transform_2, window_bounds = array<i64: 1, 128>}, {pipeline_mode = #tpu.pipeline_mode<synchronous>, transform_indices = @transform_3, window_bounds = array<i64: 1, 128>}, {transform_indices = @transform_4, window_bounds = array<i64: 1, 88, 128>}]} {
    %c0 = arith.constant 0 : index
    %c0_0 = arith.constant 0 : index
    %c0_1 = arith.constant 0 : index
    %0 = vector.load %arg1[%c0, %c0_0, %c0_1] : memref<1x352x576xbf16, #tpu.memory_space<vmem>>, vector<1x352x576xbf16>
    %1 = vector.shape_cast %0 : vector<1x352x576xbf16> to vector<352x576xbf16>
    %c0_2 = arith.constant 0 : index
    %c0_3 = arith.constant 0 : index
    %2 = vector.load %arg2[%c0_2, %c0_3] : memref<576x128xbf16, #tpu.memory_space<vmem>>, vector<576x128xbf16>
    %cst = arith.constant dense<0.000000e+00> : vector<352x128xf32>
    %3 = tpu.matmul %1, %2, %cst {dimension_numbers = #tpu.dot_dimension_numbers<[1], [0], [0], [1], [0, 0, 1, 1], [], []>} : vector<352x576xbf16>, vector<576x128xbf16>, vector<352x128xf32> -> vector<352x128xf32>
    %c0_4 = arith.constant 0 : index
    %c0_5 = arith.constant 0 : index
    %4 = vector.load %arg3[%c0_4, %c0_5] : memref<1x128xf32, #tpu.memory_space<vmem>>, vector<1x128xf32>
    %5 = vector.broadcast %4 : vector<1x128xf32> to vector<352x128xf32>
    %6 = arith.mulf %3, %5 : vector<352x128xf32>
    %c0_6 = arith.constant 0 : index
    %c0_7 = arith.constant 0 : index
    %7 = vector.load %arg4[%c0_6, %c0_7] : memref<1x128xf32, #tpu.memory_space<vmem>>, vector<1x128xf32>
    %8 = vector.broadcast %7 : vector<1x128xf32> to vector<352x128xf32>
    %9 = arith.addf %6, %8 : vector<352x128xf32>
    %10 = vector.shape_cast %9 : vector<352x128xf32> to vector<4x88x128xf32>
    %cst_8 = arith.constant dense<0xFF800000> : vector<88x128xf32>
    %11 = vector.multi_reduction <maximumf>, %10, %cst_8 [0] : vector<4x88x128xf32> to vector<88x128xf32>
    %cst_9 = arith.constant 0.000000e+00 : f32
    %12 = vector.broadcast %cst_9 : f32 to vector<88x128xf32>
    %13 = arith.maximumf %11, %12 : vector<88x128xf32>
    %c0_10 = arith.constant 0 : index
    %c0_11 = arith.constant 0 : index
    %c0_12 = arith.constant 0 : index
    %14 = vector.load %arg5[%c0_10, %c0_11, %c0_12] : memref<1x88x128xf32, #tpu.memory_space<vmem>>, vector<1x88x128xf32>
    %15 = vector.shape_cast %14 : vector<1x88x128xf32> to vector<88x128xf32>
    %16 = vector.shape_cast %13 : vector<88x128xf32> to vector<1x88x128xf32>
    tpu.vector_store %arg5[%c0_10, %c0_11, %c0_12], %16 {strides = array<i32>} : memref<1x88x128xf32, #tpu.memory_space<vmem>>, vector<1x88x128xf32>,
    return
  }
  func.func @transform_0(%arg0: i32) -> (i32, i32, i32) {
    %c0_i32 = arith.constant 0 : i32
    %c0_i32_0 = arith.constant 0 : i32
    %c0_i32_1 = arith.constant 0 : i32
    return %arg0, %c0_i32, %c0_i32_0 : i32, i32, i32
  }
  func.func @transform_1(%arg0: i32) -> (i32, i32) {
    %c0_i32 = arith.constant 0 : i32
    %c0_i32_0 = arith.constant 0 : i32
    %c0_i32_1 = arith.constant 0 : i32
    return %c0_i32, %c0_i32_0 : i32, i32
  }
  func.func @transform_2(%arg0: i32) -> (i32, i32) {
    %c0_i32 = arith.constant 0 : i32
    %c0_i32_0 = arith.constant 0 : i32
    %c0_i32_1 = arith.constant 0 : i32
    return %c0_i32, %c0_i32_0 : i32, i32
  }
  func.func @transform_3(%arg0: i32) -> (i32, i32) {
    %c0_i32 = arith.constant 0 : i32
    %c0_i32_0 = arith.constant 0 : i32
    %c0_i32_1 = arith.constant 0 : i32
    return %c0_i32, %c0_i32_0 : i32, i32
  }
  func.func @transform_4(%arg0: i32) -> (i32, i32, i32) {
    %c0_i32 = arith.constant 0 : i32
    %c0_i32_0 = arith.constant 0 : i32
    %c0_i32_1 = arith.constant 0 : i32
    return %arg0, %c0_i32, %c0_i32_0 : i32, i32, i32
  }
}

module attributes {stable_mosaic.version = 11 : i64} {
  func.func @_tail_kernel(%arg0: i32, %arg1: memref<1x88x128xf32, #tpu.memory_space<vmem>>, %arg2: memref<1152x128xbf16, #tpu.memory_space<vmem>>, %arg3: memref<1152x128xbf16, #tpu.memory_space<vmem>>, %arg4: memref<1152x128xbf16, #tpu.memory_space<vmem>>, %arg5: memref<3200x512xbf16, #tpu.memory_space<vmem>>, %arg6: memref<512x128xbf16, #tpu.memory_space<vmem>>, %arg7: memref<8x128xf32, #tpu.memory_space<vmem>>, %arg8: memref<2x512xf32, #tpu.memory_space<vmem>>, %arg9: memref<1x8x128xf32, #tpu.memory_space<vmem>>, %arg10: memref<64x128xf32, #tpu.memory_space<vmem>>, %arg11: memref<96x128xf32, #tpu.memory_space<vmem>>, %arg12: memref<72x128xf32, #tpu.memory_space<vmem>>, %arg13: memref<48x128xf32, #tpu.memory_space<vmem>>) attributes {dimension_semantics = [#tpu.dimension_semantics<parallel>], iteration_bounds = array<i64: 2>, scalar_prefetch = 0 : i64, scratch_operands = 4 : i64, tpu.core_type = #tpu.core_type<tc>, window_params = [{transform_indices = @transform_0, window_bounds = array<i64: 1, 88, 128>}, {pipeline_mode = #tpu.pipeline_mode<synchronous>, transform_indices = @transform_1, window_bounds = array<i64: 1152, 128>}, {pipeline_mode = #tpu.pipeline_mode<synchronous>, transform_indices = @transform_2, window_bounds = array<i64: 1152, 128>}, {pipeline_mode = #tpu.pipeline_mode<synchronous>, transform_indices = @transform_3, window_bounds = array<i64: 1152, 128>}, {pipeline_mode = #tpu.pipeline_mode<synchronous>, transform_indices = @transform_4, window_bounds = array<i64: 3200, 512>}, {pipeline_mode = #tpu.pipeline_mode<synchronous>, transform_indices = @transform_5, window_bounds = array<i64: 512, 128>}, {pipeline_mode = #tpu.pipeline_mode<synchronous>, transform_indices = @transform_6, window_bounds = array<i64: 8, 128>}, {pipeline_mode = #tpu.pipeline_mode<synchronous>, transform_indices = @transform_7, window_bounds = array<i64: 2, 512>}, {transform_indices = @transform_8, window_bounds = array<i64: 1, 8, 128>}]} {
    %c0 = arith.constant 0 : index
    %c0_0 = arith.constant 0 : index
    %0 = vector.load %arg2[%c0, %c0_0] : memref<1152x128xbf16, #tpu.memory_space<vmem>>, vector<128x128xbf16>
    %c0_1 = arith.constant 0 : index
    %c0_2 = arith.constant 0 : index
    %c0_3 = arith.constant 0 : index
    %1 = vector.load %arg1[%c0_1, %c0_2, %c0_3] : memref<1x88x128xf32, #tpu.memory_space<vmem>>, vector<1x64x128xf32>
    %2 = vector.shape_cast %1 : vector<1x64x128xf32> to vector<64x128xf32>
    %3 = arith.truncf %2 : vector<64x128xf32> to vector<64x128xbf16>
    %cst = arith.constant dense<0.000000e+00> : vector<64x128xf32>
    %4 = tpu.matmul %3, %0, %cst {dimension_numbers = #tpu.dot_dimension_numbers<[1], [0], [0], [1], [0, 0, 1, 1], [], []>} : vector<64x128xbf16>, vector<128x128xbf16>, vector<64x128xf32> -> vector<64x128xf32>
    %c128 = arith.constant 128 : index
    %c0_4 = arith.constant 0 : index
    %5 = vector.load %arg2[%c128, %c0_4] : memref<1152x128xbf16, #tpu.memory_space<vmem>>, vector<128x128xbf16>
    %c0_5 = arith.constant 0 : index
    %c1 = arith.constant 1 : index
    %c0_6 = arith.constant 0 : index
    %6 = vector.load %arg1[%c0_5, %c1, %c0_6] : memref<1x88x128xf32, #tpu.memory_space<vmem>>, vector<1x64x128xf32>
    %7 = vector.shape_cast %6 : vector<1x64x128xf32> to vector<64x128xf32>
    %8 = arith.truncf %7 : vector<64x128xf32> to vector<64x128xbf16>
    %cst_7 = arith.constant dense<0.000000e+00> : vector<64x128xf32>
    %9 = tpu.matmul %8, %5, %cst_7 {dimension_numbers = #tpu.dot_dimension_numbers<[1], [0], [0], [1], [0, 0, 1, 1], [], []>} : vector<64x128xbf16>, vector<128x128xbf16>, vector<64x128xf32> -> vector<64x128xf32>
    %10 = arith.addf %4, %9 : vector<64x128xf32>
    %c256 = arith.constant 256 : index
    %c0_8 = arith.constant 0 : index
    %11 = vector.load %arg2[%c256, %c0_8] : memref<1152x128xbf16, #tpu.memory_space<vmem>>, vector<128x128xbf16>
    %c0_9 = arith.constant 0 : index
    %c2 = arith.constant 2 : index
    %c0_10 = arith.constant 0 : index
    %12 = vector.load %arg1[%c0_9, %c2, %c0_10] : memref<1x88x128xf32, #tpu.memory_space<vmem>>, vector<1x64x128xf32>
    %13 = vector.shape_cast %12 : vector<1x64x128xf32> to vector<64x128xf32>
    %14 = arith.truncf %13 : vector<64x128xf32> to vector<64x128xbf16>
    %cst_11 = arith.constant dense<0.000000e+00> : vector<64x128xf32>
    %15 = tpu.matmul %14, %11, %cst_11 {dimension_numbers = #tpu.dot_dimension_numbers<[1], [0], [0], [1], [0, 0, 1, 1], [], []>} : vector<64x128xbf16>, vector<128x128xbf16>, vector<64x128xf32> -> vector<64x128xf32>
    %16 = arith.addf %10, %15 : vector<64x128xf32>
    %c384 = arith.constant 384 : index
    %c0_12 = arith.constant 0 : index
    %17 = vector.load %arg2[%c384, %c0_12] : memref<1152x128xbf16, #tpu.memory_space<vmem>>, vector<128x128xbf16>
    %c0_13 = arith.constant 0 : index
    %c9 = arith.constant 9 : index
    %c0_14 = arith.constant 0 : index
    %18 = vector.load %arg1[%c0_13, %c9, %c0_14] : memref<1x88x128xf32, #tpu.memory_space<vmem>>, vector<1x64x128xf32>
    %19 = vector.shape_cast %18 : vector<1x64x128xf32> to vector<64x128xf32>
    %20 = arith.truncf %19 : vector<64x128xf32> to vector<64x128xbf16>
    %cst_15 = arith.constant dense<0.000000e+00> : vector<64x128xf32>
    %21 = tpu.matmul %20, %17, %cst_15 {dimension_numbers = #tpu.dot_dimension_numbers<[1], [0], [0], [1], [0, 0, 1, 1], [], []>} : vector<64x128xbf16>, vector<128x128xbf16>, vector<64x128xf32> -> vector<64x128xf32>
    %22 = arith.addf %16, %21 : vector<64x128xf32>
    %c512 = arith.constant 512 : index
    %c0_16 = arith.constant 0 : index
    %23 = vector.load %arg2[%c512, %c0_16] : memref<1152x128xbf16, #tpu.memory_space<vmem>>, vector<128x128xbf16>
    %c0_17 = arith.constant 0 : index
    %c10 = arith.constant 10 : index
    %c0_18 = arith.constant 0 : index
    %24 = vector.load %arg1[%c0_17, %c10, %c0_18] : memref<1x88x128xf32, #tpu.memory_space<vmem>>, vector<1x64x128xf32>
    %25 = vector.shape_cast %24 : vector<1x64x128xf32> to vector<64x128xf32>
    %26 = arith.truncf %25 : vector<64x128xf32> to vector<64x128xbf16>
    %cst_19 = arith.constant dense<0.000000e+00> : vector<64x128xf32>
    %27 = tpu.matmul %26, %23, %cst_19 {dimension_numbers = #tpu.dot_dimension_numbers<[1], [0], [0], [1], [0, 0, 1, 1], [], []>} : vector<64x128xbf16>, vector<128x128xbf16>, vector<64x128xf32> -> vector<64x128xf32>
    %28 = arith.addf %22, %27 : vector<64x128xf32>
    %c640 = arith.constant 640 : index
    %c0_20 = arith.constant 0 : index
    %29 = vector.load %arg2[%c640, %c0_20] : memref<1152x128xbf16, #tpu.memory_space<vmem>>, vector<128x128xbf16>
    %c0_21 = arith.constant 0 : index
    %c11 = arith.constant 11 : index
    %c0_22 = arith.constant 0 : index
    %30 = vector.load %arg1[%c0_21, %c11, %c0_22] : memref<1x88x128xf32, #tpu.memory_space<vmem>>, vector<1x64x128xf32>
    %31 = vector.shape_cast %30 : vector<1x64x128xf32> to vector<64x128xf32>
    %32 = arith.truncf %31 : vector<64x128xf32> to vector<64x128xbf16>
    %cst_23 = arith.constant dense<0.000000e+00> : vector<64x128xf32>
    %33 = tpu.matmul %32, %29, %cst_23 {dimension_numbers = #tpu.dot_dimension_numbers<[1], [0], [0], [1], [0, 0, 1, 1], [], []>} : vector<64x128xbf16>, vector<128x128xbf16>, vector<64x128xf32> -> vector<64x128xf32>
    %34 = arith.addf %28, %33 : vector<64x128xf32>
    %c768 = arith.constant 768 : index
    %c0_24 = arith.constant 0 : index
    %35 = vector.load %arg2[%c768, %c0_24] : memref<1152x128xbf16, #tpu.memory_space<vmem>>, vector<128x128xbf16>
    %c0_25 = arith.constant 0 : index
    %c18 = arith.constant 18 : index
    %c0_26 = arith.constant 0 : index
    %36 = vector.load %arg1[%c0_25, %c18, %c0_26] : memref<1x88x128xf32, #tpu.memory_space<vmem>>, vector<1x64x128xf32>
    %37 = vector.shape_cast %36 : vector<1x64x128xf32> to vector<64x128xf32>
    %38 = arith.truncf %37 : vector<64x128xf32> to vector<64x128xbf16>
    %cst_27 = arith.constant dense<0.000000e+00> : vector<64x128xf32>
    %39 = tpu.matmul %38, %35, %cst_27 {dimension_numbers = #tpu.dot_dimension_numbers<[1], [0], [0], [1], [0, 0, 1, 1], [], []>} : vector<64x128xbf16>, vector<128x128xbf16>, vector<64x128xf32> -> vector<64x128xf32>
    %40 = arith.addf %34, %39 : vector<64x128xf32>
    %c896 = arith.constant 896 : index
    %c0_28 = arith.constant 0 : index
    %41 = vector.load %arg2[%c896, %c0_28] : memref<1152x128xbf16, #tpu.memory_space<vmem>>, vector<128x128xbf16>
    %c0_29 = arith.constant 0 : index
    %c19 = arith.constant 19 : index
    %c0_30 = arith.constant 0 : index
    %42 = vector.load %arg1[%c0_29, %c19, %c0_30] : memref<1x88x128xf32, #tpu.memory_space<vmem>>, vector<1x64x128xf32>
    %43 = vector.shape_cast %42 : vector<1x64x128xf32> to vector<64x128xf32>
    %44 = arith.truncf %43 : vector<64x128xf32> to vector<64x128xbf16>
    %cst_31 = arith.constant dense<0.000000e+00> : vector<64x128xf32>
    %45 = tpu.matmul %44, %41, %cst_31 {dimension_numbers = #tpu.dot_dimension_numbers<[1], [0], [0], [1], [0, 0, 1, 1], [], []>} : vector<64x128xbf16>, vector<128x128xbf16>, vector<64x128xf32> -> vector<64x128xf32>
    %46 = arith.addf %40, %45 : vector<64x128xf32>
    %c1024 = arith.constant 1024 : index
    %c0_32 = arith.constant 0 : index
    %47 = vector.load %arg2[%c1024, %c0_32] : memref<1152x128xbf16, #tpu.memory_space<vmem>>, vector<128x128xbf16>
    %c0_33 = arith.constant 0 : index
    %c20 = arith.constant 20 : index
    %c0_34 = arith.constant 0 : index
    %48 = vector.load %arg1[%c0_33, %c20, %c0_34] : memref<1x88x128xf32, #tpu.memory_space<vmem>>, vector<1x64x128xf32>
    %49 = vector.shape_cast %48 : vector<1x64x128xf32> to vector<64x128xf32>
    %50 = arith.truncf %49 : vector<64x128xf32> to vector<64x128xbf16>
    %cst_35 = arith.constant dense<0.000000e+00> : vector<64x128xf32>
    %51 = tpu.matmul %50, %47, %cst_35 {dimension_numbers = #tpu.dot_dimension_numbers<[1], [0], [0], [1], [0, 0, 1, 1], [], []>} : vector<64x128xbf16>, vector<128x128xbf16>, vector<64x128xf32> -> vector<64x128xf32>
    %52 = arith.addf %46, %51 : vector<64x128xf32>
    %c0_36 = arith.constant 0 : index
    %c0_37 = arith.constant 0 : index
    %53 = vector.load %arg7[%c0_36, %c0_37] : memref<8x128xf32, #tpu.memory_space<vmem>>, vector<1x128xf32>
    %54 = vector.broadcast %53 : vector<1x128xf32> to vector<64x128xf32>
    %55 = arith.mulf %52, %54 : vector<64x128xf32>
    %c1_38 = arith.constant 1 : index
    %c0_39 = arith.constant 0 : index
    %56 = vector.load %arg7[%c1_38, %c0_39] : memref<8x128xf32, #tpu.memory_space<vmem>>, vector<1x128xf32>
    %57 = vector.broadcast %56 : vector<1x128xf32> to vector<64x128xf32>
    %58 = arith.addf %55, %57 : vector<64x128xf32>
    %cst_40 = arith.constant 0.000000e+00 : f32
    %59 = vector.broadcast %cst_40 : f32 to vector<64x128xf32>
    %60 = arith.maximumf %58, %59 : vector<64x128xf32>
    %c0_41 = arith.constant 0 : index
    %c0_42 = arith.constant 0 : index
    %61 = vector.load %arg10[%c0_41, %c0_42] : memref<64x128xf32, #tpu.memory_space<vmem>>, vector<64x128xf32>
    tpu.vector_store %arg10[%c0_41, %c0_42], %60 {strides = array<i32>} : memref<64x128xf32, #tpu.memory_space<vmem>>, vector<64x128xf32>,
    %cst_43 = arith.constant 0.000000e+00 : f32
    %62 = vector.broadcast %cst_43 : f32 to vector<96x128xf32>
    %c0_44 = arith.constant 0 : index
    %c0_45 = arith.constant 0 : index
    %63 = vector.load %arg11[%c0_44, %c0_45] : memref<96x128xf32, #tpu.memory_space<vmem>>, vector<96x128xf32>
    tpu.vector_store %arg11[%c0_44, %c0_45], %62 {strides = array<i32>} : memref<96x128xf32, #tpu.memory_space<vmem>>, vector<96x128xf32>,
    %c0_46 = arith.constant 0 : index
    %c0_47 = arith.constant 0 : index
    %64 = vector.load %arg10[%c0_46, %c0_47] : memref<64x128xf32, #tpu.memory_space<vmem>>, vector<7x128xf32>
    %c10_48 = arith.constant 10 : index
    %c0_49 = arith.constant 0 : index
    %65 = vector.load %arg11[%c10_48, %c0_49] : memref<96x128xf32, #tpu.memory_space<vmem>>, vector<7x128xf32>
    tpu.vector_store %arg11[%c10_48, %c0_49], %64 {strides = array<i32>} : memref<96x128xf32, #tpu.memory_space<vmem>>, vector<7x128xf32>,
    %c9_50 = arith.constant 9 : index
    %c0_51 = arith.constant 0 : index
    %66 = vector.load %arg10[%c9_50, %c0_51] : memref<64x128xf32, #tpu.memory_space<vmem>>, vector<7x128xf32>
    %c19_52 = arith.constant 19 : index
    %c0_53 = arith.constant 0 : index
    %67 = vector.load %arg11[%c19_52, %c0_53] : memref<96x128xf32, #tpu.memory_space<vmem>>, vector<7x128xf32>
    tpu.vector_store %arg11[%c19_52, %c0_53], %66 {strides = array<i32>} : memref<96x128xf32, #tpu.memory_space<vmem>>, vector<7x128xf32>,
    %c18_54 = arith.constant 18 : index
    %c0_55 = arith.constant 0 : index
    %68 = vector.load %arg10[%c18_54, %c0_55] : memref<64x128xf32, #tpu.memory_space<vmem>>, vector<7x128xf32>
    %c28 = arith.constant 28 : index
    %c0_56 = arith.constant 0 : index
    %69 = vector.load %arg11[%c28, %c0_56] : memref<96x128xf32, #tpu.memory_space<vmem>>, vector<7x128xf32>
    tpu.vector_store %arg11[%c28, %c0_56], %68 {strides = array<i32>} : memref<96x128xf32, #tpu.memory_space<vmem>>, vector<7x128xf32>,
    %c27 = arith.constant 27 : index
    %c0_57 = arith.constant 0 : index
    %70 = vector.load %arg10[%c27, %c0_57] : memref<64x128xf32, #tpu.memory_space<vmem>>, vector<7x128xf32>
    %c37 = arith.constant 37 : index
    %c0_58 = arith.constant 0 : index
    %71 = vector.load %arg11[%c37, %c0_58] : memref<96x128xf32, #tpu.memory_space<vmem>>, vector<7x128xf32>
    tpu.vector_store %arg11[%c37, %c0_58], %70 {strides = array<i32>} : memref<96x128xf32, #tpu.memory_space<vmem>>, vector<7x128xf32>,
    %c36 = arith.constant 36 : index
    %c0_59 = arith.constant 0 : index
    %72 = vector.load %arg10[%c36, %c0_59] : memref<64x128xf32, #tpu.memory_space<vmem>>, vector<7x128xf32>
    %c46 = arith.constant 46 : index
    %c0_60 = arith.constant 0 : index
    %73 = vector.load %arg11[%c46, %c0_60] : memref<96x128xf32, #tpu.memory_space<vmem>>, vector<7x128xf32>
    tpu.vector_store %arg11[%c46, %c0_60], %72 {strides = array<i32>} : memref<96x128xf32, #tpu.memory_space<vmem>>, vector<7x128xf32>,
    %c45 = arith.constant 45 : index
    %c0_61 = arith.constant 0 : index
    %74 = vector.load %arg10[%c45, %c0_61] : memref<64x128xf32, #tpu.memory_space<vmem>>, vector<7x128xf32>
    %c55 = arith.constant 55 : index
    %c0_62 = arith.constant 0 : index
    %75 = vector.load %arg11[%c55, %c0_62] : memref<96x128xf32, #tpu.memory_space<vmem>>, vector<7x128xf32>
    tpu.vector_store %arg11[%c55, %c0_62], %74 {strides = array<i32>} : memref<96x128xf32, #tpu.memory_space<vmem>>, vector<7x128xf32>,
    %c54 = arith.constant 54 : index
    %c0_63 = arith.constant 0 : index
    %76 = vector.load %arg10[%c54, %c0_63] : memref<64x128xf32, #tpu.memory_space<vmem>>, vector<7x128xf32>
    %c64 = arith.constant 64 : index
    %c0_64 = arith.constant 0 : index
    %77 = vector.load %arg11[%c64, %c0_64] : memref<96x128xf32, #tpu.memory_space<vmem>>, vector<7x128xf32>
    tpu.vector_store %arg11[%c64, %c0_64], %76 {strides = array<i32>} : memref<96x128xf32, #tpu.memory_space<vmem>>, vector<7x128xf32>,
    %c0_65 = arith.constant 0 : index
    %c0_66 = arith.constant 0 : index
    %78 = vector.load %arg3[%c0_65, %c0_66] : memref<1152x128xbf16, #tpu.memory_space<vmem>>, vector<128x128xbf16>
    %c0_67 = arith.constant 0 : index
    %c0_68 = arith.constant 0 : index
    %79 = vector.load %arg11[%c0_67, %c0_68] : memref<96x128xf32, #tpu.memory_space<vmem>>, vector<72x128xf32>
    %80 = arith.truncf %79 : vector<72x128xf32> to vector<72x128xbf16>
    %cst_69 = arith.constant dense<0.000000e+00> : vector<72x128xf32>
    %81 = tpu.matmul %80, %78, %cst_69 {dimension_numbers = #tpu.dot_dimension_numbers<[1], [0], [0], [1], [0, 0, 1, 1], [], []>} : vector<72x128xbf16>, vector<128x128xbf16>, vector<72x128xf32> -> vector<72x128xf32>
    %c128_70 = arith.constant 128 : index
    %c0_71 = arith.constant 0 : index
    %82 = vector.load %arg3[%c128_70, %c0_71] : memref<1152x128xbf16, #tpu.memory_space<vmem>>, vector<128x128xbf16>
    %c1_72 = arith.constant 1 : index
    %c0_73 = arith.constant 0 : index
    %83 = vector.load %arg11[%c1_72, %c0_73] : memref<96x128xf32, #tpu.memory_space<vmem>>, vector<72x128xf32>
    %84 = arith.truncf %83 : vector<72x128xf32> to vector<72x128xbf16>
    %cst_74 = arith.constant dense<0.000000e+00> : vector<72x128xf32>
    %85 = tpu.matmul %84, %82, %cst_74 {dimension_numbers = #tpu.dot_dimension_numbers<[1], [0], [0], [1], [0, 0, 1, 1], [], []>} : vector<72x128xbf16>, vector<128x128xbf16>, vector<72x128xf32> -> vector<72x128xf32>
    %86 = arith.addf %81, %85 : vector<72x128xf32>
    %c256_75 = arith.constant 256 : index
    %c0_76 = arith.constant 0 : index
    %87 = vector.load %arg3[%c256_75, %c0_76] : memref<1152x128xbf16, #tpu.memory_space<vmem>>, vector<128x128xbf16>
    %c2_77 = arith.constant 2 : index
    %c0_78 = arith.constant 0 : index
    %88 = vector.load %arg11[%c2_77, %c0_78] : memref<96x128xf32, #tpu.memory_space<vmem>>, vector<72x128xf32>
    %89 = arith.truncf %88 : vector<72x128xf32> to vector<72x128xbf16>
    %cst_79 = arith.constant dense<0.000000e+00> : vector<72x128xf32>
    %90 = tpu.matmul %89, %87, %cst_79 {dimension_numbers = #tpu.dot_dimension_numbers<[1], [0], [0], [1], [0, 0, 1, 1], [], []>} : vector<72x128xbf16>, vector<128x128xbf16>, vector<72x128xf32> -> vector<72x128xf32>
    %91 = arith.addf %86, %90 : vector<72x128xf32>
    %c384_80 = arith.constant 384 : index
    %c0_81 = arith.constant 0 : index
    %92 = vector.load %arg3[%c384_80, %c0_81] : memref<1152x128xbf16, #tpu.memory_space<vmem>>, vector<128x128xbf16>
    %c9_82 = arith.constant 9 : index
    %c0_83 = arith.constant 0 : index
    %93 = vector.load %arg11[%c9_82, %c0_83] : memref<96x128xf32, #tpu.memory_space<vmem>>, vector<72x128xf32>
    %94 = arith.truncf %93 : vector<72x128xf32> to vector<72x128xbf16>
    %cst_84 = arith.constant dense<0.000000e+00> : vector<72x128xf32>
    %95 = tpu.matmul %94, %92, %cst_84 {dimension_numbers = #tpu.dot_dimension_numbers<[1], [0], [0], [1], [0, 0, 1, 1], [], []>} : vector<72x128xbf16>, vector<128x128xbf16>, vector<72x128xf32> -> vector<72x128xf32>
    %96 = arith.addf %91, %95 : vector<72x128xf32>
    %c512_85 = arith.constant 512 : index
    %c0_86 = arith.constant 0 : index
    %97 = vector.load %arg3[%c512_85, %c0_86] : memref<1152x128xbf16, #tpu.memory_space<vmem>>, vector<128x128xbf16>
    %c10_87 = arith.constant 10 : index
    %c0_88 = arith.constant 0 : index
    %98 = vector.load %arg11[%c10_87, %c0_88] : memref<96x128xf32, #tpu.memory_space<vmem>>, vector<72x128xf32>
    %99 = arith.truncf %98 : vector<72x128xf32> to vector<72x128xbf16>
    %cst_89 = arith.constant dense<0.000000e+00> : vector<72x128xf32>
    %100 = tpu.matmul %99, %97, %cst_89 {dimension_numbers = #tpu.dot_dimension_numbers<[1], [0], [0], [1], [0, 0, 1, 1], [], []>} : vector<72x128xbf16>, vector<128x128xbf16>, vector<72x128xf32> -> vector<72x128xf32>
    %101 = arith.addf %96, %100 : vector<72x128xf32>
    %c640_90 = arith.constant 640 : index
    %c0_91 = arith.constant 0 : index
    %102 = vector.load %arg3[%c640_90, %c0_91] : memref<1152x128xbf16, #tpu.memory_space<vmem>>, vector<128x128xbf16>
    %c11_92 = arith.constant 11 : index
    %c0_93 = arith.constant 0 : index
    %103 = vector.load %arg11[%c11_92, %c0_93] : memref<96x128xf32, #tpu.memory_space<vmem>>, vector<72x128xf32>
    %104 = arith.truncf %103 : vector<72x128xf32> to vector<72x128xbf16>
    %cst_94 = arith.constant dense<0.000000e+00> : vector<72x128xf32>
    %105 = tpu.matmul %104, %102, %cst_94 {dimension_numbers = #tpu.dot_dimension_numbers<[1], [0], [0], [1], [0, 0, 1, 1], [], []>} : vector<72x128xbf16>, vector<128x128xbf16>, vector<72x128xf32> -> vector<72x128xf32>
    %106 = arith.addf %101, %105 : vector<72x128xf32>
    %c768_95 = arith.constant 768 : index
    %c0_96 = arith.constant 0 : index
    %107 = vector.load %arg3[%c768_95, %c0_96] : memref<1152x128xbf16, #tpu.memory_space<vmem>>, vector<128x128xbf16>
    %c18_97 = arith.constant 18 : index
    %c0_98 = arith.constant 0 : index
    %108 = vector.load %arg11[%c18_97, %c0_98] : memref<96x128xf32, #tpu.memory_space<vmem>>, vector<72x128xf32>
    %109 = arith.truncf %108 : vector<72x128xf32> to vector<72x128xbf16>
    %cst_99 = arith.constant dense<0.000000e+00> : vector<72x128xf32>
    %110 = tpu.matmul %109, %107, %cst_99 {dimension_numbers = #tpu.dot_dimension_numbers<[1], [0], [0], [1], [0, 0, 1, 1], [], []>} : vector<72x128xbf16>, vector<128x128xbf16>, vector<72x128xf32> -> vector<72x128xf32>
    %111 = arith.addf %106, %110 : vector<72x128xf32>
    %c896_100 = arith.constant 896 : index
    %c0_101 = arith.constant 0 : index
    %112 = vector.load %arg3[%c896_100, %c0_101] : memref<1152x128xbf16, #tpu.memory_space<vmem>>, vector<128x128xbf16>
    %c19_102 = arith.constant 19 : index
    %c0_103 = arith.constant 0 : index
    %113 = vector.load %arg11[%c19_102, %c0_103] : memref<96x128xf32, #tpu.memory_space<vmem>>, vector<72x128xf32>
    %114 = arith.truncf %113 : vector<72x128xf32> to vector<72x128xbf16>
    %cst_104 = arith.constant dense<0.000000e+00> : vector<72x128xf32>
    %115 = tpu.matmul %114, %112, %cst_104 {dimension_numbers = #tpu.dot_dimension_numbers<[1], [0], [0], [1], [0, 0, 1, 1], [], []>} : vector<72x128xbf16>, vector<128x128xbf16>, vector<72x128xf32> -> vector<72x128xf32>
    %116 = arith.addf %111, %115 : vector<72x128xf32>
    %c1024_105 = arith.constant 1024 : index
    %c0_106 = arith.constant 0 : index
    %117 = vector.load %arg3[%c1024_105, %c0_106] : memref<1152x128xbf16, #tpu.memory_space<vmem>>, vector<128x128xbf16>
    %c20_107 = arith.constant 20 : index
    %c0_108 = arith.constant 0 : index
    %118 = vector.load %arg11[%c20_107, %c0_108] : memref<96x128xf32, #tpu.memory_space<vmem>>, vector<72x128xf32>
    %119 = arith.truncf %118 : vector<72x128xf32> to vector<72x128xbf16>
    %cst_109 = arith.constant dense<0.000000e+00> : vector<72x128xf32>
    %120 = tpu.matmul %119, %117, %cst_109 {dimension_numbers = #tpu.dot_dimension_numbers<[1], [0], [0], [1], [0, 0, 1, 1], [], []>} : vector<72x128xbf16>, vector<128x128xbf16>, vector<72x128xf32> -> vector<72x128xf32>
    %121 = arith.addf %116, %120 : vector<72x128xf32>
    %c2_110 = arith.constant 2 : index
    %c0_111 = arith.constant 0 : index
    %122 = vector.load %arg7[%c2_110, %c0_111] : memref<8x128xf32, #tpu.memory_space<vmem>>, vector<1x128xf32>
    %123 = vector.broadcast %122 : vector<1x128xf32> to vector<72x128xf32>
    %124 = arith.mulf %121, %123 : vector<72x128xf32>
    %c3 = arith.constant 3 : index
    %c0_112 = arith.constant 0 : index
    %125 = vector.load %arg7[%c3, %c0_112] : memref<8x128xf32, #tpu.memory_space<vmem>>, vector<1x128xf32>
    %126 = vector.broadcast %125 : vector<1x128xf32> to vector<72x128xf32>
    %127 = arith.addf %124, %126 : vector<72x128xf32>
    %cst_113 = arith.constant 0.000000e+00 : f32
    %128 = vector.broadcast %cst_113 : f32 to vector<72x128xf32>
    %129 = arith.maximumf %127, %128 : vector<72x128xf32>
    %c0_114 = arith.constant 0 : index
    %c0_115 = arith.constant 0 : index
    %130 = vector.load %arg12[%c0_114, %c0_115] : memref<72x128xf32, #tpu.memory_space<vmem>>, vector<72x128xf32>
    tpu.vector_store %arg12[%c0_114, %c0_115], %129 {strides = array<i32>} : memref<72x128xf32, #tpu.memory_space<vmem>>, vector<72x128xf32>,
    %c0_116 = arith.constant 0 : index
    %c0_117 = arith.constant 0 : index
    %131 = vector.load %arg4[%c0_116, %c0_117] : memref<1152x128xbf16, #tpu.memory_space<vmem>>, vector<128x128xbf16>
    %c0_118 = arith.constant 0 : index
    %c0_119 = arith.constant 0 : index
    %132 = vector.load %arg12[%c0_118, %c0_119] : memref<72x128xf32, #tpu.memory_space<vmem>>, vector<48x128xf32>
    %133 = arith.truncf %132 : vector<48x128xf32> to vector<48x128xbf16>
    %cst_120 = arith.constant dense<0.000000e+00> : vector<48x128xf32>
    %134 = tpu.matmul %133, %131, %cst_120 {dimension_numbers = #tpu.dot_dimension_numbers<[1], [0], [0], [1], [0, 0, 1, 1], [], []>} : vector<48x128xbf16>, vector<128x128xbf16>, vector<48x128xf32> -> vector<48x128xf32>
    %c128_121 = arith.constant 128 : index
    %c0_122 = arith.constant 0 : index
    %135 = vector.load %arg4[%c128_121, %c0_122] : memref<1152x128xbf16, #tpu.memory_space<vmem>>, vector<128x128xbf16>
    %c1_123 = arith.constant 1 : index
    %c0_124 = arith.constant 0 : index
    %136 = vector.load %arg12[%c1_123, %c0_124] : memref<72x128xf32, #tpu.memory_space<vmem>>, vector<48x128xf32>
    %137 = arith.truncf %136 : vector<48x128xf32> to vector<48x128xbf16>
    %cst_125 = arith.constant dense<0.000000e+00> : vector<48x128xf32>
    %138 = tpu.matmul %137, %135, %cst_125 {dimension_numbers = #tpu.dot_dimension_numbers<[1], [0], [0], [1], [0, 0, 1, 1], [], []>} : vector<48x128xbf16>, vector<128x128xbf16>, vector<48x128xf32> -> vector<48x128xf32>
    %139 = arith.addf %134, %138 : vector<48x128xf32>
    %c256_126 = arith.constant 256 : index
    %c0_127 = arith.constant 0 : index
    %140 = vector.load %arg4[%c256_126, %c0_127] : memref<1152x128xbf16, #tpu.memory_space<vmem>>, vector<128x128xbf16>
    %c2_128 = arith.constant 2 : index
    %c0_129 = arith.constant 0 : index
    %141 = vector.load %arg12[%c2_128, %c0_129] : memref<72x128xf32, #tpu.memory_space<vmem>>, vector<48x128xf32>
    %142 = arith.truncf %141 : vector<48x128xf32> to vector<48x128xbf16>
    %cst_130 = arith.constant dense<0.000000e+00> : vector<48x128xf32>
    %143 = tpu.matmul %142, %140, %cst_130 {dimension_numbers = #tpu.dot_dimension_numbers<[1], [0], [0], [1], [0, 0, 1, 1], [], []>} : vector<48x128xbf16>, vector<128x128xbf16>, vector<48x128xf32> -> vector<48x128xf32>
    %144 = arith.addf %139, %143 : vector<48x128xf32>
    %c384_131 = arith.constant 384 : index
    %c0_132 = arith.constant 0 : index
    %145 = vector.load %arg4[%c384_131, %c0_132] : memref<1152x128xbf16, #tpu.memory_space<vmem>>, vector<128x128xbf16>
    %c9_133 = arith.constant 9 : index
    %c0_134 = arith.constant 0 : index
    %146 = vector.load %arg12[%c9_133, %c0_134] : memref<72x128xf32, #tpu.memory_space<vmem>>, vector<48x128xf32>
    %147 = arith.truncf %146 : vector<48x128xf32> to vector<48x128xbf16>
    %cst_135 = arith.constant dense<0.000000e+00> : vector<48x128xf32>
    %148 = tpu.matmul %147, %145, %cst_135 {dimension_numbers = #tpu.dot_dimension_numbers<[1], [0], [0], [1], [0, 0, 1, 1], [], []>} : vector<48x128xbf16>, vector<128x128xbf16>, vector<48x128xf32> -> vector<48x128xf32>
    %149 = arith.addf %144, %148 : vector<48x128xf32>
    %c512_136 = arith.constant 512 : index
    %c0_137 = arith.constant 0 : index
    %150 = vector.load %arg4[%c512_136, %c0_137] : memref<1152x128xbf16, #tpu.memory_space<vmem>>, vector<128x128xbf16>
    %c10_138 = arith.constant 10 : index
    %c0_139 = arith.constant 0 : index
    %151 = vector.load %arg12[%c10_138, %c0_139] : memref<72x128xf32, #tpu.memory_space<vmem>>, vector<48x128xf32>
    %152 = arith.truncf %151 : vector<48x128xf32> to vector<48x128xbf16>
    %cst_140 = arith.constant dense<0.000000e+00> : vector<48x128xf32>
    %153 = tpu.matmul %152, %150, %cst_140 {dimension_numbers = #tpu.dot_dimension_numbers<[1], [0], [0], [1], [0, 0, 1, 1], [], []>} : vector<48x128xbf16>, vector<128x128xbf16>, vector<48x128xf32> -> vector<48x128xf32>
    %154 = arith.addf %149, %153 : vector<48x128xf32>
    %c640_141 = arith.constant 640 : index
    %c0_142 = arith.constant 0 : index
    %155 = vector.load %arg4[%c640_141, %c0_142] : memref<1152x128xbf16, #tpu.memory_space<vmem>>, vector<128x128xbf16>
    %c11_143 = arith.constant 11 : index
    %c0_144 = arith.constant 0 : index
    %156 = vector.load %arg12[%c11_143, %c0_144] : memref<72x128xf32, #tpu.memory_space<vmem>>, vector<48x128xf32>
    %157 = arith.truncf %156 : vector<48x128xf32> to vector<48x128xbf16>
    %cst_145 = arith.constant dense<0.000000e+00> : vector<48x128xf32>
    %158 = tpu.matmul %157, %155, %cst_145 {dimension_numbers = #tpu.dot_dimension_numbers<[1], [0], [0], [1], [0, 0, 1, 1], [], []>} : vector<48x128xbf16>, vector<128x128xbf16>, vector<48x128xf32> -> vector<48x128xf32>
    %159 = arith.addf %154, %158 : vector<48x128xf32>
    %c768_146 = arith.constant 768 : index
    %c0_147 = arith.constant 0 : index
    %160 = vector.load %arg4[%c768_146, %c0_147] : memref<1152x128xbf16, #tpu.memory_space<vmem>>, vector<128x128xbf16>
    %c18_148 = arith.constant 18 : index
    %c0_149 = arith.constant 0 : index
    %161 = vector.load %arg12[%c18_148, %c0_149] : memref<72x128xf32, #tpu.memory_space<vmem>>, vector<48x128xf32>
    %162 = arith.truncf %161 : vector<48x128xf32> to vector<48x128xbf16>
    %cst_150 = arith.constant dense<0.000000e+00> : vector<48x128xf32>
    %163 = tpu.matmul %162, %160, %cst_150 {dimension_numbers = #tpu.dot_dimension_numbers<[1], [0], [0], [1], [0, 0, 1, 1], [], []>} : vector<48x128xbf16>, vector<128x128xbf16>, vector<48x128xf32> -> vector<48x128xf32>
    %164 = arith.addf %159, %163 : vector<48x128xf32>
    %c896_151 = arith.constant 896 : index
    %c0_152 = arith.constant 0 : index
    %165 = vector.load %arg4[%c896_151, %c0_152] : memref<1152x128xbf16, #tpu.memory_space<vmem>>, vector<128x128xbf16>
    %c19_153 = arith.constant 19 : index
    %c0_154 = arith.constant 0 : index
    %166 = vector.load %arg12[%c19_153, %c0_154] : memref<72x128xf32, #tpu.memory_space<vmem>>, vector<48x128xf32>
    %167 = arith.truncf %166 : vector<48x128xf32> to vector<48x128xbf16>
    %cst_155 = arith.constant dense<0.000000e+00> : vector<48x128xf32>
    %168 = tpu.matmul %167, %165, %cst_155 {dimension_numbers = #tpu.dot_dimension_numbers<[1], [0], [0], [1], [0, 0, 1, 1], [], []>} : vector<48x128xbf16>, vector<128x128xbf16>, vector<48x128xf32> -> vector<48x128xf32>
    %169 = arith.addf %164, %168 : vector<48x128xf32>
    %c1024_156 = arith.constant 1024 : index
    %c0_157 = arith.constant 0 : index
    %170 = vector.load %arg4[%c1024_156, %c0_157] : memref<1152x128xbf16, #tpu.memory_space<vmem>>, vector<128x128xbf16>
    %c20_158 = arith.constant 20 : index
    %c0_159 = arith.constant 0 : index
    %171 = vector.load %arg12[%c20_158, %c0_159] : memref<72x128xf32, #tpu.memory_space<vmem>>, vector<48x128xf32>
    %172 = arith.truncf %171 : vector<48x128xf32> to vector<48x128xbf16>
    %cst_160 = arith.constant dense<0.000000e+00> : vector<48x128xf32>
    %173 = tpu.matmul %172, %170, %cst_160 {dimension_numbers = #tpu.dot_dimension_numbers<[1], [0], [0], [1], [0, 0, 1, 1], [], []>} : vector<48x128xbf16>, vector<128x128xbf16>, vector<48x128xf32> -> vector<48x128xf32>
    %174 = arith.addf %169, %173 : vector<48x128xf32>
    %c4 = arith.constant 4 : index
    %c0_161 = arith.constant 0 : index
    %175 = vector.load %arg7[%c4, %c0_161] : memref<8x128xf32, #tpu.memory_space<vmem>>, vector<1x128xf32>
    %176 = vector.broadcast %175 : vector<1x128xf32> to vector<48x128xf32>
    %177 = arith.mulf %174, %176 : vector<48x128xf32>
    %c5 = arith.constant 5 : index
    %c0_162 = arith.constant 0 : index
    %178 = vector.load %arg7[%c5, %c0_162] : memref<8x128xf32, #tpu.memory_space<vmem>>, vector<1x128xf32>
    %179 = vector.broadcast %178 : vector<1x128xf32> to vector<48x128xf32>
    %180 = arith.addf %177, %179 : vector<48x128xf32>
    %cst_163 = arith.constant 0.000000e+00 : f32
    %181 = vector.broadcast %cst_163 : f32 to vector<48x128xf32>
    %182 = arith.maximumf %180, %181 : vector<48x128xf32>
    %c0_164 = arith.constant 0 : index
    %c0_165 = arith.constant 0 : index
    %183 = vector.load %arg13[%c0_164, %c0_165] : memref<48x128xf32, #tpu.memory_space<vmem>>, vector<48x128xf32>
    tpu.vector_store %arg13[%c0_164, %c0_165], %182 {strides = array<i32>} : memref<48x128xf32, #tpu.memory_space<vmem>>, vector<48x128xf32>,
    %c0_166 = arith.constant 0 : index
    %c0_167 = arith.constant 0 : index
    %184 = vector.load %arg5[%c0_166, %c0_167] : memref<3200x512xbf16, #tpu.memory_space<vmem>>, vector<128x512xbf16>
    %c0_168 = arith.constant 0 : index
    %c0_169 = arith.constant 0 : index
    %185 = vector.load %arg13[%c0_168, %c0_169] : memref<48x128xf32, #tpu.memory_space<vmem>>, vector<8x128xf32>
    %186 = arith.truncf %185 : vector<8x128xf32> to vector<8x128xbf16>
    %cst_170 = arith.constant dense<0.000000e+00> : vector<8x512xf32>
    %187 = tpu.matmul %186, %184, %cst_170 {dimension_numbers = #tpu.dot_dimension_numbers<[1], [0], [0], [1], [0, 0, 1, 1], [], []>} : vector<8x128xbf16>, vector<128x512xbf16>, vector<8x512xf32> -> vector<8x512xf32>
    %c128_171 = arith.constant 128 : index
    %c0_172 = arith.constant 0 : index
    %188 = vector.load %arg5[%c128_171, %c0_172] : memref<3200x512xbf16, #tpu.memory_space<vmem>>, vector<128x512xbf16>
    %c1_173 = arith.constant 1 : index
    %c0_174 = arith.constant 0 : index
    %189 = vector.load %arg13[%c1_173, %c0_174] : memref<48x128xf32, #tpu.memory_space<vmem>>, vector<8x128xf32>
    %190 = arith.truncf %189 : vector<8x128xf32> to vector<8x128xbf16>
    %cst_175 = arith.constant dense<0.000000e+00> : vector<8x512xf32>
    %191 = tpu.matmul %190, %188, %cst_175 {dimension_numbers = #tpu.dot_dimension_numbers<[1], [0], [0], [1], [0, 0, 1, 1], [], []>} : vector<8x128xbf16>, vector<128x512xbf16>, vector<8x512xf32> -> vector<8x512xf32>
    %192 = arith.addf %187, %191 : vector<8x512xf32>
    %c256_176 = arith.constant 256 : index
    %c0_177 = arith.constant 0 : index
    %193 = vector.load %arg5[%c256_176, %c0_177] : memref<3200x512xbf16, #tpu.memory_space<vmem>>, vector<128x512xbf16>
    %c2_178 = arith.constant 2 : index
    %c0_179 = arith.constant 0 : index
    %194 = vector.load %arg13[%c2_178, %c0_179] : memref<48x128xf32, #tpu.memory_space<vmem>>, vector<8x128xf32>
    %195 = arith.truncf %194 : vector<8x128xf32> to vector<8x128xbf16>
    %cst_180 = arith.constant dense<0.000000e+00> : vector<8x512xf32>
    %196 = tpu.matmul %195, %193, %cst_180 {dimension_numbers = #tpu.dot_dimension_numbers<[1], [0], [0], [1], [0, 0, 1, 1], [], []>} : vector<8x128xbf16>, vector<128x512xbf16>, vector<8x512xf32> -> vector<8x512xf32>
    %197 = arith.addf %192, %196 : vector<8x512xf32>
    %c384_181 = arith.constant 384 : index
    %c0_182 = arith.constant 0 : index
    %198 = vector.load %arg5[%c384_181, %c0_182] : memref<3200x512xbf16, #tpu.memory_space<vmem>>, vector<128x512xbf16>
    %c3_183 = arith.constant 3 : index
    %c0_184 = arith.constant 0 : index
    %199 = vector.load %arg13[%c3_183, %c0_184] : memref<48x128xf32, #tpu.memory_space<vmem>>, vector<8x128xf32>
    %200 = arith.truncf %199 : vector<8x128xf32> to vector<8x128xbf16>
    %cst_185 = arith.constant dense<0.000000e+00> : vector<8x512xf32>
    %201 = tpu.matmul %200, %198, %cst_185 {dimension_numbers = #tpu.dot_dimension_numbers<[1], [0], [0], [1], [0, 0, 1, 1], [], []>} : vector<8x128xbf16>, vector<128x512xbf16>, vector<8x512xf32> -> vector<8x512xf32>
    %202 = arith.addf %197, %201 : vector<8x512xf32>
    %c512_186 = arith.constant 512 : index
    %c0_187 = arith.constant 0 : index
    %203 = vector.load %arg5[%c512_186, %c0_187] : memref<3200x512xbf16, #tpu.memory_space<vmem>>, vector<128x512xbf16>
    %c4_188 = arith.constant 4 : index
    %c0_189 = arith.constant 0 : index
    %204 = vector.load %arg13[%c4_188, %c0_189] : memref<48x128xf32, #tpu.memory_space<vmem>>, vector<8x128xf32>
    %205 = arith.truncf %204 : vector<8x128xf32> to vector<8x128xbf16>
    %cst_190 = arith.constant dense<0.000000e+00> : vector<8x512xf32>
    %206 = tpu.matmul %205, %203, %cst_190 {dimension_numbers = #tpu.dot_dimension_numbers<[1], [0], [0], [1], [0, 0, 1, 1], [], []>} : vector<8x128xbf16>, vector<128x512xbf16>, vector<8x512xf32> -> vector<8x512xf32>
    %207 = arith.addf %202, %206 : vector<8x512xf32>
    %c640_191 = arith.constant 640 : index
    %c0_192 = arith.constant 0 : index
    %208 = vector.load %arg5[%c640_191, %c0_192] : memref<3200x512xbf16, #tpu.memory_space<vmem>>, vector<128x512xbf16>
    %c9_193 = arith.constant 9 : index
    %c0_194 = arith.constant 0 : index
    %209 = vector.load %arg13[%c9_193, %c0_194] : memref<48x128xf32, #tpu.memory_space<vmem>>, vector<8x128xf32>
    %210 = arith.truncf %209 : vector<8x128xf32> to vector<8x128xbf16>
    %cst_195 = arith.constant dense<0.000000e+00> : vector<8x512xf32>
    %211 = tpu.matmul %210, %208, %cst_195 {dimension_numbers = #tpu.dot_dimension_numbers<[1], [0], [0], [1], [0, 0, 1, 1], [], []>} : vector<8x128xbf16>, vector<128x512xbf16>, vector<8x512xf32> -> vector<8x512xf32>
    %212 = arith.addf %207, %211 : vector<8x512xf32>
    %c768_196 = arith.constant 768 : index
    %c0_197 = arith.constant 0 : index
    %213 = vector.load %arg5[%c768_196, %c0_197] : memref<3200x512xbf16, #tpu.memory_space<vmem>>, vector<128x512xbf16>
    %c10_198 = arith.constant 10 : index
    %c0_199 = arith.constant 0 : index
    %214 = vector.load %arg13[%c10_198, %c0_199] : memref<48x128xf32, #tpu.memory_space<vmem>>, vector<8x128xf32>
    %215 = arith.truncf %214 : vector<8x128xf32> to vector<8x128xbf16>
    %cst_200 = arith.constant dense<0.000000e+00> : vector<8x512xf32>
    %216 = tpu.matmul %215, %213, %cst_200 {dimension_numbers = #tpu.dot_dimension_numbers<[1], [0], [0], [1], [0, 0, 1, 1], [], []>} : vector<8x128xbf16>, vector<128x512xbf16>, vector<8x512xf32> -> vector<8x512xf32>
    %217 = arith.addf %212, %216 : vector<8x512xf32>
    %c896_201 = arith.constant 896 : index
    %c0_202 = arith.constant 0 : index
    %218 = vector.load %arg5[%c896_201, %c0_202] : memref<3200x512xbf16, #tpu.memory_space<vmem>>, vector<128x512xbf16>
    %c11_203 = arith.constant 11 : index
    %c0_204 = arith.constant 0 : index
    %219 = vector.load %arg13[%c11_203, %c0_204] : memref<48x128xf32, #tpu.memory_space<vmem>>, vector<8x128xf32>
    %220 = arith.truncf %219 : vector<8x128xf32> to vector<8x128xbf16>
    %cst_205 = arith.constant dense<0.000000e+00> : vector<8x512xf32>
    %221 = tpu.matmul %220, %218, %cst_205 {dimension_numbers = #tpu.dot_dimension_numbers<[1], [0], [0], [1], [0, 0, 1, 1], [], []>} : vector<8x128xbf16>, vector<128x512xbf16>, vector<8x512xf32> -> vector<8x512xf32>
    %222 = arith.addf %217, %221 : vector<8x512xf32>
    %c1024_206 = arith.constant 1024 : index
    %c0_207 = arith.constant 0 : index
    %223 = vector.load %arg5[%c1024_206, %c0_207] : memref<3200x512xbf16, #tpu.memory_space<vmem>>, vector<128x512xbf16>
    %c12 = arith.constant 12 : index
    %c0_208 = arith.constant 0 : index
    %224 = vector.load %arg13[%c12, %c0_208] : memref<48x128xf32, #tpu.memory_space<vmem>>, vector<8x128xf32>
    %225 = arith.truncf %224 : vector<8x128xf32> to vector<8x128xbf16>
    %cst_209 = arith.constant dense<0.000000e+00> : vector<8x512xf32>
    %226 = tpu.matmul %225, %223, %cst_209 {dimension_numbers = #tpu.dot_dimension_numbers<[1], [0], [0], [1], [0, 0, 1, 1], [], []>} : vector<8x128xbf16>, vector<128x512xbf16>, vector<8x512xf32> -> vector<8x512xf32>
    %227 = arith.addf %222, %226 : vector<8x512xf32>
    %c1152 = arith.constant 1152 : index
    %c0_210 = arith.constant 0 : index
    %228 = vector.load %arg5[%c1152, %c0_210] : memref<3200x512xbf16, #tpu.memory_space<vmem>>, vector<128x512xbf16>
    %c13 = arith.constant 13 : index
    %c0_211 = arith.constant 0 : index
    %229 = vector.load %arg13[%c13, %c0_211] : memref<48x128xf32, #tpu.memory_space<vmem>>, vector<8x128xf32>
    %230 = arith.truncf %229 : vector<8x128xf32> to vector<8x128xbf16>
    %cst_212 = arith.constant dense<0.000000e+00> : vector<8x512xf32>
    %231 = tpu.matmul %230, %228, %cst_212 {dimension_numbers = #tpu.dot_dimension_numbers<[1], [0], [0], [1], [0, 0, 1, 1], [], []>} : vector<8x128xbf16>, vector<128x512xbf16>, vector<8x512xf32> -> vector<8x512xf32>
    %232 = arith.addf %227, %231 : vector<8x512xf32>
    %c1280 = arith.constant 1280 : index
    %c0_213 = arith.constant 0 : index
    %233 = vector.load %arg5[%c1280, %c0_213] : memref<3200x512xbf16, #tpu.memory_space<vmem>>, vector<128x512xbf16>
    %c18_214 = arith.constant 18 : index
    %c0_215 = arith.constant 0 : index
    %234 = vector.load %arg13[%c18_214, %c0_215] : memref<48x128xf32, #tpu.memory_space<vmem>>, vector<8x128xf32>
    %235 = arith.truncf %234 : vector<8x128xf32> to vector<8x128xbf16>
    %cst_216 = arith.constant dense<0.000000e+00> : vector<8x512xf32>
    %236 = tpu.matmul %235, %233, %cst_216 {dimension_numbers = #tpu.dot_dimension_numbers<[1], [0], [0], [1], [0, 0, 1, 1], [], []>} : vector<8x128xbf16>, vector<128x512xbf16>, vector<8x512xf32> -> vector<8x512xf32>
    %237 = arith.addf %232, %236 : vector<8x512xf32>
    %c1408 = arith.constant 1408 : index
    %c0_217 = arith.constant 0 : index
    %238 = vector.load %arg5[%c1408, %c0_217] : memref<3200x512xbf16, #tpu.memory_space<vmem>>, vector<128x512xbf16>
    %c19_218 = arith.constant 19 : index
    %c0_219 = arith.constant 0 : index
    %239 = vector.load %arg13[%c19_218, %c0_219] : memref<48x128xf32, #tpu.memory_space<vmem>>, vector<8x128xf32>
    %240 = arith.truncf %239 : vector<8x128xf32> to vector<8x128xbf16>
    %cst_220 = arith.constant dense<0.000000e+00> : vector<8x512xf32>
    %241 = tpu.matmul %240, %238, %cst_220 {dimension_numbers = #tpu.dot_dimension_numbers<[1], [0], [0], [1], [0, 0, 1, 1], [], []>} : vector<8x128xbf16>, vector<128x512xbf16>, vector<8x512xf32> -> vector<8x512xf32>
    %242 = arith.addf %237, %241 : vector<8x512xf32>
    %c1536 = arith.constant 1536 : index
    %c0_221 = arith.constant 0 : index
    %243 = vector.load %arg5[%c1536, %c0_221] : memref<3200x512xbf16, #tpu.memory_space<vmem>>, vector<128x512xbf16>
    %c20_222 = arith.constant 20 : index
    %c0_223 = arith.constant 0 : index
    %244 = vector.load %arg13[%c20_222, %c0_223] : memref<48x128xf32, #tpu.memory_space<vmem>>, vector<8x128xf32>
    %245 = arith.truncf %244 : vector<8x128xf32> to vector<8x128xbf16>
    %cst_224 = arith.constant dense<0.000000e+00> : vector<8x512xf32>
    %246 = tpu.matmul %245, %243, %cst_224 {dimension_numbers = #tpu.dot_dimension_numbers<[1], [0], [0], [1], [0, 0, 1, 1], [], []>} : vector<8x128xbf16>, vector<128x512xbf16>, vector<8x512xf32> -> vector<8x512xf32>
    %247 = arith.addf %242, %246 : vector<8x512xf32>
    %c1664 = arith.constant 1664 : index
    %c0_225 = arith.constant 0 : index
    %248 = vector.load %arg5[%c1664, %c0_225] : memref<3200x512xbf16, #tpu.memory_space<vmem>>, vector<128x512xbf16>
    %c21 = arith.constant 21 : index
    %c0_226 = arith.constant 0 : index
    %249 = vector.load %arg13[%c21, %c0_226] : memref<48x128xf32, #tpu.memory_space<vmem>>, vector<8x128xf32>
    %250 = arith.truncf %249 : vector<8x128xf32> to vector<8x128xbf16>
    %cst_227 = arith.constant dense<0.000000e+00> : vector<8x512xf32>
    %251 = tpu.matmul %250, %248, %cst_227 {dimension_numbers = #tpu.dot_dimension_numbers<[1], [0], [0], [1], [0, 0, 1, 1], [], []>} : vector<8x128xbf16>, vector<128x512xbf16>, vector<8x512xf32> -> vector<8x512xf32>
    %252 = arith.addf %247, %251 : vector<8x512xf32>
    %c1792 = arith.constant 1792 : index
    %c0_228 = arith.constant 0 : index
    %253 = vector.load %arg5[%c1792, %c0_228] : memref<3200x512xbf16, #tpu.memory_space<vmem>>, vector<128x512xbf16>
    %c22 = arith.constant 22 : index
    %c0_229 = arith.constant 0 : index
    %254 = vector.load %arg13[%c22, %c0_229] : memref<48x128xf32, #tpu.memory_space<vmem>>, vector<8x128xf32>
    %255 = arith.truncf %254 : vector<8x128xf32> to vector<8x128xbf16>
    %cst_230 = arith.constant dense<0.000000e+00> : vector<8x512xf32>
    %256 = tpu.matmul %255, %253, %cst_230 {dimension_numbers = #tpu.dot_dimension_numbers<[1], [0], [0], [1], [0, 0, 1, 1], [], []>} : vector<8x128xbf16>, vector<128x512xbf16>, vector<8x512xf32> -> vector<8x512xf32>
    %257 = arith.addf %252, %256 : vector<8x512xf32>
    %c1920 = arith.constant 1920 : index
    %c0_231 = arith.constant 0 : index
    %258 = vector.load %arg5[%c1920, %c0_231] : memref<3200x512xbf16, #tpu.memory_space<vmem>>, vector<128x512xbf16>
    %c27_232 = arith.constant 27 : index
    %c0_233 = arith.constant 0 : index
    %259 = vector.load %arg13[%c27_232, %c0_233] : memref<48x128xf32, #tpu.memory_space<vmem>>, vector<8x128xf32>
    %260 = arith.truncf %259 : vector<8x128xf32> to vector<8x128xbf16>
    %cst_234 = arith.constant dense<0.000000e+00> : vector<8x512xf32>
    %261 = tpu.matmul %260, %258, %cst_234 {dimension_numbers = #tpu.dot_dimension_numbers<[1], [0], [0], [1], [0, 0, 1, 1], [], []>} : vector<8x128xbf16>, vector<128x512xbf16>, vector<8x512xf32> -> vector<8x512xf32>
    %262 = arith.addf %257, %261 : vector<8x512xf32>
    %c2048 = arith.constant 2048 : index
    %c0_235 = arith.constant 0 : index
    %263 = vector.load %arg5[%c2048, %c0_235] : memref<3200x512xbf16, #tpu.memory_space<vmem>>, vector<128x512xbf16>
    %c28_236 = arith.constant 28 : index
    %c0_237 = arith.constant 0 : index
    %264 = vector.load %arg13[%c28_236, %c0_237] : memref<48x128xf32, #tpu.memory_space<vmem>>, vector<8x128xf32>
    %265 = arith.truncf %264 : vector<8x128xf32> to vector<8x128xbf16>
    %cst_238 = arith.constant dense<0.000000e+00> : vector<8x512xf32>
    %266 = tpu.matmul %265, %263, %cst_238 {dimension_numbers = #tpu.dot_dimension_numbers<[1], [0], [0], [1], [0, 0, 1, 1], [], []>} : vector<8x128xbf16>, vector<128x512xbf16>, vector<8x512xf32> -> vector<8x512xf32>
    %267 = arith.addf %262, %266 : vector<8x512xf32>
    %c2176 = arith.constant 2176 : index
    %c0_239 = arith.constant 0 : index
    %268 = vector.load %arg5[%c2176, %c0_239] : memref<3200x512xbf16, #tpu.memory_space<vmem>>, vector<128x512xbf16>
    %c29 = arith.constant 29 : index
    %c0_240 = arith.constant 0 : index
    %269 = vector.load %arg13[%c29, %c0_240] : memref<48x128xf32, #tpu.memory_space<vmem>>, vector<8x128xf32>
    %270 = arith.truncf %269 : vector<8x128xf32> to vector<8x128xbf16>
    %cst_241 = arith.constant dense<0.000000e+00> : vector<8x512xf32>
    %271 = tpu.matmul %270, %268, %cst_241 {dimension_numbers = #tpu.dot_dimension_numbers<[1], [0], [0], [1], [0, 0, 1, 1], [], []>} : vector<8x128xbf16>, vector<128x512xbf16>, vector<8x512xf32> -> vector<8x512xf32>
    %272 = arith.addf %267, %271 : vector<8x512xf32>
    %c2304 = arith.constant 2304 : index
    %c0_242 = arith.constant 0 : index
    %273 = vector.load %arg5[%c2304, %c0_242] : memref<3200x512xbf16, #tpu.memory_space<vmem>>, vector<128x512xbf16>
    %c30 = arith.constant 30 : index
    %c0_243 = arith.constant 0 : index
    %274 = vector.load %arg13[%c30, %c0_243] : memref<48x128xf32, #tpu.memory_space<vmem>>, vector<8x128xf32>
    %275 = arith.truncf %274 : vector<8x128xf32> to vector<8x128xbf16>
    %cst_244 = arith.constant dense<0.000000e+00> : vector<8x512xf32>
    %276 = tpu.matmul %275, %273, %cst_244 {dimension_numbers = #tpu.dot_dimension_numbers<[1], [0], [0], [1], [0, 0, 1, 1], [], []>} : vector<8x128xbf16>, vector<128x512xbf16>, vector<8x512xf32> -> vector<8x512xf32>
    %277 = arith.addf %272, %276 : vector<8x512xf32>
    %c2432 = arith.constant 2432 : index
    %c0_245 = arith.constant 0 : index
    %278 = vector.load %arg5[%c2432, %c0_245] : memref<3200x512xbf16, #tpu.memory_space<vmem>>, vector<128x512xbf16>
    %c31 = arith.constant 31 : index
    %c0_246 = arith.constant 0 : index
    %279 = vector.load %arg13[%c31, %c0_246] : memref<48x128xf32, #tpu.memory_space<vmem>>, vector<8x128xf32>
    %280 = arith.truncf %279 : vector<8x128xf32> to vector<8x128xbf16>
    %cst_247 = arith.constant dense<0.000000e+00> : vector<8x512xf32>
    %281 = tpu.matmul %280, %278, %cst_247 {dimension_numbers = #tpu.dot_dimension_numbers<[1], [0], [0], [1], [0, 0, 1, 1], [], []>} : vector<8x128xbf16>, vector<128x512xbf16>, vector<8x512xf32> -> vector<8x512xf32>
    %282 = arith.addf %277, %281 : vector<8x512xf32>
    %c2560 = arith.constant 2560 : index
    %c0_248 = arith.constant 0 : index
    %283 = vector.load %arg5[%c2560, %c0_248] : memref<3200x512xbf16, #tpu.memory_space<vmem>>, vector<128x512xbf16>
    %c36_249 = arith.constant 36 : index
    %c0_250 = arith.constant 0 : index
    %284 = vector.load %arg13[%c36_249, %c0_250] : memref<48x128xf32, #tpu.memory_space<vmem>>, vector<8x128xf32>
    %285 = arith.truncf %284 : vector<8x128xf32> to vector<8x128xbf16>
    %cst_251 = arith.constant dense<0.000000e+00> : vector<8x512xf32>
    %286 = tpu.matmul %285, %283, %cst_251 {dimension_numbers = #tpu.dot_dimension_numbers<[1], [0], [0], [1], [0, 0, 1, 1], [], []>} : vector<8x128xbf16>, vector<128x512xbf16>, vector<8x512xf32> -> vector<8x512xf32>
    %287 = arith.addf %282, %286 : vector<8x512xf32>
    %c2688 = arith.constant 2688 : index
    %c0_252 = arith.constant 0 : index
    %288 = vector.load %arg5[%c2688, %c0_252] : memref<3200x512xbf16, #tpu.memory_space<vmem>>, vector<128x512xbf16>
    %c37_253 = arith.constant 37 : index
    %c0_254 = arith.constant 0 : index
    %289 = vector.load %arg13[%c37_253, %c0_254] : memref<48x128xf32, #tpu.memory_space<vmem>>, vector<8x128xf32>
    %290 = arith.truncf %289 : vector<8x128xf32> to vector<8x128xbf16>
    %cst_255 = arith.constant dense<0.000000e+00> : vector<8x512xf32>
    %291 = tpu.matmul %290, %288, %cst_255 {dimension_numbers = #tpu.dot_dimension_numbers<[1], [0], [0], [1], [0, 0, 1, 1], [], []>} : vector<8x128xbf16>, vector<128x512xbf16>, vector<8x512xf32> -> vector<8x512xf32>
    %292 = arith.addf %287, %291 : vector<8x512xf32>
    %c2816 = arith.constant 2816 : index
    %c0_256 = arith.constant 0 : index
    %293 = vector.load %arg5[%c2816, %c0_256] : memref<3200x512xbf16, #tpu.memory_space<vmem>>, vector<128x512xbf16>
    %c38 = arith.constant 38 : index
    %c0_257 = arith.constant 0 : index
    %294 = vector.load %arg13[%c38, %c0_257] : memref<48x128xf32, #tpu.memory_space<vmem>>, vector<8x128xf32>
    %295 = arith.truncf %294 : vector<8x128xf32> to vector<8x128xbf16>
    %cst_258 = arith.constant dense<0.000000e+00> : vector<8x512xf32>
    %296 = tpu.matmul %295, %293, %cst_258 {dimension_numbers = #tpu.dot_dimension_numbers<[1], [0], [0], [1], [0, 0, 1, 1], [], []>} : vector<8x128xbf16>, vector<128x512xbf16>, vector<8x512xf32> -> vector<8x512xf32>
    %297 = arith.addf %292, %296 : vector<8x512xf32>
    %c2944 = arith.constant 2944 : index
    %c0_259 = arith.constant 0 : index
    %298 = vector.load %arg5[%c2944, %c0_259] : memref<3200x512xbf16, #tpu.memory_space<vmem>>, vector<128x512xbf16>
    %c39 = arith.constant 39 : index
    %c0_260 = arith.constant 0 : index
    %299 = vector.load %arg13[%c39, %c0_260] : memref<48x128xf32, #tpu.memory_space<vmem>>, vector<8x128xf32>
    %300 = arith.truncf %299 : vector<8x128xf32> to vector<8x128xbf16>
    %cst_261 = arith.constant dense<0.000000e+00> : vector<8x512xf32>
    %301 = tpu.matmul %300, %298, %cst_261 {dimension_numbers = #tpu.dot_dimension_numbers<[1], [0], [0], [1], [0, 0, 1, 1], [], []>} : vector<8x128xbf16>, vector<128x512xbf16>, vector<8x512xf32> -> vector<8x512xf32>
    %302 = arith.addf %297, %301 : vector<8x512xf32>
    %c3072 = arith.constant 3072 : index
    %c0_262 = arith.constant 0 : index
    %303 = vector.load %arg5[%c3072, %c0_262] : memref<3200x512xbf16, #tpu.memory_space<vmem>>, vector<128x512xbf16>
    %c40 = arith.constant 40 : index
    %c0_263 = arith.constant 0 : index
    %304 = vector.load %arg13[%c40, %c0_263] : memref<48x128xf32, #tpu.memory_space<vmem>>, vector<8x128xf32>
    %305 = arith.truncf %304 : vector<8x128xf32> to vector<8x128xbf16>
    %cst_264 = arith.constant dense<0.000000e+00> : vector<8x512xf32>
    %306 = tpu.matmul %305, %303, %cst_264 {dimension_numbers = #tpu.dot_dimension_numbers<[1], [0], [0], [1], [0, 0, 1, 1], [], []>} : vector<8x128xbf16>, vector<128x512xbf16>, vector<8x512xf32> -> vector<8x512xf32>
    %307 = arith.addf %302, %306 : vector<8x512xf32>
    %c0_265 = arith.constant 0 : index
    %c0_266 = arith.constant 0 : index
    %308 = vector.load %arg8[%c0_265, %c0_266] : memref<2x512xf32, #tpu.memory_space<vmem>>, vector<1x512xf32>
    %309 = vector.broadcast %308 : vector<1x512xf32> to vector<8x512xf32>
    %310 = arith.mulf %307, %309 : vector<8x512xf32>
    %c1_267 = arith.constant 1 : index
    %c0_268 = arith.constant 0 : index
    %311 = vector.load %arg8[%c1_267, %c0_268] : memref<2x512xf32, #tpu.memory_space<vmem>>, vector<1x512xf32>
    %312 = vector.broadcast %311 : vector<1x512xf32> to vector<8x512xf32>
    %313 = arith.addf %310, %312 : vector<8x512xf32>
    %cst_269 = arith.constant 0.000000e+00 : f32
    %314 = vector.broadcast %cst_269 : f32 to vector<8x512xf32>
    %315 = arith.maximumf %313, %314 : vector<8x512xf32>
    %316 = arith.truncf %315 : vector<8x512xf32> to vector<8x512xbf16>
    %c0_270 = arith.constant 0 : index
    %c0_271 = arith.constant 0 : index
    %317 = vector.load %arg6[%c0_270, %c0_271] : memref<512x128xbf16, #tpu.memory_space<vmem>>, vector<512x128xbf16>
    %cst_272 = arith.constant dense<0.000000e+00> : vector<8x128xf32>
    %318 = tpu.matmul %316, %317, %cst_272 {dimension_numbers = #tpu.dot_dimension_numbers<[1], [0], [0], [1], [0, 0, 1, 1], [], []>} : vector<8x512xbf16>, vector<512x128xbf16>, vector<8x128xf32> -> vector<8x128xf32>
    %c6 = arith.constant 6 : index
    %c0_273 = arith.constant 0 : index
    %319 = vector.load %arg7[%c6, %c0_273] : memref<8x128xf32, #tpu.memory_space<vmem>>, vector<1x128xf32>
    %320 = vector.broadcast %319 : vector<1x128xf32> to vector<8x128xf32>
    %321 = arith.addf %318, %320 : vector<8x128xf32>
    %c0_274 = arith.constant 0 : index
    %c0_275 = arith.constant 0 : index
    %c0_276 = arith.constant 0 : index
    %322 = vector.load %arg9[%c0_274, %c0_275, %c0_276] : memref<1x8x128xf32, #tpu.memory_space<vmem>>, vector<1x8x128xf32>
    %323 = vector.shape_cast %322 : vector<1x8x128xf32> to vector<8x128xf32>
    %324 = vector.shape_cast %321 : vector<8x128xf32> to vector<1x8x128xf32>
    tpu.vector_store %arg9[%c0_274, %c0_275, %c0_276], %324 {strides = array<i32>} : memref<1x8x128xf32, #tpu.memory_space<vmem>>, vector<1x8x128xf32>,
    return
  }
  func.func @transform_0(%arg0: i32) -> (i32, i32, i32) {
    %c0_i32 = arith.constant 0 : i32
    %c0_i32_0 = arith.constant 0 : i32
    %c0_i32_1 = arith.constant 0 : i32
    return %arg0, %c0_i32, %c0_i32_0 : i32, i32, i32
  }
  func.func @transform_1(%arg0: i32) -> (i32, i32) {
    %c0_i32 = arith.constant 0 : i32
    %c0_i32_0 = arith.constant 0 : i32
    %c0_i32_1 = arith.constant 0 : i32
    return %c0_i32, %c0_i32_0 : i32, i32
  }
  func.func @transform_2(%arg0: i32) -> (i32, i32) {
    %c0_i32 = arith.constant 0 : i32
    %c0_i32_0 = arith.constant 0 : i32
    %c0_i32_1 = arith.constant 0 : i32
    return %c0_i32, %c0_i32_0 : i32, i32
  }
  func.func @transform_3(%arg0: i32) -> (i32, i32) {
    %c0_i32 = arith.constant 0 : i32
    %c0_i32_0 = arith.constant 0 : i32
    %c0_i32_1 = arith.constant 0 : i32
    return %c0_i32, %c0_i32_0 : i32, i32
  }
  func.func @transform_4(%arg0: i32) -> (i32, i32) {
    %c0_i32 = arith.constant 0 : i32
    %c0_i32_0 = arith.constant 0 : i32
    %c0_i32_1 = arith.constant 0 : i32
    return %c0_i32, %c0_i32_0 : i32, i32
  }
  func.func @transform_5(%arg0: i32) -> (i32, i32) {
    %c0_i32 = arith.constant 0 : i32
    %c0_i32_0 = arith.constant 0 : i32
    %c0_i32_1 = arith.constant 0 : i32
    return %c0_i32, %c0_i32_0 : i32, i32
  }
  func.func @transform_6(%arg0: i32) -> (i32, i32) {
    %c0_i32 = arith.constant 0 : i32
    %c0_i32_0 = arith.constant 0 : i32
    %c0_i32_1 = arith.constant 0 : i32
    return %c0_i32, %c0_i32_0 : i32, i32
  }
  func.func @transform_7(%arg0: i32) -> (i32, i32) {
    %c0_i32 = arith.constant 0 : i32
    %c0_i32_0 = arith.constant 0 : i32
    %c0_i32_1 = arith.constant 0 : i32
    return %c0_i32, %c0_i32_0 : i32, i32
  }
  func.func @transform_8(%arg0: i32) -> (i32, i32, i32) {
    %c0_i32 = arith.constant 0 : i32
    %c0_i32_0 = arith.constant 0 : i32
    %c0_i32_1 = arith.constant 0 : i32
    return %arg0, %c0_i32, %c0_i32_0 : i32, i32, i32
  }
}

</mosaic_0001>

<bundles_post_ra>
// kernel: convnet8_forward.4
= control target key start
LH: loop header
LB: loop body
LE: loop exit
PB: predicated region body
PF: predicated region fallthrough
CT: control target
= control target key end

     0   :  { %s3098_s15 = smov 0   ;;  %s4030_s0 = inlined_call_operand.vmem [shape: bf16[2,1312,128], index: 0, kind: input, shape index: {}]   ;;  %s4031_s1 = inlined_call_operand.vmem [shape: bf16[128,128], index: 1, kind: input, shape index: {}]   ;;  %s4032_s2 = inlined_call_operand.vmem [shape: f32[1,128], index: 2, kind: input, shape index: {}]   ;;  %s4033_s3 = inlined_call_operand.vmem [shape: f32[1,128], index: 3, kind: input, shape index: {}]   ;;  %s4034_s4 = inlined_call_operand.vmem [shape: bf16[2,328,128], index: 4, kind: output, shape index: {}]  }
   0x1 LB: > { %s2375_s16 = sadd.s32 4294967295, %s3071_s15   ;;  %p2379_p0 = scmp.ge.s32.totalorder %s3071_s15, 1  ;;  %s3071_s15 = sphi %s3098_s15, %s14_s15  }
   0x2   : > { %p162_p1 = scmp.lt.s32.totalorder %s3071_s15, 3 }
   0x4   : > { %p163_p2 = pnand %p2379_p0, %p162_p1 }
   0x6   : > { %166 = sbr.rel (%p163_p2) target bundleno = 439 (0x1b7), region = 36 }
   0xd   : > { %v2973_v0 = vld [vmem:[%s4031_s1] sm:$0xff]   ;;  %p188_p3 = scmp.lt.s32.totalorder %s2375_s16, 1  ;;  %v2974_v1 = vld [vmem:[%s4031_s1 + $0x8] sm:$0xff]   ;;  %v2975_v2 = vld [vmem:[%s4031_s1 + $0x10] sm:$0xff]  }
   0xe   : > { %2767 = vmatprep.subr.bf16.mxu0 %v2973_v0  ;;  %2947 = vmatprep.subr.bf16.mxu1 %v2973_v0  ;;  %v2976_v3 = vld [vmem:[%s4031_s1 + $0x18] sm:$0xff]   ;;  %v2977_v6 = vld [vmem:[%s4031_s1 + $0x20] sm:$0xff]   ;;  %v2978_v7 = vld [vmem:[%s4031_s1 + $0x28] sm:$0xff]  }
   0xf   : > { %s4124_s16 = smov (!%p188_p3, %s2375_s16), 1  ;;  %2768 = vmatpush3.bf16.msra.mxu0 %v2973_v0  ;;  %2955 = vmatpush3.bf16.msra.mxu1 %v2973_v0  ;;  %v2979_v8 = vld [vmem:[%s4031_s1 + $0x30] sm:$0xff]   ;;  %v2980_v9 = vld [vmem:[%s4031_s1 + $0x38] sm:$0xff]  }
  0x10   : > { %2769 = vmatprep.subr.bf16.mxu0 %v2974_v1  ;;  %2948 = vmatprep.subr.bf16.mxu1 %v2974_v1  ;;  %s2963_s23 = smul.u32 656, %s4124_s16 }
  0x11   : > { %s2964_s17 = smul.u32 164, %s4124_s16 }
  0x12   : > { %s3121_s26 = scalar_lea.vmem %s4030_s0, %s2963_s23 }
  0x13   : > { %2770 = vmatpush3.bf16.msra.mxu0 %v2974_v1  ;;  %2956 = vmatpush3.bf16.msra.mxu1 %v2974_v1  ;;  %v2981_v4 = vld [vmem:[%s3121_s26] sm:$0xff]   ;;  %v2983_v5 = vld [vmem:[%s3121_s26 + $0x150] sm:$0xff]   ;;  %v2982_v10 = vld [vmem:[%s3121_s26 + $0x8] sm:$0xff]   ;;  %s3777_s19 = scalar_lea.vmem %s4034_s4, %s2964_s17 }
  0x14   : > { %2771 = vmatprep.subr.bf16.mxu0 %v2975_v2  ;;  %2949 = vmatprep.subr.bf16.mxu1 %v2975_v2  ;;  %v2984_v11 = vld [vmem:[%s3121_s26 + $0x158] sm:$0xff]   ;;  %v2985_v12 = vld [vmem:[%s3121_s26 + $0x10] sm:$0xff]   ;;  %v2987_v13 = vld [vmem:[%s3121_s26 + $0x160] sm:$0xff]  }
  0x15   : > { %2783 = vmatprep.mubr.bf16.mxu0 %v2981_v4  ;;  %2867 = vmatprep.mubr.bf16.mxu1 %v2983_v5  ;;  %v2986_v14 = vld [vmem:[%s3121_s26 + $0x18] sm:$0xff]   ;;  %v2988_v15 = vld [vmem:[%s3121_s26 + $0x168] sm:$0xff]   ;;  %v2989_v16 = vld [vmem:[%s3121_s26 + $0x20] sm:$0xff]  }
  0x16   : > { %v2991_v17 = vld [vmem:[%s3121_s26 + $0x170] sm:$0xff]   ;;  %v2990_v18 = vld [vmem:[%s3121_s26 + $0x28] sm:$0xff]   ;;  %v2992_v19 = vld [vmem:[%s3121_s26 + $0x178] sm:$0xff]  }
  0x17   : > { %2772 = vmatpush3.bf16.msra.mxu0 %v2975_v2  ;;  %2957 = vmatpush3.bf16.msra.mxu1 %v2975_v2  ;;  %v2993_v20 = vld [vmem:[%s3121_s26 + $0x30] sm:$0xff]   ;;  %v2995_v21 = vld [vmem:[%s3121_s26 + $0x180] sm:$0xff]   ;;  %v2994_v22 = vld [vmem:[%s3121_s26 + $0x38] sm:$0xff]  }
  0x18   : > { %2773 = vmatprep.subr.bf16.mxu0 %v2976_v3  ;;  %2950 = vmatprep.subr.bf16.mxu1 %v2976_v3  ;;  %v2996_v23 = vld [vmem:[%s3121_s26 + $0x188] sm:$0xff]   ;;  %v2997_v24 = vld [vmem:[%s3121_s26 + $0x40] sm:$0xff]   ;;  %v2999_v25 = vld [vmem:[%s3121_s26 + $0x190] sm:$0xff]  }
  0x19   : > { %v2998_v26 = vld [vmem:[%s3121_s26 + $0x48] sm:$0xff]   ;;  %v3000_v27 = vld [vmem:[%s3121_s26 + $0x198] sm:$0xff]   ;;  %v3001_v28 = vld [vmem:[%s3121_s26 + $0x50] sm:$0xff]  }
  0x1a   : > { %v3003_v29 = vld [vmem:[%s3121_s26 + $0x1a0] sm:$0xff]   ;;  %v3002_v30 = vld [vmem:[%s3121_s26 + $0x58] sm:$0xff]   ;;  %v3004_v31 = vld [vmem:[%s3121_s26 + $0x1a8] sm:$0xff]  }
  0x1b   : > { %2774 = vmatpush3.bf16.msra.mxu0 %v2976_v3  ;;  %2958 = vmatpush3.bf16.msra.mxu1 %v2976_v3  ;;  %v3005_v32 = vld [vmem:[%s3121_s26 + $0x60] sm:$0xff]   ;;  %v3007_v33 = vld [vmem:[%s3121_s26 + $0x1b0] sm:$0xff]   ;;  %v3006_v34 = vld [vmem:[%s3121_s26 + $0x68] sm:$0xff]  }
  0x1c   : > { %2775 = vmatprep.subr.bf16.mxu0 %v2977_v6  ;;  %2951 = vmatprep.subr.bf16.mxu1 %v2977_v6  ;;  %v3008_v35 = vld [vmem:[%s3121_s26 + $0x1b8] sm:$0xff]   ;;  %v3009_v36 = vld [vmem:[%s3121_s26 + $0x70] sm:$0xff]   ;;  %v3011_v37 = vld [vmem:[%s3121_s26 + $0x1c0] sm:$0xff]  }
  0x1d   : > { %v3010_v38 = vld [vmem:[%s3121_s26 + $0x78] sm:$0xff]   ;;  %v3012_v39 = vld [vmem:[%s3121_s26 + $0x1c8] sm:$0xff]   ;;  %v3013_v40 = vld [vmem:[%s3121_s26 + $0x80] sm:$0xff]  }
  0x1e   : > { %v3015_v41 = vld [vmem:[%s3121_s26 + $0x1d0] sm:$0xff]   ;;  %v3014_v42 = vld [vmem:[%s3121_s26 + $0x88] sm:$0xff]   ;;  %v3016_v43 = vld [vmem:[%s3121_s26 + $0x1d8] sm:$0xff]  }
  0x1f   : > { %2776 = vmatpush3.bf16.msra.mxu0 %v2977_v6  ;;  %2959 = vmatpush3.bf16.msra.mxu1 %v2977_v6  ;;  %v3017_v44 = vld [vmem:[%s3121_s26 + $0x90] sm:$0xff]   ;;  %v3019_v45 = vld [vmem:[%s3121_s26 + $0x1e0] sm:$0xff]   ;;  %v3018_v46 = vld [vmem:[%s3121_s26 + $0x98] sm:$0xff]  }
  0x20   : > { %2777 = vmatprep.subr.bf16.mxu0 %v2978_v7  ;;  %2952 = vmatprep.subr.bf16.mxu1 %v2978_v7  ;;  %v3020_v47 = vld [vmem:[%s3121_s26 + $0x1e8] sm:$0xff]   ;;  %v3021_v48 = vld [vmem:[%s3121_s26 + $0xa0] sm:$0xff]   ;;  %v3023_v49 = vld [vmem:[%s3121_s26 + $0x1f0] sm:$0xff]  }
  0x21   : > { %v3022_v50 = vld [vmem:[%s3121_s26 + $0xa8] sm:$0xff]   ;;  %v3024_v51 = vld [vmem:[%s3121_s26 + $0x1f8] sm:$0xff]   ;;  %v3025_v52 = vld [vmem:[%s3121_s26 + $0xb0] sm:$0xff]  }
  0x22   : > { %v3027_v53 = vld [vmem:[%s3121_s26 + $0x200] sm:$0xff]   ;;  %v3026_v54 = vld [vmem:[%s3121_s26 + $0xb8] sm:$0xff]   ;;  %v3028_v55 = vld [vmem:[%s3121_s26 + $0x208] sm:$0xff]  }
  0x23   : > { %2778 = vmatpush3.bf16.msra.mxu0 %v2978_v7  ;;  %2960 = vmatpush3.bf16.msra.mxu1 %v2978_v7  ;;  %v3029_v56 = vld [vmem:[%s3121_s26 + $0xc0] sm:$0xff]   ;;  %v3031_v57 = vld [vmem:[%s3121_s26 + $0x210] sm:$0xff]   ;;  %v3030_v58 = vld [vmem:[%s3121_s26 + $0xc8] sm:$0xff]  }
  0x24   : > { %2779 = vmatprep.subr.bf16.mxu0 %v2979_v8  ;;  %2953 = vmatprep.subr.bf16.mxu1 %v2979_v8  ;;  %v3032_v59 = vld [vmem:[%s3121_s26 + $0x218] sm:$0xff]   ;;  %v3033_v60 = vld [vmem:[%s3121_s26 + $0xd0] sm:$0xff]   ;;  %v3035_v61 = vld [vmem:[%s3121_s26 + $0x220] sm:$0xff]  }
  0x25   : > { %v3034_v62 = vld [vmem:[%s3121_s26 + $0xd8] sm:$0xff]   ;;  %v3036_v63 = vld [vmem:[%s3121_s26 + $0x228] sm:$0xff]   ;;  %v3037_v0 = vld [vmem:[%s3121_s26 + $0xe0] sm:$0xff]  }
  0x26   : > { %v3039_v1 = vld [vmem:[%s3121_s26 + $0x230] sm:$0xff]   ;;  %v3038_v2 = vld [vmem:[%s3121_s26 + $0xe8] sm:$0xff]   ;;  %v3040_v3 = vld [vmem:[%s3121_s26 + $0x238] sm:$0xff]  }
  0x27   : > { %2780 = vmatpush3.bf16.msra.mxu0 %v2979_v8  ;;  %2961 = vmatpush3.bf16.msra.mxu1 %v2979_v8  ;;  %v3041_v4 = vld [vmem:[%s3121_s26 + $0xf0] sm:$0xff]   ;;  %v3043_v5 = vld [vmem:[%s3121_s26 + $0x240] sm:$0xff]   ;;  %v3042_v6 = vld [vmem:[%s3121_s26 + $0xf8] sm:$0xff]  }
  0x28   : > { %2781 = vmatprep.subr.bf16.mxu0 %v2980_v9  ;;  %2954 = vmatprep.subr.bf16.mxu1 %v2980_v9  ;;  %v3044_v7 = vld [vmem:[%s3121_s26 + $0x248] sm:$0xff]   ;;  %v3045_v8 = vld [vmem:[%s3121_s26 + $0x100] sm:$0xff]  }
  0x2b   : > { %2782 = vmatpush3.bf16.msra.mxu0 %v2980_v9  ;;  %2962 = vmatpush3.bf16.msra.mxu1 %v2980_v9  ;;  %v3047_v9 = vld [vmem:[%s3121_s26 + $0x250] sm:$0xff]  }
  0x2e   : > { %2784 = vmatmul.mubr.bf16.vlgmr.msra.gmra.mrb[0].mxu0 %v2982_v10  ;;  %2868 = vmatmul.mubr.bf16.vlgmr.msra.gmra.mrb[0].mxu1 %v2984_v11  ;;  %v3046_v10 = vld [vmem:[%s3121_s26 + $0x108] sm:$0xff]   ;;  %v3048_v11 = vld [vmem:[%s3121_s26 + $0x258] sm:$0xff]  }
  0x2f   : > { %2787 = vmatprep.mubr.bf16.mxu0 %v2985_v12  ;;  %2871 = vmatprep.mubr.bf16.mxu1 %v2987_v13  ;;  %v3049_v12 = vld [vmem:[%s3121_s26 + $0x110] sm:$0xff]   ;;  %v3051_v13 = vld [vmem:[%s3121_s26 + $0x260] sm:$0xff]  }
  0x36   : > { %2788 = vmatmul.mubr.bf16.gmra.mrb[4].mxu0 %v2986_v14  ;;  %2872 = vmatmul.mubr.bf16.gmra.mrb[4].mxu1 %v2988_v15  ;;  %v3050_v14 = vld [vmem:[%s3121_s26 + $0x118] sm:$0xff]   ;;  %v3052_v15 = vld [vmem:[%s3121_s26 + $0x268] sm:$0xff]  }
  0x37   : > { %2791 = vmatprep.mubr.bf16.mxu0 %v2989_v16  ;;  %2875 = vmatprep.mubr.bf16.mxu1 %v2991_v17  ;;  %v3053_v16 = vld [vmem:[%s3121_s26 + $0x120] sm:$0xff]   ;;  %v3055_v17 = vld [vmem:[%s3121_s26 + $0x270] sm:$0xff]  }
  0x3e   : > { %2792 = vmatmul.mubr.bf16.gmra.mrb[8].mxu0 %v2990_v18  ;;  %2876 = vmatmul.mubr.bf16.gmra.mrb[8].mxu1 %v2992_v19  ;;  %v3054_v18 = vld [vmem:[%s3121_s26 + $0x128] sm:$0xff]   ;;  %v3056_v19 = vld [vmem:[%s3121_s26 + $0x278] sm:$0xff]  }
  0x3f   : > { %2795 = vmatprep.mubr.bf16.mxu0 %v2993_v20  ;;  %2879 = vmatprep.mubr.bf16.mxu1 %v2995_v21  ;;  %v3057_v20 = vld [vmem:[%s3121_s26 + $0x130] sm:$0xff]   ;;  %v3059_v21 = vld [vmem:[%s3121_s26 + $0x280] sm:$0xff]  }
  0x46   : > { %2796 = vmatmul.mubr.bf16.gmra.mrb[12].mxu0 %v2994_v22  ;;  %2880 = vmatmul.mubr.bf16.gmra.mrb[12].mxu1 %v2996_v23  ;;  %v3058_v22 = vld [vmem:[%s3121_s26 + $0x138] sm:$0xff]   ;;  %v3060_v23 = vld [vmem:[%s3121_s26 + $0x288] sm:$0xff]  }
  0x47   : > { %2799 = vmatprep.mubr.bf16.mxu0 %v2997_v24  ;;  %2883 = vmatprep.mubr.bf16.mxu1 %v2999_v25  ;;  %v3061_v24 = vld [vmem:[%s3121_s26 + $0x140] sm:$0xff]   ;;  %v3062_v25 = vld [vmem:[%s3121_s26 + $0x148] sm:$0xff]  }
  0x4e   : > { %2800 = vmatmul.mubr.bf16.gmra.mrb[16].mxu0 %v2998_v26  ;;  %2884 = vmatmul.mubr.bf16.gmra.mrb[16].mxu1 %v3000_v27 }
  0x4f   : > { %2803 = vmatprep.mubr.bf16.mxu0 %v3001_v28  ;;  %2887 = vmatprep.mubr.bf16.mxu1 %v3003_v29 }
  0x56   : > { %2804 = vmatmul.mubr.bf16.gmra.mrb[20].mxu0 %v3002_v30  ;;  %2888 = vmatmul.mubr.bf16.gmra.mrb[20].mxu1 %v3004_v31 }
  0x57   : > { %2807 = vmatprep.mubr.bf16.mxu0 %v3005_v32  ;;  %2891 = vmatprep.mubr.bf16.mxu1 %v3007_v33 }
  0x5e   : > { %2808 = vmatmul.mubr.bf16.gmra.mrb[24].mxu0 %v3006_v34  ;;  %2892 = vmatmul.mubr.bf16.gmra.mrb[24].mxu1 %v3008_v35 }
  0x5f   : > { %2811 = vmatprep.mubr.bf16.mxu0 %v3009_v36  ;;  %2895 = vmatprep.mubr.bf16.mxu1 %v3011_v37 }
  0x66   : > { %2812 = vmatmul.mubr.bf16.gmra.mrb[28].mxu0 %v3010_v38  ;;  %2896 = vmatmul.mubr.bf16.gmra.mrb[28].mxu1 %v3012_v39 }
  0x67   : > { %2815 = vmatprep.mubr.bf16.mxu0 %v3013_v40  ;;  %2899 = vmatprep.mubr.bf16.mxu1 %v3015_v41 }
  0x6e   : > { %2816 = vmatmul.mubr.bf16.gmra.mrb[32].mxu0 %v3014_v42  ;;  %2900 = vmatmul.mubr.bf16.gmra.mrb[32].mxu1 %v3016_v43 }
  0x6f   : > { %2819 = vmatprep.mubr.bf16.mxu0 %v3017_v44  ;;  %2903 = vmatprep.mubr.bf16.mxu1 %v3019_v45 }
  0x76   : > { %2820 = vmatmul.mubr.bf16.gmra.mrb[36].mxu0 %v3018_v46  ;;  %2904 = vmatmul.mubr.bf16.gmra.mrb[36].mxu1 %v3020_v47 }
  0x77   : > { %2823 = vmatprep.mubr.bf16.mxu0 %v3021_v48  ;;  %2907 = vmatprep.mubr.bf16.mxu1 %v3023_v49 }
  0x7e   : > { %2824 = vmatmul.mubr.bf16.gmra.mrb[40].mxu0 %v3022_v50  ;;  %2908 = vmatmul.mubr.bf16.gmra.mrb[40].mxu1 %v3024_v51 }
  0x7f   : > { %2827 = vmatprep.mubr.bf16.mxu0 %v3025_v52  ;;  %2911 = vmatprep.mubr.bf16.mxu1 %v3027_v53 }
  0x86   : > { %2828 = vmatmul.mubr.bf16.gmra.mrb[44].mxu0 %v3026_v54  ;;  %2912 = vmatmul.mubr.bf16.gmra.mrb[44].mxu1 %v3028_v55 }
  0x87   : > { %2831 = vmatprep.mubr.bf16.mxu0 %v3029_v56  ;;  %2915 = vmatprep.mubr.bf16.mxu1 %v3031_v57 }
  0x8e   : > { %2832 = vmatmul.mubr.bf16.gmra.mrb[48].mxu0 %v3030_v58  ;;  %2916 = vmatmul.mubr.bf16.gmra.mrb[48].mxu1 %v3032_v59 }
  0x8f   : > { %2835 = vmatprep.mubr.bf16.mxu0 %v3033_v60  ;;  %2919 = vmatprep.mubr.bf16.mxu1 %v3035_v61 }
  0x96   : > { %2836 = vmatmul.mubr.bf16.gmra.mrb[52].mxu0 %v3034_v62  ;;  %2920 = vmatmul.mubr.bf16.gmra.mrb[52].mxu1 %v3036_v63 }
  0x97   : > { %2839 = vmatprep.mubr.bf16.mxu0 %v3037_v0  ;;  %2923 = vmatprep.mubr.bf16.mxu1 %v3039_v1 }
  0x9e   : > { %2840 = vmatmul.mubr.bf16.gmra.mrb[56].mxu0 %v3038_v2  ;;  %2924 = vmatmul.mubr.bf16.gmra.mrb[56].mxu1 %v3040_v3 }
  0x9f   : > { %2843 = vmatprep.mubr.bf16.mxu0 %v3041_v4  ;;  %2927 = vmatprep.mubr.bf16.mxu1 %v3043_v5  ;;  %v3279_v4 = vld [vmem:[%s4032_s2] ss:$0 sm:$0xff] }
  0xa6   : > { %2844 = vmatmul.mubr.bf16.gmra.mrb[60].mxu0 %v3042_v6  ;;  %2928 = vmatmul.mubr.bf16.gmra.mrb[60].mxu1 %v3044_v7 }
  0xa7   : > { %2847 = vmatprep.mubr.bf16.mxu0 %v3045_v8  ;;  %2931 = vmatprep.mubr.bf16.mxu1 %v3047_v9 }
  0xae   : > { %2848 = vmatmul.mubr.bf16.gmra.mrb[64].mxu0 %v3046_v10  ;;  %2932 = vmatmul.mubr.bf16.gmra.mrb[64].mxu1 %v3048_v11 }
  0xaf   : > { %2851 = vmatprep.mubr.bf16.mxu0 %v3049_v12  ;;  %2935 = vmatprep.mubr.bf16.mxu1 %v3051_v13 }
  0xb6   : > { %2852 = vmatmul.mubr.bf16.gmra.mrb[68].mxu0 %v3050_v14  ;;  %2936 = vmatmul.mubr.bf16.gmra.mrb[68].mxu1 %v3052_v15  ;;  %v3299_v14 = vld [vmem:[%s4033_s3] ss:$0 sm:$0xff] }
  0xb7   : > { %2855 = vmatprep.mubr.bf16.mxu0 %v3053_v16  ;;  %2939 = vmatprep.mubr.bf16.mxu1 %v3055_v17 }
  0xbe   : > { %2856 = vmatmul.mubr.bf16.gmra.mrb[72].mxu0 %v3054_v18  ;;  %2940 = vmatmul.mubr.bf16.gmra.mrb[72].mxu1 %v3056_v19 }
  0xbf   : > { %2859 = vmatprep.mubr.bf16.mxu0 %v3057_v20  ;;  %2943 = vmatprep.mubr.bf16.mxu1 %v3059_v21 }
  0xc6   : > { %2860 = vmatmul.mubr.bf16.gmra.mrb[76].mxu0 %v3058_v22  ;;  %2944 = vmatmul.mubr.bf16.gmra.mrb[76].mxu1 %v3060_v23 }
  0xc7   : > { %2863 = vmatprep.mubr.bf16.mxu0 %v3061_v24 }
  0xce   : > { %2864 = vmatmul.mubr.bf16.gmra.mrb[80].mxu0 %v3062_v25 }
 0x101   : > { %v2785_v26 = vpop.f32.mrb[0].mxu0  ;;  %v2869_v27 = vpop.f32.mrb[0].mxu1 }
 0x102   : > { %v953_v28 = vpop.f32.mrb[1].mxu0  ;;  %v1289_v29 = vpop.f32.mrb[1].mxu1  ;;  %v1617_v11 = vmul.f32 %v2785_v26, %v3279_v4  ;;  %v1701_v13 = vmul.f32 %v2869_v27, %v3279_v4 }
 0x103   : > { %v2786_v30 = vpop.f32.mrb[2].mxu0  ;;  %v2870_v31 = vpop.f32.mrb[2].mxu1  ;;  %v1615_v12 = vmul.f32 %v3279_v4, %v953_v28  ;;  %v1699_v15 = vmul.f32 %v3279_v4, %v1289_v29 }
 0x104   : > { %v956_v32 = vpop.f32.mrb[3].mxu0  ;;  %v1292_v33 = vpop.f32.mrb[3].mxu1  ;;  %v1618_v16 = vmul.f32 %v2786_v30, %v3279_v4  ;;  %v1702_v17 = vmul.f32 %v2870_v31, %v3279_v4  ;;  %v3305_v18 = vadd.f32 %v3299_v14, %v1617_v11  ;;  %v3311_v20 = vadd.f32 %v3299_v14, %v1701_v13 }
 0x105   : > { %v3308_v19 = vadd.f32 %v3299_v14, %v1615_v12  ;;  %v1616_v23 = vmul.f32 %v3279_v4, %v956_v32  ;;  %v3320_v25 = vadd.f32 %v3299_v14, %v1699_v15  ;;  %v1700_v26 = vmul.f32 %v3279_v4, %v1292_v33 }
 0x106   : > { %4037 = vst [vmem:[#allocation2_spill] sm:$0xff] %v3311_v20  ;;  %v3328_v29 = vadd.f32 %v3299_v14, %v1618_v16  ;;  %v3332_v31 = vadd.f32 %v3299_v14, %v1702_v17 }
 0x107   : > { %v3363_v20 = vadd.f32 %v3299_v14, %v1700_v26 }
 0x109   : > { %v2789_v34 = vpop.f32.mrb[4].mxu0  ;;  %v2873_v35 = vpop.f32.mrb[4].mxu1 }
 0x10a   : > { %v969_v36 = vpop.f32.mrb[5].mxu0  ;;  %v3220_v37 = vpop.f32.mrb[5].mxu1  ;;  %v1621_v24 = vmul.f32 %v2789_v34, %v3279_v4  ;;  %v1705_v32 = vmul.f32 %v2873_v35, %v3279_v4 }
 0x10b   : > { %v2790_v38 = vpop.f32.mrb[6].mxu0  ;;  %v3222_v39 = vpop.f32.mrb[6].mxu1  ;;  %v1619_v30 = vmul.f32 %v3279_v4, %v969_v36  ;;  %v1703_v13 = vmul.f32 %v3279_v4, %v3220_v37  ;;  %v3357_v37 = vadd.f32 %v3299_v14, %v1616_v23 }
 0x10c   : > { %v972_v40 = vpop.f32.mrb[7].mxu0  ;;  %v3224_v41 = vpop.f32.mrb[7].mxu1  ;;  %v1622_v33 = vmul.f32 %v2790_v38, %v3279_v4  ;;  %v1706_v15 = vmul.f32 %v3222_v39, %v3279_v4  ;;  %v3360_v39 = vadd.f32 %v3299_v14, %v1621_v24 }
 0x10d   : > { %v1620_v12 = vmul.f32 %v3279_v4, %v972_v40  ;;  %v1704_v38 = vmul.f32 %v3279_v4, %v3224_v41  ;;  %4038 = vst [vmem:[#allocation3_spill] sm:$0xff] %v3357_v37  ;;  %v3371_v41 = vadd.f32 %v3299_v14, %v1705_v32 }
 0x10e   : > { %v3378_v24 = vadd.f32 %v3299_v14, %v1622_v33 }
 0x10f   : > { %4039 = vst [vmem:[#allocation4_spill] sm:$0xff] %v3371_v41  ;;  %v3381_v26 = vadd.f32 %v3299_v14, %v1620_v12 }
 0x111   : > { %v3226_v42 = vpop.f32.mrb[8].mxu0  ;;  %v3228_v43 = vpop.f32.mrb[8].mxu1 }
 0x112   : > { %v985_v44 = vpop.f32.mrb[9].mxu0  ;;  %v3230_v45 = vpop.f32.mrb[9].mxu1  ;;  %v1625_v35 = vmul.f32 %v3226_v42, %v3279_v4  ;;  %v1709_v40 = vmul.f32 %v3228_v43, %v3279_v4 }
 0x113   : > { %v3232_v46 = vpop.f32.mrb[10].mxu0  ;;  %v3234_v47 = vpop.f32.mrb[10].mxu1  ;;  %v1623_v17 = vmul.f32 %v3279_v4, %v985_v44  ;;  %v1707_v42 = vmul.f32 %v3279_v4, %v3230_v45  ;;  %v3368_v44 = vadd.f32 %v3299_v14, %v1619_v30  ;;  %v3384_v45 = vadd.f32 %v3299_v14, %v1703_v13 }
 0x114   : > { %v3236_v48 = vpop.f32.mrb[11].mxu0  ;;  %v3238_v49 = vpop.f32.mrb[11].mxu1  ;;  %v1626_v43 = vmul.f32 %v3232_v46, %v3279_v4  ;;  %v1710_v23 = vmul.f32 %v3234_v47, %v3279_v4  ;;  %v3387_v30 = vadd.f32 %v3299_v14, %v1706_v15  ;;  %v3390_v32 = vadd.f32 %v3299_v14, %v1625_v35 }
 0x115   : > { %v3393_v46 = vadd.f32 %v3299_v14, %v1623_v17  ;;  %v3396_v47 = vadd.f32 %v3299_v14, %v1704_v38  ;;  %v3399_v33 = vadd.f32 %v3299_v14, %v1709_v40  ;;  %v1624_v13 = vmul.f32 %v3279_v4, %v3236_v48 }
 0x116   : > { %4040 = vst [vmem:[#allocation5_spill] sm:$0xff] %v3387_v30  ;;  %v3410_v35 = vadd.f32 %v3299_v14, %v1707_v42  ;;  %v1708_v17 = vmul.f32 %v3279_v4, %v3238_v49  ;;  %v3424_v48 = vadd.f32 %v3299_v14, %v1710_v23 }
 0x117   : > { %4041 = vst [vmem:[#allocation6_spill] sm:$0xff] %v3393_v46  ;;  %4042 = vst [vmem:[#allocation7_spill] sm:$0xff] %v3396_v47 }
 0x118   : > { %4043 = vst [vmem:[#allocation8_spill] sm:$0xff] %v3399_v33  ;;  %4044 = vst [vmem:[#allocation9_spill] sm:$0xff] %v3410_v35  ;;  %v3419_v33 = vadd.f32 %v3299_v14, %v1626_v43  ;;  %v3459_v30 = vadd.f32 %v3299_v14, %v1708_v17 }
 0x119   : > { %v3240_v50 = vpop.f32.mrb[12].mxu0  ;;  %v3242_v51 = vpop.f32.mrb[12].mxu1  ;;  %4046 = vst [vmem:[#allocation11_spill] sm:$0xff] %v3424_v48 }
 0x11a   : > { %v3244_v52 = vpop.f32.mrb[13].mxu0  ;;  %v3246_v53 = vpop.f32.mrb[13].mxu1  ;;  %v1629_v15 = vmul.f32 %v3240_v50, %v3279_v4  ;;  %4045 = vst [vmem:[#allocation10_spill] sm:$0xff] %v3419_v33  ;;  %v1713_v50 = vmul.f32 %v3242_v51, %v3279_v4 }
 0x11b   : > { %v3248_v54 = vpop.f32.mrb[14].mxu0  ;;  %v3250_v55 = vpop.f32.mrb[14].mxu1  ;;  %v1627_v46 = vmul.f32 %v3279_v4, %v3244_v52  ;;  %v1711_v33 = vmul.f32 %v3279_v4, %v3246_v53  ;;  %v3453_v53 = vadd.f32 %v3299_v14, %v1624_v13 }
 0x11c   : > { %v3252_v56 = vpop.f32.mrb[15].mxu0  ;;  %v3254_v57 = vpop.f32.mrb[15].mxu1  ;;  %v1630_v49 = vmul.f32 %v3248_v54, %v3279_v4  ;;  %v1714_v52 = vmul.f32 %v3250_v55, %v3279_v4  ;;  %v3456_v55 = vadd.f32 %v3299_v14, %v1629_v15 }
 0x11d   : > { %v1628_v43 = vmul.f32 %v3279_v4, %v3252_v56  ;;  %v1712_v54 = vmul.f32 %v3279_v4, %v3254_v57  ;;  %v3467_v57 = vadd.f32 %v3299_v14, %v1713_v50 }
 0x11e   : > { %v3474_v15 = vadd.f32 %v3299_v14, %v1630_v49 }
 0x11f   : > { %4047 = vst [vmem:[#allocation12_spill] sm:$0xff] %v3467_v57  ;;  %v3477_v17 = vadd.f32 %v3299_v14, %v1628_v43 }
 0x121   : > { %v3256_v58 = vpop.f32.mrb[16].mxu0  ;;  %v3258_v59 = vpop.f32.mrb[16].mxu1 }
 0x122   : > { %v3260_v60 = vpop.f32.mrb[17].mxu0  ;;  %v3262_v61 = vpop.f32.mrb[17].mxu1  ;;  %v1633_v51 = vmul.f32 %v3256_v58, %v3279_v4  ;;  %v1717_v56 = vmul.f32 %v3258_v59, %v3279_v4 }
 0x123   : > { %v3264_v62 = vpop.f32.mrb[18].mxu0  ;;  %v3266_v63 = vpop.f32.mrb[18].mxu1  ;;  %v1631_v47 = vmul.f32 %v3279_v4, %v3260_v60  ;;  %v1715_v58 = vmul.f32 %v3279_v4, %v3262_v61  ;;  %v3464_v60 = vadd.f32 %v3299_v14, %v1627_v46  ;;  %v3480_v61 = vadd.f32 %v3299_v14, %v1711_v33 }
 0x124   : > { %v3268_v0 = vpop.f32.mrb[19].mxu0  ;;  %v3270_v1 = vpop.f32.mrb[19].mxu1  ;;  %v1634_v59 = vmul.f32 %v3264_v62, %v3279_v4  ;;  %v1718_v13 = vmul.f32 %v3266_v63, %v3279_v4  ;;  %v3483_v46 = vadd.f32 %v3299_v14, %v1714_v52  ;;  %v3486_v50 = vadd.f32 %v3299_v14, %v1633_v51 }
 0x125   : > { %v3489_v62 = vadd.f32 %v3299_v14, %v1631_v47  ;;  %v3492_v63 = vadd.f32 %v3299_v14, %v1712_v54  ;;  %v3495_v49 = vadd.f32 %v3299_v14, %v1717_v56  ;;  %v1632_v33 = vmul.f32 %v3279_v4, %v3268_v0 }
 0x126   : > { %4048 = vst [vmem:[#allocation13_spill] sm:$0xff] %v3483_v46  ;;  %v3502_v51 = vadd.f32 %v3299_v14, %v1715_v58  ;;  %v1716_v47 = vmul.f32 %v3279_v4, %v3270_v1 }
 0x127   : > { %4049 = vst [vmem:[#allocation14_spill] sm:$0xff] %v3489_v62  ;;  %4050 = vst [vmem:[#allocation15_spill] sm:$0xff] %v3492_v63  ;;  %v3507_v62 = vadd.f32 %v3299_v14, %v1634_v59 }
 0x128   : > { %4051 = vst [vmem:[#allocation16_spill] sm:$0xff] %v3495_v49  ;;  %4052 = vst [vmem:[#allocation17_spill] sm:$0xff] %v3502_v51  ;;  %v3512_v49 = vadd.f32 %v3299_v14, %v1718_v13  ;;  %v3543_v63 = vadd.f32 %v3299_v14, %v1716_v47 }
 0x129   : > { %v3272_v2 = vpop.f32.mrb[20].mxu0  ;;  %v3274_v3 = vpop.f32.mrb[20].mxu1  ;;  %4053 = vst [vmem:[#allocation18_spill] sm:$0xff] %v3507_v62 }
 0x12a   : > { %v3281_v5 = vpop.f32.mrb[21].mxu0  ;;  %v3283_v6 = vpop.f32.mrb[21].mxu1  ;;  %v1637_v52 = vmul.f32 %v3272_v2, %v3279_v4  ;;  %4054 = vst [vmem:[#allocation19_spill] sm:$0xff] %v3512_v49  ;;  %v1721_v0 = vmul.f32 %v3274_v3, %v3279_v4 }
 0x12b   : > { %v3285_v7 = vpop.f32.mrb[22].mxu0  ;;  %v3287_v8 = vpop.f32.mrb[22].mxu1  ;;  %v1635_v56 = vmul.f32 %v3279_v4, %v3281_v5  ;;  %v1719_v59 = vmul.f32 %v3279_v4, %v3283_v6  ;;  %v3537_v6 = vadd.f32 %v3299_v14, %v1632_v33 }
 0x12c   : > { %v3289_v9 = vpop.f32.mrb[23].mxu0  ;;  %v3291_v10 = vpop.f32.mrb[23].mxu1  ;;  %v1638_v51 = vmul.f32 %v3285_v7, %v3279_v4  ;;  %v1722_v5 = vmul.f32 %v3287_v8, %v3279_v4  ;;  %v3540_v8 = vadd.f32 %v3299_v14, %v1637_v52 }
 0x12d   : > { %v1636_v1 = vmul.f32 %v3279_v4, %v3289_v9  ;;  %v1720_v7 = vmul.f32 %v3279_v4, %v3291_v10  ;;  %v3551_v10 = vadd.f32 %v3299_v14, %v1721_v0 }
 0x12e   : > { %v3558_v52 = vadd.f32 %v3299_v14, %v1638_v51 }
 0x12f   : > { %4055 = vst [vmem:[#allocation20_spill] sm:$0xff] %v3551_v10  ;;  %v3561_v47 = vadd.f32 %v3299_v14, %v1636_v1 }
 0x131   : > { %v3313_v21 = vpop.f32.mrb[24].mxu0  ;;  %v3315_v22 = vpop.f32.mrb[24].mxu1 }
 0x132   : > { %v3323_v27 = vpop.f32.mrb[25].mxu0  ;;  %v3325_v28 = vpop.f32.mrb[25].mxu1  ;;  %v1641_v3 = vmul.f32 %v3313_v21, %v3279_v4  ;;  %v1725_v9 = vmul.f32 %v3315_v22, %v3279_v4 }
 0x133   : > { %v3335_v34 = vpop.f32.mrb[26].mxu0  ;;  %v3337_v11 = vpop.f32.mrb[26].mxu1  ;;  %v1639_v49 = vmul.f32 %v3279_v4, %v3323_v27  ;;  %v1723_v21 = vmul.f32 %v3279_v4, %v3325_v28  ;;  %v3548_v27 = vadd.f32 %v3299_v14, %v1635_v56  ;;  %v3564_v28 = vadd.f32 %v3299_v14, %v1719_v59 }
 0x134   : > { %v3345_v36 = vpop.f32.mrb[27].mxu0  ;;  %v3347_v16 = vpop.f32.mrb[27].mxu1  ;;  %v1642_v22 = vmul.f32 %v3335_v34, %v3279_v4  ;;  %v1726_v33 = vmul.f32 %v3337_v11, %v3279_v4  ;;  %v3567_v56 = vadd.f32 %v3299_v14, %v1722_v5  ;;  %v3570_v0 = vadd.f32 %v3299_v14, %v1641_v3 }
 0x135   : > { %v3573_v34 = vadd.f32 %v3299_v14, %v1639_v49  ;;  %v3576_v11 = vadd.f32 %v3299_v14, %v1720_v7  ;;  %v3579_v51 = vadd.f32 %v3299_v14, %v1725_v9  ;;  %v1640_v59 = vmul.f32 %v3279_v4, %v3345_v36 }
 0x136   : > { %4056 = vst [vmem:[#allocation21_spill] sm:$0xff] %v3567_v56  ;;  %4057 = vst [vmem:[#allocation22_spill] sm:$0xff] %v3570_v0  ;;  %v3588_v3 = vadd.f32 %v3299_v14, %v1723_v21  ;;  %v1724_v49 = vmul.f32 %v3279_v4, %v3347_v16  ;;  %v3593_v9 = vadd.f32 %v3299_v14, %v1642_v22 }
 0x137   : > { %4058 = vst [vmem:[#allocation23_spill] sm:$0xff] %v3573_v34  ;;  %4059 = vst [vmem:[#allocation24_spill] sm:$0xff] %v3576_v11  ;;  %v3598_v34 = vadd.f32 %v3299_v14, %v1726_v33  ;;  %v3616_v0 = vadd.f32 %v3299_v14, %v1640_v59 }
 0x138   : > { %4060 = vst [vmem:[#allocation25_spill] sm:$0xff] %v3579_v51  ;;  %4061 = vst [vmem:[#allocation26_spill] sm:$0xff] %v3588_v3 }
 0x139   : > { %v3401_v12 = vpop.f32.mrb[28].mxu0  ;;  %v3403_v41 = vpop.f32.mrb[28].mxu1  ;;  %4062 = vst [vmem:[#allocation27_spill] sm:$0xff] %v3593_v9  ;;  %4063 = vst [vmem:[#allocation28_spill] sm:$0xff] %v3598_v34 }
 0x13a   : > { %v3414_v38 = vpop.f32.mrb[29].mxu0  ;;  %v3416_v40 = vpop.f32.mrb[29].mxu1  ;;  %v1645_v5 = vmul.f32 %v3401_v12, %v3279_v4  ;;  %v1729_v36 = vmul.f32 %v3403_v41, %v3279_v4 }
 0x13b   : > { %v3428_v42 = vpop.f32.mrb[30].mxu0  ;;  %v3430_v35 = vpop.f32.mrb[30].mxu1  ;;  %v1643_v51 = vmul.f32 %v3279_v4, %v3414_v38  ;;  %v1727_v22 = vmul.f32 %v3279_v4, %v3416_v40  ;;  %v3622_v40 = vadd.f32 %v3299_v14, %v1724_v49 }
 0x13c   : > { %v3440_v23 = vpop.f32.mrb[31].mxu0  ;;  %v3442_v48 = vpop.f32.mrb[31].mxu1  ;;  %v1646_v3 = vmul.f32 %v3428_v42, %v3279_v4  ;;  %v1730_v38 = vmul.f32 %v3430_v35, %v3279_v4 }
 0x13d   : > { %v1644_v16 = vmul.f32 %v3279_v4, %v3440_v23  ;;  %v1728_v11 = vmul.f32 %v3279_v4, %v3442_v48  ;;  %v3619_v23 = vadd.f32 %v3299_v14, %v1645_v5  ;;  %v3640_v49 = vadd.f32 %v3299_v14, %v1727_v22 }
 0x13e   : > { %v3634_v59 = vadd.f32 %v3299_v14, %v1646_v3 }
 0x13f   : > { %v3637_v5 = vadd.f32 %v3299_v14, %v1644_v16 }
 0x141   : > { %v2817_v43 = vpop.f32.mrb[32].mxu0  ;;  %v2901_v57 = vpop.f32.mrb[32].mxu1 }
 0x142   : > { %v1081_v46 = vpop.f32.mrb[33].mxu0  ;;  %v1417_v54 = vpop.f32.mrb[33].mxu1  ;;  %v1649_v34 = vmul.f32 %v2817_v43, %v3279_v4  ;;  %v1733_v42 = vmul.f32 %v2901_v57, %v3279_v4  ;;  %v3626_v43 = vadd.f32 %v3299_v14, %v1643_v51 }
 0x143   : > { %v2818_v2 = vpop.f32.mrb[34].mxu0  ;;  %v2902_v58 = vpop.f32.mrb[34].mxu1  ;;  %v1647_v41 = vmul.f32 %v3279_v4, %v1081_v46  ;;  %v1731_v35 = vmul.f32 %v3279_v4, %v1417_v54  ;;  %v3629_v46 = vadd.f32 %v3299_v14, %v1729_v36  ;;  %v3643_v54 = vadd.f32 %v3299_v14, %v1730_v38 }
 0x144   : > { %v3524_v62 = vpop.f32.mrb[35].mxu0  ;;  %v3526_v13 = vpop.f32.mrb[35].mxu1  ;;  %v1650_v48 = vmul.f32 %v2818_v2, %v3279_v4  ;;  %v1734_v57 = vmul.f32 %v2902_v58, %v3279_v4  ;;  %v3646_v51 = vadd.f32 %v3299_v14, %v1649_v34  ;;  %v3652_v2 = vadd.f32 %v3299_v14, %v1728_v11 }
 0x145   : > { %4064 = vst [vmem:[#allocation29_spill] sm:$0xff] %v3629_v46  ;;  %4065 = vst [vmem:[#allocation30_spill] sm:$0xff] %v3643_v54  ;;  %v3649_v36 = vadd.f32 %v3299_v14, %v1647_v41  ;;  %v3655_v58 = vadd.f32 %v3299_v14, %v1733_v42  ;;  %v1648_v22 = vmul.f32 %v3279_v4, %v3524_v62 }
 0x146   : > { %4066 = vst [vmem:[#allocation31_spill] sm:$0xff] %v3646_v51  ;;  %4068 = vst [vmem:[#allocation33_spill] sm:$0xff] %v3652_v2  ;;  %v3660_v38 = vadd.f32 %v3299_v14, %v1731_v35  ;;  %v1732_v34 = vmul.f32 %v3279_v4, %v3526_v13  ;;  %v3666_v11 = vadd.f32 %v3299_v14, %v1650_v48 }
 0x147   : > { %4067 = vst [vmem:[#allocation32_spill] sm:$0xff] %v3649_v36  ;;  %4069 = vst [vmem:[#allocation34_spill] sm:$0xff] %v3655_v58  ;;  %v3671_v2 = vadd.f32 %v3299_v14, %v1734_v57  ;;  %v3684_v51 = vadd.f32 %v3299_v14, %v1648_v22 }
 0x148   : > { %4070 = vst [vmem:[#allocation35_spill] sm:$0xff] %v3660_v38  ;;  %4071 = vst [vmem:[#allocation36_spill] sm:$0xff] %v3666_v11 }
 0x149   : > { %v2821_v1 = vpop.f32.mrb[36].mxu0  ;;  %v3581_v10 = vpop.f32.mrb[36].mxu1  ;;  %4072 = vst [vmem:[#allocation37_spill] sm:$0xff] %v3671_v2 }
 0x14a   : > { %v1097_v7 = vpop.f32.mrb[37].mxu0  ;;  %v1433_v56 = vpop.f32.mrb[37].mxu1  ;;  %v1653_v42 = vmul.f32 %v2821_v1, %v3279_v4 }
 0x14b   : > { %v2822_v12 = vpop.f32.mrb[38].mxu0  ;;  %v2906_v21 = vpop.f32.mrb[38].mxu1  ;;  %v1651_v58 = vmul.f32 %v3279_v4, %v1097_v7 }
 0x14c   : > { %v1100_v9 = vpop.f32.mrb[39].mxu0  ;;  %v1436_v33 = vpop.f32.mrb[39].mxu1  ;;  %v1654_v38 = vmul.f32 %v2822_v12, %v3279_v4  ;;  %v1738_v7 = vmul.f32 %v2906_v21, %v3279_v4  ;;  %v3698_v21 = vmul.f32 %v3581_v10, %v3279_v4 }
 0x14d   : > { %v1652_v1 = vmul.f32 %v3279_v4, %v1100_v9  ;;  %v3694_v9 = vadd.f32 %v3299_v14, %v1732_v34 }
 0x14e   : > { %4074 = vst [vmem:[#allocation39_spill] sm:$0xff] %v3698_v21  ;;  %v3712_v34 = vadd.f32 %v3299_v14, %v1654_v38  ;;  %v3718_v10 = vadd.f32 %v3299_v14, %v1738_v7 }
 0x150   : > { %4075 = vst [vmem:[#allocation40_spill] sm:$0xff] %v3712_v34  ;;  %4076 = vst [vmem:[#allocation41_spill] sm:$0xff] %v3718_v10 }
 0x151   : > { %v2825_v3 = vpop.f32.mrb[40].mxu0  ;;  %v2909_v16 = vpop.f32.mrb[40].mxu1 }
 0x152   : > { %v1657_v41 = vmul.f32 %v2825_v3, %v3279_v4  ;;  %v1113_v46 = vpop.f32.mrb[41].mxu0  ;;  %v1449_v54 = vpop.f32.mrb[41].mxu1  ;;  %v1735_v3 = vmul.f32 %v3279_v4, %v1433_v56 }
 0x153   : > { %v2826_v62 = vpop.f32.mrb[42].mxu0  ;;  %v2910_v35 = vpop.f32.mrb[42].mxu1  ;;  %v1655_v21 = vmul.f32 %v3279_v4, %v1113_v46  ;;  %v3730_v7 = vmul.f32 %v3279_v4, %v1449_v54 }
 0x154   : > { %v3675_v13 = vadd.f32 %v3299_v14, %v1657_v41  ;;  %v1658_v36 = vmul.f32 %v2826_v62, %v3279_v4  ;;  %v1116_v48 = vpop.f32.mrb[43].mxu0  ;;  %v1452_v11 = vpop.f32.mrb[43].mxu1  ;;  %v1736_v41 = vmul.f32 %v3279_v4, %v1436_v33  ;;  %v3691_v62 = vadd.f32 %v3299_v14, %v1653_v42 }
 0x155   : > { %v1656_v57 = vmul.f32 %v3279_v4, %v1116_v48  ;;  %v1740_v2 = vmul.f32 %v3279_v4, %v1452_v11  ;;  %v3704_v11 = vadd.f32 %v3299_v14, %v1651_v58  ;;  %v3715_v48 = vadd.f32 %v3299_v14, %v1652_v1  ;;  %4078 = vst [vmem:[#allocation43_spill] sm:$0xff] %v3730_v7 }
 0x156   : > { %4073 = vst [vmem:[#allocation38_spill] sm:$0xff] %v3675_v13  ;;  %v1829_v56 = vadd.f32 %v3299_v14, %v1658_v36  ;;  %v3707_v36 = vadd.f32 %v3299_v14, %v1735_v3  ;;  %v3723_v3 = vadd.f32 %v3299_v14, %v1736_v41 }
 0x157   : > { %v3701_v22 = vadd.f32 %v3299_v14, %v1656_v57  ;;  %v1911_v42 = vadd.f32 %v3299_v14, %v1740_v2 }
 0x158   : > { %v1956_v33 = vmax.f32 %v3305_v18, %v1829_v56  ;;  %4077 = vst [vmem:[#allocation42_spill] sm:$0xff] %v3723_v3  ;;  %v1741_v18 = vmul.f32 %v2909_v16, %v3279_v4  ;;  %v1742_v3 = vmul.f32 %v2910_v35, %v3279_v4 }
 0x159   : > { %v2829_v57 = vpop.f32.mrb[44].mxu0  ;;  %v2913_v12 = vpop.f32.mrb[44].mxu1 }
 0x15a   : > { %v1957_v2 = vmax.f32 %v1956_v33, %v3320_v25  ;;  %v1661_v38 = vmul.f32 %v2829_v57, %v3279_v4  ;;  %v1129_v56 = vpop.f32.mrb[45].mxu0  ;;  %v1465_v1 = vpop.f32.mrb[45].mxu1  ;;  %v1745_v7 = vmul.f32 %v2913_v12, %v3279_v4 }
 0x15b   : > { %v1659_v58 = vmul.f32 %v3279_v4, %v1129_v56  ;;  %v2830_v10 = vpop.f32.mrb[46].mxu0  ;;  %v1743_v13 = vmul.f32 %v3279_v4, %v1465_v1  ;;  %v2914_v41 = vpop.f32.mrb[46].mxu1 }
 0x15c   : > { %v1958_v16 = vmax.f32 %v1957_v2, %v1911_v42  ;;  %v1832_v25 = vadd.f32 %v3299_v14, %v1661_v38  ;;  %v1662_v33 = vmul.f32 %v2830_v10, %v3279_v4  ;;  %v1132_v57 = vpop.f32.mrb[47].mxu0  ;;  %v1468_v37 = vpop.f32.mrb[47].mxu1  ;;  %v1746_v35 = vmul.f32 %v2914_v41, %v3279_v4 }
 0x15d   : > { %v1830_v46 = vadd.f32 %v3299_v14, %v1659_v58  ;;  %v1660_v54 = vmul.f32 %v3279_v4, %v1132_v57  ;;  %v1914_v56 = vadd.f32 %v3299_v14, %v1743_v13  ;;  %v1744_v42 = vmul.f32 %v3279_v4, %v1468_v37 }
 0x15e   : > { %v1965_v1 = vmax.f32 %v3381_v26, %v1832_v25  ;;  %v1833_v34 = vadd.f32 %v3299_v14, %v1662_v33  ;;  %v3746_v10 = vadd.f32 %v3299_v14, %v1655_v21  ;;  %v1912_v58 = vadd.f32 %v3299_v14, %v1741_v18 }
 0x15f   : > { %v1959_v2 = vmax.f32 %v3328_v29, %v1830_v46  ;;  %v1831_v12 = vadd.f32 %v3299_v14, %v1660_v54  ;;  %v1913_v13 = vadd.f32 %v3299_v14, %v1742_v3  ;;  %v1915_v41 = vadd.f32 %v3299_v14, %v1744_v42 }
 0x160   : > { %v1968_v26 = vmax.f32 %v3360_v39, %v1833_v34  ;;  %v1966_v38 = vmax.f32 %v1965_v1, %v3332_v31  ;;  %v2075_v25 = vmax.f32 %v1958_v16, 0.0  ;;  %v3758_v33 = vadd.f32 %v3299_v14, %v1745_v7 }
 0x161   : > { %v1960_v37 = vmax.f32 %v1959_v2, %v3363_v20  ;;  %v1962_v21 = vmax.f32 %v3368_v44, %v1831_v12  ;;  %v2833_v18 = vpop.f32.mrb[48].mxu0  ;;  %v2917_v29 = vpop.f32.mrb[48].mxu1  ;;  %v3762_v3 = vadd.f32 %v3299_v14, %v1746_v35  ;;  %v4079_v20 = vld [vmem:[#allocation2_spill] sm:$0xff] }
 0x162   : > { %v1967_v57 = vmax.f32 %v1966_v38, %v1914_v56  ;;  %v1969_v39 = vmax.f32 %v1968_v26, %v3384_v45  ;;  %v1665_v31 = vmul.f32 %v2833_v18, %v3279_v4  ;;  %v1145_v34 = vpop.f32.mrb[49].mxu0  ;;  %v1481_v16 = vpop.f32.mrb[49].mxu1  ;;  %v1749_v1 = vmul.f32 %v2917_v29, %v3279_v4 }
 0x163   : > { %v1961_v46 = vmax.f32 %v1960_v37, %v1912_v58  ;;  %v1963_v54 = vmax.f32 %v1962_v21, %v4079_v20  ;;  %v1663_v44 = vmul.f32 %v3279_v4, %v1145_v34  ;;  %v2834_v7 = vpop.f32.mrb[50].mxu0  ;;  %v2918_v42 = vpop.f32.mrb[50].mxu1  ;;  %v1747_v45 = vmul.f32 %v3279_v4, %v1481_v16 }
 0x164   : > { %v1970_v2 = vmax.f32 %v1969_v39, %v1915_v41  ;;  %v1836_v56 = vadd.f32 %v3299_v14, %v1665_v31  ;;  %v1666_v35 = vmul.f32 %v2834_v7, %v3279_v4  ;;  %v1148_v12 = vpop.f32.mrb[51].mxu0  ;;  %v1484_v26 = vpop.f32.mrb[51].mxu1  ;;  %v2078_v41 = vmax.f32 %v1967_v57, 0.0 }
 0x165   : > { %v2076_v38 = vmax.f32 %v1961_v46, 0.0  ;;  %v1964_v18 = vmax.f32 %v1963_v54, %v1913_v13  ;;  %v1834_v58 = vadd.f32 %v3299_v14, %v1663_v44  ;;  %v1664_v37 = vmul.f32 %v3279_v4, %v1148_v12  ;;  %v4080_v54 = vld [vmem:[#allocation5_spill] sm:$0xff] }
 0x166   : > { %v2079_v21 = vmax.f32 %v1970_v2, 0.0  ;;  %v1977_v29 = vmax.f32 %v3453_v53, %v1836_v56  ;;  %v1837_v39 = vadd.f32 %v3299_v14, %v1666_v35  ;;  %v1918_v20 = vadd.f32 %v3299_v14, %v1747_v45  ;;  %v4081_v53 = vld [vmem:[#allocation7_spill] sm:$0xff]  ;;  %v4082_v56 = vld [vmem:[#allocation6_spill] sm:$0xff] }
 0x167   : > { %v2566_v31 = vpack.c.bf16 %v2076_v38, %v2075_v25  ;;  %v2077_v34 = vmax.f32 %v1964_v18, 0.0  ;;  %v1971_v13 = vmax.f32 %v3378_v24, %v1834_v58  ;;  %v1835_v16 = vadd.f32 %v3299_v14, %v1664_v37  ;;  %v4083_v18 = vld [vmem:[#allocation9_spill] sm:$0xff] }
 0x168   : > { %v1980_v46 = vmax.f32 %v3390_v32, %v1837_v39  ;;  %v1978_v44 = vmax.f32 %v1977_v29, %v4080_v54  ;;  %v1750_v57 = vmul.f32 %v2918_v42, %v3279_v4  ;;  %v1748_v35 = vmul.f32 %v3279_v4, %v1484_v26 }
 0x169   : > { %2658 = vst [vmem:[%s3777_s19 + $0x8] sm:$0xff] %v2566_v31   ;;  %v2571_v7 = vpack.c.bf16 %v2078_v41, %v2077_v34  ;;  %v1972_v2 = vmax.f32 %v1971_v13, %v4081_v53  ;;  %v1974_v25 = vmax.f32 %v4082_v56, %v1835_v16  ;;  %v2837_v24 = vpop.f32.mrb[52].mxu0  ;;  %v2921_v12 = vpop.f32.mrb[52].mxu1  ;;  %v1920_v38 = vadd.f32 %v3299_v14, %v1749_v1  ;;  %v4084_v41 = vld [vmem:[#allocation4_spill] sm:$0xff] }
 0x16a   : > { %v1979_v32 = vmax.f32 %v1978_v44, %v1918_v20  ;;  %v1981_v45 = vmax.f32 %v1980_v46, %v4083_v18  ;;  %v1669_v58 = vmul.f32 %v2837_v24, %v3279_v4  ;;  %v1161_v37 = vpop.f32.mrb[53].mxu0  ;;  %v1497_v29 = vpop.f32.mrb[53].mxu1  ;;  %v1919_v31 = vadd.f32 %v3299_v14, %v1748_v35 }
 0x16b   : > { %2659 = vst [vmem:[%s3777_s19 + $0x10] sm:$0xff] %v2571_v7   ;;  %v1973_v42 = vmax.f32 %v1972_v2, %v3758_v33  ;;  %v1975_v39 = vmax.f32 %v1974_v25, %v4084_v41  ;;  %v1667_v26 = vmul.f32 %v3279_v4, %v1161_v37  ;;  %v2838_v34 = vpop.f32.mrb[54].mxu0  ;;  %v2922_v13 = vpop.f32.mrb[54].mxu1  ;;  %v1921_v1 = vadd.f32 %v3299_v14, %v1750_v57 }
 0x16c   : > { %v1840_v16 = vadd.f32 %v3299_v14, %v1669_v58  ;;  %v1670_v46 = vmul.f32 %v2838_v34, %v3279_v4  ;;  %v1164_v20 = vpop.f32.mrb[55].mxu0  ;;  %v1753_v54 = vmul.f32 %v2921_v12, %v3279_v4  ;;  %v1500_v44 = vpop.f32.mrb[55].mxu1  ;;  %v1982_v53 = vmax.f32 %v1981_v45, %v1919_v31  ;;  %v4085_v58 = vld [vmem:[#allocation10_spill] sm:$0xff]  ;;  %v4086_v45 = vld [vmem:[#allocation11_spill] sm:$0xff] }
 0x16d   : > { %v2080_v7 = vmax.f32 %v1973_v42, 0.0  ;;  %v1976_v33 = vmax.f32 %v1975_v39, %v3762_v3  ;;  %v1838_v2 = vadd.f32 %v3299_v14, %v1667_v26  ;;  %v2082_v56 = vmax.f32 %v1979_v32, 0.0 }
 0x16e   : > { %v1989_v25 = vmax.f32 %v3477_v17, %v1840_v16  ;;  %v1841_v57 = vadd.f32 %v3299_v14, %v1670_v46  ;;  %v1668_v35 = vmul.f32 %v3279_v4, %v1164_v20  ;;  %v3810_v12 = vadd.f32 %v3299_v14, %v1753_v54 }
 0x16f   : > { %v2576_v24 = vpack.c.bf16 %v2080_v7, %v2079_v21  ;;  %v2081_v18 = vmax.f32 %v1976_v33, 0.0  ;;  %v1983_v37 = vmax.f32 %v4085_v58, %v1838_v2  ;;  %v1751_v32 = vmul.f32 %v3279_v4, %v1497_v29 }
 0x170   : > { %v1992_v42 = vmax.f32 %v3456_v55, %v1841_v57  ;;  %v1839_v3 = vadd.f32 %v3299_v14, %v1668_v35  ;;  %v1990_v17 = vmax.f32 %v1989_v25, %v4086_v45  ;;  %v1754_v21 = vmul.f32 %v2922_v13, %v3279_v4 }
 0x171   : > { %2660 = vst [vmem:[%s3777_s19 + $0x18] sm:$0xff] %v2576_v24   ;;  %v2581_v41 = vpack.c.bf16 %v2082_v56, %v2081_v18  ;;  %v1984_v39 = vmax.f32 %v1983_v37, %v3459_v30  ;;  %v1752_v31 = vmul.f32 %v3279_v4, %v1500_v44  ;;  %v2841_v26 = vpop.f32.mrb[56].mxu0  ;;  %v2925_v34 = vpop.f32.mrb[56].mxu1  ;;  %v1922_v55 = vadd.f32 %v3299_v14, %v1751_v32  ;;  %v4087_v56 = vld [vmem:[#allocation8_spill] sm:$0xff] }
 0x172   : > { %v1986_v16 = vmax.f32 %v3464_v60, %v1839_v3  ;;  %v1993_v46 = vmax.f32 %v1992_v42, %v3480_v61  ;;  %v1673_v29 = vmul.f32 %v2841_v26, %v3279_v4  ;;  %v1177_v20 = vpop.f32.mrb[57].mxu0  ;;  %v1513_v54 = vpop.f32.mrb[57].mxu1  ;;  %v2083_v7 = vmax.f32 %v1982_v53, 0.0 }
 0x173   : > { %2661 = vst [vmem:[%s3777_s19 + $0x20] sm:$0xff] %v2581_v41   ;;  %v1985_v33 = vmax.f32 %v1984_v39, %v1920_v38  ;;  %v1923_v30 = vadd.f32 %v3299_v14, %v1752_v31  ;;  %v1671_v13 = vmul.f32 %v3279_v4, %v1177_v20  ;;  %v2842_v44 = vpop.f32.mrb[58].mxu0  ;;  %v2926_v2 = vpop.f32.mrb[58].mxu1  ;;  %v1991_v60 = vmax.f32 %v1990_v17, %v1922_v55  ;;  %v4090_v20 = vld [vmem:[#allocation13_spill] sm:$0xff] }
 0x174   : > { %v1987_v25 = vmax.f32 %v1986_v16, %v4087_v56  ;;  %v1844_v57 = vadd.f32 %v3299_v14, %v1673_v29  ;;  %v1674_v61 = vmul.f32 %v2842_v44, %v3279_v4  ;;  %v1180_v35 = vpop.f32.mrb[59].mxu0  ;;  %v1516_v24 = vpop.f32.mrb[59].mxu1  ;;  %v1925_v42 = vadd.f32 %v3299_v14, %v1754_v21  ;;  %v4088_v21 = vld [vmem:[#allocation15_spill] sm:$0xff] }
 0x175   : > { %v2084_v18 = vmax.f32 %v1985_v33, 0.0  ;;  %v1994_v58 = vmax.f32 %v1993_v46, %v1923_v30  ;;  %v1842_v38 = vadd.f32 %v3299_v14, %v1671_v13  ;;  %v1672_v53 = vmul.f32 %v3279_v4, %v1180_v35 }
 0x176   : > { %v1988_v37 = vmax.f32 %v1987_v25, %v1921_v1  ;;  %v2001_v3 = vmax.f32 %v3537_v6, %v1844_v57  ;;  %v1845_v32 = vadd.f32 %v3299_v14, %v1674_v61  ;;  %v2086_v17 = vmax.f32 %v1991_v60, 0.0  ;;  %v4089_v6 = vld [vmem:[#allocation14_spill] sm:$0xff]  ;;  %v4091_v25 = vld [vmem:[#allocation12_spill] sm:$0xff]  ;;  %v4092_v61 = vld [vmem:[#allocation17_spill] sm:$0xff] }
 0x177   : > { %v2586_v45 = vpack.c.bf16 %v2084_v18, %v2083_v7  ;;  %v1995_v41 = vmax.f32 %v3474_v15, %v1842_v38  ;;  %v1843_v39 = vadd.f32 %v3299_v14, %v1672_v53  ;;  %v1757_v16 = vmul.f32 %v2925_v34, %v3279_v4 }
 0x178   : > { %v2085_v31 = vmax.f32 %v1988_v37, 0.0  ;;  %v2004_v26 = vmax.f32 %v3486_v50, %v1845_v32  ;;  %v1755_v55 = vmul.f32 %v3279_v4, %v1513_v54  ;;  %v2087_v1 = vmax.f32 %v1994_v58, 0.0 }
 0x179   : > { %2662 = vst [vmem:[%s3777_s19 + $0x28] sm:$0xff] %v2586_v45   ;;  %v1996_v46 = vmax.f32 %v1995_v41, %v4088_v21  ;;  %v1998_v29 = vmax.f32 %v4089_v6, %v1843_v39  ;;  %v2002_v7 = vmax.f32 %v2001_v3, %v4090_v20  ;;  %v2845_v33 = vpop.f32.mrb[60].mxu0  ;;  %v2929_v15 = vpop.f32.mrb[60].mxu1  ;;  %v1758_v50 = vmul.f32 %v2926_v2, %v3279_v4 }
 0x17a   : > { %v2591_v30 = vpack.c.bf16 %v2086_v17, %v2085_v31  ;;  %v1926_v13 = vadd.f32 %v3299_v14, %v1755_v55  ;;  %v1756_v34 = vmul.f32 %v3279_v4, %v1516_v24  ;;  %v1193_v44 = vpop.f32.mrb[61].mxu0  ;;  %v1529_v54 = vpop.f32.mrb[61].mxu1  ;;  %v1928_v57 = vadd.f32 %v3299_v14, %v1757_v16 }
 0x17b   : > { %v1997_v56 = vmax.f32 %v1996_v46, %v3810_v12  ;;  %v1999_v60 = vmax.f32 %v1998_v29, %v4091_v25  ;;  %v2005_v35 = vmax.f32 %v2004_v26, %v4092_v61  ;;  %v2846_v18 = vpop.f32.mrb[62].mxu0  ;;  %v2930_v58 = vpop.f32.mrb[62].mxu1  ;;  %v1677_v2 = vmul.f32 %v2845_v33, %v3279_v4  ;;  %v4093_v29 = vld [vmem:[#allocation18_spill] sm:$0xff]  ;;  %v4094_v25 = vld [vmem:[#allocation19_spill] sm:$0xff] }
 0x17c   : > { %2663 = vst [vmem:[%s3777_s19 + $0x30] sm:$0xff] %v2591_v30   ;;  %v2003_v38 = vmax.f32 %v2002_v7, %v1926_v13  ;;  %v1927_v53 = vadd.f32 %v3299_v14, %v1756_v34  ;;  %v1675_v24 = vmul.f32 %v3279_v4, %v1193_v44  ;;  %v1196_v37 = vpop.f32.mrb[63].mxu0  ;;  %v1532_v3 = vpop.f32.mrb[63].mxu1  ;;  %v1678_v45 = vmul.f32 %v2846_v18, %v3279_v4 }
 0x17d   : > { %v2088_v32 = vmax.f32 %v1997_v56, 0.0  ;;  %v2000_v12 = vmax.f32 %v1999_v60, %v1925_v42  ;;  %v1676_v17 = vmul.f32 %v3279_v4, %v1196_v37  ;;  %v1848_v31 = vadd.f32 %v3299_v14, %v1677_v2 }
 0x17e   : > { %v2090_v41 = vmax.f32 %v2003_v38, 0.0  ;;  %v2006_v39 = vmax.f32 %v2005_v35, %v1927_v53  ;;  %v1846_v26 = vadd.f32 %v3299_v14, %v1675_v24  ;;  %v1849_v21 = vadd.f32 %v3299_v14, %v1678_v45  ;;  %v4095_v35 = vld [vmem:[#allocation16_spill] sm:$0xff] }
 0x17f   : > { %v2596_v16 = vpack.c.bf16 %v2088_v32, %v2087_v1  ;;  %v2089_v55 = vmax.f32 %v2000_v12, 0.0  ;;  %v1847_v46 = vadd.f32 %v3299_v14, %v1676_v17  ;;  %v1929_v6 = vadd.f32 %v3299_v14, %v1758_v50 }
 0x180   : > { %v2013_v42 = vmax.f32 %v3561_v47, %v1848_v31  ;;  %v2007_v20 = vmax.f32 %v4093_v29, %v1846_v26  ;;  %v1761_v7 = vmul.f32 %v2929_v15, %v3279_v4  ;;  %v2016_v30 = vmax.f32 %v3540_v8, %v1849_v21 }
 0x181   : > { %2664 = vst [vmem:[%s3777_s19 + $0x38] sm:$0xff] %v2596_v16   ;;  %v2601_v33 = vpack.c.bf16 %v2090_v41, %v2089_v55  ;;  %v2010_v1 = vmax.f32 %v3548_v27, %v1847_v46  ;;  %v1759_v13 = vmul.f32 %v3279_v4, %v1529_v54  ;;  %v2849_v34 = vpop.f32.mrb[64].mxu0  ;;  %v2933_v44 = vpop.f32.mrb[64].mxu1  ;;  %v2091_v56 = vmax.f32 %v2006_v39, 0.0 }
 0x182   : > { %v2008_v50 = vmax.f32 %v2007_v20, %v3543_v63  ;;  %v3871_v47 = vadd.f32 %v3299_v14, %v1761_v7  ;;  %v2014_v60 = vmax.f32 %v2013_v42, %v4094_v25  ;;  %v1209_v61 = vpop.f32.mrb[65].mxu0  ;;  %v1545_v15 = vpop.f32.mrb[65].mxu1  ;;  %v1760_v27 = vmul.f32 %v3279_v4, %v1532_v3  ;;  %v4096_v7 = vld [vmem:[#allocation22_spill] sm:$0xff] }
 0x183   : > { %2665 = vst [vmem:[%s3777_s19 + $0x40] sm:$0xff] %v2601_v33   ;;  %v2011_v18 = vmax.f32 %v2010_v1, %v4095_v35  ;;  %v1930_v8 = vadd.f32 %v3299_v14, %v1759_v13  ;;  %v2017_v54 = vmax.f32 %v2016_v30, %v3564_v28  ;;  %v2850_v38 = vpop.f32.mrb[66].mxu0  ;;  %v2934_v53 = vpop.f32.mrb[66].mxu1  ;;  %v1762_v63 = vmul.f32 %v2930_v58, %v3279_v4 }
 0x184   : > { %v2009_v2 = vmax.f32 %v2008_v50, %v1928_v57  ;;  %v1681_v24 = vmul.f32 %v2849_v34, %v3279_v4  ;;  %v1679_v37 = vmul.f32 %v3279_v4, %v1209_v61  ;;  %v1212_v32 = vpop.f32.mrb[67].mxu0  ;;  %v1548_v12 = vpop.f32.mrb[67].mxu1  ;;  %v1931_v41 = vadd.f32 %v3299_v14, %v1760_v27  ;;  %v4097_v34 = vld [vmem:[#allocation24_spill] sm:$0xff]  ;;  %v4100_v27 = vld [vmem:[#allocation26_spill] sm:$0xff] }
 0x185   : > { %v2012_v45 = vmax.f32 %v2011_v18, %v1929_v6  ;;  %v2015_v17 = vmax.f32 %v2014_v60, %v1930_v8  ;;  %v1682_v39 = vmul.f32 %v2850_v38, %v3279_v4  ;;  %v1680_v57 = vmul.f32 %v3279_v4, %v1212_v32  ;;  %v4099_v60 = vld [vmem:[#allocation21_spill] sm:$0xff] }
 0x186   : > { %v2092_v3 = vmax.f32 %v2009_v2, 0.0  ;;  %v1852_v28 = vadd.f32 %v3299_v14, %v1681_v24  ;;  %v1850_v31 = vadd.f32 %v3299_v14, %v1679_v37  ;;  %v2018_v16 = vmax.f32 %v2017_v54, %v1931_v41  ;;  %v4101_v24 = vld [vmem:[#allocation20_spill] sm:$0xff] }
 0x187   : > { %v2093_v58 = vmax.f32 %v2012_v45, 0.0  ;;  %v2094_v26 = vmax.f32 %v2015_v17, 0.0  ;;  %v1853_v55 = vadd.f32 %v3299_v14, %v1682_v39  ;;  %v1851_v42 = vadd.f32 %v3299_v14, %v1680_v57 }
 0x188   : > { %v2606_v21 = vpack.c.bf16 %v2092_v3, %v2091_v56  ;;  %v2025_v46 = vmax.f32 %v3616_v0, %v1852_v28  ;;  %v2019_v6 = vmax.f32 %v3558_v52, %v1850_v31  ;;  %v1933_v20 = vadd.f32 %v3299_v14, %v1762_v63  ;;  %v4098_v56 = vld [vmem:[#allocation23_spill] sm:$0xff] }
 0x189   : > { %v2611_v29 = vpack.c.bf16 %v2094_v26, %v2093_v58  ;;  %v2028_v33 = vmax.f32 %v4096_v7, %v1853_v55  ;;  %v1765_v30 = vmul.f32 %v2933_v44, %v3279_v4  ;;  %v2853_v1 = vpop.f32.mrb[68].mxu0  ;;  %v2937_v13 = vpop.f32.mrb[68].mxu1  ;;  %v2022_v25 = vmax.f32 %v4098_v56, %v1851_v42  ;;  %v4103_v56 = vld [vmem:[#allocation28_spill] sm:$0xff] }
 0x18a   : > { %2666 = vst [vmem:[%s3777_s19 + $0x48] sm:$0xff] %v2606_v21   ;;  %v2020_v50 = vmax.f32 %v2019_v6, %v4097_v34  ;;  %v1763_v0 = vmul.f32 %v3279_v4, %v1545_v15  ;;  %v2026_v52 = vmax.f32 %v2025_v46, %v4099_v60  ;;  %v1225_v61 = vpop.f32.mrb[69].mxu0  ;;  %v1561_v35 = vpop.f32.mrb[69].mxu1  ;;  %v2095_v18 = vmax.f32 %v2018_v16, 0.0 }
 0x18b   : > { %2667 = vst [vmem:[%s3777_s19 + $0x50] sm:$0xff] %v2611_v29   ;;  %v3901_v8 = vadd.f32 %v3299_v14, %v1765_v30  ;;  %v1764_v44 = vmul.f32 %v3279_v4, %v1548_v12  ;;  %v2029_v54 = vmax.f32 %v2028_v33, %v4100_v27  ;;  %v2854_v38 = vpop.f32.mrb[70].mxu0  ;;  %v2938_v2 = vpop.f32.mrb[70].mxu1  ;;  %v2023_v37 = vmax.f32 %v2022_v25, %v4101_v24  ;;  %v4102_v29 = vld [vmem:[#allocation27_spill] sm:$0xff]  ;;  %v4104_v24 = vld [vmem:[#allocation25_spill] sm:$0xff] }
 0x18c   : > { %v2021_v63 = vmax.f32 %v2020_v50, %v3871_v47  ;;  %v1934_v15 = vadd.f32 %v3299_v14, %v1763_v0  ;;  %v1685_v32 = vmul.f32 %v2853_v1, %v3279_v4  ;;  %v1228_v45 = vpop.f32.mrb[71].mxu0  ;;  %v1564_v17 = vpop.f32.mrb[71].mxu1  ;;  %v1766_v41 = vmul.f32 %v2934_v53, %v3279_v4 }
 0x18d   : > { %v1935_v39 = vadd.f32 %v3299_v14, %v1764_v44  ;;  %v1683_v12 = vmul.f32 %v3279_v4, %v1225_v61  ;;  %v1686_v3 = vmul.f32 %v2854_v38, %v3279_v4  ;;  %v2024_v31 = vmax.f32 %v2023_v37, %v1933_v20 }
 0x18e   : > { %v2096_v28 = vmax.f32 %v2021_v63, 0.0  ;;  %v2027_v57 = vmax.f32 %v2026_v52, %v1934_v15  ;;  %v1856_v47 = vadd.f32 %v3299_v14, %v1685_v32  ;;  %v1684_v55 = vmul.f32 %v3279_v4, %v1228_v45  ;;  %v3926_v4 = vld [vmem:[%s4032_s2] ss:$0 sm:$0xff] }
 0x18f   : > { %v2030_v58 = vmax.f32 %v2029_v54, %v1935_v39  ;;  %v1854_v26 = vadd.f32 %v3299_v14, %v1683_v12  ;;  %v1857_v16 = vadd.f32 %v3299_v14, %v1686_v3  ;;  %v2097_v21 = vmax.f32 %v2024_v31, 0.0 }
 0x190   : > { %v2616_v53 = vpack.c.bf16 %v2096_v28, %v2095_v18  ;;  %v2098_v46 = vmax.f32 %v2027_v57, 0.0  ;;  %v2037_v6 = vmax.f32 %v3637_v5, %v1856_v47  ;;  %v1937_v42 = vadd.f32 %v3299_v14, %v1766_v41 }
 0x191   : > { %v2031_v20 = vmax.f32 %v4102_v29, %v1854_v26  ;;  %v2040_v7 = vmax.f32 %v3619_v23, %v1857_v16  ;;  %v1855_v33 = vadd.f32 %v3299_v14, %v1684_v55  ;;  %v2857_v30 = vpop.f32.mrb[72].mxu0  ;;  %v2941_v1 = vpop.f32.mrb[72].mxu1  ;;  %v1769_v5 = vmul.f32 %v3926_v4, %v2937_v13  ;;  %v3938_v13 = vld [vmem:[%s4033_s3] ss:$0 sm:$0xff] }
 0x192   : > { %2668 = vst [vmem:[%s3777_s19 + $0x58] sm:$0xff] %v2616_v53   ;;  %v2621_v34 = vpack.c.bf16 %v2098_v46, %v2097_v21  ;;  %v1767_v50 = vmul.f32 %v3926_v4, %v1561_v35  ;;  %v2038_v25 = vmax.f32 %v2037_v6, %v4103_v56  ;;  %v1241_v0 = vpop.f32.mrb[73].mxu0  ;;  %v1577_v23 = vpop.f32.mrb[73].mxu1  ;;  %v2099_v60 = vmax.f32 %v2030_v58, 0.0  ;;  %v4105_v46 = vld [vmem:[#allocation31_spill] sm:$0xff] }
 0x193   : > { %v2032_v14 = vmax.f32 %v2031_v20, %v3622_v40  ;;  %v2034_v52 = vmax.f32 %v3626_v43, %v1855_v33  ;;  %v1768_v61 = vmul.f32 %v3926_v4, %v1564_v17  ;;  %v2858_v18 = vpop.f32.mrb[74].mxu0  ;;  %v2942_v44 = vpop.f32.mrb[74].mxu1  ;;  %v1770_v27 = vmul.f32 %v3926_v4, %v2938_v2 }
 0x194   : > { %2669 = vst [vmem:[%s3777_s19 + $0x60] sm:$0xff] %v2621_v34   ;;  %v1938_v35 = vadd.f32 %v3938_v13, %v1767_v50  ;;  %v2041_v54 = vmax.f32 %v2040_v7, %v3640_v49  ;;  %v1689_v40 = vmul.f32 %v3926_v4, %v2857_v30  ;;  %v1244_v38 = vpop.f32.mrb[75].mxu0  ;;  %v1580_v43 = vpop.f32.mrb[75].mxu1  ;;  %v1940_v15 = vadd.f32 %v3938_v13, %v1769_v5  ;;  %v4106_v30 = vld [vmem:[#allocation32_spill] sm:$0xff]  ;;  %v4107_v5 = vld [vmem:[#allocation30_spill] sm:$0xff] }
 0x195   : > { %v2033_v63 = vmax.f32 %v2032_v14, %v3901_v8  ;;  %v2035_v37 = vmax.f32 %v2034_v52, %v4104_v24  ;;  %v1939_v32 = vadd.f32 %v3938_v13, %v1768_v61  ;;  %v1687_v41 = vmul.f32 %v3926_v4, %v1241_v0  ;;  %v4108_v0 = vld [vmem:[#allocation33_spill] sm:$0xff] }
 0x196   : > { %v2039_v45 = vmax.f32 %v2038_v25, %v1938_v35  ;;  %v1860_v17 = vadd.f32 %v3938_v13, %v1689_v40  ;;  %v1690_v2 = vmul.f32 %v3926_v4, %v2858_v18  ;;  %v1688_v3 = vmul.f32 %v3926_v4, %v1244_v38  ;;  %v4109_v61 = vld [vmem:[#allocation29_spill] sm:$0xff] }
 0x197   : > { %v2100_v49 = vmax.f32 %v2033_v63, 0.0  ;;  %v2036_v39 = vmax.f32 %v2035_v37, %v1937_v42  ;;  %v2042_v12 = vmax.f32 %v2041_v54, %v1939_v32  ;;  %v1941_v8 = vadd.f32 %v3938_v13, %v1770_v27  ;;  %v4110_v27 = vld [vmem:[#allocation35_spill] sm:$0xff] }
 0x198   : > { %v2049_v28 = vmax.f32 %v3684_v51, %v1860_v17  ;;  %v1858_v31 = vadd.f32 %v3938_v13, %v1687_v41  ;;  %v1861_v57 = vadd.f32 %v3938_v13, %v1690_v2  ;;  %v2102_v26 = vmax.f32 %v2039_v45, 0.0 }
 0x199   : > { %v2626_v47 = vpack.c.bf16 %v2100_v49, %v2099_v60  ;;  %v2101_v58 = vmax.f32 %v2036_v39, 0.0  ;;  %v1859_v16 = vadd.f32 %v3938_v13, %v1688_v3  ;;  %v2861_v55 = vpop.f32.mrb[76].mxu0  ;;  %v2945_v53 = vpop.f32.mrb[76].mxu1  ;;  %v1773_v42 = vmul.f32 %v3926_v4, %v2941_v1 }
 0x19a   : > { %v2043_v21 = vmax.f32 %v3634_v59, %v1858_v31  ;;  %v2052_v6 = vmax.f32 %v4105_v46, %v1861_v57  ;;  %v1771_v29 = vmul.f32 %v3926_v4, %v1577_v23  ;;  %v1257_v51 = vpop.f32.mrb[77].mxu0  ;;  %v1593_v20 = vpop.f32.mrb[77].mxu1  ;;  %v2103_v33 = vmax.f32 %v2042_v12, 0.0  ;;  %v4111_v57 = vld [vmem:[#allocation36_spill] sm:$0xff] }
 0x19b   : > { %2670 = vst [vmem:[%s3777_s19 + $0x68] sm:$0xff] %v2626_v47   ;;  %v2631_v7 = vpack.c.bf16 %v2102_v26, %v2101_v58  ;;  %v2046_v34 = vmax.f32 %v4106_v30, %v1859_v16  ;;  %v2050_v50 = vmax.f32 %v2049_v28, %v4107_v5  ;;  %v2862_v56 = vpop.f32.mrb[78].mxu0  ;;  %v2946_v25 = vpop.f32.mrb[78].mxu1  ;;  %v1774_v1 = vmul.f32 %v3926_v4, %v2942_v44 }
 0x19c   : > { %v2044_v59 = vmax.f32 %v2043_v21, %v4108_v0  ;;  %v1942_v60 = vadd.f32 %v3938_v13, %v1771_v29  ;;  %v1772_v23 = vmul.f32 %v3926_v4, %v1580_v43  ;;  %v1260_v14 = vpop.f32.mrb[79].mxu0  ;;  %v1596_v52 = vpop.f32.mrb[79].mxu1  ;;  %v1944_v35 = vadd.f32 %v3938_v13, %v1773_v42 }
 0x19d   : > { %2671 = vst [vmem:[%s3777_s19 + $0x70] sm:$0xff] %v2631_v7   ;;  %v2047_v18 = vmax.f32 %v2046_v34, %v4109_v61  ;;  %v2053_v54 = vmax.f32 %v2052_v6, %v4110_v27  ;;  %v1693_v40 = vmul.f32 %v3926_v4, %v2861_v55  ;;  %v1691_v37 = vmul.f32 %v3926_v4, %v1257_v51  ;;  %v4112_v51 = vld [vmem:[#allocation37_spill] sm:$0xff] }
 0x19e   : > { %v2045_v38 = vmax.f32 %v2044_v59, %v1940_v15  ;;  %v2051_v63 = vmax.f32 %v2050_v50, %v1942_v60  ;;  %v1943_v24 = vadd.f32 %v3938_v13, %v1772_v23  ;;  %v1694_v32 = vmul.f32 %v3926_v4, %v2862_v56 }
 0x19f   : > { %v2048_v44 = vmax.f32 %v2047_v18, %v1941_v8  ;;  %v1864_v43 = vadd.f32 %v3938_v13, %v1693_v40  ;;  %v1692_v45 = vmul.f32 %v3926_v4, %v1260_v14  ;;  %v1862_v49 = vadd.f32 %v3938_v13, %v1691_v37  ;;  %v4115_v40 = vld [vmem:[#allocation40_spill] sm:$0xff] }
 0x1a0   : > { %v2104_v17 = vmax.f32 %v2045_v38, 0.0  ;;  %v2106_v41 = vmax.f32 %v2051_v63, 0.0  ;;  %v2054_v2 = vmax.f32 %v2053_v54, %v1943_v24  ;;  %v1865_v12 = vadd.f32 %v3938_v13, %v1694_v32  ;;  %v4116_v24 = vld [vmem:[#allocation43_spill] sm:$0xff] }
 0x1a1   : > { %v2105_v39 = vmax.f32 %v2048_v44, 0.0  ;;  %v2061_v15 = vmax.f32 %v3715_v48, %v1864_v43  ;;  %v1863_v3 = vadd.f32 %v3938_v13, %v1692_v45  ;;  %v2865_v8 = vpop.f32.mrb[80].mxu0  ;;  %v1945_v31 = vadd.f32 %v3938_v13, %v1774_v1  ;;  %v4118_v43 = vld [vmem:[#allocation38_spill] sm:$0xff] }
 0x1a2   : > { %v2636_v28 = vpack.c.bf16 %v2104_v17, %v2103_v33  ;;  %v2055_v47 = vmax.f32 %v4111_v57, %v1862_v49  ;;  %v1777_v58 = vmul.f32 %v3926_v4, %v2945_v53  ;;  %v1273_v26 = vpop.f32.mrb[81].mxu0  ;;  %v2064_v55 = vmax.f32 %v3691_v62, %v1865_v12  ;;  %v4113_v53 = vld [vmem:[#allocation34_spill] sm:$0xff]  ;;  %v4120_v17 = vld [vmem:[#allocation39_spill] sm:$0xff] }
 0x1a3   : > { %v2641_v16 = vpack.c.bf16 %v2106_v41, %v2105_v39  ;;  %v2058_v21 = vmax.f32 %v3704_v11, %v1863_v3  ;;  %v1775_v48 = vmul.f32 %v3926_v4, %v1593_v20  ;;  %v2866_v46 = vpop.f32.mrb[82].mxu0  ;;  %v2107_v6 = vmax.f32 %v2054_v2, 0.0  ;;  %v4121_v2 = vld [vmem:[#allocation41_spill] sm:$0xff] }
 0x1a4   : > { %2672 = vst [vmem:[%s3777_s19 + $0x78] sm:$0xff] %v2636_v28   ;;  %v2056_v42 = vmax.f32 %v2055_v47, %v3694_v9  ;;  %v1948_v29 = vadd.f32 %v3938_v13, %v1777_v58  ;;  %v2062_v7 = vmax.f32 %v2061_v15, %v4112_v51  ;;  %v1276_v33 = vpop.f32.mrb[83].mxu0  ;;  %v1776_v62 = vmul.f32 %v3926_v4, %v1596_v52 }
 0x1a5   : > { %2673 = vst [vmem:[%s3777_s19 + $0x80] sm:$0xff] %v2641_v16   ;;  %v2059_v30 = vmax.f32 %v2058_v21, %v4113_v53  ;;  %v1946_v34 = vadd.f32 %v3938_v13, %v1775_v48  ;;  %v2065_v11 = vmax.f32 %v2064_v55, %v3707_v36  ;;  %v1778_v5 = vmul.f32 %v3926_v4, %v2946_v25 }
 0x1a6   : > { %v2057_v20 = vmax.f32 %v2056_v42, %v1944_v35  ;;  %v1697_v50 = vmul.f32 %v3926_v4, %v2865_v8  ;;  %v1695_v9 = vmul.f32 %v3926_v4, %v1273_v26  ;;  %v1947_v59 = vadd.f32 %v3938_v13, %v1776_v62 }
 0x1a7   : > { %v2060_v56 = vmax.f32 %v2059_v30, %v1945_v31  ;;  %v2063_v0 = vmax.f32 %v2062_v7, %v1946_v34  ;;  %v1698_v60 = vmul.f32 %v3926_v4, %v2866_v46  ;;  %v1696_v36 = vmul.f32 %v3926_v4, %v1276_v33  ;;  %v4117_v4 = vld [vmem:[#allocation3_spill] sm:$0xff] }
 0x1a8   : > { %v2108_v1 = vmax.f32 %v2057_v20, 0.0  ;;  %v1868_v23 = vadd.f32 %v3938_v13, %v1697_v50  ;;  %v1866_v14 = vadd.f32 %v3938_v13, %v1695_v9  ;;  %v2066_v61 = vmax.f32 %v2065_v11, %v1947_v59 }
 0x1a9   : > { %v2109_v52 = vmax.f32 %v2060_v56, 0.0  ;;  %v2110_v25 = vmax.f32 %v2063_v0, 0.0  ;;  %v1869_v18 = vadd.f32 %v3938_v13, %v1698_v60  ;;  %v4114_v27 = vmax.f32 %v3308_v19, %v3701_v22  ;;  %v4122_v19 = vld [vmem:[#allocation42_spill] sm:$0xff] }
 0x1aa   : > { %v2646_v35 = vpack.c.bf16 %v2108_v1, %v2107_v6  ;;  %v2067_v38 = vmax.f32 %v4115_v40, %v1866_v14  ;;  %v1867_v63 = vadd.f32 %v3938_v13, %v1696_v36  ;;  %v1910_v37 = vadd.f32 %v3938_v13, %v4116_v24 }
 0x1ab   : > { %v1951_v54 = vmax.f32 %v4114_v27, %v1868_v23  ;;  %v2651_v44 = vpack.c.bf16 %v2110_v25, %v2109_v52  ;;  %v4119_v32 = vmax.f32 %v4117_v4, %v4118_v43  ;;  %v1908_v41 = vadd.f32 %v3938_v13, %v4120_v17 }
 0x1ac   : > { %2674 = vst [vmem:[%s3777_s19 + $0x88] sm:$0xff] %v2646_v35   ;;  %v2068_v22 = vmax.f32 %v2067_v38, %v4122_v19  ;;  %v2070_v39 = vmax.f32 %v3746_v10, %v1867_v63  ;;  %v1949_v12 = vadd.f32 %v3938_v13, %v1778_v5  ;;  %v2111_v57 = vmax.f32 %v2066_v61, 0.0 }
 0x1ad   : > { %v1954_v45 = vmax.f32 %v4119_v32, %v1869_v18  ;;  %v1952_v49 = vmax.f32 %v1951_v54, %v4121_v2  ;;  %2675 = vst [vmem:[%s3777_s19 + $0x90] sm:$0xff] %v2651_v44  }
 0x1ae   : > { %v2069_v3 = vmax.f32 %v2068_v22, %v1948_v29  ;;  %v2071_v8 = vmax.f32 %v2070_v39, %v1908_v41 }
 0x1af   : > { %v1955_v15 = vmax.f32 %v1954_v45, %v1910_v37  ;;  %v2073_v28 = vmax.f32 %v1952_v49, 0.0 }
 0x1b0   : > { %v2112_v47 = vmax.f32 %v2069_v3, 0.0  ;;  %v2072_v58 = vmax.f32 %v2071_v8, %v1949_v12 }
 0x1b1   : > { %v2074_v31 = vmax.f32 %v1955_v15, 0.0 }
 0x1b2   : > { %v2656_v16 = vpack.c.bf16 %v2112_v47, %v2111_v57  ;;  %v2113_v55 = vmax.f32 %v2072_v58, 0.0 }
 0x1b3   : > { %v2561_v26 = vpack.c.bf16 %v2074_v31, %v2073_v28 }
 0x1b4   : > { %2676 = vst [vmem:[%s3777_s19 + $0x98] sm:$0xff] %v2656_v16   ;;  %v2557_v21 = vpack.c.bf16 %v2113_v55, %v2113_v55 }
 0x1b5   : > { %2562 = vst [vmem:[%s3777_s19] sm:$0xff] %v2561_v26  }
 0x1b6   : > { %2319 = vst [vmem:[%s3777_s19 + $0xa0] sm:$0xf] %v2557_v21 }
 0x1b7 PF: > { %s14_s15 = sadd.s32 1, %s3071_s15  }
 0x1b8   : > { %p11_p4 = scmp.ge.s32.totalorder %s14_s15, 4  }
 0x1ba   :  { %13 = sbr.rel (!%p11_p4) target bundleno = 1 (0x1), region = 66 }

// kernel: convnet8_forward.5
= control target key start
LH: loop header
LB: loop body
LE: loop exit
PB: predicated region body
PF: predicated region fallthrough
CT: control target
= control target key end

     0   :  { %s2333_s15 = smov 0   ;;  %s2686_s0 = inlined_call_operand.vmem [shape: bf16[2,328,432], index: 0, kind: input, shape index: {}]   ;;  %s2687_s1 = inlined_call_operand.vmem [shape: bf16[432,128], index: 1, kind: input, shape index: {}]   ;;  %s2688_s2 = inlined_call_operand.vmem [shape: f32[1,128], index: 2, kind: input, shape index: {}]   ;;  %s2689_s3 = inlined_call_operand.vmem [shape: f32[1,128], index: 3, kind: input, shape index: {}]   ;;  %s2690_s4 = inlined_call_operand.vmem [shape: bf16[2,328,128], index: 4, kind: output, shape index: {}]  }
   0x1 LB: > { %s1752_s16 = sadd.s32 4294967295, %s2305_s15   ;;  %p1756_p0 = scmp.ge.s32.totalorder %s2305_s15, 1  ;;  %s2305_s15 = sphi %s2333_s15, %s14_s15  }
   0x2   : > { %p162_p1 = scmp.lt.s32.totalorder %s2305_s15, 3 }
   0x4   : > { %p163_p2 = pnand %p1756_p0, %p162_p1 }
   0x5   : > { %v2148_v0 = vld [vmem:[%s2687_s1] sm:$0xff] (!%p163_p2)   ;;  %v2307_v1 = vmov (!%p163_p2), 0   ;;  %v2149_v2 = vld [vmem:[%s2687_s1 + $0x8] sm:$0xff] (!%p163_p2)   ;;  %v2150_v4 = vld [vmem:[%s2687_s1 + $0x10] sm:$0xff] (!%p163_p2)   ;;  %p188_p3 = scmp.lt.s32.totalorder (!%p163_p2), %s1752_s16, 1  ;;  %vm890_vm0 = vcmask (!%p163_p2), 392192  }
   0x6   : > { %166 = sbr.rel (%p163_p2) target bundleno = 453 (0x1c5), region = 36  ;;  %954 = vmatprep.subr.bf16.mxu1 (!%p163_p2), %v2307_v1  ;;  %1154 = vmatprep.subr.bf16.mxu0 (!%p163_p2), %v2307_v1  ;;  %v2153_v3 = vld [vmem:[%s2687_s1 + $0x80] sm:$0xff] (!%p163_p2)   ;;  %v2155_v5 = vld [vmem:[%s2687_s1 + $0x88] sm:$0xff] (!%p163_p2)   ;;  %v2151_v6 = vld [vmem:[%s2687_s1 + $0x18] sm:$0xff] (!%p163_p2)  }
   0x7   : > { %955 = vmatpush1.bf16.msra.mxu1 (!%p163_p2), %v2148_v0  ;;  %1155 = vmatpush1.bf16.msra.mxu0 (!%p163_p2), %v2153_v3  ;;  %v2157_v7 = vld [vmem:[%s2687_s1 + $0x90] sm:$0xff] (!%p163_p2)   ;;  %v2152_v8 = vld [vmem:[%s2687_s1 + $0x20] sm:$0xff] (!%p163_p2)   ;;  %v2159_v9 = vld [vmem:[%s2687_s1 + $0x98] sm:$0xff] (!%p163_p2)  }
   0x8   : > { %956 = vmatprep.subr.bf16.mxu1 (!%p163_p2), %v2307_v1  ;;  %1156 = vmatprep.subr.bf16.mxu0 (!%p163_p2), %v2307_v1  ;;  %v2154_v10 = vld [vmem:[%s2687_s1 + $0x28] sm:$0xff] (!%p163_p2)   ;;  %v2161_v11 = vld [vmem:[%s2687_s1 + $0xa0] sm:$0xff] (!%p163_p2)   ;;  %v2156_v12 = vld [vmem:[%s2687_s1 + $0x30] sm:$0xff] (!%p163_p2)  }
   0x9   : > { %v2163_v13 = vld [vmem:[%s2687_s1 + $0xa8] sm:$0xff] (!%p163_p2)   ;;  %v2158_v14 = vld [vmem:[%s2687_s1 + $0x38] sm:$0xff] (!%p163_p2)   ;;  %v2165_v15 = vld [vmem:[%s2687_s1 + $0xb0] sm:$0xff] (!%p163_p2)  }
   0xa   : > { %v2160_v18 = vld [vmem:[%s2687_s1 + $0x40] sm:$0xff] (!%p163_p2)   ;;  %v2167_v19 = vld [vmem:[%s2687_s1 + $0xb8] sm:$0xff] (!%p163_p2)   ;;  %v2162_v20 = vld [vmem:[%s2687_s1 + $0x48] sm:$0xff] (!%p163_p2)  }
   0xb   : > { %957 = vmatpush1.bf16.msra.mxu1 (!%p163_p2), %v2149_v2  ;;  %1157 = vmatpush1.bf16.msra.mxu0 (!%p163_p2), %v2155_v5  ;;  %v2169_v21 = vld [vmem:[%s2687_s1 + $0xc0] sm:$0xff] (!%p163_p2)   ;;  %v2164_v22 = vld [vmem:[%s2687_s1 + $0x50] sm:$0xff] (!%p163_p2)   ;;  %v2171_v23 = vld [vmem:[%s2687_s1 + $0xc8] sm:$0xff] (!%p163_p2)  }
   0xc   : > { %958 = vmatprep.subr.bf16.mxu1 (!%p163_p2), %v2307_v1  ;;  %1158 = vmatprep.subr.bf16.mxu0 (!%p163_p2), %v2307_v1  ;;  %v2166_v24 = vld [vmem:[%s2687_s1 + $0x58] sm:$0xff] (!%p163_p2)   ;;  %v2173_v25 = vld [vmem:[%s2687_s1 + $0xd0] sm:$0xff] (!%p163_p2)   ;;  %v2168_v26 = vld [vmem:[%s2687_s1 + $0x60] sm:$0xff] (!%p163_p2)  }
   0xd   : > { %s2692_s16 = smov (!%p188_p3, %s1752_s16), 1  ;;  %v2170_v29 = vld [vmem:[%s2687_s1 + $0x68] sm:$0xff]   ;;  %v2172_v30 = vld [vmem:[%s2687_s1 + $0x70] sm:$0xff]   ;;  %v2177_v33 = vld [vmem:[%s2687_s1 + $0x78] sm:$0xff]  }
   0xe   : > { %s2137_s13 = smul.u32 656, %s2692_s16 }
   0xf   : > { %959 = vmatpush1.bf16.msra.mxu1 %v2150_v4  ;;  %1159 = vmatpush1.bf16.msra.mxu0 %v2157_v7  ;;  %s2138_s5 = smul.u32 164, %s2692_s16 }
  0x10   : > { %960 = vmatprep.subr.bf16.mxu1 %v2307_v1  ;;  %1160 = vmatprep.subr.bf16.mxu0 %v2307_v1  ;;  %s2403_s22 = scalar_lea.vmem %s2686_s0, %s2137_s13 }
  0x11   : > { %v2176_v16 = vld [vmem:[%s2403_s22 + $0xc] ss:$16 sps:$4 sm:$0xff]   ;;  %v2180_v17 = vld [vmem:[%s2403_s22 + $0x4] ss:$16 sps:$4 sm:$0xff]   ;;  %v2174_v27 = vld [vmem:[%s2403_s22 + $0x8] ss:$16 sps:$4 sm:$0xff]   ;;  %s2582_s8 = scalar_lea.vmem %s2690_s4, %s2138_s5 }
  0x12   : > { %1870 = vmatprep.mubr.msk.bf16.mxu0 %vm890_vm0, %v2176_v16  ;;  %986 = vmatprep.mubr.bf16.mxu1 %v2180_v17  ;;  %v2181_v28 = vld [vmem:[%s2403_s22 + $0x2c] ss:$16 sps:$4 sm:$0xff]   ;;  %v2183_v31 = vld [vmem:[%s2403_s22 + $0x28] ss:$16 sps:$4 sm:$0xff]   ;;  %v2178_v34 = vld [vmem:[%s2403_s22] ss:$16 sps:$4 sm:$0xff]  }
  0x13   : > { %961 = vmatpush1.bf16.msra.mxu1 %v2151_v6  ;;  %1161 = vmatpush1.bf16.msra.mxu0 %v2159_v9  ;;  %v2187_v32 = vld [vmem:[%s2403_s22 + $0x4c] ss:$16 sps:$4 sm:$0xff]   ;;  %v2184_v35 = vld [vmem:[%s2403_s22 + $0x24] ss:$16 sps:$4 sm:$0xff]   ;;  %v2189_v36 = vld [vmem:[%s2403_s22 + $0x48] ss:$16 sps:$4 sm:$0xff]  }
  0x14   : > { %962 = vmatprep.subr.bf16.mxu1 %v2307_v1  ;;  %1162 = vmatprep.subr.bf16.mxu0 %v2307_v1  ;;  %v2193_v37 = vld [vmem:[%s2403_s22 + $0x6c] ss:$16 sps:$4 sm:$0xff]   ;;  %v2186_v38 = vld [vmem:[%s2403_s22 + $0x20] ss:$16 sps:$4 sm:$0xff]   ;;  %v2190_v39 = vld [vmem:[%s2403_s22 + $0x44] ss:$16 sps:$4 sm:$0xff]  }
  0x15   : > { %v2195_v40 = vld [vmem:[%s2403_s22 + $0x68] ss:$16 sps:$4 sm:$0xff]   ;;  %v2199_v41 = vld [vmem:[%s2403_s22 + $0x8c] ss:$16 sps:$4 sm:$0xff]   ;;  %v2192_v42 = vld [vmem:[%s2403_s22 + $0x40] ss:$16 sps:$4 sm:$0xff]  }
  0x16   : > { %v2196_v43 = vld [vmem:[%s2403_s22 + $0x64] ss:$16 sps:$4 sm:$0xff]   ;;  %v2201_v44 = vld [vmem:[%s2403_s22 + $0x88] ss:$16 sps:$4 sm:$0xff]   ;;  %v2205_v45 = vld [vmem:[%s2403_s22 + $0xac] ss:$16 sps:$4 sm:$0xff]  }
  0x17   : > { %963 = vmatpush1.bf16.msra.mxu1 %v2152_v8  ;;  %1163 = vmatpush1.bf16.msra.mxu0 %v2161_v11  ;;  %v2198_v46 = vld [vmem:[%s2403_s22 + $0x60] ss:$16 sps:$4 sm:$0xff]   ;;  %v2202_v47 = vld [vmem:[%s2403_s22 + $0x84] ss:$16 sps:$4 sm:$0xff]   ;;  %v2207_v48 = vld [vmem:[%s2403_s22 + $0xa8] ss:$16 sps:$4 sm:$0xff]  }
  0x18   : > { %964 = vmatprep.subr.bf16.mxu1 %v2307_v1  ;;  %1164 = vmatprep.subr.bf16.mxu0 %v2307_v1  ;;  %v2211_v49 = vld [vmem:[%s2403_s22 + $0xcc] ss:$16 sps:$4 sm:$0xff]   ;;  %v2204_v50 = vld [vmem:[%s2403_s22 + $0x80] ss:$16 sps:$4 sm:$0xff]   ;;  %v2208_v51 = vld [vmem:[%s2403_s22 + $0xa4] ss:$16 sps:$4 sm:$0xff]  }
  0x19   : > { %v2213_v52 = vld [vmem:[%s2403_s22 + $0xc8] ss:$16 sps:$4 sm:$0xff]   ;;  %v2217_v53 = vld [vmem:[%s2403_s22 + $0xec] ss:$16 sps:$4 sm:$0xff]   ;;  %v2210_v54 = vld [vmem:[%s2403_s22 + $0xa0] ss:$16 sps:$4 sm:$0xff]  }
  0x1a   : > { %v2214_v55 = vld [vmem:[%s2403_s22 + $0xc4] ss:$16 sps:$4 sm:$0xff]   ;;  %v2219_v56 = vld [vmem:[%s2403_s22 + $0xe8] ss:$16 sps:$4 sm:$0xff]   ;;  %v2223_v57 = vld [vmem:[%s2403_s22 + $0x10c] ss:$16 sps:$4 sm:$0xff]  }
  0x1b   : > { %965 = vmatpush1.bf16.msra.mxu1 %v2154_v10  ;;  %1165 = vmatpush1.bf16.msra.mxu0 %v2163_v13  ;;  %v2216_v58 = vld [vmem:[%s2403_s22 + $0xc0] ss:$16 sps:$4 sm:$0xff]   ;;  %v2220_v59 = vld [vmem:[%s2403_s22 + $0xe4] ss:$16 sps:$4 sm:$0xff]   ;;  %v2225_v60 = vld [vmem:[%s2403_s22 + $0x108] ss:$16 sps:$4 sm:$0xff]  }
  0x1c   : > { %966 = vmatprep.subr.bf16.mxu1 %v2307_v1  ;;  %1166 = vmatprep.subr.bf16.mxu0 %v2307_v1  ;;  %v2229_v61 = vld [vmem:[%s2403_s22 + $0x12c] ss:$16 sps:$4 sm:$0xff]   ;;  %v2222_v62 = vld [vmem:[%s2403_s22 + $0xe0] ss:$16 sps:$4 sm:$0xff]   ;;  %v2226_v63 = vld [vmem:[%s2403_s22 + $0x104] ss:$16 sps:$4 sm:$0xff]  }
  0x1d   : > { %v2231_v0 = vld [vmem:[%s2403_s22 + $0x128] ss:$16 sps:$4 sm:$0xff]   ;;  %v2228_v2 = vld [vmem:[%s2403_s22 + $0x100] ss:$16 sps:$4 sm:$0xff]   ;;  %v2232_v3 = vld [vmem:[%s2403_s22 + $0x124] ss:$16 sps:$4 sm:$0xff]  }
  0x1e   : > { %v2237_v4 = vld [vmem:[%s2403_s22 + $0x148] ss:$16 sps:$4 sm:$0xff]   ;;  %v2241_v5 = vld [vmem:[%s2403_s22 + $0x16c] ss:$16 sps:$4 sm:$0xff]   ;;  %v2234_v6 = vld [vmem:[%s2403_s22 + $0x120] ss:$16 sps:$4 sm:$0xff]  }
  0x1f   : > { %967 = vmatpush1.bf16.msra.mxu1 %v2156_v12  ;;  %1167 = vmatpush1.bf16.msra.mxu0 %v2165_v15  ;;  %v2238_v7 = vld [vmem:[%s2403_s22 + $0x144] ss:$16 sps:$4 sm:$0xff]   ;;  %v2243_v8 = vld [vmem:[%s2403_s22 + $0x168] ss:$16 sps:$4 sm:$0xff]   ;;  %v2247_v9 = vld [vmem:[%s2403_s22 + $0x18c] ss:$16 sps:$4 sm:$0xff]  }
  0x20   : > { %968 = vmatprep.subr.bf16.mxu1 %v2307_v1  ;;  %1168 = vmatprep.subr.bf16.mxu0 %v2307_v1  ;;  %v2240_v10 = vld [vmem:[%s2403_s22 + $0x140] ss:$16 sps:$4 sm:$0xff]   ;;  %v2244_v11 = vld [vmem:[%s2403_s22 + $0x164] ss:$16 sps:$4 sm:$0xff]   ;;  %v2249_v12 = vld [vmem:[%s2403_s22 + $0x188] ss:$16 sps:$4 sm:$0xff]  }
  0x21   : > { %v2253_v13 = vld [vmem:[%s2403_s22 + $0x1ac] ss:$16 sps:$4 sm:$0xff]   ;;  %v2250_v15 = vld [vmem:[%s2403_s22 + $0x184] ss:$16 sps:$4 sm:$0xff]   ;;  %v2255_v16 = vld [vmem:[%s2403_s22 + $0x1a8] ss:$16 sps:$4 sm:$0xff]  }
  0x22   : > { %v2259_v17 = vld [vmem:[%s2403_s22 + $0x1cc] ss:$16 sps:$4 sm:$0xff]  }
  0x23   : > { %969 = vmatpush1.bf16.msra.mxu1 %v2158_v14  ;;  %1169 = vmatpush1.bf16.msra.mxu0 %v2167_v19  ;;  %v2246_v14 = vld [vmem:[%s2403_s22 + $0x160] ss:$16 sps:$4 sm:$0xff]   ;;  %v2256_v19 = vld [vmem:[%s2403_s22 + $0x1a4] ss:$16 sps:$4 sm:$0xff]  }
  0x24   : > { %970 = vmatprep.subr.bf16.mxu1 %v2307_v1  ;;  %1170 = vmatprep.subr.bf16.mxu0 %v2307_v1 }
  0x27   : > { %971 = vmatpush1.bf16.msra.mxu1 %v2160_v18  ;;  %1171 = vmatpush1.bf16.msra.mxu0 %v2169_v21  ;;  %v2252_v18 = vld [vmem:[%s2403_s22 + $0x180] ss:$16 sps:$4 sm:$0xff]   ;;  %v2265_v21 = vld [vmem:[%s2403_s22 + $0x1ec] ss:$16 sps:$4 sm:$0xff]  }
  0x28   : > { %972 = vmatprep.subr.bf16.mxu1 %v2307_v1  ;;  %1172 = vmatprep.subr.bf16.mxu0 %v2307_v1 }
  0x2b   : > { %973 = vmatpush1.bf16.msra.mxu1 %v2162_v20  ;;  %1173 = vmatpush1.bf16.msra.mxu0 %v2171_v23  ;;  %v2261_v20 = vld [vmem:[%s2403_s22 + $0x1c8] ss:$16 sps:$4 sm:$0xff]   ;;  %v2262_v23 = vld [vmem:[%s2403_s22 + $0x1c4] ss:$16 sps:$4 sm:$0xff]  }
  0x2c   : > { %974 = vmatprep.subr.bf16.mxu1 %v2307_v1  ;;  %1174 = vmatprep.subr.bf16.mxu0 %v2307_v1 }
  0x2f   : > { %975 = vmatpush1.bf16.msra.mxu1 %v2164_v22  ;;  %1175 = vmatpush1.bf16.msra.mxu0 %v2173_v25  ;;  %v2258_v22 = vld [vmem:[%s2403_s22 + $0x1a0] ss:$16 sps:$4 sm:$0xff]   ;;  %v2271_v25 = vld [vmem:[%s2403_s22 + $0x20c] ss:$16 sps:$4 sm:$0xff]  }
  0x30   : > { %976 = vmatprep.subr.bf16.mxu1 %v2307_v1 }
  0x32   : > { %1187 = vmatmul.mubr.bf16.vlgmr.msra.gmra.mrb[0].mxu0 %v2174_v27  ;;  %v2268_v27 = vld [vmem:[%s2403_s22 + $0x1e4] ss:$16 sps:$4 sm:$0xff]  }
  0x33   : > { %977 = vmatpush1.bf16.msra.mxu1 %v2166_v24  ;;  %1871 = vmatprep.mubr.msk.bf16.mxu0 %vm890_vm0, %v2181_v28  ;;  %v2267_v24 = vld [vmem:[%s2403_s22 + $0x1e8] ss:$16 sps:$4 sm:$0xff]  }
  0x34   : > { %978 = vmatprep.subr.bf16.mxu1 %v2307_v1  ;;  %v2273_v28 = vld [vmem:[%s2403_s22 + $0x208] ss:$16 sps:$4 sm:$0xff]  }
  0x37   : > { %979 = vmatpush1.bf16.msra.mxu1 %v2168_v26  ;;  %v2264_v26 = vld [vmem:[%s2403_s22 + $0x1c0] ss:$16 sps:$4 sm:$0xff]  }
  0x38   : > { %980 = vmatprep.subr.bf16.mxu1 %v2307_v1 }
  0x3a   : > { %1195 = vmatmul.mubr.bf16.gmra.mrb[4].mxu0 %v2183_v31  ;;  %v2274_v31 = vld [vmem:[%s2403_s22 + $0x204] ss:$16 sps:$4 sm:$0xff]  }
  0x3b   : > { %981 = vmatpush1.bf16.msra.mxu1 %v2170_v29  ;;  %1872 = vmatprep.mubr.msk.bf16.mxu0 %vm890_vm0, %v2187_v32  ;;  %v2277_v29 = vld [vmem:[%s2403_s22 + $0x22c] ss:$16 sps:$4 sm:$0xff]   ;;  %v2279_v32 = vld [vmem:[%s2403_s22 + $0x228] ss:$16 sps:$4 sm:$0xff]  }
  0x3c   : > { %982 = vmatprep.subr.bf16.mxu1 %v2307_v1 }
  0x3f   : > { %983 = vmatpush1.bf16.msra.mxu1 %v2172_v30  ;;  %v2270_v30 = vld [vmem:[%s2403_s22 + $0x1e0] ss:$16 sps:$4 sm:$0xff]  }
  0x40   : > { %984 = vmatprep.subr.bf16.mxu1 %v2307_v1  ;;  %v2235_v1 = vld [vmem:[%s2403_s22 + $0x14c] ss:$16 sps:$4 sm:$0xff]  }
  0x42   : > { %1203 = vmatmul.mubr.bf16.gmra.mrb[8].mxu0 %v2189_v36  ;;  %v2285_v36 = vld [vmem:[%s2403_s22 + $0x248] ss:$16 sps:$4 sm:$0xff]  }
  0x43   : > { %985 = vmatpush1.bf16.msra.mxu1 %v2177_v33  ;;  %1873 = vmatprep.mubr.msk.bf16.mxu0 %vm890_vm0, %v2193_v37  ;;  %v2283_v33 = vld [vmem:[%s2403_s22 + $0x24c] ss:$16 sps:$4 sm:$0xff]  }
  0x44   : > { %v2289_v37 = vld [vmem:[%s2403_s22 + $0x26c] ss:$16 sps:$4 sm:$0xff]  }
  0x46   : > { %987 = vmatmul.mubr.bf16.vlgmr.msra.gmra.mrb[0].mxu1 %v2178_v34  ;;  %v2276_v34 = vld [vmem:[%s2403_s22 + $0x200] ss:$16 sps:$4 sm:$0xff]  }
  0x47   : > { %994 = vmatprep.mubr.bf16.mxu1 %v2184_v35  ;;  %v2280_v35 = vld [vmem:[%s2403_s22 + $0x224] ss:$16 sps:$4 sm:$0xff]  }
  0x4a   : > { %1211 = vmatmul.mubr.bf16.gmra.mrb[12].mxu0 %v2195_v40  ;;  %v2286_v40 = vld [vmem:[%s2403_s22 + $0x244] ss:$16 sps:$4 sm:$0xff]  }
  0x4b   : > { %1874 = vmatprep.mubr.msk.bf16.mxu0 %vm890_vm0, %v2199_v41  ;;  %v2291_v41 = vld [vmem:[%s2403_s22 + $0x268] ss:$16 sps:$4 sm:$0xff]  }
  0x4e   : > { %995 = vmatmul.mubr.bf16.gmra.mrb[4].mxu1 %v2186_v38  ;;  %v280_v38 = vld [vmem:[%s2403_s22 + $0x288] sm:$0xff] }
  0x4f   : > { %1002 = vmatprep.mubr.bf16.mxu1 %v2190_v39  ;;  %v2282_v39 = vld [vmem:[%s2403_s22 + $0x220] ss:$16 sps:$4 sm:$0xff]  }
  0x52   : > { %1219 = vmatmul.mubr.bf16.gmra.mrb[16].mxu0 %v2201_v44  ;;  %v2292_v44 = vld [vmem:[%s2403_s22 + $0x264] ss:$16 sps:$4 sm:$0xff]  }
  0x53   : > { %1875 = vmatprep.mubr.msk.bf16.mxu0 %vm890_vm0, %v2205_v45  ;;  %v1841_v45 = vcombine.low %v280_v38, %v280_v38 }
  0x56   : > { %1003 = vmatmul.mubr.bf16.gmra.mrb[8].mxu1 %v2192_v42  ;;  %v1842_v42 = vcombine.high %v280_v38, %v280_v38 }
  0x57   : > { %1010 = vmatprep.mubr.bf16.mxu1 %v2196_v43  ;;  %v2288_v43 = vld [vmem:[%s2403_s22 + $0x240] ss:$16 sps:$4 sm:$0xff]  }
  0x5a   : > { %1227 = vmatmul.mubr.bf16.gmra.mrb[20].mxu0 %v2207_v48 }
  0x5b   : > { %1876 = vmatprep.mubr.msk.bf16.mxu0 %vm890_vm0, %v2211_v49 }
  0x5e   : > { %1011 = vmatmul.mubr.bf16.gmra.mrb[12].mxu1 %v2198_v46  ;;  %v279_v46 = vld [vmem:[%s2403_s22 + $0x280] sm:$0xff] }
  0x5f   : > { %1018 = vmatprep.mubr.bf16.mxu1 %v2202_v47  ;;  %v2294_v47 = vld [vmem:[%s2403_s22 + $0x260] ss:$16 sps:$4 sm:$0xff]   ;;  %v1840_v48 = vcombine.high %v279_v46, %v279_v46  ;;  %v1839_v49 = vcombine.low %v279_v46, %v279_v46 }
  0x62   : > { %1235 = vmatmul.mubr.bf16.gmra.mrb[24].mxu0 %v2213_v52 }
  0x63   : > { %1877 = vmatprep.mubr.msk.bf16.mxu0 %vm890_vm0, %v2217_v53 }
  0x66   : > { %1019 = vmatmul.mubr.bf16.gmra.mrb[16].mxu1 %v2204_v50 }
  0x67   : > { %1026 = vmatprep.mubr.bf16.mxu1 %v2208_v51 }
  0x6a   : > { %1243 = vmatmul.mubr.bf16.gmra.mrb[28].mxu0 %v2219_v56 }
  0x6b   : > { %1878 = vmatprep.mubr.msk.bf16.mxu0 %vm890_vm0, %v2223_v57 }
  0x6e   : > { %1027 = vmatmul.mubr.bf16.gmra.mrb[20].mxu1 %v2210_v54 }
  0x6f   : > { %1034 = vmatprep.mubr.bf16.mxu1 %v2214_v55 }
  0x72   : > { %1251 = vmatmul.mubr.bf16.gmra.mrb[32].mxu0 %v2225_v60 }
  0x73   : > { %1879 = vmatprep.mubr.msk.bf16.mxu0 %vm890_vm0, %v2229_v61 }
  0x76   : > { %1035 = vmatmul.mubr.bf16.gmra.mrb[24].mxu1 %v2216_v58 }
  0x77   : > { %1042 = vmatprep.mubr.bf16.mxu1 %v2220_v59  ;;  %v2567_v59 = vld [vmem:[%s2688_s2] ss:$0 sm:$0xff] }
  0x7a   : > { %1259 = vmatmul.mubr.bf16.gmra.mrb[36].mxu0 %v2231_v0 }
  0x7b   : > { %1880 = vmatprep.mubr.msk.bf16.mxu0 %vm890_vm0, %v2235_v1 }
  0x7e   : > { %1043 = vmatmul.mubr.bf16.gmra.mrb[28].mxu1 %v2222_v62 }
  0x7f   : > { %1050 = vmatprep.mubr.bf16.mxu1 %v2226_v63  ;;  %v2572_v63 = vld [vmem:[%s2689_s3] ss:$0 sm:$0xff] }
  0x82   : > { %1267 = vmatmul.mubr.bf16.gmra.mrb[40].mxu0 %v2237_v4 }
  0x83   : > { %1881 = vmatprep.mubr.msk.bf16.mxu0 %vm890_vm0, %v2241_v5 }
  0x86   : > { %1051 = vmatmul.mubr.bf16.gmra.mrb[32].mxu1 %v2228_v2 }
  0x87   : > { %1058 = vmatprep.mubr.bf16.mxu1 %v2232_v3 }
  0x8a   : > { %1275 = vmatmul.mubr.bf16.gmra.mrb[44].mxu0 %v2243_v8 }
  0x8b   : > { %1882 = vmatprep.mubr.msk.bf16.mxu0 %vm890_vm0, %v2247_v9 }
  0x8e   : > { %1059 = vmatmul.mubr.bf16.gmra.mrb[36].mxu1 %v2234_v6 }
  0x8f   : > { %1066 = vmatprep.mubr.bf16.mxu1 %v2238_v7 }
  0x92   : > { %1283 = vmatmul.mubr.bf16.gmra.mrb[48].mxu0 %v2249_v12 }
  0x93   : > { %1883 = vmatprep.mubr.msk.bf16.mxu0 %vm890_vm0, %v2253_v13 }
  0x96   : > { %1067 = vmatmul.mubr.bf16.gmra.mrb[40].mxu1 %v2240_v10 }
  0x97   : > { %1074 = vmatprep.mubr.bf16.mxu1 %v2244_v11 }
  0x9a   : > { %1291 = vmatmul.mubr.bf16.gmra.mrb[52].mxu0 %v2255_v16 }
  0x9b   : > { %1884 = vmatprep.mubr.msk.bf16.mxu0 %vm890_vm0, %v2259_v17 }
  0x9e   : > { %1075 = vmatmul.mubr.bf16.gmra.mrb[44].mxu1 %v2246_v14 }
  0x9f   : > { %1082 = vmatprep.mubr.bf16.mxu1 %v2250_v15 }
  0xa2   : > { %1299 = vmatmul.mubr.bf16.gmra.mrb[56].mxu0 %v2261_v20 }
  0xa3   : > { %1885 = vmatprep.mubr.msk.bf16.mxu0 %vm890_vm0, %v2265_v21 }
  0xa6   : > { %1083 = vmatmul.mubr.bf16.gmra.mrb[48].mxu1 %v2252_v18 }
  0xa7   : > { %1090 = vmatprep.mubr.bf16.mxu1 %v2256_v19 }
  0xaa   : > { %1307 = vmatmul.mubr.bf16.gmra.mrb[60].mxu0 %v2267_v24 }
  0xab   : > { %1886 = vmatprep.mubr.msk.bf16.mxu0 %vm890_vm0, %v2271_v25 }
  0xae   : > { %1091 = vmatmul.mubr.bf16.gmra.mrb[52].mxu1 %v2258_v22 }
  0xaf   : > { %1098 = vmatprep.mubr.bf16.mxu1 %v2262_v23 }
  0xb2   : > { %1315 = vmatmul.mubr.bf16.gmra.mrb[64].mxu0 %v2273_v28 }
  0xb3   : > { %1887 = vmatprep.mubr.msk.bf16.mxu0 %vm890_vm0, %v2277_v29 }
  0xb6   : > { %1099 = vmatmul.mubr.bf16.gmra.mrb[56].mxu1 %v2264_v26 }
  0xb7   : > { %1106 = vmatprep.mubr.bf16.mxu1 %v2268_v27 }
  0xba   : > { %1323 = vmatmul.mubr.bf16.gmra.mrb[68].mxu0 %v2279_v32 }
  0xbb   : > { %1888 = vmatprep.mubr.msk.bf16.mxu0 %vm890_vm0, %v2283_v33 }
  0xbe   : > { %1107 = vmatmul.mubr.bf16.gmra.mrb[60].mxu1 %v2270_v30 }
  0xbf   : > { %1114 = vmatprep.mubr.bf16.mxu1 %v2274_v31 }
  0xc2   : > { %1331 = vmatmul.mubr.bf16.gmra.mrb[72].mxu0 %v2285_v36 }
  0xc3   : > { %1889 = vmatprep.mubr.msk.bf16.mxu0 %vm890_vm0, %v2289_v37 }
  0xc6   : > { %1115 = vmatmul.mubr.bf16.gmra.mrb[64].mxu1 %v2276_v34 }
  0xc7   : > { %1122 = vmatprep.mubr.bf16.mxu1 %v2280_v35 }
  0xca   : > { %1339 = vmatmul.mubr.bf16.gmra.mrb[76].mxu0 %v2291_v41 }
  0xcb   : > { %1890 = vmatprep.mubr.msk.bf16.mxu0 %vm890_vm0, %v1842_v42 }
  0xce   : > { %1123 = vmatmul.mubr.bf16.gmra.mrb[68].mxu1 %v2282_v39 }
  0xcf   : > { %1130 = vmatprep.mubr.bf16.mxu1 %v2286_v40 }
  0xd2   : > { %1347 = vmatmul.mubr.bf16.gmra.mrb[80].mxu0 %v1841_v45 }
  0xd6   : > { %1131 = vmatmul.mubr.bf16.gmra.mrb[72].mxu1 %v2288_v43 }
  0xd7   : > { %1138 = vmatprep.mubr.bf16.mxu1 %v2292_v44 }
  0xde   : > { %1139 = vmatmul.mubr.bf16.gmra.mrb[76].mxu1 %v2294_v47 }
  0xdf   : > { %1146 = vmatprep.mubr.bf16.mxu1 %v1840_v48 }
  0xe6   : > { %1147 = vmatmul.mubr.bf16.gmra.mrb[80].mxu1 %v1839_v49 }
 0x105   : > { %v1188_v50 = vpop.f32.mrb[0].mxu0 }
 0x106   : > { %v1190_v51 = vpop.f32.mrb[1].mxu0 }
 0x107   : > { %v1191_v52 = vpop.f32.mrb[2].mxu0 }
 0x108   : > { %v1193_v53 = vpop.f32.mrb[3].mxu0 }
 0x10d   : > { %v1196_v54 = vpop.f32.mrb[4].mxu0 }
 0x10e   : > { %v1198_v55 = vpop.f32.mrb[5].mxu0 }
 0x10f   : > { %v1199_v56 = vpop.f32.mrb[6].mxu0 }
 0x110   : > { %v1201_v57 = vpop.f32.mrb[7].mxu0 }
 0x115   : > { %v1204_v62 = vpop.f32.mrb[8].mxu0 }
 0x116   : > { %v1206_v1 = vpop.f32.mrb[9].mxu0 }
 0x117   : > { %v1207_v5 = vpop.f32.mrb[10].mxu0 }
 0x118   : > { %v1209_v6 = vpop.f32.mrb[11].mxu0 }
 0x119   : > { %v988_v58 = vpop.f32.mrb[0].mxu1 }
 0x11a   : > { %v1189_v60 = vadd.f32 %v1188_v50, %v988_v58  ;;  %v990_v61 = vpop.f32.mrb[1].mxu1 }
 0x11b   : > { %v991_v0 = vpop.f32.mrb[2].mxu1 }
 0x11c   : > { %v1361_v2 = vmul.f32 %v2567_v59, %v1189_v60  ;;  %v1192_v3 = vadd.f32 %v1191_v52, %v991_v0  ;;  %v993_v4 = vpop.f32.mrb[3].mxu1 }
 0x11d   : > { %v1212_v15 = vpop.f32.mrb[12].mxu0 }
 0x11e   : > { %v1409_v7 = vadd.f32 %v2572_v63, %v1361_v2  ;;  %v1362_v8 = vmul.f32 %v2567_v59, %v1192_v3  ;;  %v1214_v17 = vpop.f32.mrb[13].mxu0 }
 0x11f   : > { %v1215_v22 = vpop.f32.mrb[14].mxu0 }
 0x120   : > { %v1410_v9 = vadd.f32 %v2572_v63, %v1362_v8  ;;  %v1450_v11 = vmax.f32 %v1409_v7, 0.0  ;;  %v1217_v23 = vpop.f32.mrb[15].mxu0 }
 0x121   : > { %v996_v10 = vpop.f32.mrb[4].mxu1 }
 0x122   : > { %v1451_v12 = vmax.f32 %v1410_v9, 0.0  ;;  %v1197_v13 = vadd.f32 %v1196_v54, %v996_v10  ;;  %v998_v14 = vpop.f32.mrb[5].mxu1 }
 0x123   : > { %v999_v16 = vpop.f32.mrb[6].mxu1 }
 0x124   : > { %v1980_v18 = vpack.c.bf16 %v1451_v12, %v1450_v11  ;;  %v1363_v19 = vmul.f32 %v2567_v59, %v1197_v13  ;;  %v1200_v20 = vadd.f32 %v1199_v56, %v999_v16  ;;  %v1001_v21 = vpop.f32.mrb[7].mxu1 }
 0x125   : > { %v1220_v32 = vpop.f32.mrb[16].mxu0 }
 0x126   : > { %1981 = vst [vmem:[%s2582_s8] sm:$0xff] %v1980_v18   ;;  %v1411_v24 = vadd.f32 %v2572_v63, %v1363_v19  ;;  %v1364_v25 = vmul.f32 %v2567_v59, %v1200_v20  ;;  %v1222_v34 = vpop.f32.mrb[17].mxu0 }
 0x127   : > { %v1223_v39 = vpop.f32.mrb[18].mxu0 }
 0x128   : > { %v1412_v26 = vadd.f32 %v2572_v63, %v1364_v25  ;;  %v1452_v28 = vmax.f32 %v1411_v24, 0.0  ;;  %v1225_v40 = vpop.f32.mrb[19].mxu0 }
 0x129   : > { %v1004_v27 = vpop.f32.mrb[8].mxu1 }
 0x12a   : > { %v1453_v29 = vmax.f32 %v1412_v26, 0.0  ;;  %v1205_v30 = vadd.f32 %v1204_v62, %v1004_v27  ;;  %v1006_v31 = vpop.f32.mrb[9].mxu1 }
 0x12b   : > { %v1007_v33 = vpop.f32.mrb[10].mxu1 }
 0x12c   : > { %v1985_v35 = vpack.c.bf16 %v1453_v29, %v1452_v28  ;;  %v1365_v36 = vmul.f32 %v2567_v59, %v1205_v30  ;;  %v1208_v37 = vadd.f32 %v1207_v5, %v1007_v33  ;;  %v1009_v38 = vpop.f32.mrb[11].mxu1 }
 0x12d   : > { %v1228_v49 = vpop.f32.mrb[20].mxu0 }
 0x12e   : > { %2077 = vst [vmem:[%s2582_s8 + $0x8] sm:$0xff] %v1985_v35   ;;  %v1413_v41 = vadd.f32 %v2572_v63, %v1365_v36  ;;  %v1366_v42 = vmul.f32 %v2567_v59, %v1208_v37  ;;  %v1230_v51 = vpop.f32.mrb[21].mxu0 }
 0x12f   : > { %v1231_v56 = vpop.f32.mrb[22].mxu0 }
 0x130   : > { %v1414_v43 = vadd.f32 %v2572_v63, %v1366_v42  ;;  %v1454_v45 = vmax.f32 %v1413_v41, 0.0  ;;  %v1233_v57 = vpop.f32.mrb[23].mxu0 }
 0x131   : > { %v1012_v44 = vpop.f32.mrb[12].mxu1 }
 0x132   : > { %v1455_v46 = vmax.f32 %v1414_v43, 0.0  ;;  %v1213_v47 = vadd.f32 %v1212_v15, %v1012_v44  ;;  %v1014_v48 = vpop.f32.mrb[13].mxu1 }
 0x133   : > { %v1015_v50 = vpop.f32.mrb[14].mxu1 }
 0x134   : > { %v1990_v52 = vpack.c.bf16 %v1455_v46, %v1454_v45  ;;  %v1367_v53 = vmul.f32 %v2567_v59, %v1213_v47  ;;  %v1216_v54 = vadd.f32 %v1215_v22, %v1015_v50  ;;  %v1017_v55 = vpop.f32.mrb[15].mxu1 }
 0x135   : > { %v1236_v4 = vpop.f32.mrb[24].mxu0 }
 0x136   : > { %2078 = vst [vmem:[%s2582_s8 + $0x10] sm:$0xff] %v1990_v52   ;;  %v1415_v58 = vadd.f32 %v2572_v63, %v1367_v53  ;;  %v1368_v60 = vmul.f32 %v2567_v59, %v1216_v54  ;;  %v1238_v6 = vpop.f32.mrb[25].mxu0 }
 0x137   : > { %v1239_v11 = vpop.f32.mrb[26].mxu0 }
 0x138   : > { %v1416_v61 = vadd.f32 %v2572_v63, %v1368_v60  ;;  %v1456_v0 = vmax.f32 %v1415_v58, 0.0  ;;  %v1241_v12 = vpop.f32.mrb[27].mxu0 }
 0x139   : > { %v1020_v62 = vpop.f32.mrb[16].mxu1 }
 0x13a   : > { %v1457_v1 = vmax.f32 %v1416_v61, 0.0  ;;  %v1221_v2 = vadd.f32 %v1220_v32, %v1020_v62  ;;  %v1022_v3 = vpop.f32.mrb[17].mxu1 }
 0x13b   : > { %v1023_v5 = vpop.f32.mrb[18].mxu1 }
 0x13c   : > { %v1995_v7 = vpack.c.bf16 %v1457_v1, %v1456_v0  ;;  %v1369_v8 = vmul.f32 %v2567_v59, %v1221_v2  ;;  %v1224_v9 = vadd.f32 %v1223_v39, %v1023_v5  ;;  %v1025_v10 = vpop.f32.mrb[19].mxu1 }
 0x13d   : > { %v1244_v21 = vpop.f32.mrb[28].mxu0 }
 0x13e   : > { %2079 = vst [vmem:[%s2582_s8 + $0x18] sm:$0xff] %v1995_v7   ;;  %v1417_v13 = vadd.f32 %v2572_v63, %v1369_v8  ;;  %v1370_v14 = vmul.f32 %v2567_v59, %v1224_v9  ;;  %v1246_v23 = vpop.f32.mrb[29].mxu0 }
 0x13f   : > { %v1247_v28 = vpop.f32.mrb[30].mxu0 }
 0x140   : > { %v1418_v15 = vadd.f32 %v2572_v63, %v1370_v14  ;;  %v1458_v17 = vmax.f32 %v1417_v13, 0.0  ;;  %v1249_v29 = vpop.f32.mrb[31].mxu0 }
 0x141   : > { %v1028_v16 = vpop.f32.mrb[20].mxu1 }
 0x142   : > { %v1459_v18 = vmax.f32 %v1418_v15, 0.0  ;;  %v1229_v19 = vadd.f32 %v1228_v49, %v1028_v16  ;;  %v1030_v20 = vpop.f32.mrb[21].mxu1 }
 0x143   : > { %v1031_v22 = vpop.f32.mrb[22].mxu1 }
 0x144   : > { %v2000_v24 = vpack.c.bf16 %v1459_v18, %v1458_v17  ;;  %v1371_v25 = vmul.f32 %v2567_v59, %v1229_v19  ;;  %v1232_v26 = vadd.f32 %v1231_v56, %v1031_v22  ;;  %v1033_v27 = vpop.f32.mrb[23].mxu1 }
 0x145   : > { %v1252_v38 = vpop.f32.mrb[32].mxu0 }
 0x146   : > { %2080 = vst [vmem:[%s2582_s8 + $0x20] sm:$0xff] %v2000_v24   ;;  %v1419_v30 = vadd.f32 %v2572_v63, %v1371_v25  ;;  %v1372_v31 = vmul.f32 %v2567_v59, %v1232_v26  ;;  %v1254_v40 = vpop.f32.mrb[33].mxu0 }
 0x147   : > { %v1255_v45 = vpop.f32.mrb[34].mxu0 }
 0x148   : > { %v1420_v32 = vadd.f32 %v2572_v63, %v1372_v31  ;;  %v1460_v34 = vmax.f32 %v1419_v30, 0.0  ;;  %v1257_v46 = vpop.f32.mrb[35].mxu0 }
 0x149   : > { %v1036_v33 = vpop.f32.mrb[24].mxu1 }
 0x14a   : > { %v1461_v35 = vmax.f32 %v1420_v32, 0.0  ;;  %v1237_v36 = vadd.f32 %v1236_v4, %v1036_v33  ;;  %v1038_v37 = vpop.f32.mrb[25].mxu1 }
 0x14b   : > { %v1039_v39 = vpop.f32.mrb[26].mxu1 }
 0x14c   : > { %v2005_v41 = vpack.c.bf16 %v1461_v35, %v1460_v34  ;;  %v1373_v42 = vmul.f32 %v2567_v59, %v1237_v36  ;;  %v1240_v43 = vadd.f32 %v1239_v11, %v1039_v39  ;;  %v1041_v44 = vpop.f32.mrb[27].mxu1 }
 0x14d   : > { %v1260_v55 = vpop.f32.mrb[36].mxu0 }
 0x14e   : > { %2081 = vst [vmem:[%s2582_s8 + $0x28] sm:$0xff] %v2005_v41   ;;  %v1421_v47 = vadd.f32 %v2572_v63, %v1373_v42  ;;  %v1374_v48 = vmul.f32 %v2567_v59, %v1240_v43  ;;  %v1262_v57 = vpop.f32.mrb[37].mxu0 }
 0x14f   : > { %v1263_v0 = vpop.f32.mrb[38].mxu0 }
 0x150   : > { %v1422_v49 = vadd.f32 %v2572_v63, %v1374_v48  ;;  %v1462_v51 = vmax.f32 %v1421_v47, 0.0  ;;  %v1265_v1 = vpop.f32.mrb[39].mxu0 }
 0x151   : > { %v1044_v50 = vpop.f32.mrb[28].mxu1 }
 0x152   : > { %v1463_v52 = vmax.f32 %v1422_v49, 0.0  ;;  %v1245_v53 = vadd.f32 %v1244_v21, %v1044_v50  ;;  %v1046_v54 = vpop.f32.mrb[29].mxu1 }
 0x153   : > { %v1047_v56 = vpop.f32.mrb[30].mxu1 }
 0x154   : > { %v2010_v58 = vpack.c.bf16 %v1463_v52, %v1462_v51  ;;  %v1375_v60 = vmul.f32 %v2567_v59, %v1245_v53  ;;  %v1248_v61 = vadd.f32 %v1247_v28, %v1047_v56  ;;  %v1049_v62 = vpop.f32.mrb[31].mxu1 }
 0x155   : > { %v1268_v10 = vpop.f32.mrb[40].mxu0 }
 0x156   : > { %2082 = vst [vmem:[%s2582_s8 + $0x30] sm:$0xff] %v2010_v58   ;;  %v1423_v2 = vadd.f32 %v2572_v63, %v1375_v60  ;;  %v1376_v3 = vmul.f32 %v2567_v59, %v1248_v61  ;;  %v1270_v12 = vpop.f32.mrb[41].mxu0 }
 0x157   : > { %v1271_v17 = vpop.f32.mrb[42].mxu0 }
 0x158   : > { %v1424_v4 = vadd.f32 %v2572_v63, %v1376_v3  ;;  %v1464_v6 = vmax.f32 %v1423_v2, 0.0  ;;  %v1273_v18 = vpop.f32.mrb[43].mxu0 }
 0x159   : > { %v1052_v5 = vpop.f32.mrb[32].mxu1 }
 0x15a   : > { %v1465_v7 = vmax.f32 %v1424_v4, 0.0  ;;  %v1253_v8 = vadd.f32 %v1252_v38, %v1052_v5  ;;  %v1054_v9 = vpop.f32.mrb[33].mxu1 }
 0x15b   : > { %v1055_v11 = vpop.f32.mrb[34].mxu1 }
 0x15c   : > { %v2015_v13 = vpack.c.bf16 %v1465_v7, %v1464_v6  ;;  %v1377_v14 = vmul.f32 %v2567_v59, %v1253_v8  ;;  %v1256_v15 = vadd.f32 %v1255_v45, %v1055_v11  ;;  %v1057_v16 = vpop.f32.mrb[35].mxu1 }
 0x15d   : > { %v1276_v27 = vpop.f32.mrb[44].mxu0 }
 0x15e   : > { %2083 = vst [vmem:[%s2582_s8 + $0x38] sm:$0xff] %v2015_v13   ;;  %v1425_v19 = vadd.f32 %v2572_v63, %v1377_v14  ;;  %v1378_v20 = vmul.f32 %v2567_v59, %v1256_v15  ;;  %v1278_v29 = vpop.f32.mrb[45].mxu0 }
 0x15f   : > { %v1279_v34 = vpop.f32.mrb[46].mxu0 }
 0x160   : > { %v1426_v21 = vadd.f32 %v2572_v63, %v1378_v20  ;;  %v1466_v23 = vmax.f32 %v1425_v19, 0.0  ;;  %v1281_v35 = vpop.f32.mrb[47].mxu0 }
 0x161   : > { %v1060_v22 = vpop.f32.mrb[36].mxu1 }
 0x162   : > { %v1467_v24 = vmax.f32 %v1426_v21, 0.0  ;;  %v1261_v25 = vadd.f32 %v1260_v55, %v1060_v22  ;;  %v1062_v26 = vpop.f32.mrb[37].mxu1 }
 0x163   : > { %v1063_v28 = vpop.f32.mrb[38].mxu1 }
 0x164   : > { %v2020_v30 = vpack.c.bf16 %v1467_v24, %v1466_v23  ;;  %v1379_v31 = vmul.f32 %v2567_v59, %v1261_v25  ;;  %v1264_v32 = vadd.f32 %v1263_v0, %v1063_v28  ;;  %v1065_v33 = vpop.f32.mrb[39].mxu1 }
 0x165   : > { %v1284_v44 = vpop.f32.mrb[48].mxu0 }
 0x166   : > { %2084 = vst [vmem:[%s2582_s8 + $0x40] sm:$0xff] %v2020_v30   ;;  %v1427_v36 = vadd.f32 %v2572_v63, %v1379_v31  ;;  %v1380_v37 = vmul.f32 %v2567_v59, %v1264_v32  ;;  %v1286_v46 = vpop.f32.mrb[49].mxu0 }
 0x167   : > { %v1287_v51 = vpop.f32.mrb[50].mxu0 }
 0x168   : > { %v1428_v38 = vadd.f32 %v2572_v63, %v1380_v37  ;;  %v1468_v40 = vmax.f32 %v1427_v36, 0.0  ;;  %v1289_v52 = vpop.f32.mrb[51].mxu0 }
 0x169   : > { %v1068_v39 = vpop.f32.mrb[40].mxu1 }
 0x16a   : > { %v1469_v41 = vmax.f32 %v1428_v38, 0.0  ;;  %v1269_v42 = vadd.f32 %v1268_v10, %v1068_v39  ;;  %v1070_v43 = vpop.f32.mrb[41].mxu1 }
 0x16b   : > { %v1071_v45 = vpop.f32.mrb[42].mxu1 }
 0x16c   : > { %v2025_v47 = vpack.c.bf16 %v1469_v41, %v1468_v40  ;;  %v1381_v48 = vmul.f32 %v2567_v59, %v1269_v42  ;;  %v1272_v49 = vadd.f32 %v1271_v17, %v1071_v45  ;;  %v1073_v50 = vpop.f32.mrb[43].mxu1 }
 0x16d   : > { %v1292_v62 = vpop.f32.mrb[52].mxu0 }
 0x16e   : > { %2085 = vst [vmem:[%s2582_s8 + $0x48] sm:$0xff] %v2025_v47   ;;  %v1429_v53 = vadd.f32 %v2572_v63, %v1381_v48  ;;  %v1382_v54 = vmul.f32 %v2567_v59, %v1272_v49  ;;  %v1294_v1 = vpop.f32.mrb[53].mxu0 }
 0x16f   : > { %v1295_v6 = vpop.f32.mrb[54].mxu0 }
 0x170   : > { %v1430_v55 = vadd.f32 %v2572_v63, %v1382_v54  ;;  %v1470_v57 = vmax.f32 %v1429_v53, 0.0  ;;  %v1297_v7 = vpop.f32.mrb[55].mxu0 }
 0x171   : > { %v1076_v56 = vpop.f32.mrb[44].mxu1 }
 0x172   : > { %v1471_v58 = vmax.f32 %v1430_v55, 0.0  ;;  %v1277_v60 = vadd.f32 %v1276_v27, %v1076_v56  ;;  %v1078_v61 = vpop.f32.mrb[45].mxu1 }
 0x173   : > { %v1079_v0 = vpop.f32.mrb[46].mxu1 }
 0x174   : > { %v2030_v2 = vpack.c.bf16 %v1471_v58, %v1470_v57  ;;  %v1383_v3 = vmul.f32 %v2567_v59, %v1277_v60  ;;  %v1280_v4 = vadd.f32 %v1279_v34, %v1079_v0  ;;  %v1081_v5 = vpop.f32.mrb[47].mxu1 }
 0x175   : > { %v1300_v16 = vpop.f32.mrb[56].mxu0 }
 0x176   : > { %2086 = vst [vmem:[%s2582_s8 + $0x50] sm:$0xff] %v2030_v2   ;;  %v1431_v8 = vadd.f32 %v2572_v63, %v1383_v3  ;;  %v1384_v9 = vmul.f32 %v2567_v59, %v1280_v4  ;;  %v1302_v18 = vpop.f32.mrb[57].mxu0 }
 0x177   : > { %v1303_v23 = vpop.f32.mrb[58].mxu0 }
 0x178   : > { %v1432_v10 = vadd.f32 %v2572_v63, %v1384_v9  ;;  %v1472_v12 = vmax.f32 %v1431_v8, 0.0  ;;  %v1305_v24 = vpop.f32.mrb[59].mxu0 }
 0x179   : > { %v1084_v11 = vpop.f32.mrb[48].mxu1 }
 0x17a   : > { %v1473_v13 = vmax.f32 %v1432_v10, 0.0  ;;  %v1285_v14 = vadd.f32 %v1284_v44, %v1084_v11  ;;  %v1086_v15 = vpop.f32.mrb[49].mxu1 }
 0x17b   : > { %v1087_v17 = vpop.f32.mrb[50].mxu1 }
 0x17c   : > { %v2035_v19 = vpack.c.bf16 %v1473_v13, %v1472_v12  ;;  %v1385_v20 = vmul.f32 %v2567_v59, %v1285_v14  ;;  %v1288_v21 = vadd.f32 %v1287_v51, %v1087_v17  ;;  %v1089_v22 = vpop.f32.mrb[51].mxu1 }
 0x17d   : > { %v1308_v33 = vpop.f32.mrb[60].mxu0 }
 0x17e   : > { %2087 = vst [vmem:[%s2582_s8 + $0x58] sm:$0xff] %v2035_v19   ;;  %v1433_v25 = vadd.f32 %v2572_v63, %v1385_v20  ;;  %v1386_v26 = vmul.f32 %v2567_v59, %v1288_v21  ;;  %v1310_v35 = vpop.f32.mrb[61].mxu0 }
 0x17f   : > { %v1311_v40 = vpop.f32.mrb[62].mxu0 }
 0x180   : > { %v1434_v27 = vadd.f32 %v2572_v63, %v1386_v26  ;;  %v1474_v29 = vmax.f32 %v1433_v25, 0.0  ;;  %v1313_v41 = vpop.f32.mrb[63].mxu0 }
 0x181   : > { %v1092_v28 = vpop.f32.mrb[52].mxu1 }
 0x182   : > { %v1475_v30 = vmax.f32 %v1434_v27, 0.0  ;;  %v1293_v31 = vadd.f32 %v1292_v62, %v1092_v28  ;;  %v1094_v32 = vpop.f32.mrb[53].mxu1 }
 0x183   : > { %v1095_v34 = vpop.f32.mrb[54].mxu1 }
 0x184   : > { %v2040_v36 = vpack.c.bf16 %v1475_v30, %v1474_v29  ;;  %v1387_v37 = vmul.f32 %v2567_v59, %v1293_v31  ;;  %v1296_v38 = vadd.f32 %v1295_v6, %v1095_v34  ;;  %v1097_v39 = vpop.f32.mrb[55].mxu1 }
 0x185   : > { %v1316_v50 = vpop.f32.mrb[64].mxu0 }
 0x186   : > { %2088 = vst [vmem:[%s2582_s8 + $0x60] sm:$0xff] %v2040_v36   ;;  %v1435_v42 = vadd.f32 %v2572_v63, %v1387_v37  ;;  %v1388_v43 = vmul.f32 %v2567_v59, %v1296_v38  ;;  %v1318_v52 = vpop.f32.mrb[65].mxu0 }
 0x187   : > { %v1319_v57 = vpop.f32.mrb[66].mxu0 }
 0x188   : > { %v1436_v44 = vadd.f32 %v2572_v63, %v1388_v43  ;;  %v1476_v46 = vmax.f32 %v1435_v42, 0.0  ;;  %v1321_v58 = vpop.f32.mrb[67].mxu0 }
 0x189   : > { %v1100_v45 = vpop.f32.mrb[56].mxu1 }
 0x18a   : > { %v1477_v47 = vmax.f32 %v1436_v44, 0.0  ;;  %v1301_v48 = vadd.f32 %v1300_v16, %v1100_v45  ;;  %v1102_v49 = vpop.f32.mrb[57].mxu1 }
 0x18b   : > { %v1103_v51 = vpop.f32.mrb[58].mxu1 }
 0x18c   : > { %v2045_v53 = vpack.c.bf16 %v1477_v47, %v1476_v46  ;;  %v1389_v54 = vmul.f32 %v2567_v59, %v1301_v48  ;;  %v1304_v55 = vadd.f32 %v1303_v23, %v1103_v51  ;;  %v1105_v56 = vpop.f32.mrb[59].mxu1 }
 0x18d   : > { %v1324_v5 = vpop.f32.mrb[68].mxu0 }
 0x18e   : > { %2089 = vst [vmem:[%s2582_s8 + $0x68] sm:$0xff] %v2045_v53   ;;  %v1437_v60 = vadd.f32 %v2572_v63, %v1389_v54  ;;  %v1390_v61 = vmul.f32 %v2567_v59, %v1304_v55  ;;  %v1326_v7 = vpop.f32.mrb[69].mxu0 }
 0x18f   : > { %v1327_v12 = vpop.f32.mrb[70].mxu0 }
 0x190   : > { %v1438_v62 = vadd.f32 %v2572_v63, %v1390_v61  ;;  %v1478_v1 = vmax.f32 %v1437_v60, 0.0  ;;  %v1329_v13 = vpop.f32.mrb[71].mxu0 }
 0x191   : > { %v1108_v0 = vpop.f32.mrb[60].mxu1 }
 0x192   : > { %v1479_v2 = vmax.f32 %v1438_v62, 0.0  ;;  %v1309_v3 = vadd.f32 %v1308_v33, %v1108_v0  ;;  %v1110_v4 = vpop.f32.mrb[61].mxu1 }
 0x193   : > { %v1111_v6 = vpop.f32.mrb[62].mxu1 }
 0x194   : > { %v2050_v8 = vpack.c.bf16 %v1479_v2, %v1478_v1  ;;  %v1391_v9 = vmul.f32 %v2567_v59, %v1309_v3  ;;  %v1312_v10 = vadd.f32 %v1311_v40, %v1111_v6  ;;  %v1113_v11 = vpop.f32.mrb[63].mxu1 }
 0x195   : > { %v1332_v22 = vpop.f32.mrb[72].mxu0 }
 0x196   : > { %2090 = vst [vmem:[%s2582_s8 + $0x70] sm:$0xff] %v2050_v8   ;;  %v1439_v14 = vadd.f32 %v2572_v63, %v1391_v9  ;;  %v1392_v15 = vmul.f32 %v2567_v59, %v1312_v10  ;;  %v1334_v24 = vpop.f32.mrb[73].mxu0 }
 0x197   : > { %v1335_v29 = vpop.f32.mrb[74].mxu0 }
 0x198   : > { %v1440_v16 = vadd.f32 %v2572_v63, %v1392_v15  ;;  %v1480_v18 = vmax.f32 %v1439_v14, 0.0  ;;  %v1337_v30 = vpop.f32.mrb[75].mxu0 }
 0x199   : > { %v1116_v17 = vpop.f32.mrb[64].mxu1 }
 0x19a   : > { %v1481_v19 = vmax.f32 %v1440_v16, 0.0  ;;  %v1317_v20 = vadd.f32 %v1316_v50, %v1116_v17  ;;  %v1118_v21 = vpop.f32.mrb[65].mxu1 }
 0x19b   : > { %v1119_v23 = vpop.f32.mrb[66].mxu1 }
 0x19c   : > { %v2055_v25 = vpack.c.bf16 %v1481_v19, %v1480_v18  ;;  %v1393_v26 = vmul.f32 %v2567_v59, %v1317_v20  ;;  %v1320_v27 = vadd.f32 %v1319_v57, %v1119_v23  ;;  %v1121_v28 = vpop.f32.mrb[67].mxu1 }
 0x19d   : > { %v1340_v39 = vpop.f32.mrb[76].mxu0 }
 0x19e   : > { %2091 = vst [vmem:[%s2582_s8 + $0x78] sm:$0xff] %v2055_v25   ;;  %v1441_v31 = vadd.f32 %v2572_v63, %v1393_v26  ;;  %v1394_v32 = vmul.f32 %v2567_v59, %v1320_v27  ;;  %v1342_v41 = vpop.f32.mrb[77].mxu0 }
 0x19f   : > { %v1343_v46 = vpop.f32.mrb[78].mxu0 }
 0x1a0   : > { %v1442_v33 = vadd.f32 %v2572_v63, %v1394_v32  ;;  %v1482_v35 = vmax.f32 %v1441_v31, 0.0  ;;  %v1345_v47 = vpop.f32.mrb[79].mxu0 }
 0x1a1   : > { %v1124_v34 = vpop.f32.mrb[68].mxu1 }
 0x1a2   : > { %v1483_v36 = vmax.f32 %v1442_v33, 0.0  ;;  %v1325_v37 = vadd.f32 %v1324_v5, %v1124_v34  ;;  %v1126_v38 = vpop.f32.mrb[69].mxu1 }
 0x1a3   : > { %v1127_v40 = vpop.f32.mrb[70].mxu1 }
 0x1a4   : > { %v2060_v42 = vpack.c.bf16 %v1483_v36, %v1482_v35  ;;  %v1395_v43 = vmul.f32 %v2567_v59, %v1325_v37  ;;  %v1328_v44 = vadd.f32 %v1327_v12, %v1127_v40  ;;  %v1129_v45 = vpop.f32.mrb[71].mxu1 }
 0x1a5   : > { %v1348_v56 = vpop.f32.mrb[80].mxu0 }
 0x1a6   : > { %2092 = vst [vmem:[%s2582_s8 + $0x80] sm:$0xff] %v2060_v42   ;;  %v1443_v48 = vadd.f32 %v2572_v63, %v1395_v43  ;;  %v1396_v49 = vmul.f32 %v2567_v59, %v1328_v44  ;;  %v1350_v58 = vpop.f32.mrb[81].mxu0 }
 0x1a7   : > { %v1351_v1 = vpop.f32.mrb[82].mxu0 }
 0x1a8   : > { %v1444_v50 = vadd.f32 %v2572_v63, %v1396_v49  ;;  %v1484_v52 = vmax.f32 %v1443_v48, 0.0  ;;  %v1352_v2 = vpop.f32.mrb[83].mxu0 }
 0x1a9   : > { %v1132_v51 = vpop.f32.mrb[72].mxu1 }
 0x1aa   : > { %v1485_v53 = vmax.f32 %v1444_v50, 0.0  ;;  %v1333_v54 = vadd.f32 %v1332_v22, %v1132_v51  ;;  %v1134_v55 = vpop.f32.mrb[73].mxu1 }
 0x1ab   : > { %v1135_v57 = vpop.f32.mrb[74].mxu1 }
 0x1ac   : > { %v2065_v60 = vpack.c.bf16 %v1485_v53, %v1484_v52  ;;  %v1397_v61 = vmul.f32 %v2567_v59, %v1333_v54  ;;  %v1336_v62 = vadd.f32 %v1335_v29, %v1135_v57  ;;  %v1137_v0 = vpop.f32.mrb[75].mxu1 }
 0x1ae   : > { %2093 = vst [vmem:[%s2582_s8 + $0x88] sm:$0xff] %v2065_v60   ;;  %v1445_v3 = vadd.f32 %v2572_v63, %v1397_v61  ;;  %v1398_v4 = vmul.f32 %v2567_v59, %v1336_v62 }
 0x1b0   : > { %v1446_v5 = vadd.f32 %v2572_v63, %v1398_v4  ;;  %v1486_v7 = vmax.f32 %v1445_v3, 0.0 }
 0x1b1   : > { %v1140_v6 = vpop.f32.mrb[76].mxu1 }
 0x1b2   : > { %v1487_v8 = vmax.f32 %v1446_v5, 0.0  ;;  %v1341_v9 = vadd.f32 %v1340_v39, %v1140_v6  ;;  %v1142_v10 = vpop.f32.mrb[77].mxu1 }
 0x1b3   : > { %v1143_v11 = vpop.f32.mrb[78].mxu1 }
 0x1b4   : > { %v2070_v12 = vpack.c.bf16 %v1487_v8, %v1486_v7  ;;  %v1399_v13 = vmul.f32 %v2567_v59, %v1341_v9  ;;  %v1344_v14 = vadd.f32 %v1343_v46, %v1143_v11  ;;  %v1145_v15 = vpop.f32.mrb[79].mxu1 }
 0x1b6   : > { %2094 = vst [vmem:[%s2582_s8 + $0x90] sm:$0xff] %v2070_v12   ;;  %v1447_v16 = vadd.f32 %v2572_v63, %v1399_v13  ;;  %v1400_v17 = vmul.f32 %v2567_v59, %v1344_v14 }
 0x1b8   : > { %v1448_v18 = vadd.f32 %v2572_v63, %v1400_v17  ;;  %v1488_v20 = vmax.f32 %v1447_v16, 0.0 }
 0x1b9   : > { %v1148_v19 = vpop.f32.mrb[80].mxu1 }
 0x1ba   : > { %v1489_v21 = vmax.f32 %v1448_v18, 0.0  ;;  %v1349_v22 = vadd.f32 %v1348_v56, %v1148_v19  ;;  %v1150_v23 = vpop.f32.mrb[81].mxu1 }
 0x1bb   : > { %v1151_v24 = vpop.f32.mrb[82].mxu1 }
 0x1bc   : > { %v2075_v25 = vpack.c.bf16 %v1489_v21, %v1488_v20  ;;  %v1401_v26 = vmul.f32 %v2567_v59, %v1349_v22  ;;  %v1152_v27 = vpop.f32.mrb[83].mxu1 }
 0x1be   : > { %2095 = vst [vmem:[%s2582_s8 + $0x98] sm:$0xff] %v2075_v25   ;;  %v1449_v28 = vadd.f32 %v2572_v63, %v1401_v26 }
 0x1c0   : > { %v1490_v29 = vmax.f32 %v1449_v28, 0.0 }
 0x1c2   : > { %v1976_v30 = vpack.c.bf16 %v1490_v29, %v1490_v29 }
 0x1c4   : > { %1696 = vst [vmem:[%s2582_s8 + $0xa0] sm:$0xf] %v1976_v30 }
 0x1c5 PF: > { %s14_s15 = sadd.s32 1, %s2305_s15  }
 0x1c6   : > { %p11_p4 = scmp.ge.s32.totalorder %s14_s15, 4  }
 0x1c8   :  { %13 = sbr.rel (!%p11_p4) target bundleno = 1 (0x1), region = 66 }

// kernel: convnet8_forward.6
= control target key start
LH: loop header
LB: loop body
LE: loop exit
PB: predicated region body
PF: predicated region fallthrough
CT: control target
= control target key end

     0   :  { %s2655_s15 = smov 0   ;;  %s3346_s0 = inlined_call_operand.vmem [shape: bf16[2,352,576], index: 0, kind: input, shape index: {}]   ;;  %s3347_s1 = inlined_call_operand.vmem [shape: bf16[576,128], index: 1, kind: input, shape index: {}]   ;;  %s3348_s2 = inlined_call_operand.vmem [shape: f32[1,128], index: 2, kind: input, shape index: {}]   ;;  %s3349_s3 = inlined_call_operand.vmem [shape: f32[1,128], index: 3, kind: input, shape index: {}]   ;;  %s3350_s4 = inlined_call_operand.vmem [shape: f32[2,88,128], index: 4, kind: output, shape index: {}]  }
   0x1 LB: > { %s2075_s16 = sadd.s32 4294967295, %s2627_s15   ;;  %p2079_p0 = scmp.ge.s32.totalorder %s2627_s15, 1  ;;  %s2627_s15 = sphi %s2655_s15, %s14_s15  }
   0x2   : > { %p162_p1 = scmp.lt.s32.totalorder %s2627_s15, 3 }
   0x4   : > { %p163_p2 = pnand %p2079_p0, %p162_p1 }
   0x5   : > { %v2431_v0 = vld [vmem:[%s3347_s1] sm:$0xff] (!%p163_p2)   ;;  %v2629_v1 = vmov (!%p163_p2), 0   ;;  %v2433_v3 = vld [vmem:[%s3347_s1 + $0x8] sm:$0xff] (!%p163_p2)   ;;  %v2435_v5 = vld [vmem:[%s3347_s1 + $0x10] sm:$0xff] (!%p163_p2)   ;;  %p188_p3 = scmp.lt.s32.totalorder (!%p163_p2), %s2075_s16, 1  ;;  %vm1169_vm0 = vcmask (!%p163_p2), 523264  }
   0x6   : > { %166 = sbr.rel (%p163_p2) target bundleno = 515 (0x203), region = 36  ;;  %1236 = vmatprep.subr.bf16.mxu0 (!%p163_p2), %v2629_v1  ;;  %2332 = vmatprep.subr.bf16.mxu1 (!%p163_p2), %v2629_v1  ;;  %v2671_v2 = vld [vmem:[%s3347_s1 + $0x80] sm:$0xff] (!%p163_p2)   ;;  %v2681_v4 = vld [vmem:[%s3347_s1 + $0x88] sm:$0xff] (!%p163_p2)   ;;  %v2692_v6 = vld [vmem:[%s3347_s1 + $0x90] sm:$0xff] (!%p163_p2)  }
   0x7   : > { %1237 = vmatpush1.bf16.msra.mxu0 (!%p163_p2), %v2431_v0  ;;  %2348 = vmatpush1.bf16.msra.mxu1 (!%p163_p2), %v2671_v2  ;;  %v2437_v7 = vld [vmem:[%s3347_s1 + $0x18] sm:$0xff] (!%p163_p2)   ;;  %v2439_v9 = vld [vmem:[%s3347_s1 + $0x20] sm:$0xff] (!%p163_p2)   ;;  %v2441_v11 = vld [vmem:[%s3347_s1 + $0x28] sm:$0xff] (!%p163_p2)  }
   0x8   : > { %1238 = vmatprep.subr.bf16.mxu0 (!%p163_p2), %v2629_v1  ;;  %2333 = vmatprep.subr.bf16.mxu1 (!%p163_p2), %v2629_v1  ;;  %v2703_v8 = vld [vmem:[%s3347_s1 + $0x98] sm:$0xff] (!%p163_p2)   ;;  %v2714_v10 = vld [vmem:[%s3347_s1 + $0xa0] sm:$0xff] (!%p163_p2)   ;;  %v2727_v12 = vld [vmem:[%s3347_s1 + $0xa8] sm:$0xff] (!%p163_p2)  }
   0x9   : > { %v2443_v13 = vld [vmem:[%s3347_s1 + $0x30] sm:$0xff] (!%p163_p2)   ;;  %v2445_v15 = vld [vmem:[%s3347_s1 + $0x38] sm:$0xff] (!%p163_p2)   ;;  %v2447_v17 = vld [vmem:[%s3347_s1 + $0x40] sm:$0xff] (!%p163_p2)  }
   0xa   : > { %v2742_v14 = vld [vmem:[%s3347_s1 + $0xb0] sm:$0xff] (!%p163_p2)   ;;  %v2754_v16 = vld [vmem:[%s3347_s1 + $0xb8] sm:$0xff] (!%p163_p2)   ;;  %v2770_v18 = vld [vmem:[%s3347_s1 + $0xc0] sm:$0xff] (!%p163_p2)  }
   0xb   : > { %1239 = vmatpush1.bf16.msra.mxu0 (!%p163_p2), %v2433_v3  ;;  %2349 = vmatpush1.bf16.msra.mxu1 (!%p163_p2), %v2681_v4  ;;  %v2449_v20 = vld [vmem:[%s3347_s1 + $0x48] sm:$0xff] (!%p163_p2)   ;;  %v2451_v23 = vld [vmem:[%s3347_s1 + $0x50] sm:$0xff] (!%p163_p2)   ;;  %v2453_v25 = vld [vmem:[%s3347_s1 + $0x58] sm:$0xff] (!%p163_p2)  }
   0xc   : > { %1240 = vmatprep.subr.bf16.mxu0 (!%p163_p2), %v2629_v1  ;;  %2334 = vmatprep.subr.bf16.mxu1 (!%p163_p2), %v2629_v1  ;;  %v2783_v22 = vld [vmem:[%s3347_s1 + $0xc8] sm:$0xff] (!%p163_p2)   ;;  %v2794_v24 = vld [vmem:[%s3347_s1 + $0xd0] sm:$0xff] (!%p163_p2)   ;;  %v2805_v26 = vld [vmem:[%s3347_s1 + $0xd8] sm:$0xff] (!%p163_p2)  }
   0xd   : > { %s3352_s16 = smov (!%p188_p3, %s2075_s16), 1  ;;  %v2455_v27 = vld [vmem:[%s3347_s1 + $0x60] sm:$0xff]   ;;  %v2457_v29 = vld [vmem:[%s3347_s1 + $0x68] sm:$0xff]   ;;  %v2459_v31 = vld [vmem:[%s3347_s1 + $0x70] sm:$0xff]  }
   0xe   : > { %s2420_s23 = smul.u32 880, %s3352_s16  ;;  %v2816_v28 = vld [vmem:[%s3347_s1 + $0xe0] sm:$0xff]   ;;  %v2827_v30 = vld [vmem:[%s3347_s1 + $0xe8] sm:$0xff]   ;;  %v2838_v32 = vld [vmem:[%s3347_s1 + $0xf0] sm:$0xff]  }
   0xf   : > { %1241 = vmatpush1.bf16.msra.mxu0 %v2435_v5  ;;  %2350 = vmatpush1.bf16.msra.mxu1 %v2692_v6  ;;  %v2461_v33 = vld [vmem:[%s3347_s1 + $0x78] sm:$0xff]   ;;  %v2475_v35 = vld [vmem:[%s3347_s1 + $0x100] sm:$0xff]   ;;  %v2500_v40 = vld [vmem:[%s3347_s1 + $0x108] sm:$0xff]   ;;  %s2421_s25 = smul.u32 88, %s3352_s16 }
  0x10   : > { %1242 = vmatprep.subr.bf16.mxu0 %v2629_v1  ;;  %2335 = vmatprep.subr.bf16.mxu1 %v2629_v1  ;;  %s2763_s30 = scalar_lea.vmem %s3346_s0, %s2420_s23  ;;  %v2849_v34 = vld [vmem:[%s3347_s1 + $0xf8] sm:$0xff]   ;;  %v2525_v43 = vld [vmem:[%s3347_s1 + $0x110] sm:$0xff]  }
  0x11   : > { %v2465_v19 = vld [vmem:[%s2763_s30 + $0x4] ss:$20 sps:$4 sm:$0xff]   ;;  %v2468_v21 = vld [vmem:[%s2763_s30 + $0xfc] ss:$20 sps:$4 sm:$0xff]   ;;  %v2463_v36 = vld [vmem:[%s2763_s30] ss:$20 sps:$4 sm:$0xff]   ;;  %s3250_s27 = scalar_lea.vmem %s3350_s4, %s2421_s25 }
  0x12   : > { %1268 = vmatprep.mubr.bf16.mxu0 %v2465_v19  ;;  %1525 = vmatprep.mubr.bf16.mxu1 %v2468_v21  ;;  %v2466_v37 = vld [vmem:[%s2763_s30 + $0xf8] ss:$20 sps:$4 sm:$0xff]   ;;  %v2473_v41 = vld [vmem:[%s2763_s30 + $0x28] ss:$20 sps:$4 sm:$0xff]   ;;  %v2474_v42 = vld [vmem:[%s2763_s30 + $0x120] ss:$20 sps:$4 sm:$0xff]  }
  0x13   : > { %1243 = vmatpush1.bf16.msra.mxu0 %v2437_v7  ;;  %2351 = vmatpush1.bf16.msra.mxu1 %v2703_v8  ;;  %v2469_v38 = vld [vmem:[%s2763_s30 + $0x2c] ss:$20 sps:$4 sm:$0xff]   ;;  %v2471_v39 = vld [vmem:[%s2763_s30 + $0x124] ss:$20 sps:$4 sm:$0xff]   ;;  %v2476_v44 = vld [vmem:[%s2763_s30 + $0x54] ss:$20 sps:$4 sm:$0xff]  }
  0x14   : > { %1244 = vmatprep.subr.bf16.mxu0 %v2629_v1  ;;  %2336 = vmatprep.subr.bf16.mxu1 %v2629_v1  ;;  %v2478_v45 = vld [vmem:[%s2763_s30 + $0x14c] ss:$20 sps:$4 sm:$0xff]   ;;  %v2550_v46 = vld [vmem:[%s3347_s1 + $0x118] sm:$0xff]   ;;  %v2480_v47 = vld [vmem:[%s2763_s30 + $0x50] ss:$20 sps:$4 sm:$0xff]  }
  0x15   : > { %v2481_v48 = vld [vmem:[%s2763_s30 + $0x148] ss:$20 sps:$4 sm:$0xff]   ;;  %v2486_v51 = vld [vmem:[%s2763_s30 + $0x78] ss:$20 sps:$4 sm:$0xff]   ;;  %v2487_v52 = vld [vmem:[%s2763_s30 + $0x170] ss:$20 sps:$4 sm:$0xff]  }
  0x16   : > { %v2482_v49 = vld [vmem:[%s2763_s30 + $0x7c] ss:$20 sps:$4 sm:$0xff]   ;;  %v2484_v50 = vld [vmem:[%s2763_s30 + $0x174] ss:$20 sps:$4 sm:$0xff]   ;;  %v2488_v53 = vld [vmem:[%s2763_s30 + $0xa4] ss:$20 sps:$4 sm:$0xff]  }
  0x17   : > { %1245 = vmatpush1.bf16.msra.mxu0 %v2439_v9  ;;  %2352 = vmatpush1.bf16.msra.mxu1 %v2714_v10  ;;  %v2490_v54 = vld [vmem:[%s2763_s30 + $0x19c] ss:$20 sps:$4 sm:$0xff]   ;;  %v2492_v55 = vld [vmem:[%s2763_s30 + $0xa0] ss:$20 sps:$4 sm:$0xff]   ;;  %v2493_v56 = vld [vmem:[%s2763_s30 + $0x198] ss:$20 sps:$4 sm:$0xff]  }
  0x18   : > { %1246 = vmatprep.subr.bf16.mxu0 %v2629_v1  ;;  %2337 = vmatprep.subr.bf16.mxu1 %v2629_v1  ;;  %v2494_v57 = vld [vmem:[%s2763_s30 + $0xcc] ss:$20 sps:$4 sm:$0xff]   ;;  %v2496_v58 = vld [vmem:[%s2763_s30 + $0x1c4] ss:$20 sps:$4 sm:$0xff]   ;;  %v2498_v59 = vld [vmem:[%s2763_s30 + $0xc8] ss:$20 sps:$4 sm:$0xff]  }
  0x19   : > { %v2499_v60 = vld [vmem:[%s2763_s30 + $0x1c0] ss:$20 sps:$4 sm:$0xff]   ;;  %v2505_v63 = vld [vmem:[%s2763_s30 + $0xf0] ss:$20 sps:$4 sm:$0xff]   ;;  %v2506_v0 = vld [vmem:[%s2763_s30 + $0x1e8] ss:$20 sps:$4 sm:$0xff]  }
  0x1a   : > { %v2501_v61 = vld [vmem:[%s2763_s30 + $0xf4] ss:$20 sps:$4 sm:$0xff]   ;;  %v2503_v62 = vld [vmem:[%s2763_s30 + $0x1ec] ss:$20 sps:$4 sm:$0xff]   ;;  %v2512_v5 = vld [vmem:[%s2763_s30 + $0x210] ss:$20 sps:$4 sm:$0xff]  }
  0x1b   : > { %1247 = vmatpush1.bf16.msra.mxu0 %v2441_v11  ;;  %2353 = vmatpush1.bf16.msra.mxu1 %v2727_v12  ;;  %v2509_v3 = vld [vmem:[%s2763_s30 + $0x214] ss:$20 sps:$4 sm:$0xff]   ;;  %v2515_v7 = vld [vmem:[%s2763_s30 + $0x23c] ss:$20 sps:$4 sm:$0xff]   ;;  %v2518_v9 = vld [vmem:[%s2763_s30 + $0x238] ss:$20 sps:$4 sm:$0xff]  }
  0x1c   : > { %1248 = vmatprep.subr.bf16.mxu0 %v2629_v1  ;;  %2338 = vmatprep.subr.bf16.mxu1 %v2629_v1  ;;  %v2521_v11 = vld [vmem:[%s2763_s30 + $0x264] ss:$20 sps:$4 sm:$0xff]  }
  0x1d   : > { %v2536_v19 = vld [vmem:[%s2763_s30 + $0x1b8] ss:$20 sps:$4 sm:$0xff]  }
  0x1e   : > { %v2538_v21 = vld [vmem:[%s2763_s30 + $0x1e4] ss:$20 sps:$4 sm:$0xff]  }
  0x1f   : > { %1249 = vmatpush1.bf16.msra.mxu0 %v2443_v13  ;;  %2354 = vmatpush1.bf16.msra.mxu1 %v2742_v14  ;;  %v2524_v13 = vld [vmem:[%s2763_s30 + $0x260] ss:$20 sps:$4 sm:$0xff]  }
  0x20   : > { %1250 = vmatprep.subr.bf16.mxu0 %v2629_v1  ;;  %2339 = vmatprep.subr.bf16.mxu1 %v2629_v1 }
  0x23   : > { %1251 = vmatpush1.bf16.msra.mxu0 %v2445_v15  ;;  %2355 = vmatpush1.bf16.msra.mxu1 %v2754_v16  ;;  %v2530_v15 = vld [vmem:[%s2763_s30 + $0x190] ss:$20 sps:$4 sm:$0xff]  }
  0x24   : > { %1252 = vmatprep.subr.bf16.mxu0 %v2629_v1  ;;  %2340 = vmatprep.subr.bf16.mxu1 %v2629_v1 }
  0x27   : > { %1253 = vmatpush1.bf16.msra.mxu0 %v2447_v17  ;;  %2356 = vmatpush1.bf16.msra.mxu1 %v2770_v18  ;;  %v2532_v17 = vld [vmem:[%s2763_s30 + $0x1bc] ss:$20 sps:$4 sm:$0xff]  }
  0x28   : > { %1254 = vmatprep.subr.bf16.mxu0 %v2629_v1  ;;  %2341 = vmatprep.subr.bf16.mxu1 %v2629_v1 }
  0x2b   : > { %1255 = vmatpush1.bf16.msra.mxu0 %v2449_v20  ;;  %2357 = vmatpush1.bf16.msra.mxu1 %v2783_v22  ;;  %v2537_v20 = vld [vmem:[%s2763_s30 + $0x2b0] ss:$20 sps:$4 sm:$0xff]  }
  0x2c   : > { %1256 = vmatprep.subr.bf16.mxu0 %v2629_v1  ;;  %2342 = vmatprep.subr.bf16.mxu1 %v2629_v1 }
  0x2f   : > { %1257 = vmatpush1.bf16.msra.mxu0 %v2451_v23  ;;  %2358 = vmatpush1.bf16.msra.mxu1 %v2794_v24  ;;  %v2542_v23 = vld [vmem:[%s2763_s30 + $0x1e0] ss:$20 sps:$4 sm:$0xff]  }
  0x30   : > { %1258 = vmatprep.subr.bf16.mxu0 %v2629_v1  ;;  %2343 = vmatprep.subr.bf16.mxu1 %v2629_v1 }
  0x33   : > { %1259 = vmatpush1.bf16.msra.mxu0 %v2453_v25  ;;  %2359 = vmatpush1.bf16.msra.mxu1 %v2805_v26  ;;  %v2544_v25 = vld [vmem:[%s2763_s30 + $0x20c] ss:$20 sps:$4 sm:$0xff]  }
  0x34   : > { %1260 = vmatprep.subr.bf16.mxu0 %v2629_v1  ;;  %2344 = vmatprep.subr.bf16.mxu1 %v2629_v1 }
  0x37   : > { %1261 = vmatpush1.bf16.msra.mxu0 %v2455_v27  ;;  %2360 = vmatpush1.bf16.msra.mxu1 %v2816_v28  ;;  %v2548_v27 = vld [vmem:[%s2763_s30 + $0x208] ss:$20 sps:$4 sm:$0xff]  }
  0x38   : > { %1262 = vmatprep.subr.bf16.mxu0 %v2629_v1  ;;  %2345 = vmatprep.subr.bf16.mxu1 %v2629_v1 }
  0x3b   : > { %1263 = vmatpush1.bf16.msra.mxu0 %v2457_v29  ;;  %2361 = vmatpush1.bf16.msra.mxu1 %v2827_v30  ;;  %v2551_v29 = vld [vmem:[%s2763_s30 + $0x234] ss:$20 sps:$4 sm:$0xff]  }
  0x3c   : > { %1264 = vmatprep.subr.bf16.mxu0 %v2629_v1  ;;  %2346 = vmatprep.subr.bf16.mxu1 %v2629_v1 }
  0x3f   : > { %1265 = vmatpush1.bf16.msra.mxu0 %v2459_v31  ;;  %2362 = vmatpush1.bf16.msra.mxu1 %v2838_v32  ;;  %v2555_v31 = vld [vmem:[%s2763_s30 + $0x230] ss:$20 sps:$4 sm:$0xff]  }
  0x40   : > { %1266 = vmatprep.subr.bf16.mxu0 %v2629_v1  ;;  %2347 = vmatprep.subr.bf16.mxu1 %v2629_v1 }
  0x43   : > { %1267 = vmatpush1.bf16.msra.mxu0 %v2461_v33  ;;  %2363 = vmatpush1.bf16.msra.mxu1 %v2849_v34  ;;  %v2557_v33 = vld [vmem:[%s2763_s30 + $0x25c] ss:$20 sps:$4 sm:$0xff]  }
  0x44   : > { %1445 = vmatprep.subr.bf16.mxu0 %v2629_v1  ;;  %2280 = vmatprep.subr.bf16.mxu1 %v2475_v35 }
  0x46   : > { %1269 = vmatmul.mubr.bf16.vlgmr.msra.gmra.mrb[0].mxu0 %v2463_v36  ;;  %1526 = vmatmul.mubr.bf16.vlgmr.msra.gmra.mrb[0].mxu1 %v2466_v37  ;;  %v2562_v36 = vld [vmem:[%s2763_s30 + $0x350] ss:$20 sps:$4 sm:$0xff]  }
  0x47   : > { %1446 = vmatpush1.bf16.msra.mxu0 %v2671_v2  ;;  %1276 = vmatprep.mubr.bf16.mxu0 %v2469_v38  ;;  %v2507_v2 = vld [vmem:[%s2763_s30 + $0x11c] ss:$20 sps:$4 sm:$0xff]   ;;  %v2563_v37 = vld [vmem:[%s2763_s30 + $0x284] ss:$20 sps:$4 sm:$0xff]  }
  0x48   : > { %1533 = vmatprep.mubr.bf16.mxu1 %v2471_v39  ;;  %1447 = vmatprep.subr.bf16.mxu0 %v2629_v1  ;;  %v2565_v38 = vld [vmem:[%s2763_s30 + $0x10] ss:$20 sps:$4 sm:$0xff]   ;;  %v2566_v39 = vld [vmem:[%s2763_s30 + $0x280] ss:$20 sps:$4 sm:$0xff]  }
  0x49   : > { %2281 = vmatpush3.bf16.msra.mxu1 %v2475_v35  ;;  %v2561_v35 = vld [vmem:[%s2763_s30 + $0x258] ss:$20 sps:$4 sm:$0xff]  }
  0x4a   : > { %2282 = vmatprep.subr.bf16.mxu1 %v2500_v40 }
  0x4b   : > { %1448 = vmatpush1.bf16.msra.mxu0 %v2681_v4  ;;  %v2511_v4 = vld [vmem:[%s2763_s30 + $0x118] ss:$20 sps:$4 sm:$0xff]  }
  0x4c   : > { %1449 = vmatprep.subr.bf16.mxu0 %v2629_v1 }
  0x4d   : > { %2283 = vmatpush3.bf16.msra.mxu1 %v2500_v40  ;;  %v2567_v40 = vld [vmem:[%s2763_s30 + $0x38] ss:$20 sps:$4 sm:$0xff]  }
  0x4e   : > { %1277 = vmatmul.mubr.bf16.gmra.mrb[4].mxu0 %v2473_v41  ;;  %2284 = vmatprep.subr.bf16.mxu1 %v2525_v43  ;;  %v2568_v41 = vld [vmem:[%s2763_s30 + $0x2ac] ss:$20 sps:$4 sm:$0xff]  }
  0x4f   : > { %1534 = vmatmul.mubr.bf16.gmra.mrb[4].mxu1 %v2474_v42  ;;  %1284 = vmatprep.mubr.bf16.mxu0 %v2476_v44  ;;  %v2570_v42 = vld [vmem:[%s2763_s30 + $0x60] ss:$20 sps:$4 sm:$0xff]   ;;  %v2572_v44 = vld [vmem:[%s2763_s30 + $0x88] ss:$20 sps:$4 sm:$0xff]  }
  0x50   : > { %1541 = vmatprep.mubr.bf16.mxu1 %v2478_v45  ;;  %1450 = vmatpush1.bf16.msra.mxu0 %v2692_v6  ;;  %v2513_v6 = vld [vmem:[%s2763_s30 + $0x144] ss:$20 sps:$4 sm:$0xff]   ;;  %v2573_v45 = vld [vmem:[%s2763_s30 + $0x2d4] ss:$20 sps:$4 sm:$0xff]  }
  0x51   : > { %1451 = vmatprep.subr.bf16.mxu0 %v2629_v1  ;;  %2285 = vmatpush3.bf16.msra.mxu1 %v2525_v43  ;;  %v2571_v43 = vld [vmem:[%s2763_s30 + $0x2a8] ss:$20 sps:$4 sm:$0xff]  }
  0x52   : > { %2286 = vmatprep.subr.bf16.mxu1 %v2550_v46 }
  0x54   : > { %1452 = vmatpush1.bf16.msra.mxu0 %v2703_v8  ;;  %v2517_v8 = vld [vmem:[%s2763_s30 + $0x140] ss:$20 sps:$4 sm:$0xff]  }
  0x55   : > { %1453 = vmatprep.subr.bf16.mxu0 %v2629_v1  ;;  %2287 = vmatpush3.bf16.msra.mxu1 %v2550_v46  ;;  %v2575_v46 = vld [vmem:[%s2763_s30 + $0xb0] ss:$20 sps:$4 sm:$0xff]  }
  0x56   : > { %1285 = vmatmul.mubr.bf16.gmra.mrb[8].mxu0 %v2480_v47  ;;  %v2576_v47 = vld [vmem:[%s2763_s30 + $0x2d0] ss:$20 sps:$4 sm:$0xff]  }
  0x57   : > { %1542 = vmatmul.mubr.bf16.gmra.mrb[8].mxu1 %v2481_v48  ;;  %1292 = vmatprep.mubr.bf16.mxu0 %v2482_v49  ;;  %v2577_v48 = vld [vmem:[%s2763_s30 + $0xd8] ss:$20 sps:$4 sm:$0xff]   ;;  %v2578_v49 = vld [vmem:[%s2763_s30 + $0x2fc] ss:$20 sps:$4 sm:$0xff]  }
  0x58   : > { %1549 = vmatprep.mubr.bf16.mxu1 %v2484_v50  ;;  %1454 = vmatpush1.bf16.msra.mxu0 %v2714_v10  ;;  %v2519_v10 = vld [vmem:[%s2763_s30 + $0x16c] ss:$20 sps:$4 sm:$0xff]  }
  0x59   : > { %1455 = vmatprep.subr.bf16.mxu0 %v2629_v1  ;;  %v2580_v50 = vld [vmem:[%s2763_s30 + $0x100] ss:$20 sps:$4 sm:$0xff]  }
  0x5c   : > { %1456 = vmatpush1.bf16.msra.mxu0 %v2727_v12  ;;  %v2523_v12 = vld [vmem:[%s2763_s30 + $0x168] ss:$20 sps:$4 sm:$0xff]  }
  0x5d   : > { %1457 = vmatprep.subr.bf16.mxu0 %v2629_v1 }
  0x5e   : > { %1293 = vmatmul.mubr.bf16.gmra.mrb[12].mxu0 %v2486_v51  ;;  %v2581_v51 = vld [vmem:[%s2763_s30 + $0x2f8] ss:$20 sps:$4 sm:$0xff]  }
  0x5f   : > { %1550 = vmatmul.mubr.bf16.gmra.mrb[12].mxu1 %v2487_v52  ;;  %1300 = vmatprep.mubr.bf16.mxu0 %v2488_v53  ;;  %v2582_v52 = vld [vmem:[%s2763_s30 + $0x128] ss:$20 sps:$4 sm:$0xff]   ;;  %v2583_v53 = vld [vmem:[%s2763_s30 + $0x324] ss:$20 sps:$4 sm:$0xff]  }
  0x60   : > { %1557 = vmatprep.mubr.bf16.mxu1 %v2490_v54  ;;  %1458 = vmatpush1.bf16.msra.mxu0 %v2742_v14  ;;  %v2526_v14 = vld [vmem:[%s2763_s30 + $0x194] ss:$20 sps:$4 sm:$0xff]   ;;  %v2585_v54 = vld [vmem:[%s2763_s30 + $0x150] ss:$20 sps:$4 sm:$0xff]  }
  0x61   : > { %1459 = vmatprep.subr.bf16.mxu0 %v2629_v1 }
  0x64   : > { %1460 = vmatpush1.bf16.msra.mxu0 %v2754_v16  ;;  %v2531_v16 = vld [vmem:[%s2763_s30 + $0x288] ss:$20 sps:$4 sm:$0xff]  }
  0x65   : > { %1461 = vmatprep.subr.bf16.mxu0 %v2629_v1 }
  0x66   : > { %1301 = vmatmul.mubr.bf16.gmra.mrb[16].mxu0 %v2492_v55  ;;  %v2586_v55 = vld [vmem:[%s2763_s30 + $0x320] ss:$20 sps:$4 sm:$0xff]  }
  0x67   : > { %1558 = vmatmul.mubr.bf16.gmra.mrb[16].mxu1 %v2493_v56  ;;  %1308 = vmatprep.mubr.bf16.mxu0 %v2494_v57  ;;  %v2587_v56 = vld [vmem:[%s2763_s30 + $0x178] ss:$20 sps:$4 sm:$0xff]  }
  0x68   : > { %1565 = vmatprep.mubr.bf16.mxu1 %v2496_v58  ;;  %1462 = vmatpush1.bf16.msra.mxu0 %v2770_v18  ;;  %v2534_v18 = vld [vmem:[%s2763_s30 + $0x2b4] ss:$20 sps:$4 sm:$0xff]   ;;  %v2588_v57 = vld [vmem:[%s2763_s30 + $0x34c] ss:$20 sps:$4 sm:$0xff]  }
  0x69   : > { %1463 = vmatprep.subr.bf16.mxu0 %v2629_v1  ;;  %v2590_v58 = vld [vmem:[%s2763_s30 + $0x1a0] ss:$20 sps:$4 sm:$0xff]  }
  0x6c   : > { %1464 = vmatpush1.bf16.msra.mxu0 %v2783_v22  ;;  %v2540_v22 = vld [vmem:[%s2763_s30 + $0x2dc] ss:$20 sps:$4 sm:$0xff]  }
  0x6d   : > { %1465 = vmatprep.subr.bf16.mxu0 %v2629_v1 }
  0x6e   : > { %1309 = vmatmul.mubr.bf16.gmra.mrb[20].mxu0 %v2498_v59  ;;  %v2591_v59 = vld [vmem:[%s2763_s30 + $0x348] ss:$20 sps:$4 sm:$0xff]  }
  0x6f   : > { %1566 = vmatmul.mubr.bf16.gmra.mrb[20].mxu1 %v2499_v60  ;;  %1316 = vmatprep.mubr.bf16.mxu0 %v2501_v61  ;;  %v2592_v60 = vld [vmem:[%s2763_s30 + $0x1c8] ss:$20 sps:$4 sm:$0xff]   ;;  %v2595_v61 = vld [vmem:[%s2763_s30 + $0xc] ss:$20 sps:$4 sm:$0xff]  }
  0x70   : > { %1573 = vmatprep.mubr.bf16.mxu1 %v2503_v62  ;;  %1466 = vmatpush1.bf16.msra.mxu0 %v2794_v24  ;;  %v2543_v24 = vld [vmem:[%s2763_s30 + $0x2d8] ss:$20 sps:$4 sm:$0xff]   ;;  %v2596_v62 = vld [vmem:[%s2763_s30 + $0x1f0] ss:$20 sps:$4 sm:$0xff]  }
  0x71   : > { %1467 = vmatprep.subr.bf16.mxu0 %v2629_v1 }
  0x74   : > { %1468 = vmatpush1.bf16.msra.mxu0 %v2805_v26  ;;  %v2546_v26 = vld [vmem:[%s2763_s30 + $0x304] ss:$20 sps:$4 sm:$0xff]  }
  0x75   : > { %1469 = vmatprep.subr.bf16.mxu0 %v2629_v1 }
  0x76   : > { %1317 = vmatmul.mubr.bf16.gmra.mrb[24].mxu0 %v2505_v63  ;;  %v2593_v63 = vld [vmem:[%s2763_s30 + $0x8] ss:$20 sps:$4 sm:$0xff]  }
  0x77   : > { %1574 = vmatmul.mubr.bf16.gmra.mrb[24].mxu1 %v2506_v0  ;;  %1324 = vmatprep.mubr.bf16.mxu0 %v2507_v2  ;;  %v2597_v0 = vld [vmem:[%s2763_s30 + $0x218] ss:$20 sps:$4 sm:$0xff]   ;;  %v2598_v2 = vld [vmem:[%s2763_s30 + $0x34] ss:$20 sps:$4 sm:$0xff]  }
  0x78   : > { %1581 = vmatprep.mubr.bf16.mxu1 %v2509_v3  ;;  %1470 = vmatpush1.bf16.msra.mxu0 %v2816_v28  ;;  %v2549_v28 = vld [vmem:[%s2763_s30 + $0x300] ss:$20 sps:$4 sm:$0xff]  }
  0x79   : > { %1471 = vmatprep.subr.bf16.mxu0 %v2629_v1  ;;  %v2600_v3 = vld [vmem:[%s2763_s30 + $0x240] ss:$20 sps:$4 sm:$0xff]  }
  0x7c   : > { %1472 = vmatpush1.bf16.msra.mxu0 %v2827_v30  ;;  %v2553_v30 = vld [vmem:[%s2763_s30 + $0x32c] ss:$20 sps:$4 sm:$0xff]  }
  0x7d   : > { %1473 = vmatprep.subr.bf16.mxu0 %v2629_v1 }
  0x7e   : > { %1325 = vmatmul.mubr.bf16.gmra.mrb[28].mxu0 %v2511_v4  ;;  %v2601_v4 = vld [vmem:[%s2763_s30 + $0x30] ss:$20 sps:$4 sm:$0xff]  }
  0x7f   : > { %1582 = vmatmul.mubr.bf16.gmra.mrb[28].mxu1 %v2512_v5  ;;  %1332 = vmatprep.mubr.bf16.mxu0 %v2513_v6  ;;  %v2602_v5 = vld [vmem:[%s2763_s30 + $0x268] ss:$20 sps:$4 sm:$0xff]  }
  0x80   : > { %1589 = vmatprep.mubr.bf16.mxu1 %v2515_v7  ;;  %1474 = vmatpush1.bf16.msra.mxu0 %v2838_v32  ;;  %v2556_v32 = vld [vmem:[%s2763_s30 + $0x328] ss:$20 sps:$4 sm:$0xff]   ;;  %v2605_v7 = vld [vmem:[%s2763_s30 + $0x290] ss:$20 sps:$4 sm:$0xff]  }
  0x81   : > { %1475 = vmatprep.subr.bf16.mxu0 %v2629_v1  ;;  %v2528_v1 = vld [vmem:[%s2763_s30 + $0x28c] ss:$20 sps:$4 sm:$0xff]   ;;  %v2603_v6 = vld [vmem:[%s2763_s30 + $0x5c] ss:$20 sps:$4 sm:$0xff]  }
  0x84   : > { %1476 = vmatpush1.bf16.msra.mxu0 %v2849_v34  ;;  %v2559_v34 = vld [vmem:[%s2763_s30 + $0x354] ss:$20 sps:$4 sm:$0xff]  }
  0x86   : > { %1333 = vmatmul.mubr.bf16.gmra.mrb[32].mxu0 %v2517_v8  ;;  %v2606_v8 = vld [vmem:[%s2763_s30 + $0x58] ss:$20 sps:$4 sm:$0xff]  }
  0x87   : > { %1590 = vmatmul.mubr.bf16.gmra.mrb[32].mxu1 %v2518_v9  ;;  %1340 = vmatprep.mubr.bf16.mxu0 %v2519_v10  ;;  %v2607_v9 = vld [vmem:[%s2763_s30 + $0x2b8] ss:$20 sps:$4 sm:$0xff]  }
  0x88   : > { %1597 = vmatprep.mubr.bf16.mxu1 %v2521_v11  ;;  %v2608_v10 = vld [vmem:[%s2763_s30 + $0x84] ss:$20 sps:$4 sm:$0xff]   ;;  %v2610_v11 = vld [vmem:[%s2763_s30 + $0x2e0] ss:$20 sps:$4 sm:$0xff]  }
  0x8e   : > { %1341 = vmatmul.mubr.bf16.gmra.mrb[36].mxu0 %v2523_v12  ;;  %v2611_v12 = vld [vmem:[%s2763_s30 + $0x80] ss:$20 sps:$4 sm:$0xff]  }
  0x8f   : > { %1598 = vmatmul.mubr.bf16.gmra.mrb[36].mxu1 %v2524_v13  ;;  %1348 = vmatprep.mubr.bf16.mxu0 %v2526_v14  ;;  %v2612_v13 = vld [vmem:[%s2763_s30 + $0x308] ss:$20 sps:$4 sm:$0xff]   ;;  %v2613_v14 = vld [vmem:[%s2763_s30 + $0xac] ss:$20 sps:$4 sm:$0xff]  }
  0x90   : > { %1605 = vmatprep.mubr.bf16.mxu1 %v2528_v1  ;;  %v2615_v1 = vld [vmem:[%s2763_s30 + $0x330] ss:$20 sps:$4 sm:$0xff]  }
  0x96   : > { %1349 = vmatmul.mubr.bf16.gmra.mrb[40].mxu0 %v2530_v15  ;;  %v2616_v15 = vld [vmem:[%s2763_s30 + $0xa8] ss:$20 sps:$4 sm:$0xff]  }
  0x97   : > { %1606 = vmatmul.mubr.bf16.gmra.mrb[40].mxu1 %v2531_v16  ;;  %1356 = vmatprep.mubr.bf16.mxu0 %v2532_v17  ;;  %v2617_v16 = vld [vmem:[%s2763_s30 + $0x358] ss:$20 sps:$4 sm:$0xff]   ;;  %v2618_v17 = vld [vmem:[%s2763_s30 + $0xd4] ss:$20 sps:$4 sm:$0xff]  }
  0x98   : > { %1613 = vmatprep.mubr.bf16.mxu1 %v2534_v18  ;;  %v2620_v18 = vld [vmem:[%s2763_s30 + $0xd0] ss:$20 sps:$4 sm:$0xff]  }
  0x9e   : > { %1357 = vmatmul.mubr.bf16.gmra.mrb[44].mxu0 %v2536_v19 }
  0x9f   : > { %1614 = vmatmul.mubr.bf16.gmra.mrb[44].mxu1 %v2537_v20  ;;  %1364 = vmatprep.mubr.bf16.mxu0 %v2538_v21 }
  0xa0   : > { %1621 = vmatprep.mubr.bf16.mxu1 %v2540_v22 }
  0xa6   : > { %1365 = vmatmul.mubr.bf16.gmra.mrb[48].mxu0 %v2542_v23 }
  0xa7   : > { %1622 = vmatmul.mubr.bf16.gmra.mrb[48].mxu1 %v2543_v24  ;;  %1372 = vmatprep.mubr.bf16.mxu0 %v2544_v25 }
  0xa8   : > { %1629 = vmatprep.mubr.bf16.mxu1 %v2546_v26 }
  0xae   : > { %1373 = vmatmul.mubr.bf16.gmra.mrb[52].mxu0 %v2548_v27 }
  0xaf   : > { %1630 = vmatmul.mubr.bf16.gmra.mrb[52].mxu1 %v2549_v28  ;;  %1380 = vmatprep.mubr.bf16.mxu0 %v2551_v29 }
  0xb0   : > { %1637 = vmatprep.mubr.bf16.mxu1 %v2553_v30 }
  0xb6   : > { %1381 = vmatmul.mubr.bf16.gmra.mrb[56].mxu0 %v2555_v31 }
  0xb7   : > { %1638 = vmatmul.mubr.bf16.gmra.mrb[56].mxu1 %v2556_v32  ;;  %1388 = vmatprep.mubr.bf16.mxu0 %v2557_v33 }
  0xb8   : > { %1645 = vmatprep.mubr.bf16.mxu1 %v2559_v34 }
  0xbe   : > { %1389 = vmatmul.mubr.bf16.gmra.mrb[60].mxu0 %v2561_v35 }
  0xbf   : > { %1646 = vmatmul.mubr.bf16.gmra.mrb[60].mxu1 %v2562_v36  ;;  %1396 = vmatprep.mubr.bf16.mxu0 %v2563_v37 }
  0xc0   : > { %2288 = vmatprep.mubr.msk.bf16.mxu1 %vm1169_vm0, %v2565_v38 }
  0xc6   : > { %1397 = vmatmul.mubr.bf16.gmra.mrb[64].mxu0 %v2566_v39 }
  0xc7   : > { %2289 = vmatmul.mubr.msk.bf16.vlgmr.msra.gmra.mrb[64].mxu1 %vm1169_vm0, %v2567_v40  ;;  %1404 = vmatprep.mubr.bf16.mxu0 %v2568_v41 }
  0xc8   : > { %2292 = vmatprep.mubr.msk.bf16.mxu1 %vm1169_vm0, %v2570_v42 }
  0xce   : > { %1405 = vmatmul.mubr.bf16.gmra.mrb[68].mxu0 %v2571_v43 }
  0xcf   : > { %2293 = vmatmul.mubr.msk.bf16.gmra.mrb[68].mxu1 %vm1169_vm0, %v2572_v44  ;;  %1412 = vmatprep.mubr.bf16.mxu0 %v2573_v45 }
  0xd0   : > { %2296 = vmatprep.mubr.msk.bf16.mxu1 %vm1169_vm0, %v2575_v46 }
  0xd6   : > { %1413 = vmatmul.mubr.bf16.gmra.mrb[72].mxu0 %v2576_v47 }
  0xd7   : > { %2297 = vmatmul.mubr.msk.bf16.gmra.mrb[72].mxu1 %vm1169_vm0, %v2577_v48  ;;  %1420 = vmatprep.mubr.bf16.mxu0 %v2578_v49 }
  0xd8   : > { %2300 = vmatprep.mubr.msk.bf16.mxu1 %vm1169_vm0, %v2580_v50 }
  0xde   : > { %1421 = vmatmul.mubr.bf16.gmra.mrb[76].mxu0 %v2581_v51 }
  0xdf   : > { %2301 = vmatmul.mubr.msk.bf16.gmra.mrb[76].mxu1 %vm1169_vm0, %v2582_v52  ;;  %1428 = vmatprep.mubr.bf16.mxu0 %v2583_v53 }
  0xe0   : > { %2304 = vmatprep.mubr.msk.bf16.mxu1 %vm1169_vm0, %v2585_v54 }
  0xe6   : > { %1429 = vmatmul.mubr.bf16.gmra.mrb[80].mxu0 %v2586_v55 }
  0xe7   : > { %2305 = vmatmul.mubr.msk.bf16.gmra.mrb[80].mxu1 %vm1169_vm0, %v2587_v56  ;;  %1436 = vmatprep.mubr.bf16.mxu0 %v2588_v57 }
  0xe8   : > { %2308 = vmatprep.mubr.msk.bf16.mxu1 %vm1169_vm0, %v2590_v58 }
  0xee   : > { %1437 = vmatmul.mubr.bf16.gmra.mrb[84].mxu0 %v2591_v59 }
  0xef   : > { %2309 = vmatmul.mubr.msk.bf16.gmra.mrb[84].mxu1 %vm1169_vm0, %v2592_v60  ;;  %1477 = vmatprep.mubr.bf16.mxu0 %v2595_v61 }
  0xf0   : > { %2312 = vmatprep.mubr.msk.bf16.mxu1 %vm1169_vm0, %v2596_v62 }
  0xf6   : > { %1478 = vmatmul.mubr.bf16.vlgmr.msra.gmra.mrb[0].mxu0 %v2593_v63 }
  0xf7   : > { %2313 = vmatmul.mubr.msk.bf16.gmra.mrb[88].mxu1 %vm1169_vm0, %v2597_v0  ;;  %1485 = vmatprep.mubr.bf16.mxu0 %v2598_v2 }
  0xf8   : > { %2316 = vmatprep.mubr.msk.bf16.mxu1 %vm1169_vm0, %v2600_v3 }
  0xfe   : > { %1486 = vmatmul.mubr.bf16.gmra.mrb[4].mxu0 %v2601_v4 }
  0xff   : > { %2317 = vmatmul.mubr.msk.bf16.gmra.mrb[92].mxu1 %vm1169_vm0, %v2602_v5  ;;  %1493 = vmatprep.mubr.bf16.mxu0 %v2603_v6 }
 0x100   : > { %2320 = vmatprep.mubr.msk.bf16.mxu1 %vm1169_vm0, %v2605_v7 }
 0x106   : > { %1494 = vmatmul.mubr.bf16.gmra.mrb[8].mxu0 %v2606_v8 }
 0x107   : > { %2321 = vmatmul.mubr.msk.bf16.gmra.mrb[96].mxu1 %vm1169_vm0, %v2607_v9  ;;  %1501 = vmatprep.mubr.bf16.mxu0 %v2608_v10 }
 0x108   : > { %2324 = vmatprep.mubr.msk.bf16.mxu1 %vm1169_vm0, %v2610_v11 }
 0x10e   : > { %1502 = vmatmul.mubr.bf16.gmra.mrb[12].mxu0 %v2611_v12 }
 0x10f   : > { %2325 = vmatmul.mubr.msk.bf16.gmra.mrb[100].mxu1 %vm1169_vm0, %v2612_v13  ;;  %1509 = vmatprep.mubr.bf16.mxu0 %v2613_v14 }
 0x110   : > { %2328 = vmatprep.mubr.msk.bf16.mxu1 %vm1169_vm0, %v2615_v1 }
 0x116   : > { %1510 = vmatmul.mubr.bf16.gmra.mrb[16].mxu0 %v2616_v15 }
 0x117   : > { %2329 = vmatmul.mubr.msk.bf16.gmra.mrb[104].mxu1 %vm1169_vm0, %v2617_v16  ;;  %1517 = vmatprep.mubr.bf16.mxu0 %v2618_v17 }
 0x119   : > { %v1527_v19 = vpop.f32.mrb[0].mxu1 }
 0x11a   : > { %v1529_v20 = vpop.f32.mrb[1].mxu1 }
 0x11b   : > { %v1530_v21 = vpop.f32.mrb[2].mxu1 }
 0x11c   : > { %v1532_v22 = vpop.f32.mrb[3].mxu1 }
 0x11e   : > { %1518 = vmatmul.mubr.bf16.gmra.mrb[20].mxu0 %v2620_v18 }
 0x122   : > { %v1535_v23 = vpop.f32.mrb[4].mxu1 }
 0x123   : > { %v1537_v24 = vpop.f32.mrb[5].mxu1 }
 0x124   : > { %v1538_v25 = vpop.f32.mrb[6].mxu1 }
 0x125   : > { %v1540_v26 = vpop.f32.mrb[7].mxu1 }
 0x12a   : > { %v1543_v27 = vpop.f32.mrb[8].mxu1 }
 0x12b   : > { %v1545_v28 = vpop.f32.mrb[9].mxu1 }
 0x12c   : > { %v1546_v29 = vpop.f32.mrb[10].mxu1 }
 0x12d   : > { %v1548_v30 = vpop.f32.mrb[11].mxu1 }
 0x132   : > { %v1551_v31 = vpop.f32.mrb[12].mxu1 }
 0x133   : > { %v1553_v32 = vpop.f32.mrb[13].mxu1 }
 0x134   : > { %v1554_v33 = vpop.f32.mrb[14].mxu1 }
 0x135   : > { %v1556_v34 = vpop.f32.mrb[15].mxu1 }
 0x13a   : > { %v1559_v35 = vpop.f32.mrb[16].mxu1 }
 0x13b   : > { %v1561_v36 = vpop.f32.mrb[17].mxu1 }
 0x13c   : > { %v1562_v37 = vpop.f32.mrb[18].mxu1 }
 0x13d   : > { %v1564_v38 = vpop.f32.mrb[19].mxu1 }
 0x142   : > { %v1567_v39 = vpop.f32.mrb[20].mxu1 }
 0x143   : > { %v1569_v40 = vpop.f32.mrb[21].mxu1 }
 0x144   : > { %v1570_v41 = vpop.f32.mrb[22].mxu1 }
 0x145   : > { %v1572_v42 = vpop.f32.mrb[23].mxu1 }
 0x149   : > { %v1318_v43 = vpop.f32.mrb[24].mxu0 }
 0x14a   : > { %v3027_v44 = vadd.f32 %v1527_v19, %v1318_v43  ;;  %v1320_v45 = vpop.f32.mrb[25].mxu0  ;;  %v1575_v46 = vpop.f32.mrb[24].mxu1 }
 0x14b   : > { %v1321_v47 = vpop.f32.mrb[26].mxu0  ;;  %v1577_v48 = vpop.f32.mrb[25].mxu1 }
 0x14c   : > { %v3029_v49 = vadd.f32 %v1530_v21, %v1321_v47  ;;  %v1323_v50 = vpop.f32.mrb[27].mxu0  ;;  %v1578_v51 = vpop.f32.mrb[26].mxu1 }
 0x14d   : > { %v1580_v52 = vpop.f32.mrb[27].mxu1 }
 0x151   : > { %v1326_v53 = vpop.f32.mrb[28].mxu0 }
 0x152   : > { %v3031_v54 = vadd.f32 %v1535_v23, %v1326_v53  ;;  %v1328_v55 = vpop.f32.mrb[29].mxu0  ;;  %v1583_v56 = vpop.f32.mrb[28].mxu1 }
 0x153   : > { %v1329_v57 = vpop.f32.mrb[30].mxu0  ;;  %v1585_v58 = vpop.f32.mrb[29].mxu1 }
 0x154   : > { %v3033_v59 = vadd.f32 %v1538_v25, %v1329_v57  ;;  %v1331_v60 = vpop.f32.mrb[31].mxu0  ;;  %v1586_v61 = vpop.f32.mrb[30].mxu1 }
 0x155   : > { %v1588_v62 = vpop.f32.mrb[31].mxu1 }
 0x159   : > { %v1334_v63 = vpop.f32.mrb[32].mxu0 }
 0x15a   : > { %v3035_v0 = vadd.f32 %v1543_v27, %v1334_v63  ;;  %v1336_v2 = vpop.f32.mrb[33].mxu0  ;;  %v1591_v3 = vpop.f32.mrb[32].mxu1 }
 0x15b   : > { %v1337_v4 = vpop.f32.mrb[34].mxu0  ;;  %v1593_v5 = vpop.f32.mrb[33].mxu1 }
 0x15c   : > { %v3037_v6 = vadd.f32 %v1546_v29, %v1337_v4  ;;  %v1339_v7 = vpop.f32.mrb[35].mxu0  ;;  %v1594_v8 = vpop.f32.mrb[34].mxu1 }
 0x15d   : > { %v1596_v9 = vpop.f32.mrb[35].mxu1 }
 0x161   : > { %v1342_v10 = vpop.f32.mrb[36].mxu0 }
 0x162   : > { %v3039_v11 = vadd.f32 %v1551_v31, %v1342_v10  ;;  %v1344_v12 = vpop.f32.mrb[37].mxu0  ;;  %v1599_v13 = vpop.f32.mrb[36].mxu1 }
 0x163   : > { %v1345_v14 = vpop.f32.mrb[38].mxu0  ;;  %v1601_v1 = vpop.f32.mrb[37].mxu1 }
 0x164   : > { %v3041_v15 = vadd.f32 %v1554_v33, %v1345_v14  ;;  %v1347_v16 = vpop.f32.mrb[39].mxu0  ;;  %v1602_v17 = vpop.f32.mrb[38].mxu1 }
 0x165   : > { %v1604_v18 = vpop.f32.mrb[39].mxu1 }
 0x169   : > { %v1350_v19 = vpop.f32.mrb[40].mxu0 }
 0x16a   : > { %v3043_v20 = vadd.f32 %v1559_v35, %v1350_v19  ;;  %v1352_v21 = vpop.f32.mrb[41].mxu0  ;;  %v1607_v22 = vpop.f32.mrb[40].mxu1 }
 0x16b   : > { %v1353_v23 = vpop.f32.mrb[42].mxu0  ;;  %v1609_v24 = vpop.f32.mrb[41].mxu1 }
 0x16c   : > { %v3045_v25 = vadd.f32 %v1562_v37, %v1353_v23  ;;  %v1355_v26 = vpop.f32.mrb[43].mxu0  ;;  %v1610_v27 = vpop.f32.mrb[42].mxu1 }
 0x16d   : > { %v1612_v28 = vpop.f32.mrb[43].mxu1 }
 0x171   : > { %v1358_v29 = vpop.f32.mrb[44].mxu0 }
 0x172   : > { %v3047_v30 = vadd.f32 %v1567_v39, %v1358_v29  ;;  %v1360_v31 = vpop.f32.mrb[45].mxu0  ;;  %v1615_v32 = vpop.f32.mrb[44].mxu1 }
 0x173   : > { %v1361_v33 = vpop.f32.mrb[46].mxu0  ;;  %v1617_v34 = vpop.f32.mrb[45].mxu1 }
 0x174   : > { %v3049_v36 = vadd.f32 %v1570_v41, %v1361_v33  ;;  %v1363_v35 = vpop.f32.mrb[47].mxu0  ;;  %v1618_v38 = vpop.f32.mrb[46].mxu1 }
 0x175   : > { %v1620_v40 = vpop.f32.mrb[47].mxu1 }
 0x179   : > { %v1366_v42 = vpop.f32.mrb[48].mxu0 }
 0x17a   : > { %v3051_v43 = vadd.f32 %v1575_v46, %v1366_v42  ;;  %v1368_v37 = vpop.f32.mrb[49].mxu0  ;;  %v1623_v45 = vpop.f32.mrb[48].mxu1 }
 0x17b   : > { %v1369_v47 = vpop.f32.mrb[50].mxu0  ;;  %v1625_v48 = vpop.f32.mrb[49].mxu1 }
 0x17c   : > { %v3053_v50 = vadd.f32 %v1578_v51, %v1369_v47  ;;  %v1371_v39 = vpop.f32.mrb[51].mxu0  ;;  %v1626_v52 = vpop.f32.mrb[50].mxu1 }
 0x17d   : > { %v1628_v53 = vpop.f32.mrb[51].mxu1 }
 0x181   : > { %v1374_v55 = vpop.f32.mrb[52].mxu0 }
 0x182   : > { %v3055_v57 = vadd.f32 %v1583_v56, %v1374_v55  ;;  %v1376_v41 = vpop.f32.mrb[53].mxu0  ;;  %v1631_v58 = vpop.f32.mrb[52].mxu1 }
 0x183   : > { %v1377_v60 = vpop.f32.mrb[54].mxu0  ;;  %v1633_v62 = vpop.f32.mrb[53].mxu1 }
 0x184   : > { %v3057_v63 = vadd.f32 %v1586_v61, %v1377_v60  ;;  %v1379_v46 = vpop.f32.mrb[55].mxu0  ;;  %v1634_v2 = vpop.f32.mrb[54].mxu1 }
 0x185   : > { %v1636_v4 = vpop.f32.mrb[55].mxu1 }
 0x189   : > { %v1382_v5 = vpop.f32.mrb[56].mxu0 }
 0x18a   : > { %v3059_v7 = vadd.f32 %v1591_v3, %v1382_v5  ;;  %v1384_v51 = vpop.f32.mrb[57].mxu0  ;;  %v1639_v9 = vpop.f32.mrb[56].mxu1 }
 0x18b   : > { %v1385_v10 = vpop.f32.mrb[58].mxu0  ;;  %v1641_v12 = vpop.f32.mrb[57].mxu1 }
 0x18c   : > { %v3061_v14 = vadd.f32 %v1594_v8, %v1385_v10  ;;  %v1387_v56 = vpop.f32.mrb[59].mxu0  ;;  %v3063_v1 = vpop.f32.mrb[58].mxu1 }
 0x18d   : > { %v1644_v16 = vpop.f32.mrb[59].mxu1 }
 0x191   : > { %v1390_v18 = vpop.f32.mrb[60].mxu0 }
 0x192   : > { %v3065_v19 = vadd.f32 %v1599_v13, %v1390_v18  ;;  %v1392_v61 = vpop.f32.mrb[61].mxu0  ;;  %v3067_v21 = vpop.f32.mrb[60].mxu1 }
 0x193   : > { %v1393_v23 = vpop.f32.mrb[62].mxu0  ;;  %v1649_v24 = vpop.f32.mrb[61].mxu1 }
 0x194   : > { %v3069_v3 = vadd.f32 %v1602_v17, %v1393_v23  ;;  %v1395_v26 = vpop.f32.mrb[63].mxu0  ;;  %v3071_v28 = vpop.f32.mrb[62].mxu1 }
 0x195   : > { %v1652_v29 = vpop.f32.mrb[63].mxu1 }
 0x199   : > { %v1398_v8 = vpop.f32.mrb[64].mxu0 }
 0x19a   : > { %v3073_v31 = vadd.f32 %v1607_v22, %v1398_v8  ;;  %v1400_v33 = vpop.f32.mrb[65].mxu0  ;;  %v3075_v34 = vpop.f32.mrb[64].mxu1 }
 0x19b   : > { %v1401_v35 = vpop.f32.mrb[66].mxu0  ;;  %v3077_v13 = vpop.f32.mrb[65].mxu1 }
 0x19c   : > { %v3079_v40 = vadd.f32 %v1610_v27, %v1401_v35  ;;  %v1403_v42 = vpop.f32.mrb[67].mxu0  ;;  %v3081_v37 = vpop.f32.mrb[66].mxu1 }
 0x19d   : > { %v3083_v17 = vpop.f32.mrb[67].mxu1 }
 0x1a1   : > { %v1406_v47 = vpop.f32.mrb[68].mxu0 }
 0x1a2   : > { %v3085_v48 = vadd.f32 %v1615_v32, %v1406_v47  ;;  %v1408_v39 = vpop.f32.mrb[69].mxu0  ;;  %v3087_v53 = vpop.f32.mrb[68].mxu1 }
 0x1a3   : > { %v1409_v22 = vpop.f32.mrb[70].mxu0  ;;  %v3089_v55 = vpop.f32.mrb[69].mxu1 }
 0x1a4   : > { %v3091_v41 = vadd.f32 %v1618_v38, %v1409_v22  ;;  %v1411_v60 = vpop.f32.mrb[71].mxu0  ;;  %v3093_v62 = vpop.f32.mrb[70].mxu1 }
 0x1a5   : > { %v3095_v27 = vpop.f32.mrb[71].mxu1 }
 0x1a9   : > { %v1414_v46 = vpop.f32.mrb[72].mxu0 }
 0x1aa   : > { %v3097_v4 = vadd.f32 %v1623_v45, %v1414_v46  ;;  %v1416_v5 = vpop.f32.mrb[73].mxu0  ;;  %v3099_v51 = vpop.f32.mrb[72].mxu1 }
 0x1ab   : > { %v1417_v32 = vpop.f32.mrb[74].mxu0  ;;  %v3101_v10 = vpop.f32.mrb[73].mxu1 }
 0x1ac   : > { %v3103_v12 = vadd.f32 %v1626_v52, %v1417_v32  ;;  %v1419_v56 = vpop.f32.mrb[75].mxu0  ;;  %v3105_v16 = vpop.f32.mrb[74].mxu1 }
 0x1ad   : > { %v3107_v38 = vpop.f32.mrb[75].mxu1 }
 0x1b1   : > { %v1422_v18 = vpop.f32.mrb[76].mxu0 }
 0x1b2   : > { %v3109_v61 = vadd.f32 %v1631_v58, %v1422_v18  ;;  %v2302_v23 = vpop.f32.mrb[76].mxu1  ;;  %v1424_v24 = vpop.f32.mrb[77].mxu0 }
 0x1b3   : > { %v3112_v45 = vadd.f32 %v2302_v23, %v3031_v54  ;;  %v1736_v26 = vpop.f32.mrb[77].mxu1  ;;  %v1425_v29 = vpop.f32.mrb[78].mxu0 }
 0x1b4   : > { %v1737_v8 = vadd.f32 %v1736_v26, %v3027_v44  ;;  %v3115_v33 = vadd.f32 %v1634_v2, %v1425_v29  ;;  %v2303_v52 = vpop.f32.mrb[78].mxu1  ;;  %v1427_v35 = vpop.f32.mrb[79].mxu0 }
 0x1b5   : > { %v3118_v42 = vadd.f32 %v2303_v52, %v3033_v59  ;;  %v1739_v47 = vpop.f32.mrb[79].mxu1 }
 0x1b6   : > { %v1740_v58 = vadd.f32 %v1739_v47, %v3029_v49 }
 0x1b9   : > { %v1430_v39 = vpop.f32.mrb[80].mxu0 }
 0x1ba   : > { %v3121_v22 = vadd.f32 %v1639_v9, %v1430_v39  ;;  %v2306_v60 = vpop.f32.mrb[80].mxu1  ;;  %v1432_v54 = vpop.f32.mrb[81].mxu0 }
 0x1bb   : > { %v3124_v46 = vadd.f32 %v2306_v60, %v3039_v11  ;;  %v1752_v5 = vpop.f32.mrb[81].mxu1  ;;  %v1433_v44 = vpop.f32.mrb[82].mxu0 }
 0x1bc   : > { %v3127_v2 = vadd.f32 %v1752_v5, %v3035_v0  ;;  %v3130_v32 = vadd.f32 %v3063_v1, %v1433_v44  ;;  %v2307_v59 = vpop.f32.mrb[82].mxu1  ;;  %v1435_v56 = vpop.f32.mrb[83].mxu0 }
 0x1bd   : > { %v3133_v49 = vadd.f32 %v2307_v59, %v3041_v15  ;;  %v1755_v9 = vpop.f32.mrb[83].mxu1 }
 0x1be   : > { %v3136_v18 = vadd.f32 %v1755_v9, %v3037_v6 }
 0x1c1   : > { %v1438_v23 = vpop.f32.mrb[84].mxu0 }
 0x1c2   : > { %v3139_v11 = vadd.f32 %v3067_v21, %v1438_v23  ;;  %v2310_v24 = vpop.f32.mrb[84].mxu1  ;;  %v1440_v26 = vpop.f32.mrb[85].mxu0 }
 0x1c3   : > { %v3142_v0 = vadd.f32 %v2310_v24, %v3047_v30  ;;  %v1768_v1 = vpop.f32.mrb[85].mxu1  ;;  %v1441_v29 = vpop.f32.mrb[86].mxu0  ;;  %v3157_v30 = vld [vmem:[%s3348_s2] ss:$0 sm:$0xff] }
 0x1c4   : > { %v3145_v52 = vadd.f32 %v1768_v1, %v3043_v20  ;;  %v3148_v15 = vadd.f32 %v3071_v28, %v1441_v29  ;;  %v2311_v35 = vpop.f32.mrb[86].mxu1  ;;  %v1443_v6 = vpop.f32.mrb[87].mxu0  ;;  %v3169_v24 = vld [vmem:[%s3349_s3] ss:$0 sm:$0xff]  ;;  %v1883_v29 = vmul.f32 %v3157_v30, %v1740_v58 }
 0x1c5   : > { %v1780_v47 = vadd.f32 %v2311_v35, %v3049_v36  ;;  %v1771_v39 = vpop.f32.mrb[87].mxu1  ;;  %v1882_v36 = vmul.f32 %v3157_v30, %v1737_v8 }
 0x1c6   : > { %v3152_v21 = vadd.f32 %v1771_v39, %v3045_v25 }
 0x1c9   : > { %v1479_v60 = vpop.f32.mrb[0].mxu0 }
 0x1ca   : > { %v3160_v20 = vadd.f32 %v3077_v13, %v1479_v60  ;;  %v2314_v54 = vpop.f32.mrb[88].mxu1  ;;  %v1481_v28 = vpop.f32.mrb[1].mxu0 }
 0x1cb   : > { %v1793_v5 = vadd.f32 %v2314_v54, %v3055_v57  ;;  %v1784_v44 = vpop.f32.mrb[89].mxu1  ;;  %v1482_v59 = vpop.f32.mrb[2].mxu0  ;;  %v1893_v57 = vmul.f32 %v3157_v30, %v1780_v47  ;;  %v1884_v47 = vmul.f32 %v3157_v30, %v3112_v45 }
 0x1cc   : > { %v1785_v25 = vadd.f32 %v1784_v44, %v3051_v43  ;;  %v1692_v56 = vadd.f32 %v3083_v17, %v1482_v59  ;;  %v2315_v9 = vpop.f32.mrb[90].mxu1  ;;  %v1484_v23 = vpop.f32.mrb[3].mxu0  ;;  %v1933_v43 = vadd.f32 %v3169_v24, %v1882_v36 }
 0x1cd   : > { %v1796_v13 = vadd.f32 %v2315_v9, %v3057_v63  ;;  %v1787_v26 = vpop.f32.mrb[91].mxu1  ;;  %v1944_v6 = vadd.f32 %v3169_v24, %v1893_v57 }
 0x1ce   : > { %v1871_v1 = vmul.f32 %v3157_v30, %v1692_v56  ;;  %v1788_v8 = vadd.f32 %v1787_v26, %v3053_v50  ;;  %v1894_v28 = vmul.f32 %v3157_v30, %v1785_v25  ;;  %v1934_v26 = vadd.f32 %v3169_v24, %v1883_v29 }
 0x1d0   : > { %v1922_v17 = vadd.f32 %v3169_v24, %v1871_v1 }
 0x1d1   : > { %v1487_v35 = vpop.f32.mrb[4].mxu0 }
 0x1d2   : > { %v1968_v39 = vmax.f32 %v1922_v17, %v1933_v43  ;;  %v1697_v60 = vadd.f32 %v3075_v34, %v1487_v35  ;;  %v2318_v63 = vpop.f32.mrb[92].mxu1  ;;  %v1489_v54 = vpop.f32.mrb[5].mxu0  ;;  %v1945_v43 = vadd.f32 %v3169_v24, %v1894_v28  ;;  %v1896_v28 = vmul.f32 %v3157_v30, %v1793_v5 }
 0x1d3   : > { %v3184_v50 = vadd.f32 %v2318_v63, %v3065_v19  ;;  %v1800_v44 = vpop.f32.mrb[93].mxu1  ;;  %v1490_v59 = vpop.f32.mrb[6].mxu0  ;;  %v1895_v19 = vmul.f32 %v3157_v30, %v1788_v8  ;;  %v1888_v54 = vmul.f32 %v3157_v30, %v3124_v46 }
 0x1d4   : > { %v1872_v58 = vmul.f32 %v3157_v30, %v1697_v60  ;;  %v3188_v36 = vadd.f32 %v1800_v44, %v3059_v7  ;;  %v1700_v56 = vadd.f32 %v3081_v37, %v1490_v59  ;;  %v2319_v34 = vpop.f32.mrb[94].mxu1  ;;  %v1492_v9 = vpop.f32.mrb[7].mxu0  ;;  %v1969_v23 = vmax.f32 %v1968_v39, %v1944_v6 }
 0x1d5   : > { %v3193_v45 = vadd.f32 %v2319_v34, %v3069_v3  ;;  %v1803_v25 = vpop.f32.mrb[95].mxu1  ;;  %v1935_v37 = vadd.f32 %v3169_v24, %v1884_v47  ;;  %v1885_v3 = vmul.f32 %v3157_v30, %v3118_v42  ;;  %v1946_v8 = vadd.f32 %v3169_v24, %v1895_v19 }
 0x1d6   : > { %v1923_v57 = vadd.f32 %v3169_v24, %v1872_v58  ;;  %v1873_v1 = vmul.f32 %v3157_v30, %v1700_v56  ;;  %v3199_v7 = vadd.f32 %v1803_v25, %v3061_v14  ;;  %v1886_v47 = vmul.f32 %v3157_v30, %v3127_v2 }
 0x1d7   : > { %v1936_v2 = vadd.f32 %v3169_v24, %v1885_v3  ;;  %v1897_v25 = vmul.f32 %v3157_v30, %v1796_v13 }
 0x1d8   : > { %v1971_v17 = vmax.f32 %v1923_v57, %v1934_v26  ;;  %v1924_v29 = vadd.f32 %v3169_v24, %v1873_v1  ;;  %v3232_v57 = vadd.f32 %v3169_v24, %v1888_v54 }
 0x1d9   : > { %v1495_v35 = vpop.f32.mrb[8].mxu0 }
 0x1da   : > { %v1974_v6 = vmax.f32 %v1924_v29, %v1935_v37  ;;  %v1705_v39 = vadd.f32 %v3089_v55, %v1495_v35  ;;  %v2322_v60 = vpop.f32.mrb[96].mxu1  ;;  %v1497_v63 = vpop.f32.mrb[9].mxu0  ;;  %v1972_v14 = vmax.f32 %v1971_v17, %v1945_v43  ;;  %v1947_v43 = vadd.f32 %v3169_v24, %v1896_v28 }
 0x1db   : > { %v1825_v42 = vadd.f32 %v2322_v60, %v3085_v48  ;;  %v1816_v44 = vpop.f32.mrb[97].mxu1  ;;  %v1498_v59 = vpop.f32.mrb[10].mxu0  ;;  %v3241_v29 = vmul.f32 %v3157_v30, %v3133_v49 }
 0x1dc   : > { %v1874_v58 = vmul.f32 %v3157_v30, %v1705_v39  ;;  %v3216_v55 = vadd.f32 %v1816_v44, %v3073_v31  ;;  %v1708_v56 = vadd.f32 %v3095_v27, %v1498_v59  ;;  %v2323_v34 = vpop.f32.mrb[98].mxu1  ;;  %v1500_v9 = vpop.f32.mrb[11].mxu0  ;;  %v3219_v46 = vmax.f32 %v1974_v6, %v1946_v8 }
 0x1dd   : > { %v1904_v5 = vmul.f32 %v3157_v30, %v1825_v42  ;;  %v1828_v26 = vadd.f32 %v2323_v34, %v3091_v41  ;;  %v1819_v48 = vpop.f32.mrb[99].mxu1  ;;  %v1937_v41 = vadd.f32 %v3169_v24, %v1886_v47  ;;  %v1948_v6 = vadd.f32 %v3169_v24, %v1897_v25 }
 0x1de   : > { %v1925_v19 = vadd.f32 %v3169_v24, %v1874_v58  ;;  %v1875_v31 = vmul.f32 %v3157_v30, %v1708_v56  ;;  %v3229_v27 = vadd.f32 %v1819_v48, %v3079_v40  ;;  %v1887_v40 = vmul.f32 %v3157_v30, %v3136_v18 }
 0x1df   : > { %v1955_v1 = vadd.f32 %v3169_v24, %v1904_v5  ;;  %v1905_v37 = vmul.f32 %v3157_v30, %v1828_v26  ;;  %v1898_v18 = vmul.f32 %v3157_v30, %v3188_v36 }
 0x1e0   : > { %v1977_v13 = vmax.f32 %v1925_v19, %v1936_v2  ;;  %v1926_v17 = vadd.f32 %v3169_v24, %v1875_v31  ;;  %v1938_v2 = vadd.f32 %v3169_v24, %v1887_v40  ;;  %v1899_v19 = vmul.f32 %v3157_v30, %v3199_v7 }
 0x1e1   : > { %v1970_v3 = vmax.f32 %v1969_v23, %v1955_v1  ;;  %v1956_v35 = vadd.f32 %v3169_v24, %v1905_v37  ;;  %v1503_v8 = vpop.f32.mrb[12].mxu0 }
 0x1e2   : > { %v1980_v39 = vmax.f32 %v1926_v17, %v1937_v41  ;;  %v1713_v60 = vadd.f32 %v3087_v53, %v1503_v8  ;;  %v2326_v63 = vpop.f32.mrb[100].mxu1  ;;  %v1505_v49 = vpop.f32.mrb[13].mxu0  ;;  %v3253_v54 = vmax.f32 %v1977_v13, %v1947_v43  ;;  %v1900_v13 = vmul.f32 %v3157_v30, %v3184_v50 }
 0x1e3   : > { %v1999_v23 = vmax.f32 %v1970_v3, 0.0  ;;  %v1973_v47 = vmax.f32 %v1972_v14, %v1956_v35  ;;  %v1841_v28 = vadd.f32 %v2326_v63, %v3109_v61  ;;  %v1832_v42 = vpop.f32.mrb[101].mxu1  ;;  %v1506_v44 = vpop.f32.mrb[14].mxu0  ;;  %v1950_v63 = vadd.f32 %v3169_v24, %v1899_v19 }
 0x1e4   : > { %v1876_v59 = vmul.f32 %v3157_v30, %v1713_v60  ;;  %v1981_v58 = vmax.f32 %v1980_v39, %v1948_v6  ;;  %v1833_v56 = vadd.f32 %v1832_v42, %v3097_v4  ;;  %v1716_v53 = vadd.f32 %v3093_v62, %v1506_v44  ;;  %v2327_v34 = vpop.f32.mrb[102].mxu1  ;;  %v1508_v9 = vpop.f32.mrb[15].mxu0 }
 0x1e5   : > { %2010 = vst [vmem:[%s3250_s27 + $0x8] sm:$0xff] %v1999_v23  ;;  %v2000_v36 = vmax.f32 %v1973_v47, 0.0  ;;  %v1908_v14 = vmul.f32 %v3157_v30, %v1841_v28  ;;  %v1844_v61 = vadd.f32 %v2327_v34, %v3115_v33  ;;  %v1835_v5 = vpop.f32.mrb[103].mxu1  ;;  %v1949_v62 = vadd.f32 %v3169_v24, %v1898_v18 }
 0x1e6   : > { %v1927_v26 = vadd.f32 %v3169_v24, %v1876_v59  ;;  %v1906_v48 = vmul.f32 %v3157_v30, %v1833_v56  ;;  %v1877_v4 = vmul.f32 %v3157_v30, %v1716_v53  ;;  %v1836_v25 = vadd.f32 %v1835_v5, %v3103_v12 }
 0x1e7   : > { %2011 = vst [vmem:[%s3250_s27 + $0x10] sm:$0xff] %v2000_v36  ;;  %v1959_v31 = vadd.f32 %v3169_v24, %v1908_v14  ;;  %v1909_v1 = vmul.f32 %v3157_v30, %v1844_v61  ;;  %v1890_v12 = vmul.f32 %v3157_v30, %v3145_v52  ;;  %v1940_v59 = vadd.f32 %v3169_v24, %v3241_v29 }
 0x1e8   : > { %v1983_v33 = vmax.f32 %v1927_v26, %v1938_v2  ;;  %v1957_v37 = vadd.f32 %v3169_v24, %v1906_v48  ;;  %v1928_v41 = vadd.f32 %v3169_v24, %v1877_v4  ;;  %v1907_v43 = vmul.f32 %v3157_v30, %v1836_v25 }
 0x1e9   : > { %v1982_v17 = vmax.f32 %v1981_v58, %v1959_v31  ;;  %v1960_v7 = vadd.f32 %v3169_v24, %v1909_v1  ;;  %v1511_v40 = vpop.f32.mrb[16].mxu0  ;;  %v1901_v9 = vmul.f32 %v3157_v30, %v3193_v45  ;;  %v1941_v14 = vadd.f32 %v3169_v24, %v1890_v12 }
 0x1ea   : > { %v1976_v3 = vmax.f32 %v3219_v46, %v1957_v37  ;;  %v1986_v35 = vmax.f32 %v1928_v41, %v3232_v57  ;;  %v1984_v8 = vmax.f32 %v1983_v33, %v1949_v62  ;;  %v1958_v6 = vadd.f32 %v3169_v24, %v1907_v43  ;;  %v2330_v39 = vpop.f32.mrb[104].mxu1  ;;  %v1513_v60 = vpop.f32.mrb[17].mxu0 }
 0x1eb   : > { %v2003_v52 = vmax.f32 %v1982_v17, 0.0  ;;  %v1721_v49 = vadd.f32 %v3101_v10, %v1511_v40  ;;  %v1857_v50 = vadd.f32 %v2330_v39, %v3139_v11  ;;  %v1848_v18 = vpop.f32.mrb[105].mxu1  ;;  %v1514_v23 = vpop.f32.mrb[18].mxu0  ;;  %v1891_v4 = vmul.f32 %v3157_v30, %v3152_v21 }
 0x1ec   : > { %v2001_v47 = vmax.f32 %v1976_v3, 0.0  ;;  %v1985_v46 = vmax.f32 %v1984_v8, %v1960_v7  ;;  %v1979_v57 = vmax.f32 %v3253_v54, %v1958_v6  ;;  %v1849_v28 = vadd.f32 %v1848_v18, %v3121_v22  ;;  %v2331_v42 = vpop.f32.mrb[106].mxu1  ;;  %v1516_v44 = vpop.f32.mrb[19].mxu0 }
 0x1ed   : > { %2014 = vst [vmem:[%s3250_s27 + $0x28] sm:$0xff] %v2003_v52  ;;  %v1878_v10 = vmul.f32 %v3157_v30, %v1721_v49  ;;  %v1987_v58 = vmax.f32 %v1986_v35, %v1950_v63  ;;  %v1724_v11 = vadd.f32 %v3107_v38, %v1514_v23  ;;  %v1851_v56 = vpop.f32.mrb[107].mxu1  ;;  %v1860_v22 = vadd.f32 %v2331_v42, %v3148_v15 }
 0x1ee   : > { %2012 = vst [vmem:[%s3250_s27 + $0x18] sm:$0xff] %v2001_v47  ;;  %v2004_v53 = vmax.f32 %v1985_v46, 0.0  ;;  %v2002_v34 = vmax.f32 %v1979_v57, 0.0  ;;  %v1910_v54 = vmul.f32 %v3157_v30, %v1849_v28  ;;  %v1852_v36 = vadd.f32 %v1851_v56, %v3130_v32 }
 0x1ef   : > { %v1929_v29 = vadd.f32 %v3169_v24, %v1878_v10  ;;  %v1879_v2 = vmul.f32 %v3157_v30, %v1724_v11  ;;  %v1951_v38 = vadd.f32 %v3169_v24, %v1900_v13  ;;  %v1912_v15 = vmul.f32 %v3157_v30, %v1857_v50 }
 0x1f0   : > { %2015 = vst [vmem:[%s3250_s27 + $0x30] sm:$0xff] %v2004_v53  ;;  %2013 = vst [vmem:[%s3250_s27 + $0x20] sm:$0xff] %v2002_v34  ;;  %v1961_v61 = vadd.f32 %v3169_v24, %v1910_v54  ;;  %v1911_v45 = vmul.f32 %v3157_v30, %v1852_v36  ;;  %v1870_v32 = vmul.f32 %v3157_v30, %v3160_v20 }
 0x1f1   : > { %v1989_v5 = vmax.f32 %v1929_v29, %v1940_v59  ;;  %v1930_v26 = vadd.f32 %v3169_v24, %v1879_v2  ;;  %v1519_v48 = vpop.f32.mrb[20].mxu0  ;;  %v1952_v31 = vadd.f32 %v3169_v24, %v1901_v9  ;;  %v1902_v43 = vmul.f32 %v3157_v30, %v3216_v55 }
 0x1f2   : > { %v1988_v25 = vmax.f32 %v1987_v58, %v1961_v61  ;;  %v1729_v62 = vadd.f32 %v3099_v51, %v1519_v48  ;;  %v1521_v19 = vpop.f32.mrb[21].mxu0  ;;  %v1962_v33 = vadd.f32 %v3169_v24, %v1911_v45  ;;  %v1892_v51 = vmul.f32 %v3157_v30, %v3142_v0 }
 0x1f3   : > { %v1992_v1 = vmax.f32 %v1930_v26, %v1941_v14  ;;  %v1990_v37 = vmax.f32 %v1989_v5, %v1951_v38  ;;  %v1522_v41 = vpop.f32.mrb[22].mxu0  ;;  %v1963_v17 = vadd.f32 %v3169_v24, %v1912_v15  ;;  %v1942_v3 = vadd.f32 %v3169_v24, %v1891_v4 }
 0x1f4   : > { %v2005_v12 = vmax.f32 %v1988_v25, 0.0  ;;  %v1880_v21 = vmul.f32 %v3157_v30, %v1729_v62  ;;  %v1732_v20 = vadd.f32 %v3105_v16, %v1522_v41  ;;  %v1524_v13 = vpop.f32.mrb[23].mxu0  ;;  %v1913_v35 = vmul.f32 %v3157_v30, %v1860_v22 }
 0x1f5   : > { %v1993_v7 = vmax.f32 %v1992_v1, %v1952_v31  ;;  %v1991_v40 = vmax.f32 %v1990_v37, %v1962_v33  ;;  %v1921_v16 = vadd.f32 %v3169_v24, %v1870_v32  ;;  %v1953_v0 = vadd.f32 %v3169_v24, %v1902_v43 }
 0x1f6   : > { %2016 = vst [vmem:[%s3250_s27 + $0x38] sm:$0xff] %v2005_v12  ;;  %v1931_v55 = vadd.f32 %v3169_v24, %v1880_v21  ;;  %v1881_v8 = vmul.f32 %v3157_v30, %v1732_v20  ;;  %v1903_v60 = vmul.f32 %v3157_v30, %v3229_v27  ;;  %v1943_v50 = vadd.f32 %v3169_v24, %v1892_v51 }
 0x1f7   : > { %v1994_v6 = vmax.f32 %v1993_v7, %v1963_v17  ;;  %v2006_v39 = vmax.f32 %v1991_v40, 0.0  ;;  %v1964_v18 = vadd.f32 %v3169_v24, %v1913_v35 }
 0x1f8   : > { %v1995_v63 = vmax.f32 %v1931_v55, %v1942_v3  ;;  %v1932_v52 = vadd.f32 %v3169_v24, %v1881_v8  ;;  %v1954_v46 = vadd.f32 %v3169_v24, %v1903_v60 }
 0x1f9   : > { %v2007_v49 = vmax.f32 %v1994_v6, 0.0  ;;  %2017 = vst [vmem:[%s3250_s27 + $0x40] sm:$0xff] %v2006_v39 }
 0x1fa   : > { %v1996_v23 = vmax.f32 %v1995_v63, %v1953_v0  ;;  %v1965_v47 = vmax.f32 %v1921_v16, %v1932_v52 }
 0x1fb   : > { %2018 = vst [vmem:[%s3250_s27 + $0x48] sm:$0xff] %v2007_v49 }
 0x1fc   : > { %v1997_v57 = vmax.f32 %v1996_v23, %v1964_v18  ;;  %v1966_v28 = vmax.f32 %v1965_v47, %v1943_v50 }
 0x1fe   : > { %v2008_v42 = vmax.f32 %v1997_v57, 0.0  ;;  %v1967_v44 = vmax.f32 %v1966_v28, %v1954_v46 }
 0x200   : > { %2019 = vst [vmem:[%s3250_s27 + $0x50] sm:$0xff] %v2008_v42  ;;  %v1998_v30 = vmax.f32 %v1967_v44, 0.0 }
 0x202   : > { %2009 = vst [vmem:[%s3250_s27] sm:$0xff] %v1998_v30 }
 0x203 PF: > { %s14_s15 = sadd.s32 1, %s2627_s15  }
 0x204   : > { %p11_p4 = scmp.ge.s32.totalorder %s14_s15, 4  }
 0x206   :  { %13 = sbr.rel (!%p11_p4) target bundleno = 1 (0x1), region = 66 }

// kernel: convnet8_forward.7
= control target key start
LH: loop header
LB: loop body
LE: loop exit
PB: predicated region body
PF: predicated region fallthrough
CT: control target
= control target key end

     0   :  { %s16103_s27 = smov 0   ;;  %s20088_s0 = inlined_call_operand.vmem [shape: f32[2,88,128], index: 0, kind: input, shape index: {}]   ;;  %s20089_s1 = inlined_call_operand.vmem [shape: bf16[1152,128], index: 1, kind: input, shape index: {}]   ;;  %s20090_s2 = inlined_call_operand.vmem [shape: bf16[1152,128], index: 2, kind: input, shape index: {}]   ;;  %s20091_s3 = inlined_call_operand.vmem [shape: bf16[1152,128], index: 3, kind: input, shape index: {}]   ;;  %s20092_s4 = inlined_call_operand.vmem [shape: bf16[3200,512], index: 4, kind: input, shape index: {}]   ;;  %s20093_s5 = inlined_call_operand.vmem [shape: bf16[512,128], index: 5, kind: input, shape index: {}]   ;;  %s20094_s6 = inlined_call_operand.vmem [shape: f32[8,128], index: 6, kind: input, shape index: {}]   ;;  %s20095_s7 = inlined_call_operand.vmem [shape: f32[2,512], index: 7, kind: input, shape index: {}]   ;;  %s20096_s8 = inlined_call_operand.vmem [shape: f32[2,8,128], index: 8, kind: output, shape index: {}]  }
   0x1 LB: > { %s11851_s28 = sadd.s32 4294967295, %s16053_s27   ;;  %p11855_p0 = scmp.ge.s32.totalorder %s16053_s27, 1  ;;  %s16053_s27 = sphi %s16103_s27, %s18_s27  }
   0x2   : > { %p262_p1 = scmp.lt.s32.totalorder %s16053_s27, 3 }
   0x4   : > { %p263_p2 = pnand %p11855_p0, %p262_p1 }
   0x5   : > { %v14596_v0 = vld [vmem:[%s20089_s1 + $0x40] sm:$0xff] (!%p263_p2)   ;;  %p295_p3 = scmp.lt.s32.totalorder (!%p263_p2), %s11851_s28, 1  ;;  %v14597_v1 = vld [vmem:[%s20089_s1 + $0x48] sm:$0xff] (!%p263_p2)   ;;  %v14598_v2 = vld [vmem:[%s20089_s1 + $0x50] sm:$0xff] (!%p263_p2)   ;;  %vm16056_vm0 = vmmov (!%p263_p2), 0  }
   0x6   : > { %266 = sbr.rel (%p263_p2) target bundleno = 3296 (0xce0), region = 52  ;;  %13284 = vmatprep.subr.bf16.mxu0 (!%p263_p2), %v14596_v0  ;;  %v14599_v3 = vld [vmem:[%s20089_s1 + $0x58] sm:$0xff] (!%p263_p2)   ;;  %v14600_v9 = vld [vmem:[%s20089_s1 + $0x60] sm:$0xff] (!%p263_p2)   ;;  %v14601_v12 = vld [vmem:[%s20089_s1 + $0x68] sm:$0xff] (!%p263_p2)  }
   0x7   : > { %13285 = vmatpush3.bf16.msra.mxu0 (!%p263_p2), %v14596_v0  ;;  %v14602_v14 = vld [vmem:[%s20089_s1 + $0x70] sm:$0xff] (!%p263_p2)   ;;  %v14603_v18 = vld [vmem:[%s20089_s1 + $0x78] sm:$0xff] (!%p263_p2)   ;;  %v14604_v19 = vld [vmem:[%s20089_s1] sm:$0xff] (!%p263_p2)  }
   0x8   : > { %13286 = vmatprep.subr.bf16.mxu0 (!%p263_p2), %v14597_v1  ;;  %v14605_v22 = vld [vmem:[%s20089_s1 + $0x8] sm:$0xff] (!%p263_p2)   ;;  %v14606_v23 = vld [vmem:[%s20089_s1 + $0x10] sm:$0xff] (!%p263_p2)   ;;  %v14607_v29 = vld [vmem:[%s20089_s1 + $0x18] sm:$0xff] (!%p263_p2)  }
   0x9   : > { %v14608_v30 = vld [vmem:[%s20089_s1 + $0x20] sm:$0xff] (!%p263_p2)   ;;  %v14609_v31 = vld [vmem:[%s20089_s1 + $0x28] sm:$0xff] (!%p263_p2)   ;;  %v14610_v32 = vld [vmem:[%s20089_s1 + $0x30] sm:$0xff] (!%p263_p2)  }
   0xa   : > { %v14611_v33 = vld [vmem:[%s20089_s1 + $0x38] sm:$0xff] (!%p263_p2)   ;;  %v14612_v36 = vld [vmem:[%s20089_s1 + $0x80] sm:$0xff] (!%p263_p2)   ;;  %v14613_v41 = vld [vmem:[%s20089_s1 + $0x88] sm:$0xff] (!%p263_p2)  }
   0xb   : > { %13287 = vmatpush3.bf16.msra.mxu0 (!%p263_p2), %v14597_v1  ;;  %v14614_v44 = vld [vmem:[%s20089_s1 + $0x90] sm:$0xff] (!%p263_p2)   ;;  %v14615_v48 = vld [vmem:[%s20089_s1 + $0x98] sm:$0xff] (!%p263_p2)   ;;  %v14616_v50 = vld [vmem:[%s20089_s1 + $0xa0] sm:$0xff] (!%p263_p2)  }
   0xc   : > { %13288 = vmatprep.subr.bf16.mxu0 (!%p263_p2), %v14598_v2  ;;  %v14617_v51 = vld [vmem:[%s20089_s1 + $0xa8] sm:$0xff] (!%p263_p2)   ;;  %v14618_v52 = vld [vmem:[%s20089_s1 + $0xb0] sm:$0xff] (!%p263_p2)   ;;  %v14619_v53 = vld [vmem:[%s20089_s1 + $0xb8] sm:$0xff] (!%p263_p2)  }
   0xd   : > { %s20098_s28 = smov (!%p295_p3, %s11851_s28), 1  ;;  %v14620_v56 = vld [vmem:[%s20089_s1 + $0xc0] sm:$0xff]   ;;  %v14621_v60 = vld [vmem:[%s20089_s1 + $0xc8] sm:$0xff]   ;;  %v14622_v63 = vld [vmem:[%s20089_s1 + $0xd0] sm:$0xff]  }
   0xe   : > { %s14584_s13 = smul.u32 88, %s20098_s28  ;;  %s11857_s11 = sshll.u32 %s20098_s28, 3 }
   0xf   : > { %13289 = vmatpush3.bf16.msra.mxu0 %v14598_v2  ;;  %v14623_v2 = vld [vmem:[%s20089_s1 + $0xd8] sm:$0xff]   ;;  %s303_s14 = scalar_lea.vmem %s20096_s8, %s11857_s11 }
  0x10   : > { %s16126_s16 = scalar_lea.vmem %s20088_s0, %s14584_s13  ;;  %13290 = vmatprep.subr.bf16.mxu0 %v14599_v3 }
  0x11   : > { %v349_v4 = vld [vmem:[%s16126_s16 + $0x1] sm:$0xff]  ;;  %v16133_v5 = vld [vmem:[%s16126_s16 + $0x9] sm:$0xff]  ;;  %v16137_v7 = vld [vmem:[%s16126_s16 + $0x11] sm:$0xff] }
  0x12   : > { %v357_v6 = vpack.c.bf16 %v16133_v5, %v349_v4  ;;  %v760_v8 = vpack.c.bf16 %v16137_v7, %v16133_v5  ;;  %v16145_v10 = vld [vmem:[%s16126_s16 + $0x19] sm:$0xff]  ;;  %v16148_v11 = vld [vmem:[%s16126_s16 + $0x21] sm:$0xff]  ;;  %v16159_v15 = vld [vmem:[%s16126_s16 + $0x29] sm:$0xff] }
  0x13   : > { %13291 = vmatpush3.bf16.msra.mxu0 %v14599_v3  ;;  %v761_v13 = vpack.c.bf16 %v16148_v11, %v16145_v10  ;;  %v16162_v16 = vld [vmem:[%s16126_s16 + $0x31] sm:$0xff]  ;;  %v358_v20 = vpack.c.bf16 %v16145_v10, %v16137_v7  ;;  %v359_v21 = vpack.c.bf16 %v16159_v15, %v16148_v11  ;;  %v16183_v24 = vld [vmem:[%s16126_s16 + $0x39] sm:$0xff]  ;;  %v322_v26 = vld [vmem:[%s16126_s16 + $0x8] sm:$0xff] }
  0x14   : > { %13300 = vmatprep.mubr.bf16.mxu0 %v357_v6  ;;  %13292 = vmatprep.subr.bf16.mxu0 %v14600_v9  ;;  %v762_v17 = vpack.c.bf16 %v16162_v16, %v16159_v15  ;;  %v321_v25 = vld [vmem:[%s16126_s16] sm:$0xff]  ;;  %v360_v27 = vpack.c.bf16 %v16183_v24, %v16162_v16  ;;  %v323_v34 = vld [vmem:[%s16126_s16 + $0x10] sm:$0xff]  ;;  %v324_v35 = vld [vmem:[%s16126_s16 + $0x18] sm:$0xff] }
  0x15   : > { %v329_v28 = vpack.c.bf16 %v322_v26, %v321_v25  ;;  %v325_v37 = vld [vmem:[%s16126_s16 + $0x20] sm:$0xff]  ;;  %v326_v38 = vld [vmem:[%s16126_s16 + $0x28] sm:$0xff]  ;;  %v330_v39 = vpack.c.bf16 %v324_v35, %v323_v34  ;;  %v327_v42 = vld [vmem:[%s16126_s16 + $0x30] sm:$0xff] }
  0x16   : > { %v331_v40 = vpack.c.bf16 %v326_v38, %v325_v37  ;;  %v328_v43 = vld [vmem:[%s16126_s16 + $0x38] sm:$0xff]  ;;  %v603_v45 = vld [vmem:[%s16126_s16 + $0x2] sm:$0xff]  ;;  %v16221_v46 = vld [vmem:[%s16126_s16 + $0xa] sm:$0xff] }
  0x17   : > { %13293 = vmatpush3.bf16.msra.mxu0 %v14600_v9  ;;  %v332_v47 = vpack.c.bf16 %v328_v43, %v327_v42  ;;  %v611_v49 = vpack.c.bf16 %v16221_v46, %v603_v45  ;;  %v605_v54 = vld [vmem:[%s16126_s16 + $0x12] sm:$0xff]  ;;  %v16241_v55 = vld [vmem:[%s16126_s16 + $0x1a] sm:$0xff]  ;;  %v16247_v57 = vld [vmem:[%s16126_s16 + $0x22] sm:$0xff] }
  0x18   : > { %13294 = vmatprep.subr.bf16.mxu0 %v14601_v12  ;;  %v16250_v58 = vld [vmem:[%s16126_s16 + $0x2a] sm:$0xff]  ;;  %v16253_v59 = vpack.c.bf16 %v16241_v55, %v605_v54  ;;  %v16263_v62 = vld [vmem:[%s16126_s16 + $0x32] sm:$0xff]  ;;  %v16271_v0 = vld [vmem:[%s16126_s16 + $0x3a] sm:$0xff]  ;;  %v909_v10 = vpack.c.bf16 %v605_v54, %v16221_v46 }
  0x19   : > { %v16260_v61 = vpack.c.bf16 %v16250_v58, %v16247_v57  ;;  %v16275_v1 = vpack.c.bf16 %v16271_v0, %v16263_v62  ;;  %v14624_v3 = vld [vmem:[%s20089_s1 + $0xe0] sm:$0xff]   ;;  %v14625_v4 = vld [vmem:[%s20089_s1 + $0xe8] sm:$0xff]   ;;  %v14626_v6 = vld [vmem:[%s20089_s1 + $0xf0] sm:$0xff]  }
  0x1a   : > { %v14627_v5 = vld [vmem:[%s20089_s1 + $0xf8] sm:$0xff]   ;;  %v14628_v7 = vld [vmem:[%s20089_s1 + $0x100] sm:$0xff]   ;;  %v14630_v9 = vld [vmem:[%s20089_s1 + $0x110] sm:$0xff]  }
  0x1b   : > { %13295 = vmatpush3.bf16.msra.mxu0 %v14601_v12  ;;  %v759_v12 = vld [vmem:[%s16126_s16 + $0x41] sm:$0xff]  ;;  %v14634_v15 = vld [vmem:[%s20089_s1 + $0x130] sm:$0xff]   ;;  %v14635_v16 = vld [vmem:[%s20089_s1 + $0x138] sm:$0xff]  }
  0x1c   : > { %13296 = vmatprep.subr.bf16.mxu0 %v14602_v14  ;;  %v14632_v11 = vld [vmem:[%s20089_s1 + $0x120] sm:$0xff]   ;;  %v16347_v25 = vld [vmem:[%s16126_s16 + $0x13] sm:$0xff]  ;;  %v16387_v37 = vld [vmem:[%s16126_s16 + $0x2b] sm:$0xff] }
  0x1d   : > { %v14639_v26 = vld [vmem:[%s20089_s1 + $0x158] sm:$0xff]   ;;  %v16381_v35 = vld [vmem:[%s16126_s16 + $0x23] sm:$0xff]  ;;  %v14654_v54 = vld [vmem:[%s20089_s1 + $0x1d0] sm:$0xff]  }
  0x1e   : > { %v1052_v34 = vld [vmem:[%s16126_s16 + $0x1b] sm:$0xff]  ;;  %v16390_v38 = vld [vmem:[%s16126_s16 + $0x33] sm:$0xff]  ;;  %v16402_v43 = vld [vmem:[%s16126_s16 + $0x43] sm:$0xff] }
  0x1f   : > { %13297 = vmatpush3.bf16.msra.mxu0 %v14602_v14  ;;  %v763_v14 = vpack.c.bf16 %v759_v12, %v16183_v24  ;;  %v1050_v24 = vld [vmem:[%s16126_s16 + $0xb] sm:$0xff]  ;;  %v16399_v42 = vld [vmem:[%s16126_s16 + $0x3b] sm:$0xff] }
  0x20   : > { %13298 = vmatprep.subr.bf16.mxu0 %v14603_v18  ;;  %v14647_v45 = vld [vmem:[%s20089_s1 + $0x198] sm:$0xff]   ;;  %v1061_v46 = vpack.c.bf16 %v16402_v43, %v16399_v42  ;;  %v14665_v12 = vld [vmem:[%s20089_s1 + $0x228] sm:$0xff]  }
  0x23   : > { %13299 = vmatpush3.bf16.msra.mxu0 %v14603_v18  ;;  %v14631_v18 = vld [vmem:[%s20089_s1 + $0x118] sm:$0xff]  }
  0x24   : > { %13308 = vmatprep.subr.bf16.mxu0 %v14604_v19 }
  0x26   : > { %13301 = vmatmul.mubr.bf16.vlgmr.msra.gmra.mrb[0].mxu0 %v358_v20  ;;  %v14637_v20 = vld [vmem:[%s20089_s1 + $0x148] sm:$0xff]  }
  0x27   : > { %13309 = vmatpush3.bf16.msra.mxu0 %v14604_v19  ;;  %13304 = vmatprep.mubr.bf16.mxu0 %v359_v21  ;;  %v910_v19 = vpack.c.bf16 %v16247_v57, %v16241_v55  ;;  %v911_v21 = vpack.c.bf16 %v16263_v62, %v16250_v58  ;;  %v14655_v55 = vld [vmem:[%s20089_s1 + $0x1d8] sm:$0xff]   ;;  %v1356_v57 = vpack.c.bf16 %v1052_v34, %v16347_v25  ;;  %v14656_v58 = vld [vmem:[%s20089_s1 + $0x1e0] sm:$0xff]  }
  0x28   : > { %13310 = vmatprep.subr.bf16.mxu0 %v14605_v22  ;;  %v14660_v62 = vld [vmem:[%s20089_s1 + $0x200] sm:$0xff]  }
  0x2b   : > { %13311 = vmatpush3.bf16.msra.mxu0 %v14605_v22  ;;  %v14638_v22 = vld [vmem:[%s20089_s1 + $0x150] sm:$0xff]  }
  0x2c   : > { %13312 = vmatprep.subr.bf16.mxu0 %v14606_v23 }
  0x2e   : > { %13305 = vmatmul.mubr.bf16.gmra.mrb[4].mxu0 %v360_v27 }
  0x2f   : > { %13313 = vmatpush3.bf16.msra.mxu0 %v14606_v23  ;;  %13324 = vmatprep.mubr.bf16.mxu0 %v329_v28  ;;  %v16343_v23 = vld [vmem:[%s16126_s16 + $0x42] sm:$0xff]  ;;  %v1058_v28 = vpack.c.bf16 %v16347_v25, %v1050_v24  ;;  %v14670_v25 = vld [vmem:[%s20090_s2 + $0x50] sm:$0xff]  }
  0x30   : > { %13314 = vmatprep.subr.bf16.mxu0 %v14607_v29  ;;  %v912_v27 = vpack.c.bf16 %v16343_v23, %v16271_v0  ;;  %v14661_v0 = vld [vmem:[%s20089_s1 + $0x208] sm:$0xff]  }
  0x33   : > { %13315 = vmatpush3.bf16.msra.mxu0 %v14607_v29  ;;  %v14640_v29 = vld [vmem:[%s20089_s1 + $0x160] sm:$0xff]  }
  0x34   : > { %13316 = vmatprep.subr.bf16.mxu0 %v14608_v30 }
  0x37   : > { %13317 = vmatpush3.bf16.msra.mxu0 %v14608_v30  ;;  %v16055_v30 = vmov 0.0  }
  0x38   : > { %13318 = vmatprep.subr.bf16.mxu0 %v14609_v31  ;;  %1672 = vst [vmem:[#allocation3] sm:$0xff] %v16055_v30  ;;  %1673 = vst [vmem:[#allocation3 + $0x8] sm:$0xff] %v16055_v30 }
  0x39   : > { %1674 = vst [vmem:[#allocation3 + $0x10] sm:$0xff] %v16055_v30  ;;  %1675 = vst [vmem:[#allocation3 + $0x18] sm:$0xff] %v16055_v30 }
  0x3a   : > { %1676 = vst [vmem:[#allocation3 + $0x20] sm:$0xff] %v16055_v30  ;;  %1677 = vst [vmem:[#allocation3 + $0x28] sm:$0xff] %v16055_v30 }
  0x3b   : > { %13319 = vmatpush3.bf16.msra.mxu0 %v14609_v31  ;;  %1678 = vst [vmem:[#allocation3 + $0x30] sm:$0xff] %v16055_v30  ;;  %1679 = vst [vmem:[#allocation3 + $0x38] sm:$0xff] %v16055_v30  ;;  %v14641_v31 = vld [vmem:[%s20089_s1 + $0x168] sm:$0xff]  }
  0x3c   : > { %13320 = vmatprep.subr.bf16.mxu0 %v14610_v32  ;;  %1680 = vst [vmem:[#allocation3 + $0x40] sm:$0xff] %v16055_v30  ;;  %1681 = vst [vmem:[#allocation3 + $0x48] sm:$0xff] %v16055_v30 }
  0x3d   : > { %1682 = vst [vmem:[#allocation3 + $0x50] sm:$0xff] %v16055_v30  ;;  %1683 = vst [vmem:[#allocation3 + $0x58] sm:$0xff] %v16055_v30 }
  0x3f   : > { %13321 = vmatpush3.bf16.msra.mxu0 %v14610_v32  ;;  %v14642_v32 = vld [vmem:[%s20089_s1 + $0x170] sm:$0xff]   ;;  %v16044_v24 = vld [vmem:[#allocation3] sm:$0xff] }
  0x40   : > { %13322 = vmatprep.subr.bf16.mxu0 %v14611_v33 }
  0x43   : > { %13323 = vmatpush3.bf16.msra.mxu0 %v14611_v33  ;;  %v14643_v33 = vld [vmem:[%s20089_s1 + $0x178] sm:$0xff]  }
  0x44   : > { %13332 = vmatprep.subr.bf16.mxu0 %v14612_v36 }
  0x46   : > { %13325 = vmatmul.mubr.bf16.vlgmr.msra.gmra.mrb[0].mxu0 %v330_v39  ;;  %v1059_v39 = vpack.c.bf16 %v16381_v35, %v1052_v34 }
  0x47   : > { %13333 = vmatpush3.bf16.msra.mxu0 %v14612_v36  ;;  %13328 = vmatprep.mubr.bf16.mxu0 %v331_v40  ;;  %v14644_v36 = vld [vmem:[%s20089_s1 + $0x180] sm:$0xff]   ;;  %v14645_v40 = vld [vmem:[%s20089_s1 + $0x188] sm:$0xff]  }
  0x48   : > { %13334 = vmatprep.subr.bf16.mxu0 %v14613_v41 }
  0x4b   : > { %13335 = vmatpush3.bf16.msra.mxu0 %v14613_v41  ;;  %v1060_v41 = vpack.c.bf16 %v16390_v38, %v16387_v37 }
  0x4c   : > { %13336 = vmatprep.subr.bf16.mxu0 %v14614_v44 }
  0x4e   : > { %13329 = vmatmul.mubr.bf16.gmra.mrb[4].mxu0 %v332_v47  ;;  %v14648_v47 = vld [vmem:[%s20089_s1 + $0x1a0] sm:$0xff]  }
  0x4f   : > { %13337 = vmatpush3.bf16.msra.mxu0 %v14614_v44  ;;  %13348 = vmatprep.mubr.bf16.mxu0 %v611_v49  ;;  %v14646_v44 = vld [vmem:[%s20089_s1 + $0x190] sm:$0xff]  }
  0x50   : > { %13338 = vmatprep.subr.bf16.mxu0 %v14615_v48  ;;  %v14650_v49 = vld [vmem:[%s20089_s1 + $0x1b0] sm:$0xff]  }
  0x53   : > { %13339 = vmatpush3.bf16.msra.mxu0 %v14615_v48  ;;  %v14649_v48 = vld [vmem:[%s20089_s1 + $0x1a8] sm:$0xff]  }
  0x54   : > { %13340 = vmatprep.subr.bf16.mxu0 %v14616_v50 }
  0x57   : > { %13341 = vmatpush3.bf16.msra.mxu0 %v14616_v50  ;;  %v14651_v50 = vld [vmem:[%s20089_s1 + $0x1b8] sm:$0xff]  }
  0x58   : > { %13342 = vmatprep.subr.bf16.mxu0 %v14617_v51 }
  0x5b   : > { %13343 = vmatpush3.bf16.msra.mxu0 %v14617_v51  ;;  %v14652_v51 = vld [vmem:[%s20089_s1 + $0x1c0] sm:$0xff]  }
  0x5c   : > { %13344 = vmatprep.subr.bf16.mxu0 %v14618_v52 }
  0x5f   : > { %13345 = vmatpush3.bf16.msra.mxu0 %v14618_v52  ;;  %v14653_v52 = vld [vmem:[%s20089_s1 + $0x1c8] sm:$0xff]  }
  0x60   : > { %13346 = vmatprep.subr.bf16.mxu0 %v14619_v53 }
  0x63   : > { %13347 = vmatpush3.bf16.msra.mxu0 %v14619_v53  ;;  %v1206_v53 = vld [vmem:[%s16126_s16 + $0x4a] sm:$0xff] }
  0x64   : > { %13356 = vmatprep.subr.bf16.mxu0 %v14620_v56 }
  0x66   : > { %13349 = vmatmul.mubr.bf16.vlgmr.msra.gmra.mrb[0].mxu0 %v16253_v59 }
  0x67   : > { %13357 = vmatpush3.bf16.msra.mxu0 %v14620_v56  ;;  %13352 = vmatprep.mubr.bf16.mxu0 %v16260_v61  ;;  %v1210_v56 = vpack.c.bf16 %v1206_v53, %v16343_v23 }
  0x68   : > { %13358 = vmatprep.subr.bf16.mxu0 %v14621_v60 }
  0x6b   : > { %13359 = vmatpush3.bf16.msra.mxu0 %v14621_v60  ;;  %v14658_v60 = vld [vmem:[%s20089_s1 + $0x1f0] sm:$0xff]  }
  0x6c   : > { %13360 = vmatprep.subr.bf16.mxu0 %v14622_v63 }
  0x6e   : > { %13353 = vmatmul.mubr.bf16.gmra.mrb[4].mxu0 %v16275_v1 }
  0x6f   : > { %13361 = vmatpush3.bf16.msra.mxu0 %v14622_v63  ;;  %13372 = vmatprep.mubr.bf16.mxu0 %v760_v8  ;;  %v14629_v8 = vld [vmem:[%s20089_s1 + $0x108] sm:$0xff]   ;;  %v1357_v63 = vpack.c.bf16 %v16387_v37, %v16381_v35 }
  0x70   : > { %13362 = vmatprep.subr.bf16.mxu0 %v14623_v2 }
  0x73   : > { %13363 = vmatpush3.bf16.msra.mxu0 %v14623_v2  ;;  %v1355_v2 = vld [vmem:[%s16126_s16 + $0x4b] sm:$0xff] }
  0x74   : > { %13364 = vmatprep.subr.bf16.mxu0 %v14624_v3 }
  0x77   : > { %13365 = vmatpush3.bf16.msra.mxu0 %v14624_v3  ;;  %v14662_v3 = vld [vmem:[%s20089_s1 + $0x210] sm:$0xff]  }
  0x78   : > { %13366 = vmatprep.subr.bf16.mxu0 %v14625_v4 }
  0x7b   : > { %13367 = vmatpush3.bf16.msra.mxu0 %v14625_v4  ;;  %v1497_v4 = vld [vmem:[%s16126_s16 + $0x14] sm:$0xff] }
  0x7c   : > { %13368 = vmatprep.subr.bf16.mxu0 %v14626_v6 }
  0x7f   : > { %13369 = vmatpush3.bf16.msra.mxu0 %v14626_v6  ;;  %v1498_v6 = vld [vmem:[%s16126_s16 + $0x1c] sm:$0xff] }
  0x80   : > { %13370 = vmatprep.subr.bf16.mxu0 %v14627_v5 }
  0x83   : > { %13371 = vmatpush3.bf16.msra.mxu0 %v14627_v5  ;;  %v14663_v5 = vld [vmem:[%s20089_s1 + $0x218] sm:$0xff]  }
  0x84   : > { %13380 = vmatprep.subr.bf16.mxu0 %v14628_v7 }
  0x86   : > { %13373 = vmatmul.mubr.bf16.vlgmr.msra.gmra.mrb[0].mxu0 %v761_v13  ;;  %v14633_v13 = vld [vmem:[%s20089_s1 + $0x128] sm:$0xff]  }
  0x87   : > { %13381 = vmatpush3.bf16.msra.mxu0 %v14628_v7  ;;  %13376 = vmatprep.mubr.bf16.mxu0 %v762_v17  ;;  %v14636_v17 = vld [vmem:[%s20089_s1 + $0x140] sm:$0xff]   ;;  %v1359_v7 = vpack.c.bf16 %v1355_v2, %v16402_v43 }
  0x88   : > { %13382 = vmatprep.subr.bf16.mxu0 %v14629_v8 }
  0x8b   : > { %13383 = vmatpush3.bf16.msra.mxu0 %v14629_v8  ;;  %v1505_v8 = vpack.c.bf16 %v1498_v6, %v1497_v4  ;;  %v1744_v4 = vld [vmem:[#allocation3 + $0x1] sm:$0xff] }
  0x8c   : > { %13384 = vmatprep.subr.bf16.mxu0 %v14630_v9 }
  0x8e   : > { %13377 = vmatmul.mubr.bf16.gmra.mrb[4].mxu0 %v763_v14  ;;  %v14666_v14 = vld [vmem:[%s20089_s1 + $0x230] sm:$0xff]  }
  0x8f   : > { %13385 = vmatpush3.bf16.msra.mxu0 %v14630_v9  ;;  %13396 = vmatprep.mubr.bf16.mxu0 %v909_v10  ;;  %v14664_v9 = vld [vmem:[%s20089_s1 + $0x220] sm:$0xff]  }
  0x90   : > { %13386 = vmatprep.subr.bf16.mxu0 %v14631_v18  ;;  %v1499_v10 = vld [vmem:[%s16126_s16 + $0x24] sm:$0xff] }
  0x93   : > { %13387 = vmatpush3.bf16.msra.mxu0 %v14631_v18  ;;  %v14667_v18 = vld [vmem:[%s20089_s1 + $0x238] sm:$0xff]  }
  0x94   : > { %13388 = vmatprep.subr.bf16.mxu0 %v14632_v11 }
  0x97   : > { %13389 = vmatpush3.bf16.msra.mxu0 %v14632_v11  ;;  %v1500_v11 = vld [vmem:[%s16126_s16 + $0x2c] sm:$0xff] }
  0x98   : > { %13390 = vmatprep.subr.bf16.mxu0 %v14633_v13 }
  0x9b   : > { %13391 = vmatpush3.bf16.msra.mxu0 %v14633_v13  ;;  %v1501_v13 = vld [vmem:[%s16126_s16 + $0x34] sm:$0xff] }
  0x9c   : > { %13392 = vmatprep.subr.bf16.mxu0 %v14634_v15 }
  0x9f   : > { %13393 = vmatpush3.bf16.msra.mxu0 %v14634_v15  ;;  %v1502_v15 = vld [vmem:[%s16126_s16 + $0x3c] sm:$0xff] }
  0xa0   : > { %13394 = vmatprep.subr.bf16.mxu0 %v14635_v16 }
  0xa3   : > { %13395 = vmatpush3.bf16.msra.mxu0 %v14635_v16  ;;  %v14668_v16 = vld [vmem:[%s20090_s2 + $0x40] sm:$0xff]  }
  0xa4   : > { %13404 = vmatprep.subr.bf16.mxu0 %v14636_v17 }
  0xa6   : > { %13397 = vmatmul.mubr.bf16.vlgmr.msra.gmra.mrb[0].mxu0 %v910_v19  ;;  %v1507_v19 = vpack.c.bf16 %v1502_v15, %v1501_v13  ;;  %v16538_v13 = vld [vmem:[#allocation3] sm:$0xff] }
  0xa7   : > { %13405 = vmatpush3.bf16.msra.mxu0 %v14636_v17  ;;  %13400 = vmatprep.mubr.bf16.mxu0 %v911_v21  ;;  %v1506_v17 = vpack.c.bf16 %v1500_v11, %v1499_v10  ;;  %v1504_v21 = vld [vmem:[%s16126_s16 + $0x4c] sm:$0xff] }
  0xa8   : > { %13406 = vmatprep.subr.bf16.mxu0 %v14637_v20  ;;  %v14677_v11 = vld [vmem:[%s20090_s2 + $0x8] sm:$0xff]  }
  0xab   : > { %13407 = vmatpush3.bf16.msra.mxu0 %v14637_v20  ;;  %v1503_v20 = vld [vmem:[%s16126_s16 + $0x44] sm:$0xff] }
  0xac   : > { %13408 = vmatprep.subr.bf16.mxu0 %v14638_v22  ;;  %v1508_v23 = vpack.c.bf16 %v1504_v21, %v1503_v20 }
  0xae   : > { %13401 = vmatmul.mubr.bf16.gmra.mrb[4].mxu0 %v912_v27  ;;  %v14672_v27 = vld [vmem:[%s20090_s2 + $0x60] sm:$0xff]  }
  0xaf   : > { %13409 = vmatpush3.bf16.msra.mxu0 %v14638_v22  ;;  %13420 = vmatprep.mubr.bf16.mxu0 %v1058_v28  ;;  %v14669_v22 = vld [vmem:[%s20090_s2 + $0x48] sm:$0xff]  }
  0xb0   : > { %13410 = vmatprep.subr.bf16.mxu0 %v14639_v26  ;;  %v14673_v28 = vld [vmem:[%s20090_s2 + $0x68] sm:$0xff]  }
  0xb3   : > { %13411 = vmatpush3.bf16.msra.mxu0 %v14639_v26  ;;  %v14671_v26 = vld [vmem:[%s20090_s2 + $0x58] sm:$0xff]  }
  0xb4   : > { %13412 = vmatprep.subr.bf16.mxu0 %v14640_v29 }
  0xb7   : > { %13413 = vmatpush3.bf16.msra.mxu0 %v14640_v29  ;;  %v14674_v29 = vld [vmem:[%s20090_s2 + $0x70] sm:$0xff]  }
  0xb8   : > { %13414 = vmatprep.subr.bf16.mxu0 %v14641_v31 }
  0xbb   : > { %13415 = vmatpush3.bf16.msra.mxu0 %v14641_v31  ;;  %v11930_v31 = vld [vmem:[%s20094_s6] ss:$0 sm:$0xff] }
  0xbc   : > { %13416 = vmatprep.subr.bf16.mxu0 %v14642_v32 }
  0xbf   : > { %13417 = vmatpush3.bf16.msra.mxu0 %v14642_v32 }
  0xc0   : > { %13418 = vmatprep.subr.bf16.mxu0 %v14643_v33 }
  0xc3   : > { %13419 = vmatpush3.bf16.msra.mxu0 %v14643_v33  ;;  %v11931_v33 = vld [vmem:[%s20094_s6 + $0x1] ss:$0 sm:$0xff] }
  0xc4   : > { %13428 = vmatprep.subr.bf16.mxu0 %v14644_v36 }
  0xc6   : > { %13421 = vmatmul.mubr.bf16.vlgmr.msra.gmra.mrb[0].mxu0 %v1059_v39 }
  0xc7   : > { %13429 = vmatpush3.bf16.msra.mxu0 %v14644_v36  ;;  %13424 = vmatprep.mubr.bf16.mxu0 %v1060_v41 }
  0xc8   : > { %13430 = vmatprep.subr.bf16.mxu0 %v14645_v40 }
  0xcb   : > { %13431 = vmatpush3.bf16.msra.mxu0 %v14645_v40 }
  0xcc   : > { %13432 = vmatprep.subr.bf16.mxu0 %v14646_v44 }
  0xce   : > { %13425 = vmatmul.mubr.bf16.gmra.mrb[4].mxu0 %v1061_v46 }
  0xcf   : > { %13433 = vmatpush3.bf16.msra.mxu0 %v14646_v44  ;;  %13444 = vmatprep.mubr.bf16.mxu0 %v16253_v59  ;;  %v14657_v59 = vld [vmem:[%s20089_s1 + $0x1e8] sm:$0xff]  }
  0xd0   : > { %13434 = vmatprep.subr.bf16.mxu0 %v14647_v45 }
  0xd3   : > { %13435 = vmatpush3.bf16.msra.mxu0 %v14647_v45 }
  0xd4   : > { %13436 = vmatprep.subr.bf16.mxu0 %v14648_v47 }
  0xd7   : > { %13437 = vmatpush3.bf16.msra.mxu0 %v14648_v47 }
  0xd8   : > { %13438 = vmatprep.subr.bf16.mxu0 %v14649_v48 }
  0xdb   : > { %13439 = vmatpush3.bf16.msra.mxu0 %v14649_v48 }
  0xdc   : > { %13440 = vmatprep.subr.bf16.mxu0 %v14650_v49 }
  0xdf   : > { %13441 = vmatpush3.bf16.msra.mxu0 %v14650_v49 }
  0xe0   : > { %13442 = vmatprep.subr.bf16.mxu0 %v14651_v50 }
  0xe3   : > { %13443 = vmatpush3.bf16.msra.mxu0 %v14651_v50 }
  0xe4   : > { %13452 = vmatprep.subr.bf16.mxu0 %v14652_v51 }
  0xe6   : > { %13445 = vmatmul.mubr.bf16.vlgmr.msra.gmra.mrb[0].mxu0 %v16260_v61  ;;  %v14659_v61 = vld [vmem:[%s20089_s1 + $0x1f8] sm:$0xff]  }
  0xe7   : > { %13453 = vmatpush3.bf16.msra.mxu0 %v14652_v51  ;;  %13448 = vmatprep.mubr.bf16.mxu0 %v16275_v1  ;;  %v1358_v1 = vpack.c.bf16 %v16399_v42, %v16390_v38 }
  0xe8   : > { %13454 = vmatprep.subr.bf16.mxu0 %v14653_v52 }
  0xeb   : > { %13455 = vmatpush3.bf16.msra.mxu0 %v14653_v52 }
  0xec   : > { %13456 = vmatprep.subr.bf16.mxu0 %v14654_v54 }
  0xee   : > { %13449 = vmatmul.mubr.bf16.gmra.mrb[4].mxu0 %v1210_v56 }
  0xef   : > { %13457 = vmatpush3.bf16.msra.mxu0 %v14654_v54  ;;  %13468 = vmatprep.mubr.bf16.mxu0 %v1356_v57 }
  0xf0   : > { %13458 = vmatprep.subr.bf16.mxu0 %v14655_v55 }
  0xf3   : > { %13459 = vmatpush3.bf16.msra.mxu0 %v14655_v55 }
  0xf4   : > { %13460 = vmatprep.subr.bf16.mxu0 %v14656_v58 }
  0xf7   : > { %13461 = vmatpush3.bf16.msra.mxu0 %v14656_v58 }
  0xf8   : > { %13462 = vmatprep.subr.bf16.mxu0 %v14657_v59 }
  0xfb   : > { %13463 = vmatpush3.bf16.msra.mxu0 %v14657_v59 }
  0xfc   : > { %13464 = vmatprep.subr.bf16.mxu0 %v14658_v60 }
  0xff   : > { %13465 = vmatpush3.bf16.msra.mxu0 %v14658_v60 }
 0x100   : > { %13466 = vmatprep.subr.bf16.mxu0 %v14659_v61 }
 0x103   : > { %13467 = vmatpush3.bf16.msra.mxu0 %v14659_v61 }
 0x104   : > { %13476 = vmatprep.subr.bf16.mxu0 %v14660_v62 }
 0x106   : > { %13469 = vmatmul.mubr.bf16.vlgmr.msra.gmra.mrb[0].mxu0 %v1357_v63 }
 0x107   : > { %13477 = vmatpush3.bf16.msra.mxu0 %v14660_v62  ;;  %13472 = vmatprep.mubr.bf16.mxu0 %v1358_v1 }
 0x108   : > { %13478 = vmatprep.subr.bf16.mxu0 %v14661_v0 }
 0x10b   : > { %13479 = vmatpush3.bf16.msra.mxu0 %v14661_v0 }
 0x10c   : > { %13480 = vmatprep.subr.bf16.mxu0 %v14662_v3 }
 0x10e   : > { %13473 = vmatmul.mubr.bf16.gmra.mrb[4].mxu0 %v1359_v7  ;;  %v14676_v7 = vld [vmem:[%s20090_s2] sm:$0xff]  }
 0x10f   : > { %13481 = vmatpush3.bf16.msra.mxu0 %v14662_v3  ;;  %13492 = vmatprep.mubr.bf16.mxu0 %v1505_v8 }
 0x110   : > { %13482 = vmatprep.subr.bf16.mxu0 %v14663_v5 }
 0x113   : > { %13483 = vmatpush3.bf16.msra.mxu0 %v14663_v5 }
 0x114   : > { %13484 = vmatprep.subr.bf16.mxu0 %v14664_v9 }
 0x117   : > { %13485 = vmatpush3.bf16.msra.mxu0 %v14664_v9 }
 0x118   : > { %13486 = vmatprep.subr.bf16.mxu0 %v14665_v12 }
 0x11b   : > { %13487 = vmatpush3.bf16.msra.mxu0 %v14665_v12 }
 0x11c   : > { %13488 = vmatprep.subr.bf16.mxu0 %v14666_v14 }
 0x11f   : > { %13489 = vmatpush3.bf16.msra.mxu0 %v14666_v14 }
 0x120   : > { %13490 = vmatprep.subr.bf16.mxu0 %v14667_v18 }
 0x123   : > { %13491 = vmatpush3.bf16.msra.mxu0 %v14667_v18 }
 0x124   : > { %13500 = vmatprep.subr.bf16.mxu0 %v16055_v30 }
 0x126   : > { %13493 = vmatmul.mubr.bf16.vlgmr.msra.gmra.mrb[0].mxu0 %v1506_v17 }
 0x127   : > { %13496 = vmatprep.mubr.bf16.mxu0 %v1507_v19  ;;  %13501 = vmatpush3.bf16.msra.mxu0 %v14668_v16 }
 0x128   : > { %13502 = vmatprep.subr.bf16.mxu0 %v16055_v30  ;;  %v14675_v30 = vld [vmem:[%s20090_s2 + $0x78] sm:$0xff]  }
 0x12b   : > { %13503 = vmatpush3.bf16.msra.mxu0 %v14669_v22 }
 0x12c   : > { %13504 = vmatprep.subr.bf16.mxu0 %v16044_v24 }
 0x12e   : > { %13497 = vmatmul.mubr.bf16.gmra.mrb[4].mxu0 %v1508_v23  ;;  %v14678_v23 = vld [vmem:[%s20090_s2 + $0x10] sm:$0xff]  }
 0x12f   : > { %13505 = vmatpush3.bf16.msra.mxu0 %v14670_v25  ;;  %13516 = vmatprep.mubr.msk.bf16.mxu0 %vm16056_vm0, %v16044_v24 }
 0x130   : > { %13506 = vmatprep.subr.bf16.mxu0 %v16044_v24 }
 0x133   : > { %13507 = vmatpush3.bf16.msra.mxu0 %v14671_v26 }
 0x134   : > { %13508 = vmatprep.subr.bf16.mxu0 %v16044_v24 }
 0x137   : > { %13509 = vmatpush3.bf16.msra.mxu0 %v14672_v27 }
 0x138   : > { %13510 = vmatprep.subr.bf16.mxu0 %v16044_v24 }
 0x13b   : > { %13511 = vmatpush3.bf16.msra.mxu0 %v14673_v28 }
 0x13c   : > { %13512 = vmatprep.subr.bf16.mxu0 %v16044_v24 }
 0x13f   : > { %13513 = vmatpush3.bf16.msra.mxu0 %v14674_v29 }
 0x140   : > { %13514 = vmatprep.subr.bf16.mxu0 %v16044_v24 }
 0x143   : > { %13515 = vmatpush3.bf16.msra.mxu0 %v14675_v30 }
 0x144   : > { %13536 = vmatprep.subr.bf16.mxu0 %v16044_v24  ;;  %v16560_v24 = vld [vmem:[#allocation3 + $0x4a] sm:$0xff] }
 0x1f9   : > { %v13494_v32 = vpop.f32.mrb[0].mxu0 }
 0x1fa   : > { %v1637_v34 = vmul.f32 %v13494_v32, %v11930_v31  ;;  %v1591_v35 = vpop.f32.mrb[1].mxu0 }
 0x1fb   : > { %v1635_v36 = vmul.f32 %v11930_v31, %v1591_v35  ;;  %v13495_v37 = vpop.f32.mrb[2].mxu0 }
 0x1fc   : > { %v1650_v38 = vadd.f32 %v11931_v33, %v1637_v34  ;;  %v1638_v39 = vmul.f32 %v13495_v37, %v11930_v31  ;;  %v1594_v40 = vpop.f32.mrb[3].mxu0  ;;  %v14679_v37 = vld [vmem:[%s20090_s2 + $0x18] sm:$0xff]  }
 0x1fd   : > { %v1648_v41 = vadd.f32 %v11931_v33, %v1635_v36  ;;  %v1636_v42 = vmul.f32 %v11930_v31, %v1594_v40 }
 0x1fe   : > { %v1658_v43 = vmax.f32 %v1650_v38, 0.0  ;;  %v1651_v44 = vadd.f32 %v11931_v33, %v1638_v39 }
 0x1ff   : > { %v1656_v45 = vmax.f32 %v1648_v41, 0.0  ;;  %v1649_v46 = vadd.f32 %v11931_v33, %v1636_v42 }
 0x200   : > { %1666 = vst [vmem:[#allocation2 + $0x10] sm:$0xff] %v1658_v43  ;;  %v1659_v47 = vmax.f32 %v1651_v44, 0.0 }
 0x201   : > { %1664 = vst [vmem:[#allocation2] sm:$0xff] %v1656_v45  ;;  %v1657_v48 = vmax.f32 %v1649_v46, 0.0  ;;  %v13498_v49 = vpop.f32.mrb[4].mxu0 }
 0x202   : > { %1667 = vst [vmem:[#allocation2 + $0x18] sm:$0xff] %v1659_v47  ;;  %v1641_v50 = vmul.f32 %v13498_v49, %v11930_v31  ;;  %v1607_v51 = vpop.f32.mrb[5].mxu0 }
 0x203   : > { %1665 = vst [vmem:[#allocation2 + $0x8] sm:$0xff] %v1657_v48  ;;  %v1639_v52 = vmul.f32 %v11930_v31, %v1607_v51  ;;  %v13499_v53 = vpop.f32.mrb[6].mxu0  ;;  %v14680_v51 = vld [vmem:[%s20090_s2 + $0x20] sm:$0xff]  }
 0x204   : > { %v1654_v54 = vadd.f32 %v11931_v33, %v1641_v50  ;;  %v1642_v55 = vmul.f32 %v13499_v53, %v11930_v31  ;;  %v1610_v56 = vpop.f32.mrb[7].mxu0  ;;  %v14681_v53 = vld [vmem:[%s20090_s2 + $0x28] sm:$0xff]  }
 0x205   : > { %v1652_v57 = vadd.f32 %v11931_v33, %v1639_v52  ;;  %v1640_v58 = vmul.f32 %v11930_v31, %v1610_v56  ;;  %v14683_v56 = vld [vmem:[%s20090_s2 + $0x38] sm:$0xff]  }
 0x206   : > { %v1662_v59 = vmax.f32 %v1654_v54, 0.0  ;;  %v1655_v60 = vadd.f32 %v11931_v33, %v1642_v55  ;;  %v14682_v54 = vld [vmem:[%s20090_s2 + $0x30] sm:$0xff]  }
 0x207   : > { %v1660_v61 = vmax.f32 %v1652_v57, 0.0  ;;  %v1653_v62 = vadd.f32 %v11931_v33, %v1640_v58 }
 0x208   : > { %v1684_v63 = vld [vmem:[#allocation2] sm:$0x7f]  ;;  %1670 = vst [vmem:[#allocation2 + $0x30] sm:$0xff] %v1662_v59  ;;  %v1663_v0 = vmax.f32 %v1655_v60, 0.0 }
 0x209   : > { %1685 = vst [vmem:[#allocation3 + $0xa] sm:$0x7f] %v1684_v63  ;;  %v1688_v1 = vld [vmem:[#allocation2 + $0x12] sm:$0x7f]  ;;  %1668 = vst [vmem:[#allocation2 + $0x20] sm:$0xff] %v1660_v61  ;;  %v1661_v2 = vmax.f32 %v1653_v62, 0.0 }
 0x20a   : > { %1689 = vst [vmem:[#allocation3 + $0x1c] sm:$0x7f] %v1688_v1  ;;  %v1686_v3 = vld [vmem:[#allocation2 + $0x9] sm:$0x7f]  ;;  %1671 = vst [vmem:[#allocation2 + $0x38] sm:$0xff] %v1663_v0  ;;  %v14684_v59 = vld [vmem:[%s20090_s2 + $0x80] sm:$0xff]  }
 0x20b   : > { %1687 = vst [vmem:[#allocation3 + $0x13] sm:$0x7f] %v1686_v3  ;;  %1669 = vst [vmem:[#allocation2 + $0x28] sm:$0xff] %v1661_v2  ;;  %v14685_v61 = vld [vmem:[%s20090_s2 + $0x88] sm:$0xff]   ;;  %v14686_v0 = vld [vmem:[%s20090_s2 + $0x90] sm:$0xff]  }
 0x20c   : > { %v14687_v2 = vld [vmem:[%s20090_s2 + $0x98] sm:$0xff]  }
 0x210   : > { %v1690_v6 = vld [vmem:[#allocation2 + $0x1b] sm:$0x7f]  ;;  %v16525_v5 = vld [vmem:[#allocation3 + $0x9] sm:$0xff] }
 0x211   : > { %1691 = vst [vmem:[#allocation3 + $0x25] sm:$0x7f] %v1690_v6  ;;  %v1696_v8 = vld [vmem:[#allocation2 + $0x36] sm:$0x7f]  ;;  %v1753_v9 = vpack.c.bf16 %v16525_v5, %v1744_v4  ;;  %v16542_v15 = vld [vmem:[#allocation3 + $0xa] sm:$0xff]  ;;  %v14688_v6 = vld [vmem:[%s20090_s2 + $0xa0] sm:$0xff]  }
 0x212   : > { %1697 = vst [vmem:[#allocation3 + $0x40] sm:$0x7f] %v1696_v8  ;;  %v1692_v12 = vld [vmem:[#allocation2 + $0x24] sm:$0x7f]  ;;  %v1694_v14 = vld [vmem:[#allocation2 + $0x2d] sm:$0x7f] }
 0x213   : > { %v16531_v18 = vld [vmem:[#allocation3 + $0x11] sm:$0xff]  ;;  %1693 = vst [vmem:[#allocation3 + $0x2e] sm:$0x7f] %v1692_v12  ;;  %1695 = vst [vmem:[#allocation3 + $0x37] sm:$0x7f] %v1694_v14  ;;  %13517 = vmatmul.mubr.bf16.vlgmr.msra.gmra.mrb[8].mxu0 %v1753_v9  ;;  %v16551_v20 = vld [vmem:[#allocation3 + $0x1b] sm:$0xff] }
 0x214   : > { %v2182_v10 = vpack.c.bf16 %v16531_v18, %v16525_v5  ;;  %13537 = vmatpush3.bf16.msra.mxu0 %v14676_v7  ;;  %13520 = vmatprep.mubr.msk.bf16.mxu0 %vm16056_vm0, %v16538_v13  ;;  %v16544_v16 = vld [vmem:[#allocation3 + $0x12] sm:$0xff]  ;;  %v16564_v26 = vld [vmem:[#allocation3 + $0x1a] sm:$0xff]  ;;  %v1715_v58 = vld [vmem:[#allocation3 + $0x8] sm:$0xff] }
 0x215   : > { %13538 = vmatprep.subr.bf16.mxu0 %v16538_v13  ;;  %v2341_v17 = vpack.c.bf16 %v16544_v16, %v16542_v15  ;;  %v16549_v19 = vld [vmem:[#allocation3 + $0x13] sm:$0xff]  ;;  %v1723_v60 = vpack.c.bf16 %v1715_v58, %v16538_v13  ;;  %v14689_v8 = vld [vmem:[%s20090_s2 + $0xa8] sm:$0xff]   ;;  %v14696_v58 = vld [vmem:[%s20090_s2 + $0xe0] sm:$0xff]  }
 0x216   : > { %v16553_v21 = vld [vmem:[#allocation3 + $0x19] sm:$0xff]  ;;  %v2818_v22 = vpack.c.bf16 %v16551_v20, %v16549_v19  ;;  %v1716_v62 = vld [vmem:[#allocation3 + $0x10] sm:$0xff] }
 0x217   : > { %v1754_v28 = vpack.c.bf16 %v16553_v21, %v16531_v18  ;;  %v1717_v63 = vld [vmem:[#allocation3 + $0x18] sm:$0xff]  ;;  %v14690_v14 = vld [vmem:[%s20090_s2 + $0xb0] sm:$0xff]   ;;  %v14704_v18 = vld [vmem:[%s20090_s2 + $0x120] sm:$0xff]  }
 0x218   : > { %13539 = vmatpush3.bf16.msra.mxu0 %v14677_v11  ;;  %v16562_v25 = vld [vmem:[#allocation3 + $0x21] sm:$0xff]  ;;  %v1724_v1 = vpack.c.bf16 %v1717_v63, %v1716_v62  ;;  %v14699_v63 = vld [vmem:[%s20090_s2 + $0xf8] sm:$0xff]  }
 0x219   : > { %v16566_v27 = vld [vmem:[#allocation3 + $0x22] sm:$0xff]  ;;  %13540 = vmatprep.subr.bf16.mxu0 %v16538_v13  ;;  %v2183_v31 = vpack.c.bf16 %v16562_v25, %v16553_v21  ;;  %v14703_v5 = vld [vmem:[%s20090_s2 + $0x118] sm:$0xff]   ;;  %v14706_v21 = vld [vmem:[%s20090_s2 + $0x130] sm:$0xff]  }
 0x21a   : > { %v16571_v29 = vld [vmem:[#allocation3 + $0x41] sm:$0xff]  ;;  %v2342_v32 = vpack.c.bf16 %v16566_v27, %v16564_v26  ;;  %v16579_v33 = vld [vmem:[#allocation3 + $0x29] sm:$0xff]  ;;  %v16581_v34 = vld [vmem:[#allocation3 + $0x31] sm:$0xff] }
 0x21b   : > { %v16573_v30 = vld [vmem:[#allocation3 + $0x42] sm:$0xff]  ;;  %v16583_v35 = vld [vmem:[#allocation3 + $0x39] sm:$0xff]  ;;  %13521 = vmatmul.mubr.bf16.gmra.mrb[12].mxu0 %v1754_v28  ;;  %v2184_v38 = vpack.c.bf16 %v16581_v34, %v16579_v33  ;;  %v16596_v40 = vld [vmem:[#allocation3 + $0x2a] sm:$0xff]  ;;  %v1755_v52 = vpack.c.bf16 %v16579_v33, %v16562_v25  ;;  %v1757_v57 = vpack.c.bf16 %v16571_v29, %v16571_v29 }
 0x21c   : > { %v2662_v36 = vpack.c.bf16 %v16560_v24, %v16573_v30  ;;  %v2185_v39 = vpack.c.bf16 %v16571_v29, %v16583_v35  ;;  %13541 = vmatpush3.bf16.msra.mxu0 %v14678_v23  ;;  %13524 = vmatprep.mubr.msk.bf16.mxu0 %vm16056_vm0, %v16538_v13  ;;  %v16598_v41 = vld [vmem:[#allocation3 + $0x32] sm:$0xff]  ;;  %v16600_v42 = vld [vmem:[#allocation3 + $0x3a] sm:$0xff]  ;;  %v16607_v45 = vld [vmem:[#allocation3 + $0x23] sm:$0xff]  ;;  %v1756_v55 = vpack.c.bf16 %v16583_v35, %v16581_v34 }
 0x21d   : > { %13542 = vmatprep.subr.bf16.mxu0 %v16538_v13  ;;  %v2343_v43 = vpack.c.bf16 %v16598_v41, %v16596_v40  ;;  %v2344_v44 = vpack.c.bf16 %v16573_v30, %v16600_v42  ;;  %v16609_v46 = vld [vmem:[#allocation3 + $0x2b] sm:$0xff]  ;;  %v16611_v47 = vld [vmem:[#allocation3 + $0x33] sm:$0xff]  ;;  %v16613_v48 = vld [vmem:[#allocation3 + $0x3b] sm:$0xff]  ;;  %v16736_v62 = vpack.c.bf16 %v16600_v42, %v16598_v41 }
 0x21e   : > { %v2819_v49 = vpack.c.bf16 %v16609_v46, %v16607_v45  ;;  %v2820_v50 = vpack.c.bf16 %v16613_v48, %v16611_v47  ;;  %v1719_v3 = vld [vmem:[#allocation3 + $0x28] sm:$0xff]  ;;  %v1718_v4 = vld [vmem:[#allocation3 + $0x20] sm:$0xff]  ;;  %v1720_v9 = vld [vmem:[#allocation3 + $0x30] sm:$0xff] }
 0x21f   : > { %v1725_v7 = vpack.c.bf16 %v1719_v3, %v1718_v4  ;;  %v1721_v12 = vld [vmem:[#allocation3 + $0x38] sm:$0xff]  ;;  %v1722_v28 = vld [vmem:[#allocation3 + $0x40] sm:$0xff]  ;;  %v14702_v3 = vld [vmem:[%s20090_s2 + $0x110] sm:$0xff]  }
 0x220   : > { %13543 = vmatpush3.bf16.msra.mxu0 %v14679_v37  ;;  %v1726_v11 = vpack.c.bf16 %v1721_v12, %v1720_v9  ;;  %v14691_v23 = vld [vmem:[%s20090_s2 + $0xb8] sm:$0xff]   ;;  %v1727_v37 = vpack.c.bf16 %v1722_v28, %v1722_v28  ;;  %v2181_v25 = vld [vmem:[#allocation3 + $0x49] sm:$0xff]  ;;  %v14708_v29 = vld [vmem:[%s20090_s2 + $0x140] sm:$0xff]  }
 0x221   : > { %13544 = vmatprep.subr.bf16.mxu0 %v16538_v13  ;;  %v2186_v33 = vpack.c.bf16 %v2181_v25, %v2181_v25  ;;  %v14709_v34 = vld [vmem:[%s20090_s2 + $0x148] sm:$0xff]   ;;  %v14710_v35 = vld [vmem:[%s20090_s2 + $0x150] sm:$0xff]   ;;  %v14720_v4 = vld [vmem:[%s20090_s2 + $0x1a0] sm:$0xff]  }
 0x222   : > { %v14717_v41 = vld [vmem:[%s20090_s2 + $0x188] sm:$0xff]   ;;  %v14718_v42 = vld [vmem:[%s20090_s2 + $0x190] sm:$0xff]   ;;  %v14724_v28 = vld [vmem:[%s20090_s2 + $0x1c0] sm:$0xff]  }
 0x223   : > { %13525 = vmatmul.mubr.bf16.gmra.mrb[16].mxu0 %v1755_v52  ;;  %v14692_v52 = vld [vmem:[%s20090_s2 + $0xc0] sm:$0xff]   ;;  %v14722_v9 = vld [vmem:[%s20090_s2 + $0x1b0] sm:$0xff]  }
 0x224   : > { %13545 = vmatpush3.bf16.msra.mxu0 %v14680_v51  ;;  %13528 = vmatprep.mubr.msk.bf16.mxu0 %vm16056_vm0, %v16538_v13  ;;  %v2014_v51 = vld [vmem:[#allocation3 + $0x2] sm:$0xff] }
 0x225   : > { %13546 = vmatprep.subr.bf16.mxu0 %v16538_v13 }
 0x228   : > { %13547 = vmatpush3.bf16.msra.mxu0 %v14681_v53  ;;  %v2023_v53 = vpack.c.bf16 %v16542_v15, %v2014_v51  ;;  %v14711_v15 = vld [vmem:[%s20090_s2 + $0x158] sm:$0xff]   ;;  %v14726_v51 = vld [vmem:[%s20090_s2 + $0x1d0] sm:$0xff]  }
 0x229   : > { %13548 = vmatprep.subr.bf16.mxu0 %v16538_v13 }
 0x22b   : > { %13529 = vmatmul.mubr.bf16.gmra.mrb[20].mxu0 %v1756_v55  ;;  %v14694_v55 = vld [vmem:[%s20090_s2 + $0xd0] sm:$0xff]  }
 0x22c   : > { %13549 = vmatpush3.bf16.msra.mxu0 %v14682_v54  ;;  %13532 = vmatprep.mubr.msk.bf16.mxu0 %vm16056_vm0, %v16538_v13  ;;  %v14693_v54 = vld [vmem:[%s20090_s2 + $0xc8] sm:$0xff]  }
 0x22d   : > { %13550 = vmatprep.subr.bf16.mxu0 %v16538_v13 }
 0x230   : > { %13551 = vmatpush3.bf16.msra.mxu0 %v14683_v56  ;;  %v16706_v56 = vpack.c.bf16 %v16564_v26, %v16544_v16  ;;  %v14712_v16 = vld [vmem:[%s20090_s2 + $0x160] sm:$0xff]   ;;  %v14714_v26 = vld [vmem:[%s20090_s2 + $0x170] sm:$0xff]  }
 0x231   : > { %13572 = vmatprep.subr.bf16.mxu0 %v16538_v13 }
 0x233   : > { %13533 = vmatmul.mubr.bf16.gmra.mrb[24].mxu0 %v1757_v57  ;;  %v14695_v57 = vld [vmem:[%s20090_s2 + $0xd8] sm:$0xff]  }
 0x234   : > { %13552 = vmatprep.mubr.msk.bf16.mxu0 %vm16056_vm0, %v16538_v13 }
 0x23b   : > { %13553 = vmatmul.mubr.bf16.vlgmr.msra.gmra.mrb[8].mxu0 %v1723_v60  ;;  %v14697_v60 = vld [vmem:[%s20090_s2 + $0xe8] sm:$0xff]  }
 0x23c   : > { %13573 = vmatpush3.bf16.msra.mxu0 %v14684_v59  ;;  %13556 = vmatprep.mubr.msk.bf16.mxu0 %vm16056_vm0, %v16538_v13  ;;  %v16721_v59 = vpack.c.bf16 %v16596_v40, %v16566_v27  ;;  %v14715_v27 = vld [vmem:[%s20090_s2 + $0x178] sm:$0xff]  }
 0x23d   : > { %13574 = vmatprep.subr.bf16.mxu0 %v16538_v13 }
 0x240   : > { %13575 = vmatpush3.bf16.msra.mxu0 %v14685_v61  ;;  %v14698_v61 = vld [vmem:[%s20090_s2 + $0xf0] sm:$0xff]  }
 0x241   : > { %13576 = vmatprep.subr.bf16.mxu0 %v16538_v13 }
 0x243   : > { %13557 = vmatmul.mubr.bf16.gmra.mrb[12].mxu0 %v1724_v1  ;;  %v14700_v1 = vld [vmem:[%s20090_s2 + $0x100] sm:$0xff]  }
 0x244   : > { %13577 = vmatpush3.bf16.msra.mxu0 %v14686_v0  ;;  %13560 = vmatprep.mubr.msk.bf16.mxu0 %vm16056_vm0, %v16538_v13  ;;  %v2027_v0 = vpack.c.bf16 %v16573_v30, %v16573_v30  ;;  %v14733_v30 = vld [vmem:[%s20090_s2 + $0x208] sm:$0xff]  }
 0x245   : > { %13578 = vmatprep.subr.bf16.mxu0 %v16538_v13 }
 0x248   : > { %13579 = vmatpush3.bf16.msra.mxu0 %v14687_v2  ;;  %v14701_v2 = vld [vmem:[%s20090_s2 + $0x108] sm:$0xff]  }
 0x249   : > { %13580 = vmatprep.subr.bf16.mxu0 %v16538_v13 }
 0x24b   : > { %13561 = vmatmul.mubr.bf16.gmra.mrb[16].mxu0 %v1725_v7  ;;  %v14721_v7 = vld [vmem:[%s20090_s2 + $0x1a8] sm:$0xff]  }
 0x24c   : > { %13581 = vmatpush3.bf16.msra.mxu0 %v14688_v6  ;;  %13564 = vmatprep.mubr.msk.bf16.mxu0 %vm16056_vm0, %v16538_v13  ;;  %v2502_v6 = vpack.c.bf16 %v16611_v47, %v16609_v46  ;;  %v2817_v47 = vld [vmem:[#allocation3 + $0x53] sm:$0xff] }
 0x24d   : > { %13582 = vmatprep.subr.bf16.mxu0 %v16538_v13 }
 0x250   : > { %13583 = vmatpush3.bf16.msra.mxu0 %v14689_v8  ;;  %v16895_v8 = vld [vmem:[#allocation3 + $0x43] sm:$0xff] }
 0x251   : > { %13584 = vmatprep.subr.bf16.mxu0 %v16538_v13  ;;  %v2503_v12 = vpack.c.bf16 %v16895_v8, %v16613_v48  ;;  %v14739_v48 = vld [vmem:[%s20090_s2 + $0x238] sm:$0xff]  }
 0x253   : > { %13565 = vmatmul.mubr.bf16.gmra.mrb[20].mxu0 %v1726_v11  ;;  %v16909_v11 = vld [vmem:[#allocation3 + $0x4b] sm:$0xff] }
 0x254   : > { %13585 = vmatpush3.bf16.msra.mxu0 %v14690_v14  ;;  %13568 = vmatprep.mubr.msk.bf16.mxu0 %vm16056_vm0, %v16538_v13  ;;  %v14723_v14 = vld [vmem:[%s20090_s2 + $0x1b8] sm:$0xff]   ;;  %v2821_v46 = vpack.c.bf16 %v16909_v11, %v16895_v8 }
 0x255   : > { %13586 = vmatprep.subr.bf16.mxu0 %v16538_v13 }
 0x258   : > { %13587 = vmatpush3.bf16.msra.mxu0 %v14691_v23  ;;  %v2504_v23 = vpack.c.bf16 %v16909_v11, %v16909_v11 }
 0x259   : > { %13608 = vmatprep.subr.bf16.mxu0 %v16538_v13 }
 0x25b   : > { %13569 = vmatmul.mubr.bf16.gmra.mrb[24].mxu0 %v1727_v37  ;;  %v14725_v37 = vld [vmem:[%s20090_s2 + $0x1c8] sm:$0xff]  }
 0x25c   : > { %13588 = vmatprep.mubr.msk.bf16.mxu0 %vm16056_vm0, %v16538_v13 }
 0x263   : > { %13589 = vmatmul.mubr.bf16.vlgmr.msra.gmra.mrb[8].mxu0 %v2023_v53  ;;  %v14728_v53 = vld [vmem:[%s20090_s2 + $0x1e0] sm:$0xff]  }
 0x264   : > { %13609 = vmatpush3.bf16.msra.mxu0 %v14692_v52  ;;  %13592 = vmatprep.mubr.msk.bf16.mxu0 %vm16056_vm0, %v16538_v13  ;;  %v14727_v52 = vld [vmem:[%s20090_s2 + $0x1d8] sm:$0xff]  }
 0x265   : > { %13610 = vmatprep.subr.bf16.mxu0 %v16538_v13 }
 0x268   : > { %13611 = vmatpush3.bf16.msra.mxu0 %v14693_v54  ;;  %v14729_v54 = vld [vmem:[%s20090_s2 + $0x1e8] sm:$0xff]  }
 0x269   : > { %13612 = vmatprep.subr.bf16.mxu0 %v16538_v13 }
 0x26b   : > { %13593 = vmatmul.mubr.bf16.gmra.mrb[12].mxu0 %v16706_v56 }
 0x26c   : > { %13613 = vmatpush3.bf16.msra.mxu0 %v14694_v55  ;;  %13596 = vmatprep.mubr.msk.bf16.mxu0 %vm16056_vm0, %v16538_v13  ;;  %v14730_v55 = vld [vmem:[%s20090_s2 + $0x1f0] sm:$0xff]  }
 0x26d   : > { %13614 = vmatprep.subr.bf16.mxu0 %v16538_v13 }
 0x270   : > { %13615 = vmatpush3.bf16.msra.mxu0 %v14695_v57  ;;  %v14731_v57 = vld [vmem:[%s20090_s2 + $0x1f8] sm:$0xff]  }
 0x271   : > { %13616 = vmatprep.subr.bf16.mxu0 %v16538_v13 }
 0x273   : > { %13597 = vmatmul.mubr.bf16.gmra.mrb[16].mxu0 %v16721_v59 }
 0x274   : > { %13617 = vmatpush3.bf16.msra.mxu0 %v14696_v58  ;;  %13600 = vmatprep.mubr.msk.bf16.mxu0 %vm16056_vm0, %v16538_v13 }
 0x275   : > { %13618 = vmatprep.subr.bf16.mxu0 %v16538_v13 }
 0x278   : > { %13619 = vmatpush3.bf16.msra.mxu0 %v14697_v60  ;;  %v14740_v60 = vld [vmem:[%s20091_s3 + $0x40] sm:$0xff]  }
 0x279   : > { %13620 = vmatprep.subr.bf16.mxu0 %v16538_v13 }
 0x27b   : > { %13601 = vmatmul.mubr.bf16.gmra.mrb[20].mxu0 %v16736_v62 }
 0x27c   : > { %13621 = vmatpush3.bf16.msra.mxu0 %v14698_v61  ;;  %13604 = vmatprep.mubr.msk.bf16.mxu0 %vm16056_vm0, %v16538_v13 }
 0x27d   : > { %13622 = vmatprep.subr.bf16.mxu0 %v16538_v13 }
 0x280   : > { %13623 = vmatpush3.bf16.msra.mxu0 %v14699_v63  ;;  %v2971_v63 = vld [vmem:[#allocation3 + $0x2c] sm:$0xff] }
 0x281   : > { %13644 = vmatprep.subr.bf16.mxu0 %v16538_v13 }
 0x283   : > { %13605 = vmatmul.mubr.bf16.gmra.mrb[24].mxu0 %v2027_v0  ;;  %v2970_v0 = vld [vmem:[#allocation3 + $0x24] sm:$0xff] }
 0x284   : > { %13624 = vmatprep.mubr.msk.bf16.mxu0 %vm16056_vm0, %v16538_v13 }
 0x28b   : > { %13625 = vmatmul.mubr.bf16.vlgmr.msra.gmra.mrb[8].mxu0 %v2182_v10  ;;  %v14705_v10 = vld [vmem:[%s20090_s2 + $0x128] sm:$0xff]  }
 0x28c   : > { %13645 = vmatpush3.bf16.msra.mxu0 %v14700_v1  ;;  %13628 = vmatprep.mubr.msk.bf16.mxu0 %vm16056_vm0, %v16538_v13  ;;  %v14742_v1 = vld [vmem:[%s20091_s3 + $0x50] sm:$0xff]  }
 0x28d   : > { %13646 = vmatprep.subr.bf16.mxu0 %v16538_v13 }
 0x290   : > { %13647 = vmatpush3.bf16.msra.mxu0 %v14701_v2  ;;  %v2978_v2 = vpack.c.bf16 %v2971_v63, %v2970_v0 }
 0x291   : > { %13648 = vmatprep.subr.bf16.mxu0 %v16538_v13 }
 0x293   : > { %13629 = vmatmul.mubr.bf16.gmra.mrb[12].mxu0 %v2183_v31  ;;  %v14707_v31 = vld [vmem:[%s20090_s2 + $0x138] sm:$0xff]  }
 0x294   : > { %13649 = vmatpush3.bf16.msra.mxu0 %v14702_v3  ;;  %13632 = vmatprep.mubr.msk.bf16.mxu0 %vm16056_vm0, %v16538_v13  ;;  %v2972_v3 = vld [vmem:[#allocation3 + $0x34] sm:$0xff] }
 0x295   : > { %13650 = vmatprep.subr.bf16.mxu0 %v16538_v13 }
 0x298   : > { %13651 = vmatpush3.bf16.msra.mxu0 %v14703_v5  ;;  %v2973_v5 = vld [vmem:[#allocation3 + $0x3c] sm:$0xff] }
 0x299   : > { %13652 = vmatprep.subr.bf16.mxu0 %v16538_v13 }
 0x29b   : > { %13633 = vmatmul.mubr.bf16.gmra.mrb[16].mxu0 %v2184_v38  ;;  %v2491_v38 = vld [vmem:[#allocation3 + $0xb] sm:$0xff] }
 0x29c   : > { %13653 = vmatpush3.bf16.msra.mxu0 %v14704_v18  ;;  %13636 = vmatprep.mubr.msk.bf16.mxu0 %vm16056_vm0, %v16538_v13  ;;  %v2500_v40 = vpack.c.bf16 %v16549_v19, %v2491_v38  ;;  %v14735_v19 = vld [vmem:[%s20090_s2 + $0x218] sm:$0xff]   ;;  %v2979_v18 = vpack.c.bf16 %v2973_v5, %v2972_v3 }
 0x29d   : > { %13654 = vmatprep.subr.bf16.mxu0 %v16538_v13 }
 0x2a0   : > { %13655 = vmatpush3.bf16.msra.mxu0 %v14705_v10  ;;  %v2974_v10 = vld [vmem:[#allocation3 + $0x44] sm:$0xff] }
 0x2a1   : > { %13656 = vmatprep.subr.bf16.mxu0 %v16538_v13 }
 0x2a3   : > { %13637 = vmatmul.mubr.bf16.gmra.mrb[20].mxu0 %v2185_v39  ;;  %v14716_v39 = vld [vmem:[%s20090_s2 + $0x180] sm:$0xff]  }
 0x2a4   : > { %13657 = vmatpush3.bf16.msra.mxu0 %v14706_v21  ;;  %13640 = vmatprep.mubr.msk.bf16.mxu0 %vm16056_vm0, %v16538_v13  ;;  %v2975_v21 = vld [vmem:[#allocation3 + $0x4c] sm:$0xff] }
 0x2a5   : > { %13658 = vmatprep.subr.bf16.mxu0 %v16538_v13  ;;  %v2980_v25 = vpack.c.bf16 %v2975_v21, %v2974_v10 }
 0x2a8   : > { %13659 = vmatpush3.bf16.msra.mxu0 %v14707_v31  ;;  %v2976_v31 = vld [vmem:[#allocation3 + $0x54] sm:$0xff] }
 0x2a9   : > { %13680 = vmatprep.subr.bf16.mxu0 %v16538_v13 }
 0x2ab   : > { %13641 = vmatmul.mubr.bf16.gmra.mrb[24].mxu0 %v2186_v33  ;;  %v2981_v33 = vpack.c.bf16 %v2976_v31, %v2976_v31 }
 0x2ac   : > { %13660 = vmatprep.mubr.msk.bf16.mxu0 %vm16056_vm0, %v16538_v13 }
 0x2b3   : > { %13661 = vmatmul.mubr.bf16.vlgmr.msra.gmra.mrb[8].mxu0 %v2341_v17  ;;  %v14713_v17 = vld [vmem:[%s20090_s2 + $0x168] sm:$0xff]  }
 0x2b4   : > { %13681 = vmatpush3.bf16.msra.mxu0 %v14708_v29  ;;  %13664 = vmatprep.mubr.msk.bf16.mxu0 %vm16056_vm0, %v16538_v13  ;;  %v14743_v29 = vld [vmem:[%s20091_s3 + $0x58] sm:$0xff]  }
 0x2b5   : > { %13682 = vmatprep.subr.bf16.mxu0 %v16538_v13 }
 0x2b8   : > { %13683 = vmatpush3.bf16.msra.mxu0 %v14709_v34  ;;  %v14744_v34 = vld [vmem:[%s20091_s3 + $0x60] sm:$0xff]  }
 0x2b9   : > { %13684 = vmatprep.subr.bf16.mxu0 %v16538_v13 }
 0x2bb   : > { %13665 = vmatmul.mubr.bf16.gmra.mrb[12].mxu0 %v2342_v32  ;;  %v2345_v32 = vpack.c.bf16 %v16560_v24, %v16560_v24  ;;  %v14732_v24 = vld [vmem:[%s20090_s2 + $0x200] sm:$0xff]  }
 0x2bc   : > { %13685 = vmatpush3.bf16.msra.mxu0 %v14710_v35  ;;  %13668 = vmatprep.mubr.msk.bf16.mxu0 %vm16056_vm0, %v16538_v13  ;;  %v14745_v35 = vld [vmem:[%s20091_s3 + $0x68] sm:$0xff]  }
 0x2bd   : > { %13686 = vmatprep.subr.bf16.mxu0 %v16538_v13 }
 0x2c0   : > { %13687 = vmatpush3.bf16.msra.mxu0 %v14711_v15  ;;  %v14746_v15 = vld [vmem:[%s20091_s3 + $0x70] sm:$0xff]  }
 0x2c1   : > { %13688 = vmatprep.subr.bf16.mxu0 %v16538_v13 }
 0x2c3   : > { %13669 = vmatmul.mubr.bf16.gmra.mrb[16].mxu0 %v2343_v43  ;;  %v2501_v43 = vpack.c.bf16 %v16607_v45, %v16551_v20  ;;  %v14736_v20 = vld [vmem:[%s20090_s2 + $0x220] sm:$0xff]   ;;  %v14738_v45 = vld [vmem:[%s20090_s2 + $0x230] sm:$0xff]  }
 0x2c4   : > { %13689 = vmatpush3.bf16.msra.mxu0 %v14712_v16  ;;  %13672 = vmatprep.mubr.msk.bf16.mxu0 %vm16056_vm0, %v16538_v13  ;;  %v14747_v16 = vld [vmem:[%s20091_s3 + $0x78] sm:$0xff]  }
 0x2c5   : > { %13690 = vmatprep.subr.bf16.mxu0 %v16538_v13 }
 0x2c8   : > { %13691 = vmatpush3.bf16.msra.mxu0 %v14713_v17  ;;  %v17062_v17 = vld [vmem:[%s20094_s6 + $0x2] ss:$0 sm:$0xff] }
 0x2c9   : > { %13692 = vmatprep.subr.bf16.mxu0 %v16538_v13 }
 0x2cb   : > { %13673 = vmatmul.mubr.bf16.gmra.mrb[20].mxu0 %v2344_v44  ;;  %v14719_v44 = vld [vmem:[%s20090_s2 + $0x198] sm:$0xff]  }
 0x2cc   : > { %13693 = vmatpush3.bf16.msra.mxu0 %v14714_v26  ;;  %13676 = vmatprep.mubr.msk.bf16.mxu0 %vm16056_vm0, %v16538_v13 }
 0x2cd   : > { %13694 = vmatprep.subr.bf16.mxu0 %v16538_v13 }
 0x2d0   : > { %13695 = vmatpush3.bf16.msra.mxu0 %v14715_v27  ;;  %v17067_v27 = vld [vmem:[%s20094_s6 + $0x3] ss:$0 sm:$0xff] }
 0x2d1   : > { %13716 = vmatprep.subr.bf16.mxu0 %v16538_v13 }
 0x2d3   : > { %13677 = vmatmul.mubr.bf16.gmra.mrb[24].mxu0 %v2345_v32 }
 0x2d4   : > { %13696 = vmatprep.mubr.msk.bf16.mxu0 %vm16056_vm0, %v16538_v13 }
 0x2db   : > { %13697 = vmatmul.mubr.bf16.vlgmr.msra.gmra.mrb[8].mxu0 %v2500_v40 }
 0x2dc   : > { %13717 = vmatpush3.bf16.msra.mxu0 %v14716_v39  ;;  %13700 = vmatprep.mubr.msk.bf16.mxu0 %vm16056_vm0, %v16538_v13 }
 0x2dd   : > { %13718 = vmatprep.subr.bf16.mxu0 %v16538_v13 }
 0x2e0   : > { %13719 = vmatpush3.bf16.msra.mxu0 %v14717_v41 }
 0x2e1   : > { %13720 = vmatprep.subr.bf16.mxu0 %v16538_v13 }
 0x2e3   : > { %13701 = vmatmul.mubr.bf16.gmra.mrb[12].mxu0 %v2501_v43 }
 0x2e4   : > { %13721 = vmatpush3.bf16.msra.mxu0 %v14718_v42  ;;  %13704 = vmatprep.mubr.msk.bf16.mxu0 %vm16056_vm0, %v16538_v13 }
 0x2e5   : > { %13722 = vmatprep.subr.bf16.mxu0 %v16538_v13 }
 0x2e8   : > { %13723 = vmatpush3.bf16.msra.mxu0 %v14719_v44 }
 0x2e9   : > { %13724 = vmatprep.subr.bf16.mxu0 %v16538_v13 }
 0x2eb   : > { %13705 = vmatmul.mubr.bf16.gmra.mrb[16].mxu0 %v2502_v6 }
 0x2ec   : > { %13725 = vmatpush3.bf16.msra.mxu0 %v14720_v4  ;;  %13708 = vmatprep.mubr.msk.bf16.mxu0 %vm16056_vm0, %v16538_v13 }
 0x2ed   : > { %13726 = vmatprep.subr.bf16.mxu0 %v16538_v13 }
 0x2f0   : > { %13727 = vmatpush3.bf16.msra.mxu0 %v14721_v7 }
 0x2f1   : > { %13728 = vmatprep.subr.bf16.mxu0 %v16538_v13 }
 0x2f3   : > { %13709 = vmatmul.mubr.bf16.gmra.mrb[20].mxu0 %v2503_v12 }
 0x2f4   : > { %13729 = vmatpush3.bf16.msra.mxu0 %v14722_v9  ;;  %13712 = vmatprep.mubr.msk.bf16.mxu0 %vm16056_vm0, %v16538_v13 }
 0x2f5   : > { %13730 = vmatprep.subr.bf16.mxu0 %v16538_v13 }
 0x2f8   : > { %13731 = vmatpush3.bf16.msra.mxu0 %v14723_v14 }
 0x2f9   : > { %13752 = vmatprep.subr.bf16.mxu0 %v16538_v13 }
 0x2fb   : > { %13713 = vmatmul.mubr.bf16.gmra.mrb[24].mxu0 %v2504_v23 }
 0x2fc   : > { %13732 = vmatprep.mubr.msk.bf16.mxu0 %vm16056_vm0, %v16538_v13 }
 0x303   : > { %13733 = vmatmul.mubr.bf16.vlgmr.msra.gmra.mrb[8].mxu0 %v16706_v56  ;;  %v2658_v56 = vld [vmem:[#allocation3 + $0x52] sm:$0xff] }
 0x304   : > { %13753 = vmatpush3.bf16.msra.mxu0 %v14724_v28  ;;  %13736 = vmatprep.mubr.msk.bf16.mxu0 %vm16056_vm0, %v16538_v13  ;;  %v2663_v58 = vpack.c.bf16 %v2658_v56, %v2658_v56 }
 0x305   : > { %13754 = vmatprep.subr.bf16.mxu0 %v16538_v13 }
 0x308   : > { %13755 = vmatpush3.bf16.msra.mxu0 %v14725_v37 }
 0x309   : > { %13756 = vmatprep.subr.bf16.mxu0 %v16538_v13 }
 0x30b   : > { %13737 = vmatmul.mubr.bf16.gmra.mrb[12].mxu0 %v16721_v59  ;;  %v2969_v59 = vld [vmem:[#allocation3 + $0x1c] sm:$0xff] }
 0x30c   : > { %13757 = vmatpush3.bf16.msra.mxu0 %v14726_v51  ;;  %13740 = vmatprep.mubr.msk.bf16.mxu0 %vm16056_vm0, %v16538_v13 }
 0x30d   : > { %13758 = vmatprep.subr.bf16.mxu0 %v16538_v13 }
 0x310   : > { %13759 = vmatpush3.bf16.msra.mxu0 %v14727_v52 }
 0x311   : > { %13760 = vmatprep.subr.bf16.mxu0 %v16538_v13 }
 0x313   : > { %13741 = vmatmul.mubr.bf16.gmra.mrb[16].mxu0 %v16736_v62  ;;  %v14741_v62 = vld [vmem:[%s20091_s3 + $0x48] sm:$0xff]  }
 0x314   : > { %13761 = vmatpush3.bf16.msra.mxu0 %v14728_v53  ;;  %13744 = vmatprep.mubr.msk.bf16.mxu0 %vm16056_vm0, %v16538_v13 }
 0x315   : > { %13762 = vmatprep.subr.bf16.mxu0 %v16538_v13 }
 0x318   : > { %13763 = vmatpush3.bf16.msra.mxu0 %v14729_v54 }
 0x319   : > { %13764 = vmatprep.subr.bf16.mxu0 %v16538_v13 }
 0x31b   : > { %13745 = vmatmul.mubr.bf16.gmra.mrb[20].mxu0 %v2662_v36  ;;  %v14734_v36 = vld [vmem:[%s20090_s2 + $0x210] sm:$0xff]  }
 0x31c   : > { %13765 = vmatpush3.bf16.msra.mxu0 %v14730_v55  ;;  %13748 = vmatprep.mubr.msk.bf16.mxu0 %vm16056_vm0, %v16538_v13 }
 0x31d   : > { %13766 = vmatprep.subr.bf16.mxu0 %v16538_v13 }
 0x320   : > { %13767 = vmatpush3.bf16.msra.mxu0 %v14731_v57 }
 0x321   : > { %13788 = vmatprep.subr.bf16.mxu0 %v16538_v13 }
 0x323   : > { %13749 = vmatmul.mubr.bf16.gmra.mrb[24].mxu0 %v2663_v58 }
 0x324   : > { %13768 = vmatprep.mubr.msk.bf16.mxu0 %vm16056_vm0, %v16538_v13 }
 0x32b   : > { %13769 = vmatmul.mubr.bf16.vlgmr.msra.gmra.mrb[8].mxu0 %v2818_v22  ;;  %v14737_v22 = vld [vmem:[%s20090_s2 + $0x228] sm:$0xff]  }
 0x32c   : > { %13789 = vmatpush3.bf16.msra.mxu0 %v14732_v24  ;;  %13772 = vmatprep.mubr.msk.bf16.mxu0 %vm16056_vm0, %v16538_v13 }
 0x32d   : > { %13790 = vmatprep.subr.bf16.mxu0 %v16538_v13 }
 0x330   : > { %13791 = vmatpush3.bf16.msra.mxu0 %v14733_v30 }
 0x331   : > { %13792 = vmatprep.subr.bf16.mxu0 %v16538_v13 }
 0x333   : > { %13773 = vmatmul.mubr.bf16.gmra.mrb[12].mxu0 %v2819_v49  ;;  %v2822_v49 = vpack.c.bf16 %v2817_v47, %v2817_v47 }
 0x334   : > { %13793 = vmatpush3.bf16.msra.mxu0 %v14734_v36  ;;  %13776 = vmatprep.mubr.msk.bf16.mxu0 %vm16056_vm0, %v16538_v13 }
 0x335   : > { %13794 = vmatprep.subr.bf16.mxu0 %v16538_v13 }
 0x338   : > { %13795 = vmatpush3.bf16.msra.mxu0 %v14735_v19 }
 0x339   : > { %13796 = vmatprep.subr.bf16.mxu0 %v16538_v13 }
 0x33b   : > { %13777 = vmatmul.mubr.bf16.gmra.mrb[16].mxu0 %v2820_v50  ;;  %v2968_v50 = vld [vmem:[#allocation3 + $0x14] sm:$0xff] }
 0x33c   : > { %13797 = vmatpush3.bf16.msra.mxu0 %v14736_v20  ;;  %13780 = vmatprep.mubr.msk.bf16.mxu0 %vm16056_vm0, %v16538_v13  ;;  %v2977_v61 = vpack.c.bf16 %v2969_v59, %v2968_v50 }
 0x33d   : > { %13798 = vmatprep.subr.bf16.mxu0 %v16538_v13 }
 0x340   : > { %13799 = vmatpush3.bf16.msra.mxu0 %v14737_v22  ;;  %v14748_v22 = vld [vmem:[%s20091_s3] sm:$0xff]  }
 0x341   : > { %13800 = vmatprep.subr.bf16.mxu0 %v16538_v13 }
 0x343   : > { %13781 = vmatmul.mubr.bf16.gmra.mrb[20].mxu0 %v2821_v46 }
 0x344   : > { %13801 = vmatpush3.bf16.msra.mxu0 %v14738_v45  ;;  %13784 = vmatprep.mubr.msk.bf16.mxu0 %vm16056_vm0, %v16538_v13 }
 0x345   : > { %13802 = vmatprep.subr.bf16.mxu0 %v16538_v13 }
 0x348   : > { %13803 = vmatpush3.bf16.msra.mxu0 %v14739_v48 }
 0x349   : > { %13824 = vmatprep.subr.bf16.mxu0 %v16538_v13 }
 0x34b   : > { %13785 = vmatmul.mubr.bf16.gmra.mrb[24].mxu0 %v2822_v49 }
 0x34c   : > { %13804 = vmatprep.mubr.msk.bf16.mxu0 %vm16056_vm0, %v16538_v13 }
 0x353   : > { %13805 = vmatmul.mubr.bf16.vlgmr.msra.gmra.mrb[8].mxu0 %v2977_v61 }
 0x354   : > { %13808 = vmatprep.mubr.msk.bf16.mxu0 %vm16056_vm0, %v16538_v13  ;;  %13825 = vmatpush3.bf16.msra.mxu0 %v14740_v60 }
 0x355   : > { %13826 = vmatprep.subr.bf16.mxu0 %v16538_v13 }
 0x358   : > { %13827 = vmatpush3.bf16.msra.mxu0 %v14741_v62  ;;  %v14749_v62 = vld [vmem:[%s20091_s3 + $0x8] sm:$0xff]  }
 0x359   : > { %13828 = vmatprep.subr.bf16.mxu0 %v16538_v13 }
 0x35b   : > { %13809 = vmatmul.mubr.bf16.gmra.mrb[12].mxu0 %v2978_v2 }
 0x35c   : > { %13812 = vmatprep.mubr.msk.bf16.mxu0 %vm16056_vm0, %v16538_v13  ;;  %13829 = vmatpush3.bf16.msra.mxu0 %v14742_v1 }
 0x35d   : > { %13830 = vmatprep.subr.bf16.mxu0 %v16538_v13 }
 0x360   : > { %13831 = vmatpush3.bf16.msra.mxu0 %v14743_v29 }
 0x361   : > { %13832 = vmatprep.subr.bf16.mxu0 %v16538_v13 }
 0x363   : > { %13813 = vmatmul.mubr.bf16.gmra.mrb[16].mxu0 %v2979_v18  ;;  %v14750_v18 = vld [vmem:[%s20091_s3 + $0x10] sm:$0xff]  }
 0x364   : > { %13816 = vmatprep.mubr.msk.bf16.mxu0 %vm16056_vm0, %v16538_v13  ;;  %13833 = vmatpush3.bf16.msra.mxu0 %v14744_v34 }
 0x365   : > { %13834 = vmatprep.subr.bf16.mxu0 %v16538_v13 }
 0x368   : > { %13835 = vmatpush3.bf16.msra.mxu0 %v14745_v35 }
 0x369   : > { %13836 = vmatprep.subr.bf16.mxu0 %v16538_v13 }
 0x36b   : > { %13817 = vmatmul.mubr.bf16.gmra.mrb[20].mxu0 %v2980_v25 }
 0x36c   : > { %13820 = vmatprep.mubr.msk.bf16.mxu0 %vm16056_vm0, %v16538_v13  ;;  %13837 = vmatpush3.bf16.msra.mxu0 %v14746_v15  ;;  %v14751_v15 = vld [vmem:[%s20091_s3 + $0x18] sm:$0xff]  }
 0x36d   : > { %13838 = vmatprep.subr.bf16.mxu0 %v16538_v13 }
 0x370   : > { %13839 = vmatpush3.bf16.msra.mxu0 %v14747_v16 }
 0x371   : > { %13852 = vmatprep.subr.bf16.mxu0 %v16538_v13 }
 0x373   : > { %13821 = vmatmul.mubr.bf16.gmra.mrb[24].mxu0 %v2981_v33 }
 0x374   : > { %13840 = vmatprep.mubr.msk.bf16.mxu0 %vm16056_vm0, %v16538_v13 }
 0x426   : > { %v3064_v26 = vpop.f32.mrb[8].mxu0 }
 0x427   : > { %v3116_v32 = vmul.f32 %v17062_v17, %v3064_v26  ;;  %v13806_v38 = vpop.f32.mrb[9].mxu0 }
 0x428   : > { %v3067_v39 = vpop.f32.mrb[10].mxu0  ;;  %v14752_v38 = vld [vmem:[%s20091_s3 + $0x20] sm:$0xff]  }
 0x429   : > { %v3130_v40 = vadd.f32 %v17067_v27, %v3116_v32  ;;  %v3117_v41 = vmul.f32 %v17062_v17, %v3067_v39  ;;  %v13807_v42 = vpop.f32.mrb[11].mxu0 }
 0x42a   : > { %v14756_v42 = vld [vmem:[%s20091_s3 + $0x80] sm:$0xff]  }
 0x42b   : > { %v3139_v43 = vmax.f32 %v3130_v40, 0.0  ;;  %v3131_v44 = vadd.f32 %v17067_v27, %v3117_v41  ;;  %v14754_v40 = vld [vmem:[%s20091_s3 + $0x30] sm:$0xff]   ;;  %v14755_v41 = vld [vmem:[%s20091_s3 + $0x38] sm:$0xff]  }
 0x42d   : > { %3148 = vst [vmem:[#allocation4] sm:$0xff] %v3139_v43  ;;  %v3140_v4 = vmax.f32 %v3131_v44, 0.0  ;;  %v14758_v44 = vld [vmem:[%s20091_s3 + $0x90] sm:$0xff]  }
 0x42e   : > { %v3072_v6 = vpop.f32.mrb[12].mxu0 }
 0x42f   : > { %3149 = vst [vmem:[#allocation4 + $0x8] sm:$0xff] %v3140_v4  ;;  %v3118_v7 = vmul.f32 %v17062_v17, %v3072_v6  ;;  %v13810_v8 = vpop.f32.mrb[13].mxu0  ;;  %v17074_v9 = vpack.c.bf16 %v3140_v4, %v3139_v43  ;;  %v14757_v43 = vld [vmem:[%s20091_s3 + $0x88] sm:$0xff]   ;;  %v14759_v4 = vld [vmem:[%s20091_s3 + $0x98] sm:$0xff]   ;;  %v14760_v6 = vld [vmem:[%s20091_s3 + $0xa0] sm:$0xff]  }
 0x430   : > { %v3075_v12 = vpop.f32.mrb[14].mxu0  ;;  %v14762_v8 = vld [vmem:[%s20091_s3 + $0xb0] sm:$0xff]  }
 0x431   : > { %v3132_v14 = vadd.f32 %v17067_v27, %v3118_v7  ;;  %v3119_v11 = vmul.f32 %v17062_v17, %v3075_v12  ;;  %v13811_v23 = vpop.f32.mrb[15].mxu0  ;;  %v14761_v7 = vld [vmem:[%s20091_s3 + $0xa8] sm:$0xff]   ;;  %v14763_v12 = vld [vmem:[%s20091_s3 + $0xb8] sm:$0xff]  }
 0x433   : > { %v3141_v28 = vmax.f32 %v3132_v14, 0.0  ;;  %v3133_v37 = vadd.f32 %v17067_v27, %v3119_v11  ;;  %v14764_v11 = vld [vmem:[%s20091_s3 + $0xc0] sm:$0xff]  }
 0x435   : > { %3150 = vst [vmem:[#allocation4 + $0x10] sm:$0xff] %v3141_v28  ;;  %v3142_v51 = vmax.f32 %v3133_v37, 0.0 }
 0x436   : > { %v3080_v52 = vpop.f32.mrb[16].mxu0  ;;  %v3198_v19 = vld [vmem:[#allocation4 + $0x1] sm:$0xff] }
 0x437   : > { %3151 = vst [vmem:[#allocation4 + $0x18] sm:$0xff] %v3142_v51  ;;  %v3120_v53 = vmul.f32 %v17062_v17, %v3080_v52  ;;  %v13814_v54 = vpop.f32.mrb[17].mxu0  ;;  %v17080_v55 = vpack.c.bf16 %v3142_v51, %v3141_v28  ;;  %v14765_v28 = vld [vmem:[%s20091_s3 + $0xc8] sm:$0xff]   ;;  %v14766_v52 = vld [vmem:[%s20091_s3 + $0xd0] sm:$0xff]  }
 0x438   : > { %v3083_v56 = vpop.f32.mrb[18].mxu0  ;;  %v14767_v54 = vld [vmem:[%s20091_s3 + $0xd8] sm:$0xff]  }
 0x439   : > { %v3134_v57 = vadd.f32 %v17067_v27, %v3120_v53  ;;  %v3121_v58 = vmul.f32 %v17062_v17, %v3083_v56  ;;  %v13815_v24 = vpop.f32.mrb[19].mxu0 }
 0x43a   : > { %v14769_v24 = vld [vmem:[%s20091_s3 + $0xe8] sm:$0xff]  }
 0x43b   : > { %v3143_v30 = vmax.f32 %v3134_v57, 0.0  ;;  %v3135_v36 = vadd.f32 %v17067_v27, %v3121_v58  ;;  %v14768_v57 = vld [vmem:[%s20091_s3 + $0xe0] sm:$0xff]  }
 0x43c   : > { %v17085_v20 = vld [vmem:[#allocation4 + $0x9] sm:$0xff] }
 0x43d   : > { %3152 = vst [vmem:[#allocation4 + $0x20] sm:$0xff] %v3143_v30  ;;  %v3144_v45 = vmax.f32 %v3135_v36, 0.0  ;;  %v3204_v46 = vpack.c.bf16 %v17085_v20, %v3198_v19  ;;  %v17192_v14 = vld [vmem:[#allocation4 + $0xa] sm:$0xff]  ;;  %v14771_v36 = vld [vmem:[%s20091_s3 + $0xf8] sm:$0xff]   ;;  %v14772_v19 = vld [vmem:[%s20091_s3 + $0x100] sm:$0xff]  }
 0x43e   : > { %v3088_v47 = vpop.f32.mrb[20].mxu0  ;;  %v17091_v48 = vld [vmem:[#allocation4 + $0x11] sm:$0xff] }
 0x43f   : > { %3153 = vst [vmem:[#allocation4 + $0x28] sm:$0xff] %v3144_v45  ;;  %v3122_v49 = vmul.f32 %v17062_v17, %v3088_v47  ;;  %v13818_v50 = vpop.f32.mrb[21].mxu0  ;;  %13841 = vmatmul.mubr.bf16.vlgmr.msra.gmra.mrb[28].mxu0 %v3204_v46  ;;  %v17094_v59 = vpack.c.bf16 %v3144_v45, %v3143_v30  ;;  %v3575_v60 = vpack.c.bf16 %v17091_v48, %v17085_v20  ;;  %v3435_v51 = vld [vmem:[#allocation4 + $0x12] sm:$0xff]  ;;  %v14776_v47 = vld [vmem:[%s20091_s3 + $0x120] sm:$0xff]  }
 0x440   : > { %13853 = vmatpush3.bf16.msra.mxu0 %v14748_v22  ;;  %v3091_v61 = vpop.f32.mrb[22].mxu0  ;;  %13844 = vmatprep.mubr.msk.bf16.mxu0 %vm16056_vm0, %v16538_v13  ;;  %v14770_v30 = vld [vmem:[%s20091_s3 + $0xf0] sm:$0xff]   ;;  %v14773_v22 = vld [vmem:[%s20091_s3 + $0x108] sm:$0xff]   ;;  %v14775_v20 = vld [vmem:[%s20091_s3 + $0x118] sm:$0xff]  }
 0x441   : > { %v3136_v63 = vadd.f32 %v17067_v27, %v3122_v49  ;;  %v3123_v0 = vmul.f32 %v17062_v17, %v3091_v61  ;;  %v13819_v1 = vpop.f32.mrb[23].mxu0  ;;  %13854 = vmatprep.subr.bf16.mxu0 %v16538_v13  ;;  %v14774_v45 = vld [vmem:[%s20091_s3 + $0x110] sm:$0xff]   ;;  %v14777_v49 = vld [vmem:[%s20091_s3 + $0x128] sm:$0xff]   ;;  %v3711_v61 = vpack.c.bf16 %v3435_v51, %v17192_v14 }
 0x442   : > { %v14778_v50 = vld [vmem:[%s20091_s3 + $0x130] sm:$0xff]   ;;  %v14783_v1 = vld [vmem:[%s20091_s3 + $0x158] sm:$0xff]  }
 0x443   : > { %v3145_v2 = vmax.f32 %v3136_v63, 0.0  ;;  %v3137_v3 = vadd.f32 %v17067_v27, %v3123_v0  ;;  %v14782_v63 = vld [vmem:[%s20091_s3 + $0x150] sm:$0xff]  }
 0x444   : > { %13855 = vmatpush3.bf16.msra.mxu0 %v14749_v62  ;;  %v17107_v5 = vld [vmem:[#allocation4 + $0x19] sm:$0xff]  ;;  %v14781_v62 = vld [vmem:[%s20091_s3 + $0x148] sm:$0xff]  }
 0x445   : > { %3154 = vst [vmem:[#allocation4 + $0x30] sm:$0xff] %v3145_v2  ;;  %v3146_v10 = vmax.f32 %v3137_v3, 0.0  ;;  %13856 = vmatprep.subr.bf16.mxu0 %v16538_v13  ;;  %v3205_v21 = vpack.c.bf16 %v17107_v5, %v17091_v48  ;;  %v17205_v37 = vld [vmem:[#allocation4 + $0x1a] sm:$0xff] }
 0x446   : > { %v3096_v25 = vpop.f32.mrb[24].mxu0  ;;  %v17115_v31 = vld [vmem:[#allocation4 + $0x21] sm:$0xff]  ;;  %v17211_v53 = vpack.c.bf16 %v17205_v37, %v3435_v51 }
 0x447   : > { %3155 = vst [vmem:[#allocation4 + $0x38] sm:$0xff] %v3146_v10  ;;  %v3124_v33 = vmul.f32 %v17062_v17, %v3096_v25  ;;  %v13822_v29 = vpop.f32.mrb[25].mxu0  ;;  %13845 = vmatmul.mubr.bf16.gmra.mrb[32].mxu0 %v3205_v21  ;;  %v3576_v34 = vpack.c.bf16 %v17115_v31, %v17107_v5  ;;  %v3437_v56 = vld [vmem:[#allocation4 + $0x22] sm:$0xff]  ;;  %v14821_v25 = vld [vmem:[%s20092_s4 + $0x42c] ss:$16 sps:$4 sm:$0xff]  }
 0x448   : > { %13857 = vmatpush3.bf16.msra.mxu0 %v14750_v18  ;;  %v3099_v35 = vpop.f32.mrb[26].mxu0  ;;  %13848 = vmatprep.mubr.msk.bf16.mxu0 %vm16056_vm0, %v16538_v13  ;;  %v3712_v0 = vpack.c.bf16 %v3437_v56, %v17205_v37  ;;  %v14784_v3 = vld [vmem:[%s20091_s3 + $0x160] sm:$0xff]   ;;  %v14815_v18 = vld [vmem:[%s20092_s4 + $0x40c] ss:$16 sps:$4 sm:$0xff]   ;;  %v14817_v21 = vld [vmem:[%s20092_s4 + $0x408] ss:$16 sps:$4 sm:$0xff]  }
 0x449   : > { %v3138_v16 = vadd.f32 %v17067_v27, %v3124_v33  ;;  %v13823_v26 = vpop.f32.mrb[27].mxu0  ;;  %13858 = vmatprep.subr.bf16.mxu0 %v16538_v13  ;;  %v14753_v27 = vld [vmem:[%s20091_s3 + $0x28] sm:$0xff]   ;;  %5750 = vmatprep.subr.bf16.mxu1 %v14815_v18  ;;  %v14786_v29 = vld [vmem:[%s20091_s3 + $0x170] sm:$0xff]   ;;  %v14800_v51 = vld [vmem:[%s20091_s3 + $0x1e0] sm:$0xff]  }
 0x44a   : > { %v14785_v10 = vld [vmem:[%s20091_s3 + $0x168] sm:$0xff]   ;;  %5751 = vmatpush1.bf16.msra.mxu1 %v14817_v21  ;;  %v14830_v18 = vld [vmem:[%s20092_s4 + $0x160] ss:$16 sps:$4 sm:$0xff]  }
 0x44b   : > { %v3147_v17 = vmax.f32 %v3138_v16, 0.0  ;;  %5752 = vmatprep.subr.bf16.mxu1 %v14821_v25  ;;  %v14827_v33 = vld [vmem:[%s20092_s4 + $0x44c] ss:$16 sps:$4 sm:$0xff]   ;;  %v17355_v16 = vld [vmem:[#allocation4 + $0x13] sm:$0xff] }
 0x44c   : > { %13859 = vmatpush3.bf16.msra.mxu0 %v14751_v15  ;;  %v17127_v32 = vld [vmem:[#allocation4 + $0x29] sm:$0xff]  ;;  %v14787_v15 = vld [vmem:[%s20091_s3 + $0x178] sm:$0xff]  }
 0x44d   : > { %3156 = vst [vmem:[#allocation4 + $0x40] sm:$0xff] %v3147_v17  ;;  %13860 = vmatprep.subr.bf16.mxu0 %v16538_v13  ;;  %v3206_v39 = vpack.c.bf16 %v17127_v32, %v17115_v31  ;;  %v14823_v31 = vld [vmem:[%s20092_s4 + $0x428] ss:$16 sps:$4 sm:$0xff]   ;;  %v14833_v35 = vld [vmem:[%s20092_s4 + $0x46c] ss:$16 sps:$4 sm:$0xff]  }
 0x44e   : > { %v3574_v46 = vld [vmem:[#allocation4 + $0x31] sm:$0xff]  ;;  %5753 = vmatpush1.bf16.msra.mxu1 %v14823_v31 }
 0x44f   : > { %13849 = vmatmul.mubr.bf16.gmra.mrb[36].mxu0 %v3206_v39  ;;  %v3577_v48 = vpack.c.bf16 %v3574_v46, %v17127_v32  ;;  %v17312_v2 = vld [vmem:[#allocation4 + $0x32] sm:$0xff]  ;;  %5754 = vmatprep.subr.bf16.mxu1 %v14827_v33  ;;  %v14788_v32 = vld [vmem:[%s20091_s3 + $0x180] sm:$0xff]   ;;  %v14789_v39 = vld [vmem:[%s20091_s3 + $0x188] sm:$0xff]  }
 0x450   : > { %13861 = vmatpush3.bf16.msra.mxu0 %v14752_v38  ;;  %13868 = vmatprep.mubr.msk.bf16.mxu0 %vm16056_vm0, %v16538_v13  ;;  %v14835_v26 = vld [vmem:[%s20092_s4 + $0x468] ss:$16 sps:$4 sm:$0xff]   ;;  %v14810_v46 = vld [vmem:[%s20091_s3 + $0x230] sm:$0xff]   ;;  %v14839_v33 = vld [vmem:[%s20092_s4 + $0x48c] ss:$16 sps:$4 sm:$0xff]  }
 0x451   : > { %13862 = vmatprep.subr.bf16.mxu0 %v16538_v13  ;;  %v3841_v17 = vld [vmem:[#allocation4 + $0xb] sm:$0xff]  ;;  %v4253_v21 = vld [vmem:[#allocation4 + $0x34] sm:$0xff] }
 0x452   : > { %v3847_v38 = vpack.c.bf16 %v17355_v16, %v3841_v17  ;;  %v14838_v31 = vld [vmem:[%s20092_s4 + $0x184] ss:$16 sps:$4 sm:$0xff]   ;;  %v14851_v17 = vld [vmem:[%s20092_s4 + $0x4cc] ss:$16 sps:$4 sm:$0xff]  }
 0x454   : > { %13863 = vmatpush3.bf16.msra.mxu0 %v14753_v27  ;;  %v17371_v27 = vld [vmem:[#allocation4 + $0x23] sm:$0xff]  ;;  %v3982_v37 = vld [vmem:[#allocation4 + $0x3a] sm:$0xff] }
 0x455   : > { %13864 = vmatprep.subr.bf16.mxu0 %v16538_v13 }
 0x458   : > { %13865 = vmatpush3.bf16.msra.mxu0 %v14754_v40  ;;  %v3843_v40 = vld [vmem:[#allocation4 + $0x1b] sm:$0xff] }
 0x459   : > { %13866 = vmatprep.subr.bf16.mxu0 %v16538_v13 }
 0x45c   : > { %13867 = vmatpush3.bf16.msra.mxu0 %v14755_v41  ;;  %v14790_v41 = vld [vmem:[%s20091_s3 + $0x190] sm:$0xff]  }
 0x45d   : > { %13880 = vmatprep.subr.bf16.mxu0 %v16538_v13 }
 0x45f   : > { %13869 = vmatmul.mubr.bf16.vlgmr.msra.gmra.mrb[28].mxu0 %v17074_v9  ;;  %v17185_v9 = vld [vmem:[#allocation3] sm:$0xff] }
 0x460   : > { %13881 = vmatpush3.bf16.msra.mxu0 %v14756_v42  ;;  %13872 = vmatprep.mubr.msk.bf16.mxu0 %vm16056_vm0, %v16538_v13  ;;  %v3848_v42 = vpack.c.bf16 %v17371_v27, %v3843_v40 }
 0x461   : > { %13882 = vmatprep.subr.bf16.mxu0 %v16538_v13 }
 0x464   : > { %13883 = vmatpush3.bf16.msra.mxu0 %v14757_v43  ;;  %v14791_v43 = vld [vmem:[%s20091_s3 + $0x198] sm:$0xff]  }
 0x465   : > { %13884 = vmatprep.subr.bf16.mxu0 %v16538_v13 }
 0x467   : > { %13873 = vmatmul.mubr.bf16.gmra.mrb[32].mxu0 %v17080_v55  ;;  %v17221_v55 = vld [vmem:[#allocation4 + $0x2a] sm:$0xff] }
 0x468   : > { %13885 = vmatpush3.bf16.msra.mxu0 %v14758_v44  ;;  %13876 = vmatprep.mubr.msk.bf16.mxu0 %vm16056_vm0, %v16538_v13  ;;  %v17227_v58 = vpack.c.bf16 %v17221_v55, %v3437_v56  ;;  %v3713_v5 = vpack.c.bf16 %v17312_v2, %v17221_v55  ;;  %v17384_v44 = vld [vmem:[#allocation4 + $0x33] sm:$0xff]  ;;  %v14804_v56 = vld [vmem:[%s20091_s3 + $0x200] sm:$0xff]  }
 0x469   : > { %13886 = vmatprep.subr.bf16.mxu0 %v16538_v13  ;;  %v14803_v55 = vld [vmem:[%s20091_s3 + $0x1f8] sm:$0xff]  }
 0x46c   : > { %13887 = vmatpush3.bf16.msra.mxu0 %v14759_v4  ;;  %v3845_v4 = vld [vmem:[#allocation4 + $0x2b] sm:$0xff] }
 0x46d   : > { %13888 = vmatprep.subr.bf16.mxu0 %v16538_v13 }
 0x46f   : > { %13877 = vmatmul.mubr.bf16.gmra.mrb[36].mxu0 %v17094_v59  ;;  %v14779_v59 = vld [vmem:[%s20091_s3 + $0x138] sm:$0xff]  }
 0x470   : > { %13889 = vmatpush3.bf16.msra.mxu0 %v14760_v6  ;;  %13896 = vmatprep.mubr.msk.bf16.mxu0 %vm16056_vm0, %v16538_v13  ;;  %v14792_v6 = vld [vmem:[%s20091_s3 + $0x1a0] sm:$0xff]  }
 0x471   : > { %13890 = vmatprep.subr.bf16.mxu0 %v16538_v13  ;;  %v3433_v13 = vld [vmem:[#allocation4 + $0x2] sm:$0xff] }
 0x472   : > { %v3439_v23 = vpack.c.bf16 %v17192_v14, %v3433_v13  ;;  %v14795_v14 = vld [vmem:[%s20091_s3 + $0x1b8] sm:$0xff]   ;;  %v14796_v13 = vld [vmem:[%s20091_s3 + $0x1c0] sm:$0xff]  }
 0x474   : > { %13891 = vmatpush3.bf16.msra.mxu0 %v14761_v7  ;;  %v3849_v7 = vpack.c.bf16 %v17384_v44, %v3845_v4 }
 0x475   : > { %13892 = vmatprep.subr.bf16.mxu0 %v17185_v9 }
 0x478   : > { %13893 = vmatpush3.bf16.msra.mxu0 %v14762_v8  ;;  %v14793_v8 = vld [vmem:[%s20091_s3 + $0x1a8] sm:$0xff]  }
 0x479   : > { %13894 = vmatprep.subr.bf16.mxu0 %v17185_v9 }
 0x47c   : > { %13895 = vmatpush3.bf16.msra.mxu0 %v14763_v12  ;;  %v14794_v12 = vld [vmem:[%s20091_s3 + $0x1b0] sm:$0xff]  }
 0x47d   : > { %13908 = vmatprep.subr.bf16.mxu0 %v17185_v9 }
 0x47f   : > { %13897 = vmatmul.mubr.bf16.vlgmr.msra.gmra.mrb[28].mxu0 %v3439_v23  ;;  %v14798_v23 = vld [vmem:[%s20091_s3 + $0x1d0] sm:$0xff]  }
 0x480   : > { %13909 = vmatpush3.bf16.msra.mxu0 %v14764_v11  ;;  %13900 = vmatprep.mubr.msk.bf16.mxu0 %vm16056_vm0, %v17185_v9  ;;  %v14797_v11 = vld [vmem:[%s20091_s3 + $0x1c8] sm:$0xff]  }
 0x481   : > { %13910 = vmatprep.subr.bf16.mxu0 %v17185_v9 }
 0x484   : > { %13911 = vmatpush3.bf16.msra.mxu0 %v14765_v28  ;;  %v14799_v28 = vld [vmem:[%s20091_s3 + $0x1d8] sm:$0xff]  }
 0x485   : > { %13912 = vmatprep.subr.bf16.mxu0 %v17185_v9 }
 0x487   : > { %13901 = vmatmul.mubr.bf16.gmra.mrb[32].mxu0 %v17211_v53 }
 0x488   : > { %13913 = vmatpush3.bf16.msra.mxu0 %v14766_v52  ;;  %13904 = vmatprep.mubr.msk.bf16.mxu0 %vm16056_vm0, %v17185_v9  ;;  %v3985_v52 = vpack.c.bf16 %v3982_v37, %v17312_v2  ;;  %v14824_v2 = vld [vmem:[%s20092_s4 + $0x140] ss:$16 sps:$4 sm:$0xff]  }
 0x489   : > { %13914 = vmatprep.subr.bf16.mxu0 %v17185_v9 }
 0x48c   : > { %13915 = vmatpush3.bf16.msra.mxu0 %v14767_v54  ;;  %v14802_v54 = vld [vmem:[%s20091_s3 + $0x1f0] sm:$0xff]  }
 0x48d   : > { %13916 = vmatprep.subr.bf16.mxu0 %v17185_v9 }
 0x48f   : > { %13905 = vmatmul.mubr.bf16.gmra.mrb[36].mxu0 %v17227_v58 }
 0x490   : > { %13917 = vmatpush3.bf16.msra.mxu0 %v14768_v57  ;;  %13924 = vmatprep.mubr.msk.bf16.mxu0 %vm16056_vm0, %v17185_v9  ;;  %v4119_v57 = vpack.c.bf16 %v3843_v40, %v17355_v16  ;;  %v14847_v16 = vld [vmem:[%s20092_s4 + $0x4a8] ss:$16 sps:$4 sm:$0xff]   ;;  %v14857_v40 = vld [vmem:[%s20092_s4 + $0x4ec] ss:$16 sps:$4 sm:$0xff]  }
 0x491   : > { %13918 = vmatprep.subr.bf16.mxu0 %v17185_v9 }
 0x494   : > { %13919 = vmatpush3.bf16.msra.mxu0 %v14769_v24  ;;  %v14806_v24 = vld [vmem:[%s20091_s3 + $0x210] sm:$0xff]  }
 0x495   : > { %13920 = vmatprep.subr.bf16.mxu0 %v17185_v9 }
 0x498   : > { %13921 = vmatpush3.bf16.msra.mxu0 %v14770_v30  ;;  %v4120_v30 = vpack.c.bf16 %v3845_v4, %v17371_v27  ;;  %v14856_v27 = vld [vmem:[%s20092_s4 + $0x1e4] ss:$16 sps:$4 sm:$0xff]  }
 0x499   : > { %13922 = vmatprep.subr.bf16.mxu0 %v17185_v9  ;;  %v12078_v4 = vld [vmem:[%s20094_s6 + $0x4] ss:$0 sm:$0xff] }
 0x49c   : > { %13923 = vmatpush3.bf16.msra.mxu0 %v14771_v36  ;;  %v14807_v36 = vld [vmem:[%s20091_s3 + $0x218] sm:$0xff]  }
 0x49d   : > { %13936 = vmatprep.subr.bf16.mxu0 %v17185_v9 }
 0x49f   : > { %13925 = vmatmul.mubr.bf16.vlgmr.msra.gmra.mrb[28].mxu0 %v3575_v60  ;;  %v14780_v60 = vld [vmem:[%s20091_s3 + $0x140] sm:$0xff]  }
 0x4a0   : > { %13937 = vmatpush3.bf16.msra.mxu0 %v14772_v19  ;;  %13928 = vmatprep.mubr.msk.bf16.mxu0 %vm16056_vm0, %v17185_v9  ;;  %v4118_v19 = vld [vmem:[#allocation4 + $0x3b] sm:$0xff] }
 0x4a1   : > { %13938 = vmatprep.subr.bf16.mxu0 %v17185_v9 }
 0x4a4   : > { %13939 = vmatpush3.bf16.msra.mxu0 %v14773_v22  ;;  %v14808_v22 = vld [vmem:[%s20091_s3 + $0x220] sm:$0xff]  }
 0x4a5   : > { %13940 = vmatprep.subr.bf16.mxu0 %v17185_v9 }
 0x4a7   : > { %13929 = vmatmul.mubr.bf16.gmra.mrb[32].mxu0 %v3576_v34  ;;  %v14829_v34 = vld [vmem:[%s20092_s4 + $0x448] ss:$16 sps:$4 sm:$0xff]  }
 0x4a8   : > { %13941 = vmatpush3.bf16.msra.mxu0 %v14774_v45  ;;  %13932 = vmatprep.mubr.msk.bf16.mxu0 %vm16056_vm0, %v17185_v9  ;;  %v4121_v45 = vpack.c.bf16 %v4118_v19, %v17384_v44  ;;  %v16057_v44 = vmov 0   ;;  %v14860_v19 = vld [vmem:[%s20092_s4 + $0x108] ss:$16 sps:$4 sm:$0xff]  }
 0x4a9   : > { %13942 = vmatprep.subr.bf16.mxu0 %v17185_v9  ;;  %5755 = vmatpush1.bf16.msra.mxu1 %v14829_v34  ;;  %v14842_v34 = vld [vmem:[%s20092_s4 + $0x1a0] ss:$16 sps:$4 sm:$0xff]  }
 0x4aa   : > { %5756 = vmatprep.subr.bf16.mxu1 %v14833_v35  ;;  %v14844_v35 = vld [vmem:[%s20092_s4 + $0x1a4] ss:$16 sps:$4 sm:$0xff]   ;;  %5782 = vmatprep.mubr.bf16.mxu1 %v16057_v44 }
 0x4ac   : > { %13943 = vmatpush3.bf16.msra.mxu0 %v14775_v20  ;;  %v14809_v20 = vld [vmem:[%s20091_s3 + $0x228] sm:$0xff]  }
 0x4ad   : > { %13944 = vmatprep.subr.bf16.mxu0 %v17185_v9  ;;  %5757 = vmatpush1.bf16.msra.mxu1 %v14835_v26  ;;  %v14850_v26 = vld [vmem:[%s20092_s4 + $0x1c4] ss:$16 sps:$4 sm:$0xff]  }
 0x4ae   : > { %5758 = vmatprep.subr.bf16.mxu1 %v14839_v33  ;;  %v14880_v33 = vld [vmem:[%s20092_s4 + $0x16c] ss:$16 sps:$4 sm:$0xff]  }
 0x4af   : > { %13933 = vmatmul.mubr.bf16.gmra.mrb[36].mxu0 %v3577_v48  ;;  %v14814_v48 = vld [vmem:[%s20092_s4 + $0x104] ss:$16 sps:$4 sm:$0xff]  }
 0x4b0   : > { %13945 = vmatpush3.bf16.msra.mxu0 %v14776_v47  ;;  %13952 = vmatprep.mubr.msk.bf16.mxu0 %vm16056_vm0, %v17185_v9  ;;  %v14811_v47 = vld [vmem:[%s20091_s3 + $0x238] sm:$0xff]  }
 0x4b1   : > { %13946 = vmatprep.subr.bf16.mxu0 %v17185_v9 }
 0x4b4   : > { %13947 = vmatpush3.bf16.msra.mxu0 %v14777_v49  ;;  %v4250_v49 = vld [vmem:[#allocation4 + $0x1c] sm:$0xff] }
 0x4b5   : > { %13948 = vmatprep.subr.bf16.mxu0 %v17185_v9 }
 0x4b8   : > { %13949 = vmatpush3.bf16.msra.mxu0 %v14778_v50  ;;  %v4249_v50 = vld [vmem:[#allocation4 + $0x14] sm:$0xff] }
 0x4b9   : > { %13950 = vmatprep.subr.bf16.mxu0 %v17185_v9 }
 0x4bc   : > { %13951 = vmatpush3.bf16.msra.mxu0 %v14779_v59  ;;  %v14812_v59 = vld [vmem:[%s20092_s4 + $0x100] ss:$16 sps:$4 sm:$0xff]  }
 0x4bd   : > { %13964 = vmatprep.subr.bf16.mxu0 %v17185_v9 }
 0x4bf   : > { %13953 = vmatmul.mubr.bf16.vlgmr.msra.gmra.mrb[28].mxu0 %v3711_v61  ;;  %v14820_v61 = vld [vmem:[%s20092_s4 + $0x124] ss:$16 sps:$4 sm:$0xff]  }
 0x4c0   : > { %13965 = vmatpush3.bf16.msra.mxu0 %v14780_v60  ;;  %13956 = vmatprep.mubr.msk.bf16.mxu0 %vm16056_vm0, %v17185_v9  ;;  %v4255_v60 = vpack.c.bf16 %v4250_v49, %v4249_v50 }
 0x4c1   : > { %13966 = vmatprep.subr.bf16.mxu0 %v17185_v9 }
 0x4c4   : > { %13967 = vmatpush3.bf16.msra.mxu0 %v14781_v62  ;;  %v14818_v62 = vld [vmem:[%s20092_s4 + $0x120] ss:$16 sps:$4 sm:$0xff]  }
 0x4c5   : > { %13968 = vmatprep.subr.bf16.mxu0 %v17185_v9 }
 0x4c7   : > { %13957 = vmatmul.mubr.bf16.gmra.mrb[32].mxu0 %v3712_v0  ;;  %v4252_v0 = vld [vmem:[#allocation4 + $0x2c] sm:$0xff] }
 0x4c8   : > { %13969 = vmatpush3.bf16.msra.mxu0 %v14782_v63  ;;  %13960 = vmatprep.mubr.msk.bf16.mxu0 %vm16056_vm0, %v17185_v9  ;;  %v14826_v63 = vld [vmem:[%s20092_s4 + $0x144] ss:$16 sps:$4 sm:$0xff]  }
 0x4c9   : > { %13970 = vmatprep.subr.bf16.mxu0 %v17185_v9 }
 0x4cc   : > { %13971 = vmatpush3.bf16.msra.mxu0 %v14783_v1  ;;  %v4251_v1 = vld [vmem:[#allocation4 + $0x24] sm:$0xff] }
 0x4cd   : > { %13972 = vmatprep.subr.bf16.mxu0 %v17185_v9 }
 0x4cf   : > { %13961 = vmatmul.mubr.bf16.gmra.mrb[36].mxu0 %v3713_v5  ;;  %v14832_v5 = vld [vmem:[%s20092_s4 + $0x164] ss:$16 sps:$4 sm:$0xff]  }
 0x4d0   : > { %13973 = vmatpush3.bf16.msra.mxu0 %v14784_v3  ;;  %13980 = vmatprep.mubr.msk.bf16.mxu0 %vm16056_vm0, %v17185_v9  ;;  %v4256_v3 = vpack.c.bf16 %v4252_v0, %v4251_v1  ;;  %v14866_v1 = vld [vmem:[%s20092_s4 + $0x128] ss:$16 sps:$4 sm:$0xff]  }
 0x4d1   : > { %13974 = vmatprep.subr.bf16.mxu0 %v17185_v9 }
 0x4d4   : > { %13975 = vmatpush3.bf16.msra.mxu0 %v14785_v10  ;;  %v4254_v10 = vld [vmem:[#allocation4 + $0x3c] sm:$0xff] }
 0x4d5   : > { %13976 = vmatprep.subr.bf16.mxu0 %v17185_v9  ;;  %v4257_v25 = vpack.c.bf16 %v4254_v10, %v4253_v21  ;;  %v14877_v10 = vld [vmem:[%s20092_s4 + $0x544] ss:$16 sps:$4 sm:$0xff]  }
 0x4d8   : > { %13977 = vmatpush3.bf16.msra.mxu0 %v14786_v29  ;;  %v14841_v29 = vld [vmem:[%s20092_s4 + $0x488] ss:$16 sps:$4 sm:$0xff]  }
 0x4d9   : > { %13978 = vmatprep.subr.bf16.mxu0 %v17185_v9  ;;  %5759 = vmatpush1.bf16.msra.mxu1 %v14841_v29  ;;  %v14878_v29 = vld [vmem:[%s20092_s4 + $0x168] ss:$16 sps:$4 sm:$0xff]  }
 0x4dc   : > { %13979 = vmatpush3.bf16.msra.mxu0 %v14787_v15  ;;  %v14845_v15 = vld [vmem:[%s20092_s4 + $0x4ac] ss:$16 sps:$4 sm:$0xff]  }
 0x4dd   : > { %13992 = vmatprep.subr.bf16.mxu0 %v17185_v9  ;;  %5760 = vmatprep.subr.bf16.mxu1 %v14845_v15  ;;  %v14889_v15 = vld [vmem:[%s20092_s4 + $0x584] ss:$16 sps:$4 sm:$0xff]  }
 0x4de   : > { %5761 = vmatpush1.bf16.msra.mxu1 %v14847_v16  ;;  %v14884_v16 = vld [vmem:[%s20092_s4 + $0x188] ss:$16 sps:$4 sm:$0xff]  }
 0x4df   : > { %13981 = vmatmul.mubr.bf16.vlgmr.msra.gmra.mrb[28].mxu0 %v3847_v38  ;;  %v14853_v38 = vld [vmem:[%s20092_s4 + $0x4c8] ss:$16 sps:$4 sm:$0xff]   ;;  %5762 = vmatprep.subr.bf16.mxu1 %v14851_v17  ;;  %v14892_v17 = vld [vmem:[%s20092_s4 + $0x1ac] ss:$16 sps:$4 sm:$0xff]  }
 0x4e0   : > { %13993 = vmatpush3.bf16.msra.mxu0 %v14788_v32  ;;  %13984 = vmatprep.mubr.msk.bf16.mxu0 %vm16056_vm0, %v17185_v9  ;;  %v14848_v32 = vld [vmem:[%s20092_s4 + $0x1c0] ss:$16 sps:$4 sm:$0xff]  }
 0x4e1   : > { %13994 = vmatprep.subr.bf16.mxu0 %v17185_v9 }
 0x4e2   : > { %5763 = vmatpush1.bf16.msra.mxu1 %v14853_v38  ;;  %v14890_v38 = vld [vmem:[%s20092_s4 + $0x1a8] ss:$16 sps:$4 sm:$0xff]  }
 0x4e3   : > { %5764 = vmatprep.subr.bf16.mxu1 %v14857_v40  ;;  %v14901_v40 = vld [vmem:[%s20092_s4 + $0x5c4] ss:$16 sps:$4 sm:$0xff]  }
 0x4e4   : > { %13995 = vmatpush3.bf16.msra.mxu0 %v14789_v39  ;;  %v14854_v39 = vld [vmem:[%s20092_s4 + $0x1e0] ss:$16 sps:$4 sm:$0xff]  }
 0x4e5   : > { %13996 = vmatprep.subr.bf16.mxu0 %v17185_v9 }
 0x4e7   : > { %13985 = vmatmul.mubr.bf16.gmra.mrb[32].mxu0 %v3848_v42  ;;  %v14862_v42 = vld [vmem:[%s20092_s4 + $0x10c] ss:$16 sps:$4 sm:$0xff]  }
 0x4e8   : > { %13997 = vmatpush3.bf16.msra.mxu0 %v14790_v41  ;;  %13988 = vmatprep.mubr.msk.bf16.mxu0 %vm16056_vm0, %v17185_v9  ;;  %v14859_v41 = vld [vmem:[%s20092_s4 + $0x4e8] ss:$16 sps:$4 sm:$0xff]  }
 0x4e9   : > { %13998 = vmatprep.subr.bf16.mxu0 %v17185_v9  ;;  %5765 = vmatpush1.bf16.msra.mxu1 %v14859_v41  ;;  %v14896_v41 = vld [vmem:[%s20092_s4 + $0x1c8] ss:$16 sps:$4 sm:$0xff]  }
 0x4ec   : > { %13999 = vmatpush3.bf16.msra.mxu0 %v14791_v43  ;;  %v14865_v43 = vld [vmem:[%s20092_s4 + $0x504] ss:$16 sps:$4 sm:$0xff]  }
 0x4ed   : > { %14000 = vmatprep.subr.bf16.mxu0 %v17185_v9  ;;  %5989 = vmatprep.subr.bf16.mxu1 %v14865_v43  ;;  %v14904_v43 = vld [vmem:[%s20092_s4 + $0x1ec] ss:$16 sps:$4 sm:$0xff]  }
 0x4ef   : > { %13989 = vmatmul.mubr.bf16.gmra.mrb[36].mxu0 %v3849_v7  ;;  %v12079_v7 = vld [vmem:[%s20094_s6 + $0x5] ss:$0 sm:$0xff] }
 0x4f0   : > { %14001 = vmatpush3.bf16.msra.mxu0 %v14792_v6  ;;  %14008 = vmatprep.mubr.msk.bf16.mxu0 %vm16056_vm0, %v17185_v9 }
 0x4f1   : > { %14002 = vmatprep.subr.bf16.mxu0 %v17185_v9 }
 0x4f4   : > { %14003 = vmatpush3.bf16.msra.mxu0 %v14793_v8 }
 0x4f5   : > { %14004 = vmatprep.subr.bf16.mxu0 %v17185_v9 }
 0x4f8   : > { %14005 = vmatpush3.bf16.msra.mxu0 %v14794_v12 }
 0x4f9   : > { %14006 = vmatprep.subr.bf16.mxu0 %v17185_v9 }
 0x4fc   : > { %14007 = vmatpush3.bf16.msra.mxu0 %v14795_v14 }
 0x4fd   : > { %14020 = vmatprep.subr.bf16.mxu0 %v17185_v9 }
 0x4ff   : > { %14009 = vmatmul.mubr.bf16.vlgmr.msra.gmra.mrb[28].mxu0 %v17211_v53  ;;  %v14801_v53 = vld [vmem:[%s20091_s3 + $0x1e8] sm:$0xff]  }
 0x500   : > { %14021 = vmatpush3.bf16.msra.mxu0 %v14796_v13  ;;  %14012 = vmatprep.mubr.msk.bf16.mxu0 %vm16056_vm0, %v17185_v9 }
 0x501   : > { %14022 = vmatprep.subr.bf16.mxu0 %v17185_v9 }
 0x504   : > { %14023 = vmatpush3.bf16.msra.mxu0 %v14797_v11 }
 0x505   : > { %14024 = vmatprep.subr.bf16.mxu0 %v17185_v9 }
 0x507   : > { %14013 = vmatmul.mubr.bf16.gmra.mrb[32].mxu0 %v17227_v58  ;;  %v14805_v58 = vld [vmem:[%s20091_s3 + $0x208] sm:$0xff]  }
 0x508   : > { %14025 = vmatpush3.bf16.msra.mxu0 %v14798_v23  ;;  %14016 = vmatprep.mubr.msk.bf16.mxu0 %vm16056_vm0, %v17185_v9 }
 0x509   : > { %14026 = vmatprep.subr.bf16.mxu0 %v17185_v9 }
 0x50c   : > { %14027 = vmatpush3.bf16.msra.mxu0 %v14799_v28 }
 0x50d   : > { %14028 = vmatprep.subr.bf16.mxu0 %v17185_v9 }
 0x50f   : > { %14017 = vmatmul.mubr.bf16.gmra.mrb[36].mxu0 %v3985_v52 }
 0x510   : > { %14029 = vmatpush3.bf16.msra.mxu0 %v14800_v51  ;;  %14036 = vmatprep.mubr.msk.bf16.mxu0 %vm16056_vm0, %v17185_v9 }
 0x511   : > { %14030 = vmatprep.subr.bf16.mxu0 %v17185_v9 }
 0x514   : > { %14031 = vmatpush3.bf16.msra.mxu0 %v14801_v53 }
 0x515   : > { %14032 = vmatprep.subr.bf16.mxu0 %v17185_v9 }
 0x518   : > { %14033 = vmatpush3.bf16.msra.mxu0 %v14802_v54 }
 0x519   : > { %14034 = vmatprep.subr.bf16.mxu0 %v17185_v9 }
 0x51c   : > { %14035 = vmatpush3.bf16.msra.mxu0 %v14803_v55 }
 0x51d   : > { %14048 = vmatprep.subr.bf16.mxu0 %v17185_v9 }
 0x51f   : > { %14037 = vmatmul.mubr.bf16.vlgmr.msra.gmra.mrb[28].mxu0 %v4119_v57 }
 0x520   : > { %14049 = vmatpush3.bf16.msra.mxu0 %v14804_v56  ;;  %14040 = vmatprep.mubr.msk.bf16.mxu0 %vm16056_vm0, %v17185_v9 }
 0x521   : > { %14050 = vmatprep.subr.bf16.mxu0 %v17185_v9 }
 0x524   : > { %14051 = vmatpush3.bf16.msra.mxu0 %v14805_v58 }
 0x525   : > { %14052 = vmatprep.subr.bf16.mxu0 %v17185_v9 }
 0x527   : > { %14041 = vmatmul.mubr.bf16.gmra.mrb[32].mxu0 %v4120_v30 }
 0x528   : > { %14053 = vmatpush3.bf16.msra.mxu0 %v14806_v24  ;;  %14044 = vmatprep.mubr.msk.bf16.mxu0 %vm16056_vm0, %v17185_v9 }
 0x529   : > { %14054 = vmatprep.subr.bf16.mxu0 %v17185_v9 }
 0x52c   : > { %14055 = vmatpush3.bf16.msra.mxu0 %v14807_v36 }
 0x52d   : > { %14056 = vmatprep.subr.bf16.mxu0 %v17185_v9 }
 0x52f   : > { %14045 = vmatmul.mubr.bf16.gmra.mrb[36].mxu0 %v4121_v45  ;;  %v14863_v45 = vld [vmem:[%s20092_s4 + $0x500] ss:$16 sps:$4 sm:$0xff]  }
 0x530   : > { %14057 = vmatpush3.bf16.msra.mxu0 %v14808_v22  ;;  %14064 = vmatprep.mubr.msk.bf16.mxu0 %vm16056_vm0, %v17185_v9 }
 0x531   : > { %14058 = vmatprep.subr.bf16.mxu0 %v17185_v9 }
 0x534   : > { %14059 = vmatpush3.bf16.msra.mxu0 %v14809_v20 }
 0x535   : > { %14060 = vmatprep.subr.bf16.mxu0 %v17185_v9 }
 0x538   : > { %14061 = vmatpush3.bf16.msra.mxu0 %v14810_v46 }
 0x539   : > { %14062 = vmatprep.subr.bf16.mxu0 %v17185_v9 }
 0x53c   : > { %14063 = vmatpush3.bf16.msra.mxu0 %v14811_v47 }
 0x53d   : > { %4631 = vmatprep.subr.bf16.mxu0 %v14814_v48 }
 0x53f   : > { %14065 = vmatmul.mubr.bf16.vlgmr.msra.gmra.mrb[28].mxu0 %v4255_v60  ;;  %v14871_v60 = vld [vmem:[%s20092_s4 + $0x524] ss:$16 sps:$4 sm:$0xff]  }
 0x540   : > { %14068 = vmatprep.mubr.msk.bf16.mxu0 %vm16056_vm0, %v17185_v9  ;;  %4632 = vmatpush1.bf16.msra.mxu0 %v14812_v59  ;;  %v14868_v59 = vld [vmem:[%s20092_s4 + $0x12c] ss:$16 sps:$4 sm:$0xff]  }
 0x541   : > { %4633 = vmatprep.subr.bf16.mxu0 %v14820_v61 }
 0x544   : > { %4634 = vmatpush1.bf16.msra.mxu0 %v14818_v62 }
 0x545   : > { %4635 = vmatprep.subr.bf16.mxu0 %v14826_v63 }
 0x547   : > { %14069 = vmatmul.mubr.bf16.gmra.mrb[32].mxu0 %v4256_v3 }
 0x548   : > { %14072 = vmatprep.mubr.msk.bf16.mxu0 %vm16056_vm0, %v17185_v9  ;;  %4636 = vmatpush1.bf16.msra.mxu0 %v14824_v2  ;;  %v14836_v9 = vld [vmem:[%s20092_s4 + $0x180] ss:$16 sps:$4 sm:$0xff]  }
 0x549   : > { %4637 = vmatprep.subr.bf16.mxu0 %v14832_v5  ;;  %v14869_v2 = vld [vmem:[%s20092_s4 + $0x520] ss:$16 sps:$4 sm:$0xff]  }
 0x54c   : > { %4638 = vmatpush1.bf16.msra.mxu0 %v14830_v18  ;;  %v14874_v18 = vld [vmem:[%s20092_s4 + $0x14c] ss:$16 sps:$4 sm:$0xff]  }
 0x54d   : > { %4639 = vmatprep.subr.bf16.mxu0 %v14838_v31  ;;  %v14875_v31 = vld [vmem:[%s20092_s4 + $0x540] ss:$16 sps:$4 sm:$0xff]  }
 0x54f   : > { %14073 = vmatmul.mubr.bf16.gmra.mrb[36].mxu0 %v4257_v25  ;;  %v14872_v25 = vld [vmem:[%s20092_s4 + $0x148] ss:$16 sps:$4 sm:$0xff]  }
 0x550   : > { %4640 = vmatpush1.bf16.msra.mxu0 %v14836_v9  ;;  %4663 = vmatprep.mubr.bf16.mxu0 %v16057_v44  ;;  %v14883_v9 = vld [vmem:[%s20092_s4 + $0x564] ss:$16 sps:$4 sm:$0xff]  }
 0x551   : > { %4641 = vmatprep.subr.bf16.mxu0 %v14844_v35  ;;  %v14886_v35 = vld [vmem:[%s20092_s4 + $0x18c] ss:$16 sps:$4 sm:$0xff]  }
 0x554   : > { %4642 = vmatpush1.bf16.msra.mxu0 %v14842_v34  ;;  %v14881_v34 = vld [vmem:[%s20092_s4 + $0x560] ss:$16 sps:$4 sm:$0xff]  }
 0x555   : > { %4643 = vmatprep.subr.bf16.mxu0 %v14850_v26  ;;  %v14887_v26 = vld [vmem:[%s20092_s4 + $0x580] ss:$16 sps:$4 sm:$0xff]  }
 0x558   : > { %4644 = vmatpush1.bf16.msra.mxu0 %v14848_v32  ;;  %v14895_v32 = vld [vmem:[%s20092_s4 + $0x5a4] ss:$16 sps:$4 sm:$0xff]  }
 0x559   : > { %4645 = vmatprep.subr.bf16.mxu0 %v14856_v27  ;;  %v14898_v27 = vld [vmem:[%s20092_s4 + $0x1cc] ss:$16 sps:$4 sm:$0xff]  }
 0x55c   : > { %4646 = vmatpush1.bf16.msra.mxu0 %v14854_v39  ;;  %v14893_v39 = vld [vmem:[%s20092_s4 + $0x5a0] ss:$16 sps:$4 sm:$0xff]  }
 0x55d   : > { %4672 = vmatprep.subr.bf16.mxu0 %v14862_v42  ;;  %v14899_v42 = vld [vmem:[%s20092_s4 + $0x5c0] ss:$16 sps:$4 sm:$0xff]  }
 0x612   : > { %v4340_v6 = vpop.f32.mrb[28].mxu0 }
 0x613   : > { %v4374_v8 = vmul.f32 %v12078_v4, %v4340_v6  ;;  %v14066_v12 = vpop.f32.mrb[29].mxu0  ;;  %v14902_v6 = vld [vmem:[%s20092_s4 + $0x1e8] ss:$16 sps:$4 sm:$0xff]  }
 0x614   : > { %v4343_v14 = vpop.f32.mrb[30].mxu0  ;;  %v14913_v12 = vld [vmem:[%s20092_s4 + $0x50c] ss:$16 sps:$4 sm:$0xff]  }
 0x615   : > { %v4385_v13 = vadd.f32 %v12079_v7, %v4374_v8  ;;  %v4375_v11 = vmul.f32 %v12078_v4, %v4343_v14  ;;  %v14067_v23 = vpop.f32.mrb[31].mxu0  ;;  %v14910_v8 = vld [vmem:[%s20092_s4 + $0x4] ss:$16 sps:$4 sm:$0xff]  }
 0x617   : > { %v17577_v28 = vmax.f32 %v4385_v13, 0.0  ;;  %v4386_v37 = vadd.f32 %v12079_v7, %v4375_v11  ;;  %v14908_v13 = vld [vmem:[%s20092_s4] ss:$16 sps:$4 sm:$0xff]   ;;  %v14911_v11 = vld [vmem:[%s20092_s4 + $0x508] ss:$16 sps:$4 sm:$0xff]  }
 0x619   : > { %4397 = vst [vmem:[#allocation5] sm:$0xff] %v17577_v28  ;;  %v4392_v51 = vmax.f32 %v4386_v37, 0.0  ;;  %v14916_v37 = vld [vmem:[%s20092_s4 + $0x24] ss:$16 sps:$4 sm:$0xff]  }
 0x61a   : > { %v4348_v52 = vpop.f32.mrb[32].mxu0 }
 0x61b   : > { %4398 = vst [vmem:[#allocation5 + $0x8] sm:$0xff] %v4392_v51  ;;  %v4376_v53 = vmul.f32 %v12078_v4, %v4348_v52  ;;  %v14070_v54 = vpop.f32.mrb[33].mxu0  ;;  %v14919_v51 = vld [vmem:[%s20092_s4 + $0x52c] ss:$16 sps:$4 sm:$0xff]   ;;  %v14914_v52 = vld [vmem:[%s20092_s4 + $0x20] ss:$16 sps:$4 sm:$0xff]  }
 0x61c   : > { %v4351_v55 = vpop.f32.mrb[34].mxu0  ;;  %v14922_v54 = vld [vmem:[%s20092_s4 + $0x44] ss:$16 sps:$4 sm:$0xff]  }
 0x61d   : > { %v4387_v56 = vadd.f32 %v12079_v7, %v4376_v53  ;;  %v4377_v57 = vmul.f32 %v12078_v4, %v4351_v55  ;;  %v14071_v58 = vpop.f32.mrb[35].mxu0  ;;  %v14917_v53 = vld [vmem:[%s20092_s4 + $0x528] ss:$16 sps:$4 sm:$0xff]   ;;  %v14925_v55 = vld [vmem:[%s20092_s4 + $0x54c] ss:$16 sps:$4 sm:$0xff]  }
 0x61e   : > { %v14928_v58 = vld [vmem:[%s20092_s4 + $0x64] ss:$16 sps:$4 sm:$0xff]  }
 0x61f   : > { %v4393_v24 = vmax.f32 %v4387_v56, 0.0  ;;  %v4388_v30 = vadd.f32 %v12079_v7, %v4377_v57  ;;  %v14920_v56 = vld [vmem:[%s20092_s4 + $0x40] ss:$16 sps:$4 sm:$0xff]   ;;  %v14923_v57 = vld [vmem:[%s20092_s4 + $0x548] ss:$16 sps:$4 sm:$0xff]  }
 0x621   : > { %4399 = vst [vmem:[#allocation5 + $0x10] sm:$0xff] %v4393_v24  ;;  %v4394_v36 = vmax.f32 %v4388_v30, 0.0  ;;  %v14931_v24 = vld [vmem:[%s20092_s4 + $0x56c] ss:$16 sps:$4 sm:$0xff]   ;;  %v14926_v30 = vld [vmem:[%s20092_s4 + $0x60] ss:$16 sps:$4 sm:$0xff]  }
 0x622   : > { %v4356_v22 = vpop.f32.mrb[36].mxu0  ;;  %v4469_v20 = vld [vmem:[#allocation5 + $0x1] sm:$0xff] }
 0x623   : > { %v5547_v46 = vld [vmem:[#allocation5 + $0x4] sm:$0xff]  ;;  %4400 = vst [vmem:[#allocation5 + $0x18] sm:$0xff] %v4394_v36  ;;  %v4378_v47 = vmul.f32 %v12078_v4, %v4356_v22  ;;  %v14074_v48 = vpop.f32.mrb[37].mxu0  ;;  %v17586_v49 = vpack.c.bf16 %v4469_v20, %v4469_v20  ;;  %v14929_v36 = vld [vmem:[%s20092_s4 + $0x568] ss:$16 sps:$4 sm:$0xff]  }
 0x624   : > { %v17588_v50 = vpack.c.bf16 %v5547_v46, %v5547_v46  ;;  %v4359_v61 = vpop.f32.mrb[38].mxu0  ;;  %v14937_v22 = vld [vmem:[%s20092_s4 + $0x58c] ss:$16 sps:$4 sm:$0xff]   ;;  %v14935_v20 = vld [vmem:[%s20092_s4 + $0x588] ss:$16 sps:$4 sm:$0xff]  }
 0x625   : > { %v4389_v62 = vadd.f32 %v12079_v7, %v4378_v47  ;;  %v4379_v63 = vmul.f32 %v12078_v4, %v4359_v61  ;;  %v14075_v0 = vpop.f32.mrb[39].mxu0  ;;  %4664 = vmatmul.mubr.bf16.vlgmr.msra.gmra.mrb[40].mxu0 %v17586_v49  ;;  %v14907_v4 = vld [vmem:[%s20092_s4 + $0x5e4] ss:$16 sps:$4 sm:$0xff]   ;;  %v14943_v47 = vld [vmem:[%s20092_s4 + $0x5ac] ss:$16 sps:$4 sm:$0xff]  }
 0x626   : > { %5783 = vmatmul.mubr.bf16.vlgmr.msra.gmra.mrb[0].mxu1 %v17588_v50  ;;  %4673 = vmatpush1.bf16.msra.mxu0 %v14860_v19  ;;  %v14934_v19 = vld [vmem:[%s20092_s4 + $0x84] ss:$16 sps:$4 sm:$0xff]   ;;  %v14938_v48 = vld [vmem:[%s20092_s4 + $0xa0] ss:$16 sps:$4 sm:$0xff]   ;;  %v14955_v0 = vld [vmem:[%s20092_s4 + $0x5ec] ss:$16 sps:$4 sm:$0xff]  }
 0x627   : > { %5990 = vmatpush1.bf16.msra.mxu1 %v14863_v45  ;;  %v4395_v3 = vmax.f32 %v4389_v62, 0.0  ;;  %v4390_v5 = vadd.f32 %v12079_v7, %v4379_v63  ;;  %4674 = vmatprep.subr.bf16.mxu0 %v14868_v59  ;;  %v14905_v7 = vld [vmem:[%s20092_s4 + $0x5e0] ss:$16 sps:$4 sm:$0xff]   ;;  %v14940_v46 = vld [vmem:[%s20092_s4 + $0xa4] ss:$16 sps:$4 sm:$0xff]  }
 0x628   : > { %5991 = vmatprep.subr.bf16.mxu1 %v14871_v60  ;;  %4704 = vmatprep.mubr.bf16.mxu0 %v16057_v44  ;;  %v5827_v14 = vld [vmem:[#allocation5 + $0x9] sm:$0xff]  ;;  %v14949_v60 = vld [vmem:[%s20092_s4 + $0x5cc] ss:$16 sps:$4 sm:$0xff]  }
 0x629   : > { %6021 = vmatprep.mubr.bf16.mxu1 %v16057_v44  ;;  %4401 = vst [vmem:[#allocation5 + $0x20] sm:$0xff] %v4395_v3  ;;  %v4396_v21 = vmax.f32 %v4390_v5, 0.0  ;;  %v17690_v23 = vpack.c.bf16 %v5827_v14, %v5827_v14  ;;  %v14932_v45 = vld [vmem:[%s20092_s4 + $0x80] ss:$16 sps:$4 sm:$0xff]   ;;  %v14946_v59 = vld [vmem:[%s20092_s4 + $0xc4] ss:$16 sps:$4 sm:$0xff]  }
 0x62a   : > { %4675 = vmatpush1.bf16.msra.mxu0 %v14866_v1  ;;  %v14944_v61 = vld [vmem:[%s20092_s4 + $0xc0] ss:$16 sps:$4 sm:$0xff]   ;;  %v14947_v62 = vld [vmem:[%s20092_s4 + $0x5c8] ss:$16 sps:$4 sm:$0xff]   ;;  %v14952_v63 = vld [vmem:[%s20092_s4 + $0xe4] ss:$16 sps:$4 sm:$0xff]  }
 0x62b   : > { %5992 = vmatpush1.bf16.msra.mxu1 %v14869_v2  ;;  %4402 = vst [vmem:[#allocation5 + $0x28] sm:$0xff] %v4396_v21  ;;  %4676 = vmatprep.subr.bf16.mxu0 %v14874_v18  ;;  %v14950_v1 = vld [vmem:[%s20092_s4 + $0xe0] ss:$16 sps:$4 sm:$0xff]   ;;  %v14953_v2 = vld [vmem:[%s20092_s4 + $0x5e8] ss:$16 sps:$4 sm:$0xff]   ;;  %v17794_v21 = vpack.c.bf16 %v17577_v28, %v17577_v28 }
 0x62c   : > { %5993 = vmatprep.subr.bf16.mxu1 %v14877_v10  ;;  %v14958_v3 = vld [vmem:[%s20092_s4 + $0xc] ss:$16 sps:$4 sm:$0xff]   ;;  %v14961_v5 = vld [vmem:[%s20092_s4 + $0x604] ss:$16 sps:$4 sm:$0xff]   ;;  %v14956_v18 = vld [vmem:[%s20092_s4 + $0x8] ss:$16 sps:$4 sm:$0xff]  }
 0x62d   : > { %v14959_v10 = vld [vmem:[%s20092_s4 + $0x600] ss:$16 sps:$4 sm:$0xff]   ;;  %v14962_v28 = vld [vmem:[%s20092_s4 + $0x28] ss:$16 sps:$4 sm:$0xff]   ;;  %v15003_v14 = vld [vmem:[%s20092_s4 + $0x6e4] ss:$16 sps:$4 sm:$0xff]  }
 0x62e   : > { %4677 = vmatpush1.bf16.msra.mxu0 %v14872_v25  ;;  %v14964_v25 = vld [vmem:[%s20092_s4 + $0x2c] ss:$16 sps:$4 sm:$0xff]  }
 0x62f   : > { %5994 = vmatpush1.bf16.msra.mxu1 %v14875_v31  ;;  %4678 = vmatprep.subr.bf16.mxu0 %v14880_v33  ;;  %v14967_v31 = vld [vmem:[%s20092_s4 + $0x624] ss:$16 sps:$4 sm:$0xff]   ;;  %v14965_v33 = vld [vmem:[%s20092_s4 + $0x620] ss:$16 sps:$4 sm:$0xff]  }
 0x630   : > { %5995 = vmatprep.subr.bf16.mxu1 %v14883_v9  ;;  %v14970_v9 = vld [vmem:[%s20092_s4 + $0x4c] ss:$16 sps:$4 sm:$0xff]  }
 0x632   : > { %4679 = vmatpush1.bf16.msra.mxu0 %v14878_v29  ;;  %v14973_v29 = vld [vmem:[%s20092_s4 + $0x644] ss:$16 sps:$4 sm:$0xff]  }
 0x633   : > { %5996 = vmatpush1.bf16.msra.mxu1 %v14881_v34  ;;  %4680 = vmatprep.subr.bf16.mxu0 %v14886_v35  ;;  %v14968_v34 = vld [vmem:[%s20092_s4 + $0x48] ss:$16 sps:$4 sm:$0xff]   ;;  %v14971_v35 = vld [vmem:[%s20092_s4 + $0x640] ss:$16 sps:$4 sm:$0xff]  }
 0x634   : > { %5997 = vmatprep.subr.bf16.mxu1 %v14889_v15  ;;  %v14976_v15 = vld [vmem:[%s20092_s4 + $0x6c] ss:$16 sps:$4 sm:$0xff]  }
 0x636   : > { %4681 = vmatpush1.bf16.msra.mxu0 %v14884_v16  ;;  %v14979_v16 = vld [vmem:[%s20092_s4 + $0x664] ss:$16 sps:$4 sm:$0xff]  }
 0x637   : > { %5998 = vmatpush1.bf16.msra.mxu1 %v14887_v26  ;;  %4682 = vmatprep.subr.bf16.mxu0 %v14892_v17  ;;  %v14974_v26 = vld [vmem:[%s20092_s4 + $0x68] ss:$16 sps:$4 sm:$0xff]   ;;  %v14977_v17 = vld [vmem:[%s20092_s4 + $0x660] ss:$16 sps:$4 sm:$0xff]  }
 0x638   : > { %5999 = vmatprep.subr.bf16.mxu1 %v14895_v32  ;;  %v14982_v32 = vld [vmem:[%s20092_s4 + $0x8c] ss:$16 sps:$4 sm:$0xff]  }
 0x63a   : > { %4683 = vmatpush1.bf16.msra.mxu0 %v14890_v38  ;;  %v14985_v38 = vld [vmem:[%s20092_s4 + $0x684] ss:$16 sps:$4 sm:$0xff]  }
 0x63b   : > { %6000 = vmatpush1.bf16.msra.mxu1 %v14893_v39  ;;  %4684 = vmatprep.subr.bf16.mxu0 %v14898_v27  ;;  %v14980_v39 = vld [vmem:[%s20092_s4 + $0x88] ss:$16 sps:$4 sm:$0xff]   ;;  %v14983_v27 = vld [vmem:[%s20092_s4 + $0x680] ss:$16 sps:$4 sm:$0xff]  }
 0x63c   : > { %6001 = vmatprep.subr.bf16.mxu1 %v14901_v40  ;;  %v14988_v40 = vld [vmem:[%s20092_s4 + $0xac] ss:$16 sps:$4 sm:$0xff]  }
 0x63e   : > { %4685 = vmatpush1.bf16.msra.mxu0 %v14896_v41  ;;  %v14991_v41 = vld [vmem:[%s20092_s4 + $0x6a4] ss:$16 sps:$4 sm:$0xff]  }
 0x63f   : > { %6002 = vmatpush1.bf16.msra.mxu1 %v14899_v42  ;;  %4686 = vmatprep.subr.bf16.mxu0 %v14904_v43  ;;  %v14986_v42 = vld [vmem:[%s20092_s4 + $0xa8] ss:$16 sps:$4 sm:$0xff]   ;;  %v14989_v43 = vld [vmem:[%s20092_s4 + $0x6a0] ss:$16 sps:$4 sm:$0xff]  }
 0x640   : > { %6003 = vmatprep.subr.bf16.mxu1 %v14907_v4  ;;  %v14994_v4 = vld [vmem:[%s20092_s4 + $0xcc] ss:$16 sps:$4 sm:$0xff]  }
 0x642   : > { %4687 = vmatpush1.bf16.msra.mxu0 %v14902_v6  ;;  %v14997_v6 = vld [vmem:[%s20092_s4 + $0x6c4] ss:$16 sps:$4 sm:$0xff]  }
 0x643   : > { %6004 = vmatpush1.bf16.msra.mxu1 %v14905_v7  ;;  %4873 = vmatprep.subr.bf16.mxu0 %v14910_v8  ;;  %v14992_v7 = vld [vmem:[%s20092_s4 + $0xc8] ss:$16 sps:$4 sm:$0xff]   ;;  %v14995_v8 = vld [vmem:[%s20092_s4 + $0x6c0] ss:$16 sps:$4 sm:$0xff]  }
 0x644   : > { %6030 = vmatprep.subr.bf16.mxu1 %v14913_v12  ;;  %v15000_v12 = vld [vmem:[%s20092_s4 + $0xec] ss:$16 sps:$4 sm:$0xff]  }
 0x645   : > { %4705 = vmatmul.mubr.bf16.vlgmr.msra.gmra.mrb[44].mxu0 %v17586_v49  ;;  %v14941_v49 = vld [vmem:[%s20092_s4 + $0x5a8] ss:$16 sps:$4 sm:$0xff]  }
 0x646   : > { %6022 = vmatmul.mubr.bf16.vlgmr.msra.gmra.mrb[4].mxu1 %v17690_v23  ;;  %4874 = vmatpush1.bf16.msra.mxu0 %v14908_v13  ;;  %v14998_v13 = vld [vmem:[%s20092_s4 + $0xe8] ss:$16 sps:$4 sm:$0xff]  }
 0x647   : > { %6031 = vmatpush1.bf16.msra.mxu1 %v14911_v11  ;;  %4875 = vmatprep.subr.bf16.mxu0 %v14916_v37  ;;  %v15001_v11 = vld [vmem:[%s20092_s4 + $0x6e0] ss:$16 sps:$4 sm:$0xff]   ;;  %v15009_v37 = vld [vmem:[%s20092_s4 + $0x60c] ss:$16 sps:$4 sm:$0xff]  }
 0x648   : > { %6032 = vmatprep.subr.bf16.mxu1 %v14919_v51  ;;  %4905 = vmatprep.mubr.bf16.mxu0 %v16057_v44  ;;  %v6107_v51 = vld [vmem:[#allocation5 + $0xa] sm:$0xff] }
 0x649   : > { %6062 = vmatprep.mubr.bf16.mxu1 %v16057_v44 }
 0x64a   : > { %4876 = vmatpush1.bf16.msra.mxu0 %v14914_v52  ;;  %v15004_v52 = vld [vmem:[%s20092_s4 + $0x200] ss:$16 sps:$4 sm:$0xff]  }
 0x64b   : > { %6033 = vmatpush1.bf16.msra.mxu1 %v14917_v53  ;;  %4877 = vmatprep.subr.bf16.mxu0 %v14922_v54  ;;  %v15007_v53 = vld [vmem:[%s20092_s4 + $0x608] ss:$16 sps:$4 sm:$0xff]   ;;  %v17896_v54 = vpack.c.bf16 %v6107_v51, %v6107_v51  ;;  %v15096_v51 = vld [vmem:[%s20092_s4 + $0x2ec] ss:$16 sps:$4 sm:$0xff]  }
 0x64c   : > { %6034 = vmatprep.subr.bf16.mxu1 %v14925_v55  ;;  %v15012_v55 = vld [vmem:[%s20092_s4 + $0x224] ss:$16 sps:$4 sm:$0xff]  }
 0x64e   : > { %4878 = vmatpush1.bf16.msra.mxu0 %v14920_v56  ;;  %v15015_v56 = vld [vmem:[%s20092_s4 + $0x62c] ss:$16 sps:$4 sm:$0xff]  }
 0x64f   : > { %6035 = vmatpush1.bf16.msra.mxu1 %v14923_v57  ;;  %4879 = vmatprep.subr.bf16.mxu0 %v14928_v58  ;;  %v15010_v57 = vld [vmem:[%s20092_s4 + $0x220] ss:$16 sps:$4 sm:$0xff]   ;;  %v15013_v58 = vld [vmem:[%s20092_s4 + $0x628] ss:$16 sps:$4 sm:$0xff]  }
 0x650   : > { %6036 = vmatprep.subr.bf16.mxu1 %v14931_v24  ;;  %v15018_v24 = vld [vmem:[%s20092_s4 + $0x244] ss:$16 sps:$4 sm:$0xff]  }
 0x652   : > { %4880 = vmatpush1.bf16.msra.mxu0 %v14926_v30  ;;  %v15021_v30 = vld [vmem:[%s20092_s4 + $0x64c] ss:$16 sps:$4 sm:$0xff]  }
 0x653   : > { %6037 = vmatpush1.bf16.msra.mxu1 %v14929_v36  ;;  %4881 = vmatprep.subr.bf16.mxu0 %v14934_v19  ;;  %v15016_v36 = vld [vmem:[%s20092_s4 + $0x240] ss:$16 sps:$4 sm:$0xff]   ;;  %v15019_v19 = vld [vmem:[%s20092_s4 + $0x648] ss:$16 sps:$4 sm:$0xff]  }
 0x654   : > { %6038 = vmatprep.subr.bf16.mxu1 %v14937_v22  ;;  %v15024_v22 = vld [vmem:[%s20092_s4 + $0x264] ss:$16 sps:$4 sm:$0xff]  }
 0x656   : > { %4882 = vmatpush1.bf16.msra.mxu0 %v14932_v45  ;;  %v15027_v45 = vld [vmem:[%s20092_s4 + $0x66c] ss:$16 sps:$4 sm:$0xff]  }
 0x657   : > { %6039 = vmatpush1.bf16.msra.mxu1 %v14935_v20  ;;  %4883 = vmatprep.subr.bf16.mxu0 %v14940_v46  ;;  %v15022_v20 = vld [vmem:[%s20092_s4 + $0x260] ss:$16 sps:$4 sm:$0xff]   ;;  %v15025_v46 = vld [vmem:[%s20092_s4 + $0x668] ss:$16 sps:$4 sm:$0xff]  }
 0x658   : > { %6040 = vmatprep.subr.bf16.mxu1 %v14943_v47  ;;  %v15030_v47 = vld [vmem:[%s20092_s4 + $0x284] ss:$16 sps:$4 sm:$0xff]  }
 0x65a   : > { %4884 = vmatpush1.bf16.msra.mxu0 %v14938_v48  ;;  %v15033_v48 = vld [vmem:[%s20092_s4 + $0x68c] ss:$16 sps:$4 sm:$0xff]  }
 0x65b   : > { %6041 = vmatpush1.bf16.msra.mxu1 %v14941_v49  ;;  %4885 = vmatprep.subr.bf16.mxu0 %v14946_v59  ;;  %v15028_v49 = vld [vmem:[%s20092_s4 + $0x280] ss:$16 sps:$4 sm:$0xff]   ;;  %v15031_v59 = vld [vmem:[%s20092_s4 + $0x688] ss:$16 sps:$4 sm:$0xff]  }
 0x65c   : > { %6042 = vmatprep.subr.bf16.mxu1 %v14949_v60  ;;  %v15036_v60 = vld [vmem:[%s20092_s4 + $0x2a4] ss:$16 sps:$4 sm:$0xff]  }
 0x65e   : > { %4886 = vmatpush1.bf16.msra.mxu0 %v14944_v61  ;;  %v15039_v61 = vld [vmem:[%s20092_s4 + $0x6ac] ss:$16 sps:$4 sm:$0xff]  }
 0x65f   : > { %6043 = vmatpush1.bf16.msra.mxu1 %v14947_v62  ;;  %4887 = vmatprep.subr.bf16.mxu0 %v14952_v63  ;;  %v15034_v62 = vld [vmem:[%s20092_s4 + $0x2a0] ss:$16 sps:$4 sm:$0xff]   ;;  %v15037_v63 = vld [vmem:[%s20092_s4 + $0x6a8] ss:$16 sps:$4 sm:$0xff]  }
 0x660   : > { %6044 = vmatprep.subr.bf16.mxu1 %v14955_v0  ;;  %v15042_v0 = vld [vmem:[%s20092_s4 + $0x2c4] ss:$16 sps:$4 sm:$0xff]  }
 0x662   : > { %4888 = vmatpush1.bf16.msra.mxu0 %v14950_v1  ;;  %v15045_v1 = vld [vmem:[%s20092_s4 + $0x6cc] ss:$16 sps:$4 sm:$0xff]  }
 0x663   : > { %6045 = vmatpush1.bf16.msra.mxu1 %v14953_v2  ;;  %4914 = vmatprep.subr.bf16.mxu0 %v14958_v3  ;;  %v15040_v2 = vld [vmem:[%s20092_s4 + $0x2c0] ss:$16 sps:$4 sm:$0xff]   ;;  %v15043_v3 = vld [vmem:[%s20092_s4 + $0x6c8] ss:$16 sps:$4 sm:$0xff]  }
 0x664   : > { %6269 = vmatprep.subr.bf16.mxu1 %v14961_v5  ;;  %v15048_v5 = vld [vmem:[%s20092_s4 + $0x2e4] ss:$16 sps:$4 sm:$0xff]  }
 0x665   : > { %4906 = vmatmul.mubr.bf16.vlgmr.msra.gmra.mrb[40].mxu0 %v17794_v21 }
 0x666   : > { %6063 = vmatmul.mubr.bf16.vlgmr.msra.gmra.mrb[0].mxu1 %v17690_v23  ;;  %4915 = vmatpush1.bf16.msra.mxu0 %v14956_v18  ;;  %v15006_v23 = vld [vmem:[%s20092_s4 + $0x204] ss:$16 sps:$4 sm:$0xff]   ;;  %v15051_v18 = vld [vmem:[%s20092_s4 + $0x6ec] ss:$16 sps:$4 sm:$0xff]  }
 0x667   : > { %6270 = vmatpush1.bf16.msra.mxu1 %v14959_v10  ;;  %4916 = vmatprep.subr.bf16.mxu0 %v14964_v25  ;;  %v15046_v10 = vld [vmem:[%s20092_s4 + $0x2e0] ss:$16 sps:$4 sm:$0xff]   ;;  %v15054_v25 = vld [vmem:[%s20092_s4 + $0x20c] ss:$16 sps:$4 sm:$0xff]  }
 0x668   : > { %6271 = vmatprep.subr.bf16.mxu1 %v14967_v31  ;;  %4946 = vmatprep.mubr.bf16.mxu0 %v16057_v44  ;;  %v15057_v31 = vld [vmem:[%s20092_s4 + $0x704] ss:$16 sps:$4 sm:$0xff]  }
 0x669   : > { %6301 = vmatprep.mubr.bf16.mxu1 %v16057_v44 }
 0x66a   : > { %4917 = vmatpush1.bf16.msra.mxu0 %v14962_v28  ;;  %v4987_v28 = vld [vmem:[#allocation5 + $0x2] sm:$0xff] }
 0x66b   : > { %6272 = vmatpush1.bf16.msra.mxu1 %v14965_v33  ;;  %4918 = vmatprep.subr.bf16.mxu0 %v14970_v9  ;;  %v15052_v33 = vld [vmem:[%s20092_s4 + $0x208] ss:$16 sps:$4 sm:$0xff]   ;;  %v15055_v9 = vld [vmem:[%s20092_s4 + $0x700] ss:$16 sps:$4 sm:$0xff]  }
 0x66c   : > { %6273 = vmatprep.subr.bf16.mxu1 %v14973_v29  ;;  %v17998_v29 = vpack.c.bf16 %v4987_v28, %v4987_v28  ;;  %v15144_v28 = vld [vmem:[%s20092_s4 + $0x3e4] ss:$16 sps:$4 sm:$0xff]  }
 0x66e   : > { %4919 = vmatpush1.bf16.msra.mxu0 %v14968_v34  ;;  %v15060_v34 = vld [vmem:[%s20092_s4 + $0x22c] ss:$16 sps:$4 sm:$0xff]  }
 0x66f   : > { %6274 = vmatpush1.bf16.msra.mxu1 %v14971_v35  ;;  %4920 = vmatprep.subr.bf16.mxu0 %v14976_v15  ;;  %v15063_v35 = vld [vmem:[%s20092_s4 + $0x724] ss:$16 sps:$4 sm:$0xff]   ;;  %v15058_v15 = vld [vmem:[%s20092_s4 + $0x228] ss:$16 sps:$4 sm:$0xff]  }
 0x670   : > { %6275 = vmatprep.subr.bf16.mxu1 %v14979_v16  ;;  %v15061_v16 = vld [vmem:[%s20092_s4 + $0x720] ss:$16 sps:$4 sm:$0xff]  }
 0x672   : > { %4921 = vmatpush1.bf16.msra.mxu0 %v14974_v26  ;;  %v15066_v26 = vld [vmem:[%s20092_s4 + $0x24c] ss:$16 sps:$4 sm:$0xff]  }
 0x673   : > { %6276 = vmatpush1.bf16.msra.mxu1 %v14977_v17  ;;  %4922 = vmatprep.subr.bf16.mxu0 %v14982_v32  ;;  %v15069_v17 = vld [vmem:[%s20092_s4 + $0x744] ss:$16 sps:$4 sm:$0xff]   ;;  %v15064_v32 = vld [vmem:[%s20092_s4 + $0x248] ss:$16 sps:$4 sm:$0xff]  }
 0x674   : > { %6277 = vmatprep.subr.bf16.mxu1 %v14985_v38  ;;  %v15067_v38 = vld [vmem:[%s20092_s4 + $0x740] ss:$16 sps:$4 sm:$0xff]  }
 0x676   : > { %4923 = vmatpush1.bf16.msra.mxu0 %v14980_v39  ;;  %v15072_v39 = vld [vmem:[%s20092_s4 + $0x26c] ss:$16 sps:$4 sm:$0xff]  }
 0x677   : > { %6278 = vmatpush1.bf16.msra.mxu1 %v14983_v27  ;;  %4924 = vmatprep.subr.bf16.mxu0 %v14988_v40  ;;  %v15075_v27 = vld [vmem:[%s20092_s4 + $0x764] ss:$16 sps:$4 sm:$0xff]   ;;  %v15070_v40 = vld [vmem:[%s20092_s4 + $0x268] ss:$16 sps:$4 sm:$0xff]  }
 0x678   : > { %6279 = vmatprep.subr.bf16.mxu1 %v14991_v41  ;;  %v15073_v41 = vld [vmem:[%s20092_s4 + $0x760] ss:$16 sps:$4 sm:$0xff]  }
 0x67a   : > { %4925 = vmatpush1.bf16.msra.mxu0 %v14986_v42  ;;  %v15078_v42 = vld [vmem:[%s20092_s4 + $0x28c] ss:$16 sps:$4 sm:$0xff]  }
 0x67b   : > { %6280 = vmatpush1.bf16.msra.mxu1 %v14989_v43  ;;  %4926 = vmatprep.subr.bf16.mxu0 %v14994_v4  ;;  %v15081_v43 = vld [vmem:[%s20092_s4 + $0x784] ss:$16 sps:$4 sm:$0xff]   ;;  %v15076_v4 = vld [vmem:[%s20092_s4 + $0x288] ss:$16 sps:$4 sm:$0xff]  }
 0x67c   : > { %6281 = vmatprep.subr.bf16.mxu1 %v14997_v6  ;;  %v15079_v6 = vld [vmem:[%s20092_s4 + $0x780] ss:$16 sps:$4 sm:$0xff]  }
 0x67e   : > { %4927 = vmatpush1.bf16.msra.mxu0 %v14992_v7  ;;  %v15084_v7 = vld [vmem:[%s20092_s4 + $0x2ac] ss:$16 sps:$4 sm:$0xff]  }
 0x67f   : > { %6282 = vmatpush1.bf16.msra.mxu1 %v14995_v8  ;;  %4928 = vmatprep.subr.bf16.mxu0 %v15000_v12  ;;  %v15087_v8 = vld [vmem:[%s20092_s4 + $0x7a4] ss:$16 sps:$4 sm:$0xff]   ;;  %v15082_v12 = vld [vmem:[%s20092_s4 + $0x2a8] ss:$16 sps:$4 sm:$0xff]  }
 0x680   : > { %6283 = vmatprep.subr.bf16.mxu1 %v15003_v14  ;;  %v15085_v14 = vld [vmem:[%s20092_s4 + $0x7a0] ss:$16 sps:$4 sm:$0xff]  }
 0x682   : > { %4929 = vmatpush1.bf16.msra.mxu0 %v14998_v13  ;;  %v15090_v13 = vld [vmem:[%s20092_s4 + $0x2cc] ss:$16 sps:$4 sm:$0xff]  }
 0x683   : > { %6284 = vmatpush1.bf16.msra.mxu1 %v15001_v11  ;;  %5149 = vmatprep.subr.bf16.mxu0 %v15006_v23  ;;  %v15093_v11 = vld [vmem:[%s20092_s4 + $0x7c4] ss:$16 sps:$4 sm:$0xff]   ;;  %v15088_v23 = vld [vmem:[%s20092_s4 + $0x2c8] ss:$16 sps:$4 sm:$0xff]  }
 0x684   : > { %6310 = vmatprep.subr.bf16.mxu1 %v15009_v37  ;;  %v15091_v37 = vld [vmem:[%s20092_s4 + $0x7c0] ss:$16 sps:$4 sm:$0xff]  }
 0x685   : > { %4947 = vmatmul.mubr.bf16.vlgmr.msra.gmra.mrb[44].mxu0 %v17794_v21  ;;  %v15049_v21 = vld [vmem:[%s20092_s4 + $0x6e8] ss:$16 sps:$4 sm:$0xff]  }
 0x686   : > { %6302 = vmatmul.mubr.bf16.vlgmr.msra.gmra.mrb[4].mxu1 %v17896_v54  ;;  %5150 = vmatpush1.bf16.msra.mxu0 %v15004_v52  ;;  %v15099_v52 = vld [vmem:[%s20092_s4 + $0x7e4] ss:$16 sps:$4 sm:$0xff]  }
 0x687   : > { %6311 = vmatpush1.bf16.msra.mxu1 %v15007_v53  ;;  %5151 = vmatprep.subr.bf16.mxu0 %v15012_v55  ;;  %v15094_v53 = vld [vmem:[%s20092_s4 + $0x2e8] ss:$16 sps:$4 sm:$0xff]   ;;  %v15102_v55 = vld [vmem:[%s20092_s4 + $0x304] ss:$16 sps:$4 sm:$0xff]  }
 0x688   : > { %6312 = vmatprep.subr.bf16.mxu1 %v15015_v56  ;;  %5181 = vmatprep.mubr.bf16.mxu0 %v16057_v44  ;;  %v15105_v56 = vld [vmem:[%s20092_s4 + $0x70c] ss:$16 sps:$4 sm:$0xff]  }
 0x689   : > { %6342 = vmatprep.mubr.bf16.mxu1 %v16057_v44 }
 0x68a   : > { %5152 = vmatpush1.bf16.msra.mxu0 %v15010_v57  ;;  %v6387_v57 = vld [vmem:[#allocation5 + $0xb] sm:$0xff] }
 0x68b   : > { %6313 = vmatpush1.bf16.msra.mxu1 %v15013_v58  ;;  %5153 = vmatprep.subr.bf16.mxu0 %v15018_v24  ;;  %v15100_v58 = vld [vmem:[%s20092_s4 + $0x300] ss:$16 sps:$4 sm:$0xff]   ;;  %v15103_v24 = vld [vmem:[%s20092_s4 + $0x708] ss:$16 sps:$4 sm:$0xff]  }
 0x68c   : > { %6314 = vmatprep.subr.bf16.mxu1 %v15021_v30  ;;  %v18100_v30 = vpack.c.bf16 %v6387_v57, %v6387_v57  ;;  %v15192_v57 = vld [vmem:[%s20092_s4 + $0x3ec] ss:$16 sps:$4 sm:$0xff]  }
 0x68e   : > { %5154 = vmatpush1.bf16.msra.mxu0 %v15016_v36  ;;  %v15108_v36 = vld [vmem:[%s20092_s4 + $0x324] ss:$16 sps:$4 sm:$0xff]  }
 0x68f   : > { %6315 = vmatpush1.bf16.msra.mxu1 %v15019_v19  ;;  %5155 = vmatprep.subr.bf16.mxu0 %v15024_v22  ;;  %v15111_v19 = vld [vmem:[%s20092_s4 + $0x72c] ss:$16 sps:$4 sm:$0xff]   ;;  %v15106_v22 = vld [vmem:[%s20092_s4 + $0x320] ss:$16 sps:$4 sm:$0xff]  }
 0x690   : > { %6316 = vmatprep.subr.bf16.mxu1 %v15027_v45  ;;  %v15109_v45 = vld [vmem:[%s20092_s4 + $0x728] ss:$16 sps:$4 sm:$0xff]  }
 0x692   : > { %5156 = vmatpush1.bf16.msra.mxu0 %v15022_v20  ;;  %v15114_v20 = vld [vmem:[%s20092_s4 + $0x344] ss:$16 sps:$4 sm:$0xff]  }
 0x693   : > { %6317 = vmatpush1.bf16.msra.mxu1 %v15025_v46  ;;  %5157 = vmatprep.subr.bf16.mxu0 %v15030_v47  ;;  %v15117_v46 = vld [vmem:[%s20092_s4 + $0x74c] ss:$16 sps:$4 sm:$0xff]   ;;  %v15112_v47 = vld [vmem:[%s20092_s4 + $0x340] ss:$16 sps:$4 sm:$0xff]  }
 0x694   : > { %6318 = vmatprep.subr.bf16.mxu1 %v15033_v48  ;;  %v15115_v48 = vld [vmem:[%s20092_s4 + $0x748] ss:$16 sps:$4 sm:$0xff]  }
 0x696   : > { %5158 = vmatpush1.bf16.msra.mxu0 %v15028_v49  ;;  %v15120_v49 = vld [vmem:[%s20092_s4 + $0x364] ss:$16 sps:$4 sm:$0xff]  }
 0x697   : > { %6319 = vmatpush1.bf16.msra.mxu1 %v15031_v59  ;;  %5159 = vmatprep.subr.bf16.mxu0 %v15036_v60  ;;  %v15123_v59 = vld [vmem:[%s20092_s4 + $0x76c] ss:$16 sps:$4 sm:$0xff]   ;;  %v15118_v60 = vld [vmem:[%s20092_s4 + $0x360] ss:$16 sps:$4 sm:$0xff]  }
 0x698   : > { %6320 = vmatprep.subr.bf16.mxu1 %v15039_v61  ;;  %v15121_v61 = vld [vmem:[%s20092_s4 + $0x768] ss:$16 sps:$4 sm:$0xff]  }
 0x69a   : > { %5160 = vmatpush1.bf16.msra.mxu0 %v15034_v62  ;;  %v15126_v62 = vld [vmem:[%s20092_s4 + $0x384] ss:$16 sps:$4 sm:$0xff]  }
 0x69b   : > { %6321 = vmatpush1.bf16.msra.mxu1 %v15037_v63  ;;  %5161 = vmatprep.subr.bf16.mxu0 %v15042_v0  ;;  %v15129_v63 = vld [vmem:[%s20092_s4 + $0x78c] ss:$16 sps:$4 sm:$0xff]   ;;  %v15124_v0 = vld [vmem:[%s20092_s4 + $0x380] ss:$16 sps:$4 sm:$0xff]  }
 0x69c   : > { %6322 = vmatprep.subr.bf16.mxu1 %v15045_v1  ;;  %v15127_v1 = vld [vmem:[%s20092_s4 + $0x788] ss:$16 sps:$4 sm:$0xff]  }
 0x69e   : > { %5162 = vmatpush1.bf16.msra.mxu0 %v15040_v2  ;;  %v15132_v2 = vld [vmem:[%s20092_s4 + $0x3a4] ss:$16 sps:$4 sm:$0xff]  }
 0x69f   : > { %6323 = vmatpush1.bf16.msra.mxu1 %v15043_v3  ;;  %5163 = vmatprep.subr.bf16.mxu0 %v15048_v5  ;;  %v15135_v3 = vld [vmem:[%s20092_s4 + $0x7ac] ss:$16 sps:$4 sm:$0xff]   ;;  %v15130_v5 = vld [vmem:[%s20092_s4 + $0x3a0] ss:$16 sps:$4 sm:$0xff]  }
 0x6a0   : > { %6324 = vmatprep.subr.bf16.mxu1 %v15051_v18  ;;  %v15133_v18 = vld [vmem:[%s20092_s4 + $0x7a8] ss:$16 sps:$4 sm:$0xff]  }
 0x6a2   : > { %5164 = vmatpush1.bf16.msra.mxu0 %v15046_v10  ;;  %v15138_v10 = vld [vmem:[%s20092_s4 + $0x3c4] ss:$16 sps:$4 sm:$0xff]  }
 0x6a3   : > { %6325 = vmatpush1.bf16.msra.mxu1 %v15049_v21  ;;  %5190 = vmatprep.subr.bf16.mxu0 %v15054_v25  ;;  %v15141_v21 = vld [vmem:[%s20092_s4 + $0x7cc] ss:$16 sps:$4 sm:$0xff]   ;;  %v15136_v25 = vld [vmem:[%s20092_s4 + $0x3c0] ss:$16 sps:$4 sm:$0xff]  }
 0x6a4   : > { %6549 = vmatprep.subr.bf16.mxu1 %v15057_v31  ;;  %v15139_v31 = vld [vmem:[%s20092_s4 + $0x7c8] ss:$16 sps:$4 sm:$0xff]  }
 0x6a5   : > { %5182 = vmatmul.mubr.bf16.vlgmr.msra.gmra.mrb[40].mxu0 %v17998_v29 }
 0x6a6   : > { %6343 = vmatmul.mubr.bf16.vlgmr.msra.gmra.mrb[0].mxu1 %v17896_v54  ;;  %5191 = vmatpush1.bf16.msra.mxu0 %v15052_v33  ;;  %v15097_v54 = vld [vmem:[%s20092_s4 + $0x7e0] ss:$16 sps:$4 sm:$0xff]   ;;  %v15147_v33 = vld [vmem:[%s20092_s4 + $0x7ec] ss:$16 sps:$4 sm:$0xff]  }
 0x6a7   : > { %6550 = vmatpush1.bf16.msra.mxu1 %v15055_v9  ;;  %5192 = vmatprep.subr.bf16.mxu0 %v15060_v34  ;;  %v15142_v9 = vld [vmem:[%s20092_s4 + $0x3e0] ss:$16 sps:$4 sm:$0xff]   ;;  %v15150_v34 = vld [vmem:[%s20092_s4 + $0x30c] ss:$16 sps:$4 sm:$0xff]  }
 0x6a8   : > { %6551 = vmatprep.subr.bf16.mxu1 %v15063_v35  ;;  %5222 = vmatprep.mubr.bf16.mxu0 %v16057_v44  ;;  %v15153_v35 = vld [vmem:[%s20092_s4 + $0x804] ss:$16 sps:$4 sm:$0xff]  }
 0x6a9   : > { %6581 = vmatprep.mubr.bf16.mxu1 %v16057_v44 }
 0x6aa   : > { %5193 = vmatpush1.bf16.msra.mxu0 %v15058_v15  ;;  %v5267_v15 = vld [vmem:[#allocation5 + $0x3] sm:$0xff] }
 0x6ab   : > { %6552 = vmatpush1.bf16.msra.mxu1 %v15061_v16  ;;  %5194 = vmatprep.subr.bf16.mxu0 %v15066_v26  ;;  %v15148_v16 = vld [vmem:[%s20092_s4 + $0x308] ss:$16 sps:$4 sm:$0xff]   ;;  %v15151_v26 = vld [vmem:[%s20092_s4 + $0x800] ss:$16 sps:$4 sm:$0xff]  }
 0x6ac   : > { %6553 = vmatprep.subr.bf16.mxu1 %v15069_v17  ;;  %v18202_v17 = vpack.c.bf16 %v5267_v15, %v5267_v15  ;;  %v15240_v15 = vld [vmem:[%s20092_s4 + $0x4e4] ss:$16 sps:$4 sm:$0xff]  }
 0x6ae   : > { %5195 = vmatpush1.bf16.msra.mxu0 %v15064_v32  ;;  %v15156_v32 = vld [vmem:[%s20092_s4 + $0x32c] ss:$16 sps:$4 sm:$0xff]  }
 0x6af   : > { %6554 = vmatpush1.bf16.msra.mxu1 %v15067_v38  ;;  %5196 = vmatprep.subr.bf16.mxu0 %v15072_v39  ;;  %v15159_v38 = vld [vmem:[%s20092_s4 + $0x824] ss:$16 sps:$4 sm:$0xff]   ;;  %v15154_v39 = vld [vmem:[%s20092_s4 + $0x328] ss:$16 sps:$4 sm:$0xff]  }
 0x6b0   : > { %6555 = vmatprep.subr.bf16.mxu1 %v15075_v27  ;;  %v15157_v27 = vld [vmem:[%s20092_s4 + $0x820] ss:$16 sps:$4 sm:$0xff]  }
 0x6b2   : > { %5197 = vmatpush1.bf16.msra.mxu0 %v15070_v40  ;;  %v15162_v40 = vld [vmem:[%s20092_s4 + $0x34c] ss:$16 sps:$4 sm:$0xff]  }
 0x6b3   : > { %6556 = vmatpush1.bf16.msra.mxu1 %v15073_v41  ;;  %5198 = vmatprep.subr.bf16.mxu0 %v15078_v42  ;;  %v15165_v41 = vld [vmem:[%s20092_s4 + $0x844] ss:$16 sps:$4 sm:$0xff]   ;;  %v15160_v42 = vld [vmem:[%s20092_s4 + $0x348] ss:$16 sps:$4 sm:$0xff]  }
 0x6b4   : > { %6557 = vmatprep.subr.bf16.mxu1 %v15081_v43  ;;  %v15163_v43 = vld [vmem:[%s20092_s4 + $0x840] ss:$16 sps:$4 sm:$0xff]  }
 0x6b6   : > { %5199 = vmatpush1.bf16.msra.mxu0 %v15076_v4  ;;  %v15168_v4 = vld [vmem:[%s20092_s4 + $0x36c] ss:$16 sps:$4 sm:$0xff]  }
 0x6b7   : > { %6558 = vmatpush1.bf16.msra.mxu1 %v15079_v6  ;;  %5200 = vmatprep.subr.bf16.mxu0 %v15084_v7  ;;  %v15171_v6 = vld [vmem:[%s20092_s4 + $0x864] ss:$16 sps:$4 sm:$0xff]   ;;  %v15166_v7 = vld [vmem:[%s20092_s4 + $0x368] ss:$16 sps:$4 sm:$0xff]  }
 0x6b8   : > { %6559 = vmatprep.subr.bf16.mxu1 %v15087_v8  ;;  %v15169_v8 = vld [vmem:[%s20092_s4 + $0x860] ss:$16 sps:$4 sm:$0xff]  }
 0x6ba   : > { %5201 = vmatpush1.bf16.msra.mxu0 %v15082_v12  ;;  %v15174_v12 = vld [vmem:[%s20092_s4 + $0x38c] ss:$16 sps:$4 sm:$0xff]  }
 0x6bb   : > { %6560 = vmatpush1.bf16.msra.mxu1 %v15085_v14  ;;  %5202 = vmatprep.subr.bf16.mxu0 %v15090_v13  ;;  %v15177_v14 = vld [vmem:[%s20092_s4 + $0x884] ss:$16 sps:$4 sm:$0xff]   ;;  %v15172_v13 = vld [vmem:[%s20092_s4 + $0x388] ss:$16 sps:$4 sm:$0xff]  }
 0x6bc   : > { %6561 = vmatprep.subr.bf16.mxu1 %v15093_v11  ;;  %v15175_v11 = vld [vmem:[%s20092_s4 + $0x880] ss:$16 sps:$4 sm:$0xff]  }
 0x6be   : > { %5203 = vmatpush1.bf16.msra.mxu0 %v15088_v23  ;;  %v15180_v23 = vld [vmem:[%s20092_s4 + $0x3ac] ss:$16 sps:$4 sm:$0xff]  }
 0x6bf   : > { %6562 = vmatpush1.bf16.msra.mxu1 %v15091_v37  ;;  %5204 = vmatprep.subr.bf16.mxu0 %v15096_v51  ;;  %v15183_v37 = vld [vmem:[%s20092_s4 + $0x8a4] ss:$16 sps:$4 sm:$0xff]   ;;  %v15178_v51 = vld [vmem:[%s20092_s4 + $0x3a8] ss:$16 sps:$4 sm:$0xff]  }
 0x6c0   : > { %6563 = vmatprep.subr.bf16.mxu1 %v15099_v52  ;;  %v15181_v52 = vld [vmem:[%s20092_s4 + $0x8a0] ss:$16 sps:$4 sm:$0xff]  }
 0x6c2   : > { %5205 = vmatpush1.bf16.msra.mxu0 %v15094_v53  ;;  %v15186_v53 = vld [vmem:[%s20092_s4 + $0x3cc] ss:$16 sps:$4 sm:$0xff]  }
 0x6c3   : > { %6564 = vmatpush1.bf16.msra.mxu1 %v15097_v54  ;;  %5429 = vmatprep.subr.bf16.mxu0 %v15102_v55  ;;  %v15189_v54 = vld [vmem:[%s20092_s4 + $0x8c4] ss:$16 sps:$4 sm:$0xff]   ;;  %v15184_v55 = vld [vmem:[%s20092_s4 + $0x3c8] ss:$16 sps:$4 sm:$0xff]  }
 0x6c4   : > { %6590 = vmatprep.subr.bf16.mxu1 %v15105_v56  ;;  %v15187_v56 = vld [vmem:[%s20092_s4 + $0x8c0] ss:$16 sps:$4 sm:$0xff]  }
 0x6c5   : > { %5223 = vmatmul.mubr.bf16.vlgmr.msra.gmra.mrb[44].mxu0 %v17998_v29  ;;  %v15145_v29 = vld [vmem:[%s20092_s4 + $0x7e8] ss:$16 sps:$4 sm:$0xff]  }
 0x6c6   : > { %6582 = vmatmul.mubr.bf16.vlgmr.msra.gmra.mrb[4].mxu1 %v18100_v30  ;;  %5430 = vmatpush1.bf16.msra.mxu0 %v15100_v58  ;;  %v15195_v58 = vld [vmem:[%s20092_s4 + $0x8e4] ss:$16 sps:$4 sm:$0xff]  }
 0x6c7   : > { %6591 = vmatpush1.bf16.msra.mxu1 %v15103_v24  ;;  %5431 = vmatprep.subr.bf16.mxu0 %v15108_v36  ;;  %v15190_v24 = vld [vmem:[%s20092_s4 + $0x3e8] ss:$16 sps:$4 sm:$0xff]   ;;  %v15198_v36 = vld [vmem:[%s20092_s4 + $0x404] ss:$16 sps:$4 sm:$0xff]  }
 0x6c8   : > { %6592 = vmatprep.subr.bf16.mxu1 %v15111_v19  ;;  %5461 = vmatprep.mubr.bf16.mxu0 %v16057_v44  ;;  %v15201_v19 = vld [vmem:[%s20092_s4 + $0x80c] ss:$16 sps:$4 sm:$0xff]  }
 0x6c9   : > { %6622 = vmatprep.mubr.bf16.mxu1 %v16057_v44 }
 0x6ca   : > { %5432 = vmatpush1.bf16.msra.mxu0 %v15106_v22  ;;  %v6667_v22 = vld [vmem:[#allocation5 + $0xc] sm:$0xff] }
 0x6cb   : > { %6593 = vmatpush1.bf16.msra.mxu1 %v15109_v45  ;;  %5433 = vmatprep.subr.bf16.mxu0 %v15114_v20  ;;  %v15196_v45 = vld [vmem:[%s20092_s4 + $0x400] ss:$16 sps:$4 sm:$0xff]   ;;  %v15199_v20 = vld [vmem:[%s20092_s4 + $0x808] ss:$16 sps:$4 sm:$0xff]  }
 0x6cc   : > { %6594 = vmatprep.subr.bf16.mxu1 %v15117_v46  ;;  %v18304_v46 = vpack.c.bf16 %v6667_v22, %v6667_v22  ;;  %v15286_v22 = vld [vmem:[%s20092_s4 + $0x9c8] ss:$16 sps:$4 sm:$0xff]  }
 0x6ce   : > { %5434 = vmatpush1.bf16.msra.mxu0 %v15112_v47  ;;  %v15204_v47 = vld [vmem:[%s20092_s4 + $0x424] ss:$16 sps:$4 sm:$0xff]  }
 0x6cf   : > { %6595 = vmatpush1.bf16.msra.mxu1 %v15115_v48  ;;  %5435 = vmatprep.subr.bf16.mxu0 %v15120_v49  ;;  %v15207_v48 = vld [vmem:[%s20092_s4 + $0x82c] ss:$16 sps:$4 sm:$0xff]   ;;  %v15202_v49 = vld [vmem:[%s20092_s4 + $0x420] ss:$16 sps:$4 sm:$0xff]  }
 0x6d0   : > { %6596 = vmatprep.subr.bf16.mxu1 %v15123_v59  ;;  %v15205_v59 = vld [vmem:[%s20092_s4 + $0x828] ss:$16 sps:$4 sm:$0xff]  }
 0x6d2   : > { %5436 = vmatpush1.bf16.msra.mxu0 %v15118_v60  ;;  %v15210_v60 = vld [vmem:[%s20092_s4 + $0x444] ss:$16 sps:$4 sm:$0xff]  }
 0x6d3   : > { %6597 = vmatpush1.bf16.msra.mxu1 %v15121_v61  ;;  %5437 = vmatprep.subr.bf16.mxu0 %v15126_v62  ;;  %v15213_v61 = vld [vmem:[%s20092_s4 + $0x84c] ss:$16 sps:$4 sm:$0xff]   ;;  %v15208_v62 = vld [vmem:[%s20092_s4 + $0x440] ss:$16 sps:$4 sm:$0xff]  }
 0x6d4   : > { %6598 = vmatprep.subr.bf16.mxu1 %v15129_v63  ;;  %v15211_v63 = vld [vmem:[%s20092_s4 + $0x848] ss:$16 sps:$4 sm:$0xff]  }
 0x6d6   : > { %5438 = vmatpush1.bf16.msra.mxu0 %v15124_v0  ;;  %v15216_v0 = vld [vmem:[%s20092_s4 + $0x464] ss:$16 sps:$4 sm:$0xff]  }
 0x6d7   : > { %6599 = vmatpush1.bf16.msra.mxu1 %v15127_v1  ;;  %5439 = vmatprep.subr.bf16.mxu0 %v15132_v2  ;;  %v15219_v1 = vld [vmem:[%s20092_s4 + $0x86c] ss:$16 sps:$4 sm:$0xff]   ;;  %v15214_v2 = vld [vmem:[%s20092_s4 + $0x460] ss:$16 sps:$4 sm:$0xff]  }
 0x6d8   : > { %6600 = vmatprep.subr.bf16.mxu1 %v15135_v3  ;;  %v15217_v3 = vld [vmem:[%s20092_s4 + $0x868] ss:$16 sps:$4 sm:$0xff]  }
 0x6da   : > { %5440 = vmatpush1.bf16.msra.mxu0 %v15130_v5  ;;  %v15222_v5 = vld [vmem:[%s20092_s4 + $0x484] ss:$16 sps:$4 sm:$0xff]  }
 0x6db   : > { %6601 = vmatpush1.bf16.msra.mxu1 %v15133_v18  ;;  %5441 = vmatprep.subr.bf16.mxu0 %v15138_v10  ;;  %v15225_v18 = vld [vmem:[%s20092_s4 + $0x88c] ss:$16 sps:$4 sm:$0xff]   ;;  %v15220_v10 = vld [vmem:[%s20092_s4 + $0x480] ss:$16 sps:$4 sm:$0xff]  }
 0x6dc   : > { %6602 = vmatprep.subr.bf16.mxu1 %v15141_v21  ;;  %v15223_v21 = vld [vmem:[%s20092_s4 + $0x888] ss:$16 sps:$4 sm:$0xff]  }
 0x6de   : > { %5442 = vmatpush1.bf16.msra.mxu0 %v15136_v25  ;;  %v15228_v25 = vld [vmem:[%s20092_s4 + $0x4a4] ss:$16 sps:$4 sm:$0xff]  }
 0x6df   : > { %6603 = vmatpush1.bf16.msra.mxu1 %v15139_v31  ;;  %5443 = vmatprep.subr.bf16.mxu0 %v15144_v28  ;;  %v15231_v31 = vld [vmem:[%s20092_s4 + $0x8ac] ss:$16 sps:$4 sm:$0xff]   ;;  %v15226_v28 = vld [vmem:[%s20092_s4 + $0x4a0] ss:$16 sps:$4 sm:$0xff]  }
 0x6e0   : > { %6604 = vmatprep.subr.bf16.mxu1 %v15147_v33  ;;  %v15229_v33 = vld [vmem:[%s20092_s4 + $0x8a8] ss:$16 sps:$4 sm:$0xff]  }
 0x6e2   : > { %5444 = vmatpush1.bf16.msra.mxu0 %v15142_v9  ;;  %v15234_v9 = vld [vmem:[%s20092_s4 + $0x4c4] ss:$16 sps:$4 sm:$0xff]  }
 0x6e3   : > { %6605 = vmatpush1.bf16.msra.mxu1 %v15145_v29  ;;  %5470 = vmatprep.subr.bf16.mxu0 %v15150_v34  ;;  %v15237_v29 = vld [vmem:[%s20092_s4 + $0x8cc] ss:$16 sps:$4 sm:$0xff]   ;;  %v15232_v34 = vld [vmem:[%s20092_s4 + $0x4c0] ss:$16 sps:$4 sm:$0xff]  }
 0x6e4   : > { %6829 = vmatprep.subr.bf16.mxu1 %v15153_v35  ;;  %v15235_v35 = vld [vmem:[%s20092_s4 + $0x8c8] ss:$16 sps:$4 sm:$0xff]  }
 0x6e5   : > { %5462 = vmatmul.mubr.bf16.vlgmr.msra.gmra.mrb[40].mxu0 %v18202_v17 }
 0x6e6   : > { %6623 = vmatmul.mubr.bf16.vlgmr.msra.gmra.mrb[0].mxu1 %v18100_v30  ;;  %5471 = vmatpush1.bf16.msra.mxu0 %v15148_v16  ;;  %v15193_v30 = vld [vmem:[%s20092_s4 + $0x8e0] ss:$16 sps:$4 sm:$0xff]   ;;  %v15243_v16 = vld [vmem:[%s20092_s4 + $0x8ec] ss:$16 sps:$4 sm:$0xff]  }
 0x6e7   : > { %6830 = vmatpush1.bf16.msra.mxu1 %v15151_v26  ;;  %5472 = vmatprep.subr.bf16.mxu0 %v15156_v32  ;;  %v15238_v26 = vld [vmem:[%s20092_s4 + $0x4e0] ss:$16 sps:$4 sm:$0xff]   ;;  %v15246_v32 = vld [vmem:[%s20092_s4 + $0x904] ss:$16 sps:$4 sm:$0xff]  }
 0x6e8   : > { %6831 = vmatprep.subr.bf16.mxu1 %v15159_v38  ;;  %5502 = vmatprep.mubr.bf16.mxu0 %v16057_v44  ;;  %v15244_v38 = vld [vmem:[%s20092_s4 + $0x900] ss:$16 sps:$4 sm:$0xff]  }
 0x6e9   : > { %6861 = vmatprep.mubr.bf16.mxu1 %v16057_v44 }
 0x6ea   : > { %5473 = vmatpush1.bf16.msra.mxu0 %v15154_v39  ;;  %v15249_v39 = vld [vmem:[%s20092_s4 + $0x924] ss:$16 sps:$4 sm:$0xff]  }
 0x6eb   : > { %6832 = vmatpush1.bf16.msra.mxu1 %v15157_v27  ;;  %5474 = vmatprep.subr.bf16.mxu0 %v15162_v40  ;;  %v15247_v27 = vld [vmem:[%s20092_s4 + $0x920] ss:$16 sps:$4 sm:$0xff]   ;;  %v15252_v40 = vld [vmem:[%s20092_s4 + $0x944] ss:$16 sps:$4 sm:$0xff]  }
 0x6ec   : > { %6833 = vmatprep.subr.bf16.mxu1 %v15165_v41  ;;  %v15250_v41 = vld [vmem:[%s20092_s4 + $0x940] ss:$16 sps:$4 sm:$0xff]  }
 0x6ee   : > { %5475 = vmatpush1.bf16.msra.mxu0 %v15160_v42  ;;  %v15253_v42 = vld [vmem:[%s20092_s4 + $0x960] ss:$16 sps:$4 sm:$0xff]  }
 0x6ef   : > { %6834 = vmatpush1.bf16.msra.mxu1 %v15163_v43  ;;  %5476 = vmatprep.subr.bf16.mxu0 %v15168_v4  ;;  %v15258_v43 = vld [vmem:[%s20092_s4 + $0x984] ss:$16 sps:$4 sm:$0xff]   ;;  %v15256_v4 = vld [vmem:[%s20092_s4 + $0x980] ss:$16 sps:$4 sm:$0xff]  }
 0x6f0   : > { %6835 = vmatprep.subr.bf16.mxu1 %v15171_v6  ;;  %v15261_v6 = vld [vmem:[%s20092_s4 + $0x9a4] ss:$16 sps:$4 sm:$0xff]  }
 0x6f2   : > { %5477 = vmatpush1.bf16.msra.mxu0 %v15166_v7  ;;  %v15259_v7 = vld [vmem:[%s20092_s4 + $0x9a0] ss:$16 sps:$4 sm:$0xff]  }
 0x6f3   : > { %6836 = vmatpush1.bf16.msra.mxu1 %v15169_v8  ;;  %5478 = vmatprep.subr.bf16.mxu0 %v15174_v12  ;;  %v15264_v8 = vld [vmem:[%s20092_s4 + $0x9c4] ss:$16 sps:$4 sm:$0xff]   ;;  %v15262_v12 = vld [vmem:[%s20092_s4 + $0x9c0] ss:$16 sps:$4 sm:$0xff]  }
 0x6f4   : > { %6837 = vmatprep.subr.bf16.mxu1 %v15177_v14  ;;  %v15267_v14 = vld [vmem:[%s20092_s4 + $0x9e4] ss:$16 sps:$4 sm:$0xff]  }
 0x6f6   : > { %5479 = vmatpush1.bf16.msra.mxu0 %v15172_v13  ;;  %v15265_v13 = vld [vmem:[%s20092_s4 + $0x9e0] ss:$16 sps:$4 sm:$0xff]  }
 0x6f7   : > { %6838 = vmatpush1.bf16.msra.mxu1 %v15175_v11  ;;  %5480 = vmatprep.subr.bf16.mxu0 %v15180_v23  ;;  %v15270_v11 = vld [vmem:[%s20092_s4 + $0x90c] ss:$16 sps:$4 sm:$0xff]  }
 0x6f8   : > { %6839 = vmatprep.subr.bf16.mxu1 %v15183_v37  ;;  %v6947_v23 = vld [vmem:[#allocation5 + $0xd] sm:$0xff] }
 0x6f9   : > { %v15268_v37 = vld [vmem:[%s20092_s4 + $0x908] ss:$16 sps:$4 sm:$0xff]  }
 0x6fa   : > { %5481 = vmatpush1.bf16.msra.mxu0 %v15178_v51  ;;  %v6948_v51 = vpack.c.bf16 %v6947_v23, %v6947_v23  ;;  %v15360_v23 = vld [vmem:[%s20092_s4 + $0xbc4] ss:$16 sps:$4 sm:$0xff]  }
 0x6fb   : > { %6840 = vmatpush1.bf16.msra.mxu1 %v15181_v52  ;;  %5482 = vmatprep.subr.bf16.mxu0 %v15186_v53  ;;  %v15273_v52 = vld [vmem:[%s20092_s4 + $0x92c] ss:$16 sps:$4 sm:$0xff]   ;;  %v15271_v53 = vld [vmem:[%s20092_s4 + $0x928] ss:$16 sps:$4 sm:$0xff]  }
 0x6fc   : > { %6841 = vmatprep.subr.bf16.mxu1 %v15189_v54  ;;  %v15276_v54 = vld [vmem:[%s20092_s4 + $0x94c] ss:$16 sps:$4 sm:$0xff]  }
 0x6fe   : > { %5483 = vmatpush1.bf16.msra.mxu0 %v15184_v55  ;;  %v15274_v55 = vld [vmem:[%s20092_s4 + $0x948] ss:$16 sps:$4 sm:$0xff]  }
 0x6ff   : > { %6842 = vmatpush1.bf16.msra.mxu1 %v15187_v56  ;;  %5484 = vmatprep.subr.bf16.mxu0 %v15192_v57  ;;  %v15279_v56 = vld [vmem:[%s20092_s4 + $0x96c] ss:$16 sps:$4 sm:$0xff]   ;;  %v15277_v57 = vld [vmem:[%s20092_s4 + $0x968] ss:$16 sps:$4 sm:$0xff]  }
 0x700   : > { %6843 = vmatprep.subr.bf16.mxu1 %v15195_v58  ;;  %v15282_v58 = vld [vmem:[%s20092_s4 + $0x98c] ss:$16 sps:$4 sm:$0xff]  }
 0x702   : > { %5485 = vmatpush1.bf16.msra.mxu0 %v15190_v24  ;;  %v15280_v24 = vld [vmem:[%s20092_s4 + $0x988] ss:$16 sps:$4 sm:$0xff]  }
 0x703   : > { %6844 = vmatpush1.bf16.msra.mxu1 %v15193_v30  ;;  %5709 = vmatprep.subr.bf16.mxu0 %v15198_v36  ;;  %v15285_v30 = vld [vmem:[%s20092_s4 + $0x9ac] ss:$16 sps:$4 sm:$0xff]   ;;  %v15283_v36 = vld [vmem:[%s20092_s4 + $0x9a8] ss:$16 sps:$4 sm:$0xff]  }
 0x704   : > { %6870 = vmatprep.subr.bf16.mxu1 %v15201_v19  ;;  %v15288_v19 = vld [vmem:[%s20092_s4 + $0x9cc] ss:$16 sps:$4 sm:$0xff]  }
 0x705   : > { %5503 = vmatmul.mubr.bf16.vlgmr.msra.gmra.mrb[44].mxu0 %v18202_v17  ;;  %v15241_v17 = vld [vmem:[%s20092_s4 + $0x8e8] ss:$16 sps:$4 sm:$0xff]  }
 0x706   : > { %6862 = vmatmul.mubr.bf16.vlgmr.msra.gmra.mrb[4].mxu1 %v18304_v46  ;;  %5710 = vmatpush1.bf16.msra.mxu0 %v15196_v45  ;;  %v15291_v45 = vld [vmem:[%s20092_s4 + $0x9ec] ss:$16 sps:$4 sm:$0xff]  }
 0x707   : > { %6871 = vmatpush1.bf16.msra.mxu1 %v15199_v20  ;;  %5711 = vmatprep.subr.bf16.mxu0 %v15204_v47  ;;  %v15289_v20 = vld [vmem:[%s20092_s4 + $0x9e8] ss:$16 sps:$4 sm:$0xff]   ;;  %v15292_v47 = vld [vmem:[%s20092_s4 + $0xa00] ss:$16 sps:$4 sm:$0xff]  }
 0x708   : > { %6872 = vmatprep.subr.bf16.mxu1 %v15207_v48  ;;  %5741 = vmatprep.mubr.bf16.mxu0 %v16057_v44  ;;  %v15297_v48 = vld [vmem:[%s20092_s4 + $0xa24] ss:$16 sps:$4 sm:$0xff]  }
 0x709   : > { %6902 = vmatprep.mubr.bf16.mxu1 %v16057_v44 }
 0x70a   : > { %5712 = vmatpush1.bf16.msra.mxu0 %v15202_v49  ;;  %v15295_v49 = vld [vmem:[%s20092_s4 + $0xa20] ss:$16 sps:$4 sm:$0xff]  }
 0x70b   : > { %6873 = vmatpush1.bf16.msra.mxu1 %v15205_v59  ;;  %5713 = vmatprep.subr.bf16.mxu0 %v15210_v60  ;;  %v15300_v59 = vld [vmem:[%s20092_s4 + $0xa44] ss:$16 sps:$4 sm:$0xff]   ;;  %v15298_v60 = vld [vmem:[%s20092_s4 + $0xa40] ss:$16 sps:$4 sm:$0xff]  }
 0x70c   : > { %6874 = vmatprep.subr.bf16.mxu1 %v15213_v61  ;;  %v15303_v61 = vld [vmem:[%s20092_s4 + $0xa64] ss:$16 sps:$4 sm:$0xff]  }
 0x70e   : > { %5714 = vmatpush1.bf16.msra.mxu0 %v15208_v62  ;;  %v15301_v62 = vld [vmem:[%s20092_s4 + $0xa60] ss:$16 sps:$4 sm:$0xff]  }
 0x70f   : > { %6875 = vmatpush1.bf16.msra.mxu1 %v15211_v63  ;;  %5715 = vmatprep.subr.bf16.mxu0 %v15216_v0  ;;  %v15306_v63 = vld [vmem:[%s20092_s4 + $0xa84] ss:$16 sps:$4 sm:$0xff]   ;;  %v15304_v0 = vld [vmem:[%s20092_s4 + $0xa80] ss:$16 sps:$4 sm:$0xff]  }
 0x710   : > { %6876 = vmatprep.subr.bf16.mxu1 %v15219_v1  ;;  %v15309_v1 = vld [vmem:[%s20092_s4 + $0xaa4] ss:$16 sps:$4 sm:$0xff]  }
 0x712   : > { %5716 = vmatpush1.bf16.msra.mxu0 %v15214_v2  ;;  %v15307_v2 = vld [vmem:[%s20092_s4 + $0xaa0] ss:$16 sps:$4 sm:$0xff]  }
 0x713   : > { %6877 = vmatpush1.bf16.msra.mxu1 %v15217_v3  ;;  %5717 = vmatprep.subr.bf16.mxu0 %v15222_v5  ;;  %v15312_v3 = vld [vmem:[%s20092_s4 + $0xac4] ss:$16 sps:$4 sm:$0xff]   ;;  %v15310_v5 = vld [vmem:[%s20092_s4 + $0xac0] ss:$16 sps:$4 sm:$0xff]  }
 0x714   : > { %6878 = vmatprep.subr.bf16.mxu1 %v15225_v18  ;;  %v15315_v18 = vld [vmem:[%s20092_s4 + $0xae4] ss:$16 sps:$4 sm:$0xff]  }
 0x716   : > { %5718 = vmatpush1.bf16.msra.mxu0 %v15220_v10  ;;  %v15313_v10 = vld [vmem:[%s20092_s4 + $0xae0] ss:$16 sps:$4 sm:$0xff]  }
 0x717   : > { %6879 = vmatpush1.bf16.msra.mxu1 %v15223_v21  ;;  %5719 = vmatprep.subr.bf16.mxu0 %v15228_v25  ;;  %v15318_v21 = vld [vmem:[%s20092_s4 + $0xa0c] ss:$16 sps:$4 sm:$0xff]  }
 0x718   : > { %6880 = vmatprep.subr.bf16.mxu1 %v15231_v31  ;;  %v7227_v25 = vld [vmem:[#allocation5 + $0x12] sm:$0xff] }
 0x719   : > { %v15316_v31 = vld [vmem:[%s20092_s4 + $0xa08] ss:$16 sps:$4 sm:$0xff]  }
 0x71a   : > { %5720 = vmatpush1.bf16.msra.mxu0 %v15226_v28  ;;  %v7228_v28 = vpack.c.bf16 %v7227_v25, %v7227_v25  ;;  %v15402_v25 = vld [vmem:[%s20092_s4 + $0xc84] ss:$16 sps:$4 sm:$0xff]  }
 0x71b   : > { %6881 = vmatpush1.bf16.msra.mxu1 %v15229_v33  ;;  %5721 = vmatprep.subr.bf16.mxu0 %v15234_v9  ;;  %v15321_v33 = vld [vmem:[%s20092_s4 + $0xa2c] ss:$16 sps:$4 sm:$0xff]   ;;  %v15319_v9 = vld [vmem:[%s20092_s4 + $0xa28] ss:$16 sps:$4 sm:$0xff]  }
 0x71c   : > { %6882 = vmatprep.subr.bf16.mxu1 %v15237_v29  ;;  %v15324_v29 = vld [vmem:[%s20092_s4 + $0xa4c] ss:$16 sps:$4 sm:$0xff]  }
 0x71e   : > { %5722 = vmatpush1.bf16.msra.mxu0 %v15232_v34  ;;  %v15322_v34 = vld [vmem:[%s20092_s4 + $0xa48] ss:$16 sps:$4 sm:$0xff]  }
 0x71f   : > { %6883 = vmatpush1.bf16.msra.mxu1 %v15235_v35  ;;  %5723 = vmatprep.subr.bf16.mxu0 %v15240_v15  ;;  %v15327_v35 = vld [vmem:[%s20092_s4 + $0xa6c] ss:$16 sps:$4 sm:$0xff]   ;;  %v15325_v15 = vld [vmem:[%s20092_s4 + $0xa68] ss:$16 sps:$4 sm:$0xff]  }
 0x720   : > { %6884 = vmatprep.subr.bf16.mxu1 %v15243_v16  ;;  %v15330_v16 = vld [vmem:[%s20092_s4 + $0xa8c] ss:$16 sps:$4 sm:$0xff]  }
 0x722   : > { %5724 = vmatpush1.bf16.msra.mxu0 %v15238_v26  ;;  %v15328_v26 = vld [vmem:[%s20092_s4 + $0xa88] ss:$16 sps:$4 sm:$0xff]  }
 0x723   : > { %6885 = vmatpush1.bf16.msra.mxu1 %v15241_v17  ;;  %v15333_v17 = vld [vmem:[%s20092_s4 + $0xaac] ss:$16 sps:$4 sm:$0xff]  }
 0x724   : > { %7109 = vmatprep.subr.bf16.mxu1 %v15246_v32  ;;  %v15331_v32 = vld [vmem:[%s20092_s4 + $0xaa8] ss:$16 sps:$4 sm:$0xff]  }
 0x725   : > { %5742 = vmatmul.mubr.bf16.vlgmr.msra.gmra.mrb[40].mxu0 %v17588_v50  ;;  %v15255_v50 = vld [vmem:[%s20092_s4 + $0x964] ss:$16 sps:$4 sm:$0xff]  }
 0x726   : > { %6903 = vmatmul.mubr.bf16.vlgmr.msra.gmra.mrb[0].mxu1 %v18304_v46  ;;  %v15294_v46 = vld [vmem:[%s20092_s4 + $0xa04] ss:$16 sps:$4 sm:$0xff]  }
 0x727   : > { %7110 = vmatpush1.bf16.msra.mxu1 %v15244_v38  ;;  %7141 = vmatprep.mubr.bf16.mxu1 %v16057_v44  ;;  %v15336_v38 = vld [vmem:[%s20092_s4 + $0xacc] ss:$16 sps:$4 sm:$0xff]  }
 0x728   : > { %7111 = vmatprep.subr.bf16.mxu1 %v15249_v39  ;;  %v15334_v39 = vld [vmem:[%s20092_s4 + $0xac8] ss:$16 sps:$4 sm:$0xff]  }
 0x72b   : > { %7112 = vmatpush1.bf16.msra.mxu1 %v15247_v27  ;;  %v15339_v27 = vld [vmem:[%s20092_s4 + $0xaec] ss:$16 sps:$4 sm:$0xff]  }
 0x72c   : > { %7113 = vmatprep.subr.bf16.mxu1 %v15252_v40  ;;  %v15337_v40 = vld [vmem:[%s20092_s4 + $0xae8] ss:$16 sps:$4 sm:$0xff]  }
 0x72f   : > { %7114 = vmatpush1.bf16.msra.mxu1 %v15250_v41  ;;  %v15342_v41 = vld [vmem:[%s20092_s4 + $0xb04] ss:$16 sps:$4 sm:$0xff]  }
 0x730   : > { %7115 = vmatprep.subr.bf16.mxu1 %v15255_v50  ;;  %v15340_v50 = vld [vmem:[%s20092_s4 + $0xb00] ss:$16 sps:$4 sm:$0xff]  }
 0x733   : > { %7116 = vmatpush1.bf16.msra.mxu1 %v15253_v42  ;;  %v15345_v42 = vld [vmem:[%s20092_s4 + $0xb24] ss:$16 sps:$4 sm:$0xff]  }
 0x734   : > { %7117 = vmatprep.subr.bf16.mxu1 %v15258_v43  ;;  %v15343_v43 = vld [vmem:[%s20092_s4 + $0xb20] ss:$16 sps:$4 sm:$0xff]  }
 0x737   : > { %7118 = vmatpush1.bf16.msra.mxu1 %v15256_v4  ;;  %v15348_v4 = vld [vmem:[%s20092_s4 + $0xb44] ss:$16 sps:$4 sm:$0xff]  }
 0x738   : > { %7119 = vmatprep.subr.bf16.mxu1 %v15261_v6  ;;  %v15346_v6 = vld [vmem:[%s20092_s4 + $0xb40] ss:$16 sps:$4 sm:$0xff]  }
 0x73b   : > { %7120 = vmatpush1.bf16.msra.mxu1 %v15259_v7  ;;  %v15351_v7 = vld [vmem:[%s20092_s4 + $0xb64] ss:$16 sps:$4 sm:$0xff]  }
 0x73c   : > { %7121 = vmatprep.subr.bf16.mxu1 %v15264_v8  ;;  %v15349_v8 = vld [vmem:[%s20092_s4 + $0xb60] ss:$16 sps:$4 sm:$0xff]  }
 0x73f   : > { %7122 = vmatpush1.bf16.msra.mxu1 %v15262_v12  ;;  %v15354_v12 = vld [vmem:[%s20092_s4 + $0xb84] ss:$16 sps:$4 sm:$0xff]  }
 0x740   : > { %7123 = vmatprep.subr.bf16.mxu1 %v15267_v14  ;;  %v15352_v14 = vld [vmem:[%s20092_s4 + $0xb80] ss:$16 sps:$4 sm:$0xff]  }
 0x743   : > { %7124 = vmatpush1.bf16.msra.mxu1 %v15265_v13  ;;  %v15357_v13 = vld [vmem:[%s20092_s4 + $0xba4] ss:$16 sps:$4 sm:$0xff]  }
 0x744   : > { %7150 = vmatprep.subr.bf16.mxu1 %v15270_v11  ;;  %v15355_v11 = vld [vmem:[%s20092_s4 + $0xba0] ss:$16 sps:$4 sm:$0xff]  }
 0x746   : > { %7142 = vmatmul.mubr.bf16.vlgmr.msra.gmra.mrb[4].mxu1 %v6948_v51 }
 0x747   : > { %7151 = vmatpush1.bf16.msra.mxu1 %v15268_v37  ;;  %7182 = vmatprep.mubr.bf16.mxu1 %v16057_v44  ;;  %v15358_v37 = vld [vmem:[%s20092_s4 + $0xbc0] ss:$16 sps:$4 sm:$0xff]  }
 0x748   : > { %7152 = vmatprep.subr.bf16.mxu1 %v15273_v52  ;;  %v15361_v52 = vld [vmem:[%s20092_s4 + $0xbe0] ss:$16 sps:$4 sm:$0xff]  }
 0x74b   : > { %7153 = vmatpush1.bf16.msra.mxu1 %v15271_v53  ;;  %v15366_v53 = vld [vmem:[%s20092_s4 + $0xb0c] ss:$16 sps:$4 sm:$0xff]  }
 0x74c   : > { %7154 = vmatprep.subr.bf16.mxu1 %v15276_v54  ;;  %v7507_v54 = vld [vmem:[#allocation5 + $0x13] sm:$0xff] }
 0x74f   : > { %7155 = vmatpush1.bf16.msra.mxu1 %v15274_v55  ;;  %v15364_v55 = vld [vmem:[%s20092_s4 + $0xb08] ss:$16 sps:$4 sm:$0xff]  }
 0x750   : > { %7156 = vmatprep.subr.bf16.mxu1 %v15279_v56  ;;  %v7508_v56 = vpack.c.bf16 %v7507_v54, %v7507_v54  ;;  %v15444_v54 = vld [vmem:[%s20092_s4 + $0xd44] ss:$16 sps:$4 sm:$0xff]  }
 0x753   : > { %7157 = vmatpush1.bf16.msra.mxu1 %v15277_v57  ;;  %v15369_v57 = vld [vmem:[%s20092_s4 + $0xb2c] ss:$16 sps:$4 sm:$0xff]  }
 0x754   : > { %7158 = vmatprep.subr.bf16.mxu1 %v15282_v58  ;;  %v15367_v58 = vld [vmem:[%s20092_s4 + $0xb28] ss:$16 sps:$4 sm:$0xff]  }
 0x757   : > { %7159 = vmatpush1.bf16.msra.mxu1 %v15280_v24  ;;  %v15372_v24 = vld [vmem:[%s20092_s4 + $0xb4c] ss:$16 sps:$4 sm:$0xff]  }
 0x758   : > { %7160 = vmatprep.subr.bf16.mxu1 %v15285_v30  ;;  %v15370_v30 = vld [vmem:[%s20092_s4 + $0xb48] ss:$16 sps:$4 sm:$0xff]  }
 0x75b   : > { %7161 = vmatpush1.bf16.msra.mxu1 %v15283_v36  ;;  %v15375_v36 = vld [vmem:[%s20092_s4 + $0xb6c] ss:$16 sps:$4 sm:$0xff]  }
 0x75c   : > { %7162 = vmatprep.subr.bf16.mxu1 %v15288_v19  ;;  %v15373_v19 = vld [vmem:[%s20092_s4 + $0xb68] ss:$16 sps:$4 sm:$0xff]  }
 0x75f   : > { %7163 = vmatpush1.bf16.msra.mxu1 %v15286_v22  ;;  %v15378_v22 = vld [vmem:[%s20092_s4 + $0xb8c] ss:$16 sps:$4 sm:$0xff]  }
 0x760   : > { %7164 = vmatprep.subr.bf16.mxu1 %v15291_v45  ;;  %v15376_v45 = vld [vmem:[%s20092_s4 + $0xb88] ss:$16 sps:$4 sm:$0xff]  }
 0x763   : > { %7165 = vmatpush1.bf16.msra.mxu1 %v15289_v20  ;;  %v15381_v20 = vld [vmem:[%s20092_s4 + $0xbac] ss:$16 sps:$4 sm:$0xff]  }
 0x764   : > { %7389 = vmatprep.subr.bf16.mxu1 %v15294_v46  ;;  %v15379_v46 = vld [vmem:[%s20092_s4 + $0xba8] ss:$16 sps:$4 sm:$0xff]  }
 0x766   : > { %7183 = vmatmul.mubr.bf16.vlgmr.msra.gmra.mrb[0].mxu1 %v6948_v51  ;;  %v15363_v51 = vld [vmem:[%s20092_s4 + $0xbe4] ss:$16 sps:$4 sm:$0xff]  }
 0x767   : > { %7390 = vmatpush1.bf16.msra.mxu1 %v15292_v47  ;;  %7421 = vmatprep.mubr.bf16.mxu1 %v16057_v44  ;;  %v15384_v47 = vld [vmem:[%s20092_s4 + $0xbcc] ss:$16 sps:$4 sm:$0xff]  }
 0x768   : > { %7391 = vmatprep.subr.bf16.mxu1 %v15297_v48 }
 0x76b   : > { %7392 = vmatpush1.bf16.msra.mxu1 %v15295_v49 }
 0x76c   : > { %7393 = vmatprep.subr.bf16.mxu1 %v15300_v59 }
 0x76f   : > { %7394 = vmatpush1.bf16.msra.mxu1 %v15298_v60  ;;  %v15382_v60 = vld [vmem:[%s20092_s4 + $0xbc8] ss:$16 sps:$4 sm:$0xff]  }
 0x770   : > { %7395 = vmatprep.subr.bf16.mxu1 %v15303_v61 }
 0x773   : > { %7396 = vmatpush1.bf16.msra.mxu1 %v15301_v62  ;;  %v15387_v62 = vld [vmem:[%s20092_s4 + $0xbec] ss:$16 sps:$4 sm:$0xff]  }
 0x774   : > { %7397 = vmatprep.subr.bf16.mxu1 %v15306_v63  ;;  %v15385_v63 = vld [vmem:[%s20092_s4 + $0xbe8] ss:$16 sps:$4 sm:$0xff]  }
 0x777   : > { %7398 = vmatpush1.bf16.msra.mxu1 %v15304_v0  ;;  %v15390_v0 = vld [vmem:[%s20092_s4 + $0xc04] ss:$16 sps:$4 sm:$0xff]  }
 0x778   : > { %7399 = vmatprep.subr.bf16.mxu1 %v15309_v1  ;;  %v15388_v1 = vld [vmem:[%s20092_s4 + $0xc00] ss:$16 sps:$4 sm:$0xff]  }
 0x77b   : > { %7400 = vmatpush1.bf16.msra.mxu1 %v15307_v2  ;;  %v15393_v2 = vld [vmem:[%s20092_s4 + $0xc24] ss:$16 sps:$4 sm:$0xff]  }
 0x77c   : > { %7401 = vmatprep.subr.bf16.mxu1 %v15312_v3  ;;  %v15391_v3 = vld [vmem:[%s20092_s4 + $0xc20] ss:$16 sps:$4 sm:$0xff]  }
 0x77f   : > { %7402 = vmatpush1.bf16.msra.mxu1 %v15310_v5  ;;  %v15396_v5 = vld [vmem:[%s20092_s4 + $0xc44] ss:$16 sps:$4 sm:$0xff]  }
 0x780   : > { %7403 = vmatprep.subr.bf16.mxu1 %v15315_v18  ;;  %v15394_v18 = vld [vmem:[%s20092_s4 + $0xc40] ss:$16 sps:$4 sm:$0xff]  }
 0x783   : > { %7404 = vmatpush1.bf16.msra.mxu1 %v15313_v10  ;;  %v15399_v10 = vld [vmem:[%s20092_s4 + $0xc64] ss:$16 sps:$4 sm:$0xff]  }
 0x784   : > { %7430 = vmatprep.subr.bf16.mxu1 %v15318_v21  ;;  %v15397_v21 = vld [vmem:[%s20092_s4 + $0xc60] ss:$16 sps:$4 sm:$0xff]  }
 0x786   : > { %7422 = vmatmul.mubr.bf16.vlgmr.msra.gmra.mrb[4].mxu1 %v7228_v28 }
 0x787   : > { %7431 = vmatpush1.bf16.msra.mxu1 %v15316_v31  ;;  %7462 = vmatprep.mubr.bf16.mxu1 %v16057_v44  ;;  %v15400_v31 = vld [vmem:[%s20092_s4 + $0xc80] ss:$16 sps:$4 sm:$0xff]  }
 0x788   : > { %7432 = vmatprep.subr.bf16.mxu1 %v15321_v33  ;;  %v15403_v33 = vld [vmem:[%s20092_s4 + $0xca0] ss:$16 sps:$4 sm:$0xff]  }
 0x78b   : > { %7433 = vmatpush1.bf16.msra.mxu1 %v15319_v9  ;;  %v15408_v9 = vld [vmem:[%s20092_s4 + $0xcc4] ss:$16 sps:$4 sm:$0xff]  }
 0x78c   : > { %7434 = vmatprep.subr.bf16.mxu1 %v15324_v29 }
 0x78f   : > { %7435 = vmatpush1.bf16.msra.mxu1 %v15322_v34 }
 0x790   : > { %7436 = vmatprep.subr.bf16.mxu1 %v15327_v35 }
 0x793   : > { %7437 = vmatpush1.bf16.msra.mxu1 %v15325_v15  ;;  %v15406_v15 = vld [vmem:[%s20092_s4 + $0xcc0] ss:$16 sps:$4 sm:$0xff]  }
 0x794   : > { %7438 = vmatprep.subr.bf16.mxu1 %v15330_v16 }
 0x797   : > { %7439 = vmatpush1.bf16.msra.mxu1 %v15328_v26  ;;  %v15411_v26 = vld [vmem:[%s20092_s4 + $0xce4] ss:$16 sps:$4 sm:$0xff]  }
 0x798   : > { %7440 = vmatprep.subr.bf16.mxu1 %v15333_v17  ;;  %v15409_v17 = vld [vmem:[%s20092_s4 + $0xce0] ss:$16 sps:$4 sm:$0xff]  }
 0x79b   : > { %7441 = vmatpush1.bf16.msra.mxu1 %v15331_v32  ;;  %v15414_v32 = vld [vmem:[%s20092_s4 + $0xc0c] ss:$16 sps:$4 sm:$0xff]  }
 0x79c   : > { %7442 = vmatprep.subr.bf16.mxu1 %v15336_v38  ;;  %v7787_v38 = vld [vmem:[#allocation5 + $0x14] sm:$0xff] }
 0x79f   : > { %7443 = vmatpush1.bf16.msra.mxu1 %v15334_v39  ;;  %v15412_v39 = vld [vmem:[%s20092_s4 + $0xc08] ss:$16 sps:$4 sm:$0xff]  }
 0x7a0   : > { %7444 = vmatprep.subr.bf16.mxu1 %v15339_v27  ;;  %v7788_v27 = vpack.c.bf16 %v7787_v38, %v7787_v38  ;;  %v15498_v38 = vld [vmem:[%s20092_s4 + $0xe84] ss:$16 sps:$4 sm:$0xff]  }
 0x7a3   : > { %7445 = vmatpush1.bf16.msra.mxu1 %v15337_v40  ;;  %v15417_v40 = vld [vmem:[%s20092_s4 + $0xc2c] ss:$16 sps:$4 sm:$0xff]  }
 0x7a4   : > { %7669 = vmatprep.subr.bf16.mxu1 %v15342_v41  ;;  %v15415_v41 = vld [vmem:[%s20092_s4 + $0xc28] ss:$16 sps:$4 sm:$0xff]  }
 0x7a6   : > { %7463 = vmatmul.mubr.bf16.vlgmr.msra.gmra.mrb[0].mxu1 %v7228_v28  ;;  %v15405_v28 = vld [vmem:[%s20092_s4 + $0xca4] ss:$16 sps:$4 sm:$0xff]  }
 0x7a7   : > { %7670 = vmatpush1.bf16.msra.mxu1 %v15340_v50  ;;  %7701 = vmatprep.mubr.bf16.mxu1 %v16057_v44  ;;  %v15420_v50 = vld [vmem:[%s20092_s4 + $0xc4c] ss:$16 sps:$4 sm:$0xff]  }
 0x7a8   : > { %7671 = vmatprep.subr.bf16.mxu1 %v15345_v42  ;;  %v15418_v42 = vld [vmem:[%s20092_s4 + $0xc48] ss:$16 sps:$4 sm:$0xff]  }
 0x7ab   : > { %7672 = vmatpush1.bf16.msra.mxu1 %v15343_v43  ;;  %v15423_v43 = vld [vmem:[%s20092_s4 + $0xc6c] ss:$16 sps:$4 sm:$0xff]  }
 0x7ac   : > { %7673 = vmatprep.subr.bf16.mxu1 %v15348_v4  ;;  %v15421_v4 = vld [vmem:[%s20092_s4 + $0xc68] ss:$16 sps:$4 sm:$0xff]  }
 0x7af   : > { %7674 = vmatpush1.bf16.msra.mxu1 %v15346_v6  ;;  %v15426_v6 = vld [vmem:[%s20092_s4 + $0xc8c] ss:$16 sps:$4 sm:$0xff]  }
 0x7b0   : > { %7675 = vmatprep.subr.bf16.mxu1 %v15351_v7  ;;  %v15424_v7 = vld [vmem:[%s20092_s4 + $0xc88] ss:$16 sps:$4 sm:$0xff]  }
 0x7b3   : > { %7676 = vmatpush1.bf16.msra.mxu1 %v15349_v8  ;;  %v15429_v8 = vld [vmem:[%s20092_s4 + $0xcac] ss:$16 sps:$4 sm:$0xff]  }
 0x7b4   : > { %7677 = vmatprep.subr.bf16.mxu1 %v15354_v12  ;;  %v15427_v12 = vld [vmem:[%s20092_s4 + $0xca8] ss:$16 sps:$4 sm:$0xff]  }
 0x7b7   : > { %7678 = vmatpush1.bf16.msra.mxu1 %v15352_v14  ;;  %v15432_v14 = vld [vmem:[%s20092_s4 + $0xccc] ss:$16 sps:$4 sm:$0xff]  }
 0x7b8   : > { %7679 = vmatprep.subr.bf16.mxu1 %v15357_v13  ;;  %v15430_v13 = vld [vmem:[%s20092_s4 + $0xcc8] ss:$16 sps:$4 sm:$0xff]  }
 0x7bb   : > { %7680 = vmatpush1.bf16.msra.mxu1 %v15355_v11  ;;  %v15435_v11 = vld [vmem:[%s20092_s4 + $0xcec] ss:$16 sps:$4 sm:$0xff]  }
 0x7bc   : > { %7681 = vmatprep.subr.bf16.mxu1 %v15360_v23  ;;  %v15433_v23 = vld [vmem:[%s20092_s4 + $0xce8] ss:$16 sps:$4 sm:$0xff]  }
 0x7bf   : > { %7682 = vmatpush1.bf16.msra.mxu1 %v15358_v37  ;;  %v15438_v37 = vld [vmem:[%s20092_s4 + $0xd04] ss:$16 sps:$4 sm:$0xff]  }
 0x7c0   : > { %7683 = vmatprep.subr.bf16.mxu1 %v15363_v51  ;;  %v15436_v51 = vld [vmem:[%s20092_s4 + $0xd00] ss:$16 sps:$4 sm:$0xff]  }
 0x7c3   : > { %7684 = vmatpush1.bf16.msra.mxu1 %v15361_v52  ;;  %v15441_v52 = vld [vmem:[%s20092_s4 + $0xd24] ss:$16 sps:$4 sm:$0xff]  }
 0x7c4   : > { %7710 = vmatprep.subr.bf16.mxu1 %v15366_v53  ;;  %v15439_v53 = vld [vmem:[%s20092_s4 + $0xd20] ss:$16 sps:$4 sm:$0xff]  }
 0x7c6   : > { %7702 = vmatmul.mubr.bf16.vlgmr.msra.gmra.mrb[4].mxu1 %v7508_v56 }
 0x7c7   : > { %7711 = vmatpush1.bf16.msra.mxu1 %v15364_v55  ;;  %7742 = vmatprep.mubr.bf16.mxu1 %v16057_v44  ;;  %v15442_v55 = vld [vmem:[%s20092_s4 + $0xd40] ss:$16 sps:$4 sm:$0xff]  }
 0x7c8   : > { %7712 = vmatprep.subr.bf16.mxu1 %v15369_v57  ;;  %v15445_v57 = vld [vmem:[%s20092_s4 + $0xd60] ss:$16 sps:$4 sm:$0xff]  }
 0x7cb   : > { %7713 = vmatpush1.bf16.msra.mxu1 %v15367_v58  ;;  %v15450_v58 = vld [vmem:[%s20092_s4 + $0xd84] ss:$16 sps:$4 sm:$0xff]  }
 0x7cc   : > { %7714 = vmatprep.subr.bf16.mxu1 %v15372_v24  ;;  %v15448_v24 = vld [vmem:[%s20092_s4 + $0xd80] ss:$16 sps:$4 sm:$0xff]  }
 0x7cf   : > { %7715 = vmatpush1.bf16.msra.mxu1 %v15370_v30  ;;  %v15453_v30 = vld [vmem:[%s20092_s4 + $0xda4] ss:$16 sps:$4 sm:$0xff]  }
 0x7d0   : > { %7716 = vmatprep.subr.bf16.mxu1 %v15375_v36  ;;  %v15451_v36 = vld [vmem:[%s20092_s4 + $0xda0] ss:$16 sps:$4 sm:$0xff]  }
 0x7d3   : > { %7717 = vmatpush1.bf16.msra.mxu1 %v15373_v19  ;;  %v15456_v19 = vld [vmem:[%s20092_s4 + $0xdc4] ss:$16 sps:$4 sm:$0xff]  }
 0x7d4   : > { %7718 = vmatprep.subr.bf16.mxu1 %v15378_v22  ;;  %v15454_v22 = vld [vmem:[%s20092_s4 + $0xdc0] ss:$16 sps:$4 sm:$0xff]  }
 0x7d7   : > { %7719 = vmatpush1.bf16.msra.mxu1 %v15376_v45  ;;  %v15459_v45 = vld [vmem:[%s20092_s4 + $0xde4] ss:$16 sps:$4 sm:$0xff]  }
 0x7d8   : > { %7720 = vmatprep.subr.bf16.mxu1 %v15381_v20  ;;  %v18681_v48 = vpop.f32.mrb[44].mxu0  ;;  %v15457_v20 = vld [vmem:[%s20092_s4 + $0xde0] ss:$16 sps:$4 sm:$0xff]  }
 0x7d9   : > { %v18683_v49 = vpop.f32.mrb[45].mxu0 }
 0x7da   : > { %v5508_v59 = vpop.f32.mrb[46].mxu0 }
 0x7db   : > { %7721 = vmatpush1.bf16.msra.mxu1 %v15379_v46  ;;  %v5509_v61 = vpop.f32.mrb[47].mxu0  ;;  %v15462_v46 = vld [vmem:[%s20092_s4 + $0xd0c] ss:$16 sps:$4 sm:$0xff]   ;;  %v15460_v59 = vld [vmem:[%s20092_s4 + $0xd08] ss:$16 sps:$4 sm:$0xff]  }
 0x7dc   : > { %7722 = vmatprep.subr.bf16.mxu1 %v15384_v47  ;;  %v8067_v47 = vld [vmem:[#allocation5 + $0x15] sm:$0xff] }
 0x7dd   : > { %v15465_v61 = vld [vmem:[%s20092_s4 + $0xd2c] ss:$16 sps:$4 sm:$0xff]  }
 0x7df   : > { %7723 = vmatpush1.bf16.msra.mxu1 %v15382_v60  ;;  %v8068_v60 = vpack.c.bf16 %v8067_v47, %v8067_v47  ;;  %v15546_v47 = vld [vmem:[%s20092_s4 + $0xf84] ss:$16 sps:$4 sm:$0xff]  }
 0x7e0   : > { %7724 = vmatprep.subr.bf16.mxu1 %v15387_v62  ;;  %v15463_v62 = vld [vmem:[%s20092_s4 + $0xd28] ss:$16 sps:$4 sm:$0xff]  }
 0x7e3   : > { %7725 = vmatpush1.bf16.msra.mxu1 %v15385_v63  ;;  %v15468_v63 = vld [vmem:[%s20092_s4 + $0xd4c] ss:$16 sps:$4 sm:$0xff]  }
 0x7e4   : > { %7949 = vmatprep.subr.bf16.mxu1 %v15390_v0  ;;  %v15466_v0 = vld [vmem:[%s20092_s4 + $0xd48] ss:$16 sps:$4 sm:$0xff]  }
 0x7e6   : > { %7743 = vmatmul.mubr.bf16.vlgmr.msra.gmra.mrb[0].mxu1 %v7508_v56  ;;  %v15447_v56 = vld [vmem:[%s20092_s4 + $0xd64] ss:$16 sps:$4 sm:$0xff]  }
 0x7e7   : > { %7950 = vmatpush1.bf16.msra.mxu1 %v15388_v1  ;;  %7981 = vmatprep.mubr.bf16.mxu1 %v16057_v44  ;;  %v15471_v1 = vld [vmem:[%s20092_s4 + $0xd6c] ss:$16 sps:$4 sm:$0xff]  }
 0x7e8   : > { %7951 = vmatprep.subr.bf16.mxu1 %v15393_v2  ;;  %v15469_v2 = vld [vmem:[%s20092_s4 + $0xd68] ss:$16 sps:$4 sm:$0xff]  }
 0x7eb   : > { %7952 = vmatpush1.bf16.msra.mxu1 %v15391_v3  ;;  %v15474_v3 = vld [vmem:[%s20092_s4 + $0xd8c] ss:$16 sps:$4 sm:$0xff]  }
 0x7ec   : > { %7953 = vmatprep.subr.bf16.mxu1 %v15396_v5  ;;  %v15472_v5 = vld [vmem:[%s20092_s4 + $0xd88] ss:$16 sps:$4 sm:$0xff]  }
 0x7ef   : > { %7954 = vmatpush1.bf16.msra.mxu1 %v15394_v18  ;;  %v15477_v18 = vld [vmem:[%s20092_s4 + $0xdac] ss:$16 sps:$4 sm:$0xff]  }
 0x7f0   : > { %7955 = vmatprep.subr.bf16.mxu1 %v15399_v10  ;;  %v15475_v10 = vld [vmem:[%s20092_s4 + $0xda8] ss:$16 sps:$4 sm:$0xff]  }
 0x7f3   : > { %7956 = vmatpush1.bf16.msra.mxu1 %v15397_v21  ;;  %v15480_v21 = vld [vmem:[%s20092_s4 + $0xdcc] ss:$16 sps:$4 sm:$0xff]  }
 0x7f4   : > { %7957 = vmatprep.subr.bf16.mxu1 %v15402_v25  ;;  %v15478_v25 = vld [vmem:[%s20092_s4 + $0xdc8] ss:$16 sps:$4 sm:$0xff]  }
 0x7f7   : > { %7958 = vmatpush1.bf16.msra.mxu1 %v15400_v31  ;;  %v15483_v31 = vld [vmem:[%s20092_s4 + $0xdec] ss:$16 sps:$4 sm:$0xff]  }
 0x7f8   : > { %7959 = vmatprep.subr.bf16.mxu1 %v15405_v28  ;;  %v18734_v29 = vpop.f32.mrb[40].mxu0  ;;  %v15481_v28 = vld [vmem:[%s20092_s4 + $0xde8] ss:$16 sps:$4 sm:$0xff]  }
 0x7f9   : > { %v18736_v34 = vpop.f32.mrb[41].mxu0 }
 0x7fa   : > { %v5747_v35 = vpop.f32.mrb[42].mxu0 }
 0x7fb   : > { %7960 = vmatpush1.bf16.msra.mxu1 %v15403_v33  ;;  %v5748_v16 = vpop.f32.mrb[43].mxu0  ;;  %v15486_v33 = vld [vmem:[%s20092_s4 + $0xe04] ss:$16 sps:$4 sm:$0xff]  }
 0x7fc   : > { %7961 = vmatprep.subr.bf16.mxu1 %v15408_v9  ;;  %v15484_v9 = vld [vmem:[%s20092_s4 + $0xe00] ss:$16 sps:$4 sm:$0xff]   ;;  %v15489_v35 = vld [vmem:[%s20092_s4 + $0xe24] ss:$16 sps:$4 sm:$0xff]  }
 0x7fd   : > { %v15492_v16 = vld [vmem:[%s20092_s4 + $0xe44] ss:$16 sps:$4 sm:$0xff]  }
 0x7ff   : > { %7962 = vmatpush1.bf16.msra.mxu1 %v15406_v15  ;;  %v15487_v15 = vld [vmem:[%s20092_s4 + $0xe20] ss:$16 sps:$4 sm:$0xff]  }
 0x800   : > { %7963 = vmatprep.subr.bf16.mxu1 %v15411_v26  ;;  %v15490_v26 = vld [vmem:[%s20092_s4 + $0xe40] ss:$16 sps:$4 sm:$0xff]  }
 0x803   : > { %7964 = vmatpush1.bf16.msra.mxu1 %v15409_v17  ;;  %v15495_v17 = vld [vmem:[%s20092_s4 + $0xe64] ss:$16 sps:$4 sm:$0xff]  }
 0x804   : > { %7990 = vmatprep.subr.bf16.mxu1 %v15414_v32  ;;  %v15493_v32 = vld [vmem:[%s20092_s4 + $0xe60] ss:$16 sps:$4 sm:$0xff]  }
 0x806   : > { %7982 = vmatmul.mubr.bf16.vlgmr.msra.gmra.mrb[4].mxu1 %v7788_v27 }
 0x807   : > { %7991 = vmatpush1.bf16.msra.mxu1 %v15412_v39  ;;  %8022 = vmatprep.mubr.bf16.mxu1 %v16057_v44  ;;  %v15496_v39 = vld [vmem:[%s20092_s4 + $0xe80] ss:$16 sps:$4 sm:$0xff]  }
 0x808   : > { %7992 = vmatprep.subr.bf16.mxu1 %v15417_v40  ;;  %v15499_v40 = vld [vmem:[%s20092_s4 + $0xea0] ss:$16 sps:$4 sm:$0xff]  }
 0x80b   : > { %7993 = vmatpush1.bf16.msra.mxu1 %v15415_v41  ;;  %v15504_v41 = vld [vmem:[%s20092_s4 + $0xec4] ss:$16 sps:$4 sm:$0xff]  }
 0x80c   : > { %7994 = vmatprep.subr.bf16.mxu1 %v15420_v50  ;;  %v15502_v50 = vld [vmem:[%s20092_s4 + $0xec0] ss:$16 sps:$4 sm:$0xff]  }
 0x80f   : > { %7995 = vmatpush1.bf16.msra.mxu1 %v15418_v42  ;;  %v15507_v42 = vld [vmem:[%s20092_s4 + $0xee4] ss:$16 sps:$4 sm:$0xff]  }
 0x810   : > { %7996 = vmatprep.subr.bf16.mxu1 %v15423_v43  ;;  %v15505_v43 = vld [vmem:[%s20092_s4 + $0xee0] ss:$16 sps:$4 sm:$0xff]  }
 0x813   : > { %7997 = vmatpush1.bf16.msra.mxu1 %v15421_v4  ;;  %v15510_v4 = vld [vmem:[%s20092_s4 + $0xe0c] ss:$16 sps:$4 sm:$0xff]  }
 0x814   : > { %7998 = vmatprep.subr.bf16.mxu1 %v15426_v6  ;;  %v8347_v6 = vld [vmem:[#allocation5 + $0x16] sm:$0xff] }
 0x817   : > { %7999 = vmatpush1.bf16.msra.mxu1 %v15424_v7  ;;  %v15508_v7 = vld [vmem:[%s20092_s4 + $0xe08] ss:$16 sps:$4 sm:$0xff]  }
 0x818   : > { %8000 = vmatprep.subr.bf16.mxu1 %v15429_v8  ;;  %v8348_v8 = vpack.c.bf16 %v8347_v6, %v8347_v6  ;;  %v15594_v6 = vld [vmem:[%s20092_s4 + $0x1084] ss:$16 sps:$4 sm:$0xff]  }
 0x81b   : > { %8001 = vmatpush1.bf16.msra.mxu1 %v15427_v12  ;;  %v15513_v12 = vld [vmem:[%s20092_s4 + $0xe2c] ss:$16 sps:$4 sm:$0xff]  }
 0x81c   : > { %8002 = vmatprep.subr.bf16.mxu1 %v15432_v14  ;;  %v15511_v14 = vld [vmem:[%s20092_s4 + $0xe28] ss:$16 sps:$4 sm:$0xff]  }
 0x81f   : > { %8003 = vmatpush1.bf16.msra.mxu1 %v15430_v13  ;;  %v15516_v13 = vld [vmem:[%s20092_s4 + $0xe4c] ss:$16 sps:$4 sm:$0xff]  }
 0x820   : > { %8004 = vmatprep.subr.bf16.mxu1 %v15435_v11  ;;  %v15514_v11 = vld [vmem:[%s20092_s4 + $0xe48] ss:$16 sps:$4 sm:$0xff]  }
 0x823   : > { %8005 = vmatpush1.bf16.msra.mxu1 %v15433_v23  ;;  %v15519_v23 = vld [vmem:[%s20092_s4 + $0xe6c] ss:$16 sps:$4 sm:$0xff]  }
 0x824   : > { %8229 = vmatprep.subr.bf16.mxu1 %v15438_v37  ;;  %v15517_v37 = vld [vmem:[%s20092_s4 + $0xe68] ss:$16 sps:$4 sm:$0xff]  }
 0x826   : > { %8023 = vmatmul.mubr.bf16.vlgmr.msra.gmra.mrb[0].mxu1 %v7788_v27  ;;  %v15501_v27 = vld [vmem:[%s20092_s4 + $0xea4] ss:$16 sps:$4 sm:$0xff]  }
 0x827   : > { %8230 = vmatpush1.bf16.msra.mxu1 %v15436_v51  ;;  %8261 = vmatprep.mubr.bf16.mxu1 %v16057_v44  ;;  %v15522_v51 = vld [vmem:[%s20092_s4 + $0xe8c] ss:$16 sps:$4 sm:$0xff]  }
 0x828   : > { %8231 = vmatprep.subr.bf16.mxu1 %v15441_v52  ;;  %v15520_v52 = vld [vmem:[%s20092_s4 + $0xe88] ss:$16 sps:$4 sm:$0xff]  }
 0x82b   : > { %8232 = vmatpush1.bf16.msra.mxu1 %v15439_v53  ;;  %v15525_v53 = vld [vmem:[%s20092_s4 + $0xeac] ss:$16 sps:$4 sm:$0xff]  }
 0x82c   : > { %8233 = vmatprep.subr.bf16.mxu1 %v15444_v54  ;;  %v15523_v54 = vld [vmem:[%s20092_s4 + $0xea8] ss:$16 sps:$4 sm:$0xff]  }
 0x82f   : > { %8234 = vmatpush1.bf16.msra.mxu1 %v15442_v55  ;;  %v15528_v55 = vld [vmem:[%s20092_s4 + $0xecc] ss:$16 sps:$4 sm:$0xff]  }
 0x830   : > { %8235 = vmatprep.subr.bf16.mxu1 %v15447_v56  ;;  %v15526_v56 = vld [vmem:[%s20092_s4 + $0xec8] ss:$16 sps:$4 sm:$0xff]  }
 0x833   : > { %8236 = vmatpush1.bf16.msra.mxu1 %v15445_v57  ;;  %v15531_v57 = vld [vmem:[%s20092_s4 + $0xeec] ss:$16 sps:$4 sm:$0xff]  }
 0x834   : > { %8237 = vmatprep.subr.bf16.mxu1 %v15450_v58  ;;  %v15529_v58 = vld [vmem:[%s20092_s4 + $0xee8] ss:$16 sps:$4 sm:$0xff]  }
 0x837   : > { %8238 = vmatpush1.bf16.msra.mxu1 %v15448_v24  ;;  %v15534_v24 = vld [vmem:[%s20092_s4 + $0xf04] ss:$16 sps:$4 sm:$0xff]  }
 0x838   : > { %8239 = vmatprep.subr.bf16.mxu1 %v15453_v30  ;;  %v15532_v30 = vld [vmem:[%s20092_s4 + $0xf00] ss:$16 sps:$4 sm:$0xff]  }
 0x83b   : > { %8240 = vmatpush1.bf16.msra.mxu1 %v15451_v36  ;;  %v15537_v36 = vld [vmem:[%s20092_s4 + $0xf24] ss:$16 sps:$4 sm:$0xff]  }
 0x83c   : > { %8241 = vmatprep.subr.bf16.mxu1 %v15456_v19  ;;  %v15535_v19 = vld [vmem:[%s20092_s4 + $0xf20] ss:$16 sps:$4 sm:$0xff]  }
 0x83f   : > { %8242 = vmatpush1.bf16.msra.mxu1 %v15454_v22  ;;  %v15540_v22 = vld [vmem:[%s20092_s4 + $0xf44] ss:$16 sps:$4 sm:$0xff]  }
 0x840   : > { %8243 = vmatprep.subr.bf16.mxu1 %v15459_v45  ;;  %v15538_v45 = vld [vmem:[%s20092_s4 + $0xf40] ss:$16 sps:$4 sm:$0xff]  }
 0x843   : > { %8244 = vmatpush1.bf16.msra.mxu1 %v15457_v20  ;;  %v15543_v20 = vld [vmem:[%s20092_s4 + $0xf64] ss:$16 sps:$4 sm:$0xff]  }
 0x844   : > { %8270 = vmatprep.subr.bf16.mxu1 %v15462_v46  ;;  %v15541_v46 = vld [vmem:[%s20092_s4 + $0xf60] ss:$16 sps:$4 sm:$0xff]  }
 0x846   : > { %8262 = vmatmul.mubr.bf16.vlgmr.msra.gmra.mrb[4].mxu1 %v8068_v60 }
 0x847   : > { %8271 = vmatpush1.bf16.msra.mxu1 %v15460_v59  ;;  %8302 = vmatprep.mubr.bf16.mxu1 %v16057_v44  ;;  %v15544_v59 = vld [vmem:[%s20092_s4 + $0xf80] ss:$16 sps:$4 sm:$0xff]  }
 0x848   : > { %8272 = vmatprep.subr.bf16.mxu1 %v15465_v61  ;;  %v15547_v61 = vld [vmem:[%s20092_s4 + $0xfa0] ss:$16 sps:$4 sm:$0xff]  }
 0x84b   : > { %8273 = vmatpush1.bf16.msra.mxu1 %v15463_v62  ;;  %v15552_v62 = vld [vmem:[%s20092_s4 + $0xfc4] ss:$16 sps:$4 sm:$0xff]  }
 0x84c   : > { %8274 = vmatprep.subr.bf16.mxu1 %v15468_v63  ;;  %v15550_v63 = vld [vmem:[%s20092_s4 + $0xfc0] ss:$16 sps:$4 sm:$0xff]  }
 0x84f   : > { %8275 = vmatpush1.bf16.msra.mxu1 %v15466_v0  ;;  %v15555_v0 = vld [vmem:[%s20092_s4 + $0xfe4] ss:$16 sps:$4 sm:$0xff]  }
 0x850   : > { %8276 = vmatprep.subr.bf16.mxu1 %v15471_v1  ;;  %v15553_v1 = vld [vmem:[%s20092_s4 + $0xfe0] ss:$16 sps:$4 sm:$0xff]  }
 0x853   : > { %8277 = vmatpush1.bf16.msra.mxu1 %v15469_v2  ;;  %v15558_v2 = vld [vmem:[%s20092_s4 + $0xf0c] ss:$16 sps:$4 sm:$0xff]  }
 0x854   : > { %8278 = vmatprep.subr.bf16.mxu1 %v15474_v3  ;;  %v8627_v3 = vld [vmem:[#allocation5 + $0x1b] sm:$0xff] }
 0x857   : > { %8279 = vmatpush1.bf16.msra.mxu1 %v15472_v5  ;;  %v15556_v5 = vld [vmem:[%s20092_s4 + $0xf08] ss:$16 sps:$4 sm:$0xff]  }
 0x858   : > { %8280 = vmatprep.subr.bf16.mxu1 %v15477_v18  ;;  %v8628_v18 = vpack.c.bf16 %v8627_v3, %v8627_v3  ;;  %v15642_v3 = vld [vmem:[%s20092_s4 + $0x1184] ss:$16 sps:$4 sm:$0xff]  }
 0x85b   : > { %8281 = vmatpush1.bf16.msra.mxu1 %v15475_v10  ;;  %v15561_v10 = vld [vmem:[%s20092_s4 + $0xf2c] ss:$16 sps:$4 sm:$0xff]  }
 0x85c   : > { %8282 = vmatprep.subr.bf16.mxu1 %v15480_v21  ;;  %v15559_v21 = vld [vmem:[%s20092_s4 + $0xf28] ss:$16 sps:$4 sm:$0xff]  }
 0x85f   : > { %8283 = vmatpush1.bf16.msra.mxu1 %v15478_v25  ;;  %v15564_v25 = vld [vmem:[%s20092_s4 + $0xf4c] ss:$16 sps:$4 sm:$0xff]  }
 0x860   : > { %8284 = vmatprep.subr.bf16.mxu1 %v15483_v31  ;;  %v15562_v31 = vld [vmem:[%s20092_s4 + $0xf48] ss:$16 sps:$4 sm:$0xff]  }
 0x863   : > { %8285 = vmatpush1.bf16.msra.mxu1 %v15481_v28  ;;  %v15567_v28 = vld [vmem:[%s20092_s4 + $0xf6c] ss:$16 sps:$4 sm:$0xff]  }
 0x864   : > { %8509 = vmatprep.subr.bf16.mxu1 %v15486_v33  ;;  %v15565_v33 = vld [vmem:[%s20092_s4 + $0xf68] ss:$16 sps:$4 sm:$0xff]  }
 0x866   : > { %8303 = vmatmul.mubr.bf16.vlgmr.msra.gmra.mrb[0].mxu1 %v8068_v60  ;;  %v15549_v60 = vld [vmem:[%s20092_s4 + $0xfa4] ss:$16 sps:$4 sm:$0xff]  }
 0x867   : > { %8510 = vmatpush1.bf16.msra.mxu1 %v15484_v9  ;;  %8541 = vmatprep.mubr.bf16.mxu1 %v16057_v44  ;;  %v15570_v9 = vld [vmem:[%s20092_s4 + $0xf8c] ss:$16 sps:$4 sm:$0xff]  }
 0x868   : > { %8511 = vmatprep.subr.bf16.mxu1 %v15489_v35  ;;  %v15568_v35 = vld [vmem:[%s20092_s4 + $0xf88] ss:$16 sps:$4 sm:$0xff]  }
 0x86b   : > { %8512 = vmatpush1.bf16.msra.mxu1 %v15487_v15  ;;  %v15573_v15 = vld [vmem:[%s20092_s4 + $0xfac] ss:$16 sps:$4 sm:$0xff]  }
 0x86c   : > { %8513 = vmatprep.subr.bf16.mxu1 %v15492_v16  ;;  %v15571_v16 = vld [vmem:[%s20092_s4 + $0xfa8] ss:$16 sps:$4 sm:$0xff]  }
 0x86f   : > { %8514 = vmatpush1.bf16.msra.mxu1 %v15490_v26  ;;  %v15576_v26 = vld [vmem:[%s20092_s4 + $0xfcc] ss:$16 sps:$4 sm:$0xff]  }
 0x870   : > { %8515 = vmatprep.subr.bf16.mxu1 %v15495_v17  ;;  %v15574_v17 = vld [vmem:[%s20092_s4 + $0xfc8] ss:$16 sps:$4 sm:$0xff]  }
 0x873   : > { %8516 = vmatpush1.bf16.msra.mxu1 %v15493_v32  ;;  %v15579_v32 = vld [vmem:[%s20092_s4 + $0xfec] ss:$16 sps:$4 sm:$0xff]  }
 0x874   : > { %8517 = vmatprep.subr.bf16.mxu1 %v15498_v38  ;;  %v15577_v38 = vld [vmem:[%s20092_s4 + $0xfe8] ss:$16 sps:$4 sm:$0xff]  }
 0x877   : > { %8518 = vmatpush1.bf16.msra.mxu1 %v15496_v39  ;;  %v15582_v39 = vld [vmem:[%s20092_s4 + $0x1004] ss:$16 sps:$4 sm:$0xff]  }
 0x878   : > { %8519 = vmatprep.subr.bf16.mxu1 %v15501_v27  ;;  %v15580_v27 = vld [vmem:[%s20092_s4 + $0x1000] ss:$16 sps:$4 sm:$0xff]  }
 0x87b   : > { %8520 = vmatpush1.bf16.msra.mxu1 %v15499_v40  ;;  %v15585_v40 = vld [vmem:[%s20092_s4 + $0x1024] ss:$16 sps:$4 sm:$0xff]  }
 0x87c   : > { %8521 = vmatprep.subr.bf16.mxu1 %v15504_v41  ;;  %v15583_v41 = vld [vmem:[%s20092_s4 + $0x1020] ss:$16 sps:$4 sm:$0xff]  }
 0x87f   : > { %8522 = vmatpush1.bf16.msra.mxu1 %v15502_v50  ;;  %v15588_v50 = vld [vmem:[%s20092_s4 + $0x1044] ss:$16 sps:$4 sm:$0xff]  }
 0x880   : > { %8523 = vmatprep.subr.bf16.mxu1 %v15507_v42  ;;  %v15586_v42 = vld [vmem:[%s20092_s4 + $0x1040] ss:$16 sps:$4 sm:$0xff]  }
 0x883   : > { %8524 = vmatpush1.bf16.msra.mxu1 %v15505_v43  ;;  %v15591_v43 = vld [vmem:[%s20092_s4 + $0x1064] ss:$16 sps:$4 sm:$0xff]  }
 0x884   : > { %8550 = vmatprep.subr.bf16.mxu1 %v15510_v4  ;;  %v15589_v4 = vld [vmem:[%s20092_s4 + $0x1060] ss:$16 sps:$4 sm:$0xff]  }
 0x886   : > { %8542 = vmatmul.mubr.bf16.vlgmr.msra.gmra.mrb[4].mxu1 %v8348_v8 }
 0x887   : > { %8551 = vmatpush1.bf16.msra.mxu1 %v15508_v7  ;;  %8582 = vmatprep.mubr.bf16.mxu1 %v16057_v44  ;;  %v15592_v7 = vld [vmem:[%s20092_s4 + $0x1080] ss:$16 sps:$4 sm:$0xff]  }
 0x888   : > { %8552 = vmatprep.subr.bf16.mxu1 %v15513_v12  ;;  %v15595_v12 = vld [vmem:[%s20092_s4 + $0x10a0] ss:$16 sps:$4 sm:$0xff]  }
 0x88b   : > { %8553 = vmatpush1.bf16.msra.mxu1 %v15511_v14  ;;  %v15600_v14 = vld [vmem:[%s20092_s4 + $0x10c4] ss:$16 sps:$4 sm:$0xff]  }
 0x88c   : > { %8554 = vmatprep.subr.bf16.mxu1 %v15516_v13  ;;  %v15598_v13 = vld [vmem:[%s20092_s4 + $0x10c0] ss:$16 sps:$4 sm:$0xff]  }
 0x88f   : > { %8555 = vmatpush1.bf16.msra.mxu1 %v15514_v11  ;;  %v15603_v11 = vld [vmem:[%s20092_s4 + $0x10e4] ss:$16 sps:$4 sm:$0xff]  }
 0x890   : > { %8556 = vmatprep.subr.bf16.mxu1 %v15519_v23  ;;  %v15601_v23 = vld [vmem:[%s20092_s4 + $0x10e0] ss:$16 sps:$4 sm:$0xff]  }
 0x893   : > { %8557 = vmatpush1.bf16.msra.mxu1 %v15517_v37  ;;  %v15606_v37 = vld [vmem:[%s20092_s4 + $0x100c] ss:$16 sps:$4 sm:$0xff]  }
 0x894   : > { %8558 = vmatprep.subr.bf16.mxu1 %v15522_v51  ;;  %v8907_v51 = vld [vmem:[#allocation5 + $0x1c] sm:$0xff] }
 0x897   : > { %8559 = vmatpush1.bf16.msra.mxu1 %v15520_v52  ;;  %v15604_v52 = vld [vmem:[%s20092_s4 + $0x1008] ss:$16 sps:$4 sm:$0xff]  }
 0x898   : > { %8560 = vmatprep.subr.bf16.mxu1 %v15525_v53  ;;  %v8908_v53 = vpack.c.bf16 %v8907_v51, %v8907_v51  ;;  %v15690_v51 = vld [vmem:[%s20092_s4 + $0x1284] ss:$16 sps:$4 sm:$0xff]  }
 0x89b   : > { %8561 = vmatpush1.bf16.msra.mxu1 %v15523_v54  ;;  %v15609_v54 = vld [vmem:[%s20092_s4 + $0x102c] ss:$16 sps:$4 sm:$0xff]  }
 0x89c   : > { %8562 = vmatprep.subr.bf16.mxu1 %v15528_v55  ;;  %v15607_v55 = vld [vmem:[%s20092_s4 + $0x1028] ss:$16 sps:$4 sm:$0xff]  }
 0x89f   : > { %8563 = vmatpush1.bf16.msra.mxu1 %v15526_v56  ;;  %v15612_v56 = vld [vmem:[%s20092_s4 + $0x104c] ss:$16 sps:$4 sm:$0xff]  }
 0x8a0   : > { %8564 = vmatprep.subr.bf16.mxu1 %v15531_v57  ;;  %v15610_v57 = vld [vmem:[%s20092_s4 + $0x1048] ss:$16 sps:$4 sm:$0xff]  }
 0x8a3   : > { %8565 = vmatpush1.bf16.msra.mxu1 %v15529_v58  ;;  %v15615_v58 = vld [vmem:[%s20092_s4 + $0x106c] ss:$16 sps:$4 sm:$0xff]  }
 0x8a4   : > { %8789 = vmatprep.subr.bf16.mxu1 %v15534_v24  ;;  %v15613_v24 = vld [vmem:[%s20092_s4 + $0x1068] ss:$16 sps:$4 sm:$0xff]  }
 0x8a6   : > { %8583 = vmatmul.mubr.bf16.vlgmr.msra.gmra.mrb[0].mxu1 %v8348_v8  ;;  %v15597_v8 = vld [vmem:[%s20092_s4 + $0x10a4] ss:$16 sps:$4 sm:$0xff]  }
 0x8a7   : > { %8790 = vmatpush1.bf16.msra.mxu1 %v15532_v30  ;;  %8821 = vmatprep.mubr.bf16.mxu1 %v16057_v44  ;;  %v15618_v30 = vld [vmem:[%s20092_s4 + $0x108c] ss:$16 sps:$4 sm:$0xff]  }
 0x8a8   : > { %8791 = vmatprep.subr.bf16.mxu1 %v15537_v36  ;;  %v15616_v36 = vld [vmem:[%s20092_s4 + $0x1088] ss:$16 sps:$4 sm:$0xff]  }
 0x8ab   : > { %8792 = vmatpush1.bf16.msra.mxu1 %v15535_v19  ;;  %v15621_v19 = vld [vmem:[%s20092_s4 + $0x10ac] ss:$16 sps:$4 sm:$0xff]  }
 0x8ac   : > { %8793 = vmatprep.subr.bf16.mxu1 %v15540_v22  ;;  %v15619_v22 = vld [vmem:[%s20092_s4 + $0x10a8] ss:$16 sps:$4 sm:$0xff]  }
 0x8af   : > { %8794 = vmatpush1.bf16.msra.mxu1 %v15538_v45  ;;  %v15624_v45 = vld [vmem:[%s20092_s4 + $0x10cc] ss:$16 sps:$4 sm:$0xff]  }
 0x8b0   : > { %8795 = vmatprep.subr.bf16.mxu1 %v15543_v20  ;;  %v15622_v20 = vld [vmem:[%s20092_s4 + $0x10c8] ss:$16 sps:$4 sm:$0xff]  }
 0x8b3   : > { %8796 = vmatpush1.bf16.msra.mxu1 %v15541_v46  ;;  %v15627_v46 = vld [vmem:[%s20092_s4 + $0x10ec] ss:$16 sps:$4 sm:$0xff]  }
 0x8b4   : > { %8797 = vmatprep.subr.bf16.mxu1 %v15546_v47  ;;  %v15625_v47 = vld [vmem:[%s20092_s4 + $0x10e8] ss:$16 sps:$4 sm:$0xff]  }
 0x8b7   : > { %8798 = vmatpush1.bf16.msra.mxu1 %v15544_v59  ;;  %v15630_v59 = vld [vmem:[%s20092_s4 + $0x1104] ss:$16 sps:$4 sm:$0xff]  }
 0x8b8   : > { %8799 = vmatprep.subr.bf16.mxu1 %v15549_v60  ;;  %v15628_v60 = vld [vmem:[%s20092_s4 + $0x1100] ss:$16 sps:$4 sm:$0xff]  }
 0x8bb   : > { %8800 = vmatpush1.bf16.msra.mxu1 %v15547_v61  ;;  %v15633_v61 = vld [vmem:[%s20092_s4 + $0x1124] ss:$16 sps:$4 sm:$0xff]  }
 0x8bc   : > { %8801 = vmatprep.subr.bf16.mxu1 %v15552_v62  ;;  %v15631_v62 = vld [vmem:[%s20092_s4 + $0x1120] ss:$16 sps:$4 sm:$0xff]  }
 0x8bf   : > { %8802 = vmatpush1.bf16.msra.mxu1 %v15550_v63  ;;  %v15636_v63 = vld [vmem:[%s20092_s4 + $0x1144] ss:$16 sps:$4 sm:$0xff]  }
 0x8c0   : > { %8803 = vmatprep.subr.bf16.mxu1 %v15555_v0  ;;  %v15634_v0 = vld [vmem:[%s20092_s4 + $0x1140] ss:$16 sps:$4 sm:$0xff]  }
 0x8c3   : > { %8804 = vmatpush1.bf16.msra.mxu1 %v15553_v1  ;;  %v15639_v1 = vld [vmem:[%s20092_s4 + $0x1164] ss:$16 sps:$4 sm:$0xff]  }
 0x8c4   : > { %8830 = vmatprep.subr.bf16.mxu1 %v15558_v2  ;;  %v15637_v2 = vld [vmem:[%s20092_s4 + $0x1160] ss:$16 sps:$4 sm:$0xff]  }
 0x8c6   : > { %8822 = vmatmul.mubr.bf16.vlgmr.msra.gmra.mrb[4].mxu1 %v8628_v18 }
 0x8c7   : > { %8831 = vmatpush1.bf16.msra.mxu1 %v15556_v5  ;;  %8862 = vmatprep.mubr.bf16.mxu1 %v16057_v44  ;;  %v15640_v5 = vld [vmem:[%s20092_s4 + $0x1180] ss:$16 sps:$4 sm:$0xff]  }
 0x8c8   : > { %8832 = vmatprep.subr.bf16.mxu1 %v15561_v10  ;;  %v15643_v10 = vld [vmem:[%s20092_s4 + $0x11a0] ss:$16 sps:$4 sm:$0xff]  }
 0x8cb   : > { %8833 = vmatpush1.bf16.msra.mxu1 %v15559_v21  ;;  %v15648_v21 = vld [vmem:[%s20092_s4 + $0x11c4] ss:$16 sps:$4 sm:$0xff]  }
 0x8cc   : > { %8834 = vmatprep.subr.bf16.mxu1 %v15564_v25  ;;  %v15646_v25 = vld [vmem:[%s20092_s4 + $0x11c0] ss:$16 sps:$4 sm:$0xff]  }
 0x8cf   : > { %8835 = vmatpush1.bf16.msra.mxu1 %v15562_v31  ;;  %v15651_v31 = vld [vmem:[%s20092_s4 + $0x11e4] ss:$16 sps:$4 sm:$0xff]  }
 0x8d0   : > { %8836 = vmatprep.subr.bf16.mxu1 %v15567_v28  ;;  %v15649_v28 = vld [vmem:[%s20092_s4 + $0x11e0] ss:$16 sps:$4 sm:$0xff]  }
 0x8d3   : > { %8837 = vmatpush1.bf16.msra.mxu1 %v15565_v33  ;;  %v15654_v33 = vld [vmem:[%s20092_s4 + $0x110c] ss:$16 sps:$4 sm:$0xff]  }
 0x8d4   : > { %8838 = vmatprep.subr.bf16.mxu1 %v15570_v9  ;;  %v9187_v9 = vld [vmem:[#allocation5 + $0x1d] sm:$0xff] }
 0x8d7   : > { %8839 = vmatpush1.bf16.msra.mxu1 %v15568_v35  ;;  %v15652_v35 = vld [vmem:[%s20092_s4 + $0x1108] ss:$16 sps:$4 sm:$0xff]  }
 0x8d8   : > { %8840 = vmatprep.subr.bf16.mxu1 %v15573_v15  ;;  %v9188_v15 = vpack.c.bf16 %v9187_v9, %v9187_v9  ;;  %v15738_v9 = vld [vmem:[%s20092_s4 + $0x1384] ss:$16 sps:$4 sm:$0xff]  }
 0x8db   : > { %8841 = vmatpush1.bf16.msra.mxu1 %v15571_v16  ;;  %v15657_v16 = vld [vmem:[%s20092_s4 + $0x112c] ss:$16 sps:$4 sm:$0xff]  }
 0x8dc   : > { %8842 = vmatprep.subr.bf16.mxu1 %v15576_v26  ;;  %v15655_v26 = vld [vmem:[%s20092_s4 + $0x1128] ss:$16 sps:$4 sm:$0xff]  }
 0x8df   : > { %8843 = vmatpush1.bf16.msra.mxu1 %v15574_v17  ;;  %v15660_v17 = vld [vmem:[%s20092_s4 + $0x114c] ss:$16 sps:$4 sm:$0xff]  }
 0x8e0   : > { %8844 = vmatprep.subr.bf16.mxu1 %v15579_v32  ;;  %v15658_v32 = vld [vmem:[%s20092_s4 + $0x1148] ss:$16 sps:$4 sm:$0xff]  }
 0x8e3   : > { %8845 = vmatpush1.bf16.msra.mxu1 %v15577_v38  ;;  %v15663_v38 = vld [vmem:[%s20092_s4 + $0x116c] ss:$16 sps:$4 sm:$0xff]  }
 0x8e4   : > { %9069 = vmatprep.subr.bf16.mxu1 %v15582_v39  ;;  %v15661_v39 = vld [vmem:[%s20092_s4 + $0x1168] ss:$16 sps:$4 sm:$0xff]  }
 0x8e6   : > { %8863 = vmatmul.mubr.bf16.vlgmr.msra.gmra.mrb[0].mxu1 %v8628_v18  ;;  %v15645_v18 = vld [vmem:[%s20092_s4 + $0x11a4] ss:$16 sps:$4 sm:$0xff]  }
 0x8e7   : > { %9070 = vmatpush1.bf16.msra.mxu1 %v15580_v27  ;;  %9101 = vmatprep.mubr.bf16.mxu1 %v16057_v44  ;;  %v15666_v27 = vld [vmem:[%s20092_s4 + $0x118c] ss:$16 sps:$4 sm:$0xff]  }
 0x8e8   : > { %9071 = vmatprep.subr.bf16.mxu1 %v15585_v40  ;;  %v15664_v40 = vld [vmem:[%s20092_s4 + $0x1188] ss:$16 sps:$4 sm:$0xff]  }
 0x8eb   : > { %9072 = vmatpush1.bf16.msra.mxu1 %v15583_v41  ;;  %v15669_v41 = vld [vmem:[%s20092_s4 + $0x11ac] ss:$16 sps:$4 sm:$0xff]  }
 0x8ec   : > { %9073 = vmatprep.subr.bf16.mxu1 %v15588_v50  ;;  %v15667_v50 = vld [vmem:[%s20092_s4 + $0x11a8] ss:$16 sps:$4 sm:$0xff]  }
 0x8ef   : > { %9074 = vmatpush1.bf16.msra.mxu1 %v15586_v42  ;;  %v15672_v42 = vld [vmem:[%s20092_s4 + $0x11cc] ss:$16 sps:$4 sm:$0xff]  }
 0x8f0   : > { %9075 = vmatprep.subr.bf16.mxu1 %v15591_v43  ;;  %v15670_v43 = vld [vmem:[%s20092_s4 + $0x11c8] ss:$16 sps:$4 sm:$0xff]  }
 0x8f3   : > { %9076 = vmatpush1.bf16.msra.mxu1 %v15589_v4  ;;  %v15675_v4 = vld [vmem:[%s20092_s4 + $0x11ec] ss:$16 sps:$4 sm:$0xff]  }
 0x8f4   : > { %9077 = vmatprep.subr.bf16.mxu1 %v15594_v6  ;;  %v15673_v6 = vld [vmem:[%s20092_s4 + $0x11e8] ss:$16 sps:$4 sm:$0xff]  }
 0x8f7   : > { %9078 = vmatpush1.bf16.msra.mxu1 %v15592_v7  ;;  %v15678_v7 = vld [vmem:[%s20092_s4 + $0x1204] ss:$16 sps:$4 sm:$0xff]  }
 0x8f8   : > { %9079 = vmatprep.subr.bf16.mxu1 %v15597_v8  ;;  %v15676_v8 = vld [vmem:[%s20092_s4 + $0x1200] ss:$16 sps:$4 sm:$0xff]  }
 0x8fb   : > { %9080 = vmatpush1.bf16.msra.mxu1 %v15595_v12  ;;  %v15681_v12 = vld [vmem:[%s20092_s4 + $0x1224] ss:$16 sps:$4 sm:$0xff]  }
 0x8fc   : > { %9081 = vmatprep.subr.bf16.mxu1 %v15600_v14  ;;  %v15679_v14 = vld [vmem:[%s20092_s4 + $0x1220] ss:$16 sps:$4 sm:$0xff]  }
 0x8ff   : > { %9082 = vmatpush1.bf16.msra.mxu1 %v15598_v13  ;;  %v15684_v13 = vld [vmem:[%s20092_s4 + $0x1244] ss:$16 sps:$4 sm:$0xff]  }
 0x900   : > { %9083 = vmatprep.subr.bf16.mxu1 %v15603_v11  ;;  %v15682_v11 = vld [vmem:[%s20092_s4 + $0x1240] ss:$16 sps:$4 sm:$0xff]  }
 0x903   : > { %9084 = vmatpush1.bf16.msra.mxu1 %v15601_v23  ;;  %v15687_v23 = vld [vmem:[%s20092_s4 + $0x1264] ss:$16 sps:$4 sm:$0xff]  }
 0x904   : > { %9110 = vmatprep.subr.bf16.mxu1 %v15606_v37  ;;  %v15685_v37 = vld [vmem:[%s20092_s4 + $0x1260] ss:$16 sps:$4 sm:$0xff]  }
 0x906   : > { %9102 = vmatmul.mubr.bf16.vlgmr.msra.gmra.mrb[4].mxu1 %v8908_v53 }
 0x907   : > { %9111 = vmatpush1.bf16.msra.mxu1 %v15604_v52  ;;  %9142 = vmatprep.mubr.bf16.mxu1 %v16057_v44  ;;  %v15688_v52 = vld [vmem:[%s20092_s4 + $0x1280] ss:$16 sps:$4 sm:$0xff]  }
 0x908   : > { %9112 = vmatprep.subr.bf16.mxu1 %v15609_v54  ;;  %v15691_v54 = vld [vmem:[%s20092_s4 + $0x12a0] ss:$16 sps:$4 sm:$0xff]  }
 0x90b   : > { %9113 = vmatpush1.bf16.msra.mxu1 %v15607_v55  ;;  %v15696_v55 = vld [vmem:[%s20092_s4 + $0x12c4] ss:$16 sps:$4 sm:$0xff]  }
 0x90c   : > { %9114 = vmatprep.subr.bf16.mxu1 %v15612_v56  ;;  %v15694_v56 = vld [vmem:[%s20092_s4 + $0x12c0] ss:$16 sps:$4 sm:$0xff]  }
 0x90f   : > { %9115 = vmatpush1.bf16.msra.mxu1 %v15610_v57  ;;  %v15699_v57 = vld [vmem:[%s20092_s4 + $0x12e4] ss:$16 sps:$4 sm:$0xff]  }
 0x910   : > { %9116 = vmatprep.subr.bf16.mxu1 %v15615_v58  ;;  %v15697_v58 = vld [vmem:[%s20092_s4 + $0x12e0] ss:$16 sps:$4 sm:$0xff]  }
 0x913   : > { %9117 = vmatpush1.bf16.msra.mxu1 %v15613_v24  ;;  %v15702_v24 = vld [vmem:[%s20092_s4 + $0x120c] ss:$16 sps:$4 sm:$0xff]  }
 0x914   : > { %9118 = vmatprep.subr.bf16.mxu1 %v15618_v30  ;;  %v9467_v30 = vld [vmem:[#allocation5 + $0x1e] sm:$0xff] }
 0x917   : > { %9119 = vmatpush1.bf16.msra.mxu1 %v15616_v36  ;;  %v15700_v36 = vld [vmem:[%s20092_s4 + $0x1208] ss:$16 sps:$4 sm:$0xff]  }
 0x918   : > { %9120 = vmatprep.subr.bf16.mxu1 %v15621_v19  ;;  %v9468_v19 = vpack.c.bf16 %v9467_v30, %v9467_v30  ;;  %v15786_v30 = vld [vmem:[%s20092_s4 + $0x1484] ss:$16 sps:$4 sm:$0xff]  }
 0x91b   : > { %9121 = vmatpush1.bf16.msra.mxu1 %v15619_v22  ;;  %v15705_v22 = vld [vmem:[%s20092_s4 + $0x122c] ss:$16 sps:$4 sm:$0xff]  }
 0x91c   : > { %9122 = vmatprep.subr.bf16.mxu1 %v15624_v45  ;;  %v15703_v45 = vld [vmem:[%s20092_s4 + $0x1228] ss:$16 sps:$4 sm:$0xff]  }
 0x91f   : > { %9123 = vmatpush1.bf16.msra.mxu1 %v15622_v20  ;;  %v15708_v20 = vld [vmem:[%s20092_s4 + $0x124c] ss:$16 sps:$4 sm:$0xff]  }
 0x920   : > { %9124 = vmatprep.subr.bf16.mxu1 %v15627_v46  ;;  %v15706_v46 = vld [vmem:[%s20092_s4 + $0x1248] ss:$16 sps:$4 sm:$0xff]  }
 0x923   : > { %9125 = vmatpush1.bf16.msra.mxu1 %v15625_v47  ;;  %v15711_v47 = vld [vmem:[%s20092_s4 + $0x126c] ss:$16 sps:$4 sm:$0xff]  }
 0x924   : > { %9349 = vmatprep.subr.bf16.mxu1 %v15630_v59  ;;  %v15709_v59 = vld [vmem:[%s20092_s4 + $0x1268] ss:$16 sps:$4 sm:$0xff]  }
 0x926   : > { %9143 = vmatmul.mubr.bf16.vlgmr.msra.gmra.mrb[0].mxu1 %v8908_v53  ;;  %v15693_v53 = vld [vmem:[%s20092_s4 + $0x12a4] ss:$16 sps:$4 sm:$0xff]  }
 0x927   : > { %9350 = vmatpush1.bf16.msra.mxu1 %v15628_v60  ;;  %9381 = vmatprep.mubr.bf16.mxu1 %v16057_v44  ;;  %v15714_v60 = vld [vmem:[%s20092_s4 + $0x128c] ss:$16 sps:$4 sm:$0xff]  }
 0x928   : > { %9351 = vmatprep.subr.bf16.mxu1 %v15633_v61  ;;  %v15712_v61 = vld [vmem:[%s20092_s4 + $0x1288] ss:$16 sps:$4 sm:$0xff]  }
 0x92b   : > { %9352 = vmatpush1.bf16.msra.mxu1 %v15631_v62  ;;  %v15717_v62 = vld [vmem:[%s20092_s4 + $0x12ac] ss:$16 sps:$4 sm:$0xff]  }
 0x92c   : > { %9353 = vmatprep.subr.bf16.mxu1 %v15636_v63  ;;  %v15715_v63 = vld [vmem:[%s20092_s4 + $0x12a8] ss:$16 sps:$4 sm:$0xff]  }
 0x92f   : > { %9354 = vmatpush1.bf16.msra.mxu1 %v15634_v0  ;;  %v15720_v0 = vld [vmem:[%s20092_s4 + $0x12cc] ss:$16 sps:$4 sm:$0xff]  }
 0x930   : > { %9355 = vmatprep.subr.bf16.mxu1 %v15639_v1  ;;  %v15718_v1 = vld [vmem:[%s20092_s4 + $0x12c8] ss:$16 sps:$4 sm:$0xff]  }
 0x933   : > { %9356 = vmatpush1.bf16.msra.mxu1 %v15637_v2  ;;  %v15723_v2 = vld [vmem:[%s20092_s4 + $0x12ec] ss:$16 sps:$4 sm:$0xff]  }
 0x934   : > { %9357 = vmatprep.subr.bf16.mxu1 %v15642_v3  ;;  %v15721_v3 = vld [vmem:[%s20092_s4 + $0x12e8] ss:$16 sps:$4 sm:$0xff]  }
 0x937   : > { %9358 = vmatpush1.bf16.msra.mxu1 %v15640_v5  ;;  %v15726_v5 = vld [vmem:[%s20092_s4 + $0x1304] ss:$16 sps:$4 sm:$0xff]  }
 0x938   : > { %9359 = vmatprep.subr.bf16.mxu1 %v15645_v18  ;;  %v15724_v18 = vld [vmem:[%s20092_s4 + $0x1300] ss:$16 sps:$4 sm:$0xff]  }
 0x93b   : > { %9360 = vmatpush1.bf16.msra.mxu1 %v15643_v10  ;;  %v15729_v10 = vld [vmem:[%s20092_s4 + $0x1324] ss:$16 sps:$4 sm:$0xff]  }
 0x93c   : > { %9361 = vmatprep.subr.bf16.mxu1 %v15648_v21  ;;  %v15727_v21 = vld [vmem:[%s20092_s4 + $0x1320] ss:$16 sps:$4 sm:$0xff]  }
 0x93f   : > { %9362 = vmatpush1.bf16.msra.mxu1 %v15646_v25  ;;  %v15732_v25 = vld [vmem:[%s20092_s4 + $0x1344] ss:$16 sps:$4 sm:$0xff]  }
 0x940   : > { %9363 = vmatprep.subr.bf16.mxu1 %v15651_v31  ;;  %v15730_v31 = vld [vmem:[%s20092_s4 + $0x1340] ss:$16 sps:$4 sm:$0xff]  }
 0x943   : > { %9364 = vmatpush1.bf16.msra.mxu1 %v15649_v28  ;;  %v15735_v28 = vld [vmem:[%s20092_s4 + $0x1364] ss:$16 sps:$4 sm:$0xff]  }
 0x944   : > { %9390 = vmatprep.subr.bf16.mxu1 %v15654_v33  ;;  %v15733_v33 = vld [vmem:[%s20092_s4 + $0x1360] ss:$16 sps:$4 sm:$0xff]  }
 0x946   : > { %9382 = vmatmul.mubr.bf16.vlgmr.msra.gmra.mrb[4].mxu1 %v9188_v15 }
 0x947   : > { %9391 = vmatpush1.bf16.msra.mxu1 %v15652_v35  ;;  %9422 = vmatprep.mubr.bf16.mxu1 %v16057_v44  ;;  %v15736_v35 = vld [vmem:[%s20092_s4 + $0x1380] ss:$16 sps:$4 sm:$0xff]  }
 0x948   : > { %9392 = vmatprep.subr.bf16.mxu1 %v15657_v16  ;;  %v15739_v16 = vld [vmem:[%s20092_s4 + $0x13a0] ss:$16 sps:$4 sm:$0xff]  }
 0x94b   : > { %9393 = vmatpush1.bf16.msra.mxu1 %v15655_v26  ;;  %v15744_v26 = vld [vmem:[%s20092_s4 + $0x13c4] ss:$16 sps:$4 sm:$0xff]  }
 0x94c   : > { %9394 = vmatprep.subr.bf16.mxu1 %v15660_v17  ;;  %v15742_v17 = vld [vmem:[%s20092_s4 + $0x13c0] ss:$16 sps:$4 sm:$0xff]  }
 0x94f   : > { %9395 = vmatpush1.bf16.msra.mxu1 %v15658_v32  ;;  %v15747_v32 = vld [vmem:[%s20092_s4 + $0x13e4] ss:$16 sps:$4 sm:$0xff]  }
 0x950   : > { %9396 = vmatprep.subr.bf16.mxu1 %v15663_v38  ;;  %v15745_v38 = vld [vmem:[%s20092_s4 + $0x13e0] ss:$16 sps:$4 sm:$0xff]  }
 0x953   : > { %9397 = vmatpush1.bf16.msra.mxu1 %v15661_v39  ;;  %v15750_v39 = vld [vmem:[%s20092_s4 + $0x130c] ss:$16 sps:$4 sm:$0xff]  }
 0x954   : > { %9398 = vmatprep.subr.bf16.mxu1 %v15666_v27  ;;  %v9747_v27 = vld [vmem:[#allocation5 + $0x1f] sm:$0xff] }
 0x957   : > { %9399 = vmatpush1.bf16.msra.mxu1 %v15664_v40  ;;  %v15748_v40 = vld [vmem:[%s20092_s4 + $0x1308] ss:$16 sps:$4 sm:$0xff]  }
 0x958   : > { %9400 = vmatprep.subr.bf16.mxu1 %v15669_v41  ;;  %v9748_v41 = vpack.c.bf16 %v9747_v27, %v9747_v27  ;;  %v15834_v27 = vld [vmem:[%s20092_s4 + $0x1584] ss:$16 sps:$4 sm:$0xff]  }
 0x95b   : > { %9401 = vmatpush1.bf16.msra.mxu1 %v15667_v50  ;;  %v15753_v50 = vld [vmem:[%s20092_s4 + $0x132c] ss:$16 sps:$4 sm:$0xff]  }
 0x95c   : > { %9402 = vmatprep.subr.bf16.mxu1 %v15672_v42  ;;  %v15751_v42 = vld [vmem:[%s20092_s4 + $0x1328] ss:$16 sps:$4 sm:$0xff]  }
 0x95f   : > { %9403 = vmatpush1.bf16.msra.mxu1 %v15670_v43  ;;  %v15756_v43 = vld [vmem:[%s20092_s4 + $0x134c] ss:$16 sps:$4 sm:$0xff]  }
 0x960   : > { %9404 = vmatprep.subr.bf16.mxu1 %v15675_v4  ;;  %v15754_v4 = vld [vmem:[%s20092_s4 + $0x1348] ss:$16 sps:$4 sm:$0xff]  }
 0x963   : > { %9405 = vmatpush1.bf16.msra.mxu1 %v15673_v6  ;;  %v15759_v6 = vld [vmem:[%s20092_s4 + $0x136c] ss:$16 sps:$4 sm:$0xff]  }
 0x964   : > { %9629 = vmatprep.subr.bf16.mxu1 %v15678_v7  ;;  %v15757_v7 = vld [vmem:[%s20092_s4 + $0x1368] ss:$16 sps:$4 sm:$0xff]  }
 0x966   : > { %9423 = vmatmul.mubr.bf16.vlgmr.msra.gmra.mrb[0].mxu1 %v9188_v15  ;;  %v15741_v15 = vld [vmem:[%s20092_s4 + $0x13a4] ss:$16 sps:$4 sm:$0xff]  }
 0x967   : > { %9630 = vmatpush1.bf16.msra.mxu1 %v15676_v8  ;;  %9661 = vmatprep.mubr.bf16.mxu1 %v16057_v44  ;;  %v15762_v8 = vld [vmem:[%s20092_s4 + $0x138c] ss:$16 sps:$4 sm:$0xff]  }
 0x968   : > { %9631 = vmatprep.subr.bf16.mxu1 %v15681_v12  ;;  %v15760_v12 = vld [vmem:[%s20092_s4 + $0x1388] ss:$16 sps:$4 sm:$0xff]  }
 0x96b   : > { %9632 = vmatpush1.bf16.msra.mxu1 %v15679_v14  ;;  %v15765_v14 = vld [vmem:[%s20092_s4 + $0x13ac] ss:$16 sps:$4 sm:$0xff]  }
 0x96c   : > { %9633 = vmatprep.subr.bf16.mxu1 %v15684_v13  ;;  %v15763_v13 = vld [vmem:[%s20092_s4 + $0x13a8] ss:$16 sps:$4 sm:$0xff]  }
 0x96f   : > { %9634 = vmatpush1.bf16.msra.mxu1 %v15682_v11  ;;  %v15768_v11 = vld [vmem:[%s20092_s4 + $0x13cc] ss:$16 sps:$4 sm:$0xff]  }
 0x970   : > { %9635 = vmatprep.subr.bf16.mxu1 %v15687_v23  ;;  %v15766_v23 = vld [vmem:[%s20092_s4 + $0x13c8] ss:$16 sps:$4 sm:$0xff]  }
 0x973   : > { %9636 = vmatpush1.bf16.msra.mxu1 %v15685_v37  ;;  %v15771_v37 = vld [vmem:[%s20092_s4 + $0x13ec] ss:$16 sps:$4 sm:$0xff]  }
 0x974   : > { %9637 = vmatprep.subr.bf16.mxu1 %v15690_v51  ;;  %v15769_v51 = vld [vmem:[%s20092_s4 + $0x13e8] ss:$16 sps:$4 sm:$0xff]  }
 0x977   : > { %9638 = vmatpush1.bf16.msra.mxu1 %v15688_v52  ;;  %v15774_v52 = vld [vmem:[%s20092_s4 + $0x1404] ss:$16 sps:$4 sm:$0xff]  }
 0x978   : > { %9639 = vmatprep.subr.bf16.mxu1 %v15693_v53  ;;  %v15772_v53 = vld [vmem:[%s20092_s4 + $0x1400] ss:$16 sps:$4 sm:$0xff]  }
 0x97b   : > { %9640 = vmatpush1.bf16.msra.mxu1 %v15691_v54  ;;  %v15777_v54 = vld [vmem:[%s20092_s4 + $0x1424] ss:$16 sps:$4 sm:$0xff]  }
 0x97c   : > { %9641 = vmatprep.subr.bf16.mxu1 %v15696_v55  ;;  %v15775_v55 = vld [vmem:[%s20092_s4 + $0x1420] ss:$16 sps:$4 sm:$0xff]  }
 0x97f   : > { %9642 = vmatpush1.bf16.msra.mxu1 %v15694_v56  ;;  %v15780_v56 = vld [vmem:[%s20092_s4 + $0x1444] ss:$16 sps:$4 sm:$0xff]  }
 0x980   : > { %9643 = vmatprep.subr.bf16.mxu1 %v15699_v57  ;;  %v15778_v57 = vld [vmem:[%s20092_s4 + $0x1440] ss:$16 sps:$4 sm:$0xff]  }
 0x983   : > { %9644 = vmatpush1.bf16.msra.mxu1 %v15697_v58  ;;  %v15783_v58 = vld [vmem:[%s20092_s4 + $0x1464] ss:$16 sps:$4 sm:$0xff]  }
 0x984   : > { %9670 = vmatprep.subr.bf16.mxu1 %v15702_v24  ;;  %v15781_v24 = vld [vmem:[%s20092_s4 + $0x1460] ss:$16 sps:$4 sm:$0xff]  }
 0x986   : > { %9662 = vmatmul.mubr.bf16.vlgmr.msra.gmra.mrb[4].mxu1 %v9468_v19 }
 0x987   : > { %9671 = vmatpush1.bf16.msra.mxu1 %v15700_v36  ;;  %9702 = vmatprep.mubr.bf16.mxu1 %v16057_v44  ;;  %v15784_v36 = vld [vmem:[%s20092_s4 + $0x1480] ss:$16 sps:$4 sm:$0xff]  }
 0x988   : > { %9672 = vmatprep.subr.bf16.mxu1 %v15705_v22  ;;  %v15787_v22 = vld [vmem:[%s20092_s4 + $0x14a0] ss:$16 sps:$4 sm:$0xff]  }
 0x98b   : > { %9673 = vmatpush1.bf16.msra.mxu1 %v15703_v45  ;;  %v15792_v45 = vld [vmem:[%s20092_s4 + $0x14c4] ss:$16 sps:$4 sm:$0xff]  }
 0x98c   : > { %9674 = vmatprep.subr.bf16.mxu1 %v15708_v20  ;;  %v15790_v20 = vld [vmem:[%s20092_s4 + $0x14c0] ss:$16 sps:$4 sm:$0xff]  }
 0x98f   : > { %9675 = vmatpush1.bf16.msra.mxu1 %v15706_v46  ;;  %v15795_v46 = vld [vmem:[%s20092_s4 + $0x14e4] ss:$16 sps:$4 sm:$0xff]  }
 0x990   : > { %9676 = vmatprep.subr.bf16.mxu1 %v15711_v47  ;;  %v15793_v47 = vld [vmem:[%s20092_s4 + $0x14e0] ss:$16 sps:$4 sm:$0xff]  }
 0x993   : > { %9677 = vmatpush1.bf16.msra.mxu1 %v15709_v59  ;;  %v15798_v59 = vld [vmem:[%s20092_s4 + $0x140c] ss:$16 sps:$4 sm:$0xff]  }
 0x994   : > { %9678 = vmatprep.subr.bf16.mxu1 %v15714_v60  ;;  %v10027_v60 = vld [vmem:[#allocation5 + $0x24] sm:$0xff] }
 0x997   : > { %9679 = vmatpush1.bf16.msra.mxu1 %v15712_v61  ;;  %v15796_v61 = vld [vmem:[%s20092_s4 + $0x1408] ss:$16 sps:$4 sm:$0xff]  }
 0x998   : > { %9680 = vmatprep.subr.bf16.mxu1 %v15717_v62  ;;  %v10028_v62 = vpack.c.bf16 %v10027_v60, %v10027_v60  ;;  %v15882_v60 = vld [vmem:[%s20092_s4 + $0x1684] ss:$16 sps:$4 sm:$0xff]  }
 0x99b   : > { %9681 = vmatpush1.bf16.msra.mxu1 %v15715_v63  ;;  %v15801_v63 = vld [vmem:[%s20092_s4 + $0x142c] ss:$16 sps:$4 sm:$0xff]  }
 0x99c   : > { %9682 = vmatprep.subr.bf16.mxu1 %v15720_v0  ;;  %v15799_v0 = vld [vmem:[%s20092_s4 + $0x1428] ss:$16 sps:$4 sm:$0xff]  }
 0x99f   : > { %9683 = vmatpush1.bf16.msra.mxu1 %v15718_v1  ;;  %v15804_v1 = vld [vmem:[%s20092_s4 + $0x144c] ss:$16 sps:$4 sm:$0xff]  }
 0x9a0   : > { %9684 = vmatprep.subr.bf16.mxu1 %v15723_v2  ;;  %v15802_v2 = vld [vmem:[%s20092_s4 + $0x1448] ss:$16 sps:$4 sm:$0xff]  }
 0x9a3   : > { %9685 = vmatpush1.bf16.msra.mxu1 %v15721_v3  ;;  %v15807_v3 = vld [vmem:[%s20092_s4 + $0x146c] ss:$16 sps:$4 sm:$0xff]  }
 0x9a4   : > { %9909 = vmatprep.subr.bf16.mxu1 %v15726_v5  ;;  %v15805_v5 = vld [vmem:[%s20092_s4 + $0x1468] ss:$16 sps:$4 sm:$0xff]  }
 0x9a6   : > { %9703 = vmatmul.mubr.bf16.vlgmr.msra.gmra.mrb[0].mxu1 %v9468_v19  ;;  %v15789_v19 = vld [vmem:[%s20092_s4 + $0x14a4] ss:$16 sps:$4 sm:$0xff]  }
 0x9a7   : > { %9910 = vmatpush1.bf16.msra.mxu1 %v15724_v18  ;;  %9941 = vmatprep.mubr.bf16.mxu1 %v16057_v44  ;;  %v15810_v18 = vld [vmem:[%s20092_s4 + $0x148c] ss:$16 sps:$4 sm:$0xff]  }
 0x9a8   : > { %9911 = vmatprep.subr.bf16.mxu1 %v15729_v10  ;;  %v15808_v10 = vld [vmem:[%s20092_s4 + $0x1488] ss:$16 sps:$4 sm:$0xff]  }
 0x9ab   : > { %9912 = vmatpush1.bf16.msra.mxu1 %v15727_v21  ;;  %v15813_v21 = vld [vmem:[%s20092_s4 + $0x14ac] ss:$16 sps:$4 sm:$0xff]  }
 0x9ac   : > { %9913 = vmatprep.subr.bf16.mxu1 %v15732_v25  ;;  %v15811_v25 = vld [vmem:[%s20092_s4 + $0x14a8] ss:$16 sps:$4 sm:$0xff]  }
 0x9af   : > { %9914 = vmatpush1.bf16.msra.mxu1 %v15730_v31  ;;  %v15816_v31 = vld [vmem:[%s20092_s4 + $0x14cc] ss:$16 sps:$4 sm:$0xff]  }
 0x9b0   : > { %9915 = vmatprep.subr.bf16.mxu1 %v15735_v28  ;;  %v15814_v28 = vld [vmem:[%s20092_s4 + $0x14c8] ss:$16 sps:$4 sm:$0xff]  }
 0x9b3   : > { %9916 = vmatpush1.bf16.msra.mxu1 %v15733_v33  ;;  %v15819_v33 = vld [vmem:[%s20092_s4 + $0x14ec] ss:$16 sps:$4 sm:$0xff]  }
 0x9b4   : > { %9917 = vmatprep.subr.bf16.mxu1 %v15738_v9  ;;  %v15817_v9 = vld [vmem:[%s20092_s4 + $0x14e8] ss:$16 sps:$4 sm:$0xff]  }
 0x9b7   : > { %9918 = vmatpush1.bf16.msra.mxu1 %v15736_v35  ;;  %v15822_v35 = vld [vmem:[%s20092_s4 + $0x1504] ss:$16 sps:$4 sm:$0xff]  }
 0x9b8   : > { %9919 = vmatprep.subr.bf16.mxu1 %v15741_v15  ;;  %v15820_v15 = vld [vmem:[%s20092_s4 + $0x1500] ss:$16 sps:$4 sm:$0xff]  }
 0x9bb   : > { %9920 = vmatpush1.bf16.msra.mxu1 %v15739_v16  ;;  %v15825_v16 = vld [vmem:[%s20092_s4 + $0x1524] ss:$16 sps:$4 sm:$0xff]  }
 0x9bc   : > { %9921 = vmatprep.subr.bf16.mxu1 %v15744_v26  ;;  %v15823_v26 = vld [vmem:[%s20092_s4 + $0x1520] ss:$16 sps:$4 sm:$0xff]  }
 0x9bf   : > { %9922 = vmatpush1.bf16.msra.mxu1 %v15742_v17  ;;  %v15828_v17 = vld [vmem:[%s20092_s4 + $0x1544] ss:$16 sps:$4 sm:$0xff]  }
 0x9c0   : > { %9923 = vmatprep.subr.bf16.mxu1 %v15747_v32  ;;  %v15826_v32 = vld [vmem:[%s20092_s4 + $0x1540] ss:$16 sps:$4 sm:$0xff]  }
 0x9c3   : > { %9924 = vmatpush1.bf16.msra.mxu1 %v15745_v38  ;;  %v15831_v38 = vld [vmem:[%s20092_s4 + $0x1564] ss:$16 sps:$4 sm:$0xff]  }
 0x9c4   : > { %9950 = vmatprep.subr.bf16.mxu1 %v15750_v39  ;;  %v15829_v39 = vld [vmem:[%s20092_s4 + $0x1560] ss:$16 sps:$4 sm:$0xff]  }
 0x9c6   : > { %9942 = vmatmul.mubr.bf16.vlgmr.msra.gmra.mrb[4].mxu1 %v9748_v41 }
 0x9c7   : > { %9951 = vmatpush1.bf16.msra.mxu1 %v15748_v40  ;;  %9982 = vmatprep.mubr.bf16.mxu1 %v16057_v44  ;;  %v15832_v40 = vld [vmem:[%s20092_s4 + $0x1580] ss:$16 sps:$4 sm:$0xff]  }
 0x9c8   : > { %9952 = vmatprep.subr.bf16.mxu1 %v15753_v50  ;;  %v15835_v50 = vld [vmem:[%s20092_s4 + $0x15a0] ss:$16 sps:$4 sm:$0xff]  }
 0x9cb   : > { %9953 = vmatpush1.bf16.msra.mxu1 %v15751_v42  ;;  %v15840_v42 = vld [vmem:[%s20092_s4 + $0x15c4] ss:$16 sps:$4 sm:$0xff]  }
 0x9cc   : > { %9954 = vmatprep.subr.bf16.mxu1 %v15756_v43  ;;  %v15838_v43 = vld [vmem:[%s20092_s4 + $0x15c0] ss:$16 sps:$4 sm:$0xff]  }
 0x9cf   : > { %9955 = vmatpush1.bf16.msra.mxu1 %v15754_v4  ;;  %v15843_v4 = vld [vmem:[%s20092_s4 + $0x15e4] ss:$16 sps:$4 sm:$0xff]  }
 0x9d0   : > { %9956 = vmatprep.subr.bf16.mxu1 %v15759_v6  ;;  %v15841_v6 = vld [vmem:[%s20092_s4 + $0x15e0] ss:$16 sps:$4 sm:$0xff]  }
 0x9d3   : > { %9957 = vmatpush1.bf16.msra.mxu1 %v15757_v7  ;;  %v15846_v7 = vld [vmem:[%s20092_s4 + $0x150c] ss:$16 sps:$4 sm:$0xff]  }
 0x9d4   : > { %9958 = vmatprep.subr.bf16.mxu1 %v15762_v8  ;;  %v10307_v8 = vld [vmem:[#allocation5 + $0x25] sm:$0xff] }
 0x9d7   : > { %9959 = vmatpush1.bf16.msra.mxu1 %v15760_v12  ;;  %v15844_v12 = vld [vmem:[%s20092_s4 + $0x1508] ss:$16 sps:$4 sm:$0xff]  }
 0x9d8   : > { %9960 = vmatprep.subr.bf16.mxu1 %v15765_v14  ;;  %v10308_v14 = vpack.c.bf16 %v10307_v8, %v10307_v8  ;;  %v16015_v8 = vld [vmem:[%s20093_s5 + $0x8] sm:$0xff]  }
 0x9db   : > { %9961 = vmatpush1.bf16.msra.mxu1 %v15763_v13  ;;  %v15849_v13 = vld [vmem:[%s20092_s4 + $0x152c] ss:$16 sps:$4 sm:$0xff]  }
 0x9dc   : > { %9962 = vmatprep.subr.bf16.mxu1 %v15768_v11  ;;  %v15847_v11 = vld [vmem:[%s20092_s4 + $0x1528] ss:$16 sps:$4 sm:$0xff]  }
 0x9df   : > { %9963 = vmatpush1.bf16.msra.mxu1 %v15766_v23  ;;  %v15852_v23 = vld [vmem:[%s20092_s4 + $0x154c] ss:$16 sps:$4 sm:$0xff]  }
 0x9e0   : > { %9964 = vmatprep.subr.bf16.mxu1 %v15771_v37  ;;  %v15850_v37 = vld [vmem:[%s20092_s4 + $0x1548] ss:$16 sps:$4 sm:$0xff]  }
 0x9e3   : > { %9965 = vmatpush1.bf16.msra.mxu1 %v15769_v51  ;;  %v15855_v51 = vld [vmem:[%s20092_s4 + $0x156c] ss:$16 sps:$4 sm:$0xff]  }
 0x9e4   : > { %10189 = vmatprep.subr.bf16.mxu1 %v15774_v52  ;;  %v15853_v52 = vld [vmem:[%s20092_s4 + $0x1568] ss:$16 sps:$4 sm:$0xff]  }
 0x9e6   : > { %9983 = vmatmul.mubr.bf16.vlgmr.msra.gmra.mrb[0].mxu1 %v9748_v41  ;;  %v15837_v41 = vld [vmem:[%s20092_s4 + $0x15a4] ss:$16 sps:$4 sm:$0xff]  }
 0x9e7   : > { %10190 = vmatpush1.bf16.msra.mxu1 %v15772_v53  ;;  %10221 = vmatprep.mubr.bf16.mxu1 %v16057_v44  ;;  %v15858_v53 = vld [vmem:[%s20092_s4 + $0x158c] ss:$16 sps:$4 sm:$0xff]  }
 0x9e8   : > { %10191 = vmatprep.subr.bf16.mxu1 %v15777_v54  ;;  %v15856_v54 = vld [vmem:[%s20092_s4 + $0x1588] ss:$16 sps:$4 sm:$0xff]  }
 0x9eb   : > { %10192 = vmatpush1.bf16.msra.mxu1 %v15775_v55  ;;  %v15861_v55 = vld [vmem:[%s20092_s4 + $0x15ac] ss:$16 sps:$4 sm:$0xff]  }
 0x9ec   : > { %10193 = vmatprep.subr.bf16.mxu1 %v15780_v56  ;;  %v15859_v56 = vld [vmem:[%s20092_s4 + $0x15a8] ss:$16 sps:$4 sm:$0xff]  }
 0x9ef   : > { %10194 = vmatpush1.bf16.msra.mxu1 %v15778_v57  ;;  %v15864_v57 = vld [vmem:[%s20092_s4 + $0x15cc] ss:$16 sps:$4 sm:$0xff]  }
 0x9f0   : > { %10195 = vmatprep.subr.bf16.mxu1 %v15783_v58  ;;  %v15862_v58 = vld [vmem:[%s20092_s4 + $0x15c8] ss:$16 sps:$4 sm:$0xff]  }
 0x9f3   : > { %10196 = vmatpush1.bf16.msra.mxu1 %v15781_v24  ;;  %v15867_v24 = vld [vmem:[%s20092_s4 + $0x15ec] ss:$16 sps:$4 sm:$0xff]  }
 0x9f4   : > { %10197 = vmatprep.subr.bf16.mxu1 %v15786_v30  ;;  %v15865_v30 = vld [vmem:[%s20092_s4 + $0x15e8] ss:$16 sps:$4 sm:$0xff]  }
 0x9f7   : > { %10198 = vmatpush1.bf16.msra.mxu1 %v15784_v36  ;;  %v15870_v36 = vld [vmem:[%s20092_s4 + $0x1604] ss:$16 sps:$4 sm:$0xff]  }
 0x9f8   : > { %10199 = vmatprep.subr.bf16.mxu1 %v15789_v19  ;;  %v15868_v19 = vld [vmem:[%s20092_s4 + $0x1600] ss:$16 sps:$4 sm:$0xff]  }
 0x9fb   : > { %10200 = vmatpush1.bf16.msra.mxu1 %v15787_v22  ;;  %v15873_v22 = vld [vmem:[%s20092_s4 + $0x1624] ss:$16 sps:$4 sm:$0xff]  }
 0x9fc   : > { %10201 = vmatprep.subr.bf16.mxu1 %v15792_v45  ;;  %v15871_v45 = vld [vmem:[%s20092_s4 + $0x1620] ss:$16 sps:$4 sm:$0xff]  }
 0x9ff   : > { %10202 = vmatpush1.bf16.msra.mxu1 %v15790_v20  ;;  %v15876_v20 = vld [vmem:[%s20092_s4 + $0x1644] ss:$16 sps:$4 sm:$0xff]  }
 0xa00   : > { %10203 = vmatprep.subr.bf16.mxu1 %v15795_v46  ;;  %v15874_v46 = vld [vmem:[%s20092_s4 + $0x1640] ss:$16 sps:$4 sm:$0xff]  }
 0xa03   : > { %10204 = vmatpush1.bf16.msra.mxu1 %v15793_v47  ;;  %v15879_v47 = vld [vmem:[%s20092_s4 + $0x1664] ss:$16 sps:$4 sm:$0xff]  }
 0xa04   : > { %10230 = vmatprep.subr.bf16.mxu1 %v15798_v59  ;;  %v15877_v59 = vld [vmem:[%s20092_s4 + $0x1660] ss:$16 sps:$4 sm:$0xff]  }
 0xa06   : > { %10222 = vmatmul.mubr.bf16.vlgmr.msra.gmra.mrb[4].mxu1 %v10028_v62 }
 0xa07   : > { %10231 = vmatpush1.bf16.msra.mxu1 %v15796_v61  ;;  %10262 = vmatprep.mubr.bf16.mxu1 %v16057_v44  ;;  %v15880_v61 = vld [vmem:[%s20092_s4 + $0x1680] ss:$16 sps:$4 sm:$0xff]  }
 0xa08   : > { %10232 = vmatprep.subr.bf16.mxu1 %v15801_v63  ;;  %v15883_v63 = vld [vmem:[%s20092_s4 + $0x16a0] ss:$16 sps:$4 sm:$0xff]  }
 0xa0b   : > { %10233 = vmatpush1.bf16.msra.mxu1 %v15799_v0  ;;  %v15888_v0 = vld [vmem:[%s20092_s4 + $0x16c4] ss:$16 sps:$4 sm:$0xff]  }
 0xa0c   : > { %10234 = vmatprep.subr.bf16.mxu1 %v15804_v1  ;;  %v15886_v1 = vld [vmem:[%s20092_s4 + $0x16c0] ss:$16 sps:$4 sm:$0xff]  }
 0xa0f   : > { %10235 = vmatpush1.bf16.msra.mxu1 %v15802_v2  ;;  %v15891_v2 = vld [vmem:[%s20092_s4 + $0x16e4] ss:$16 sps:$4 sm:$0xff]  }
 0xa10   : > { %10236 = vmatprep.subr.bf16.mxu1 %v15807_v3  ;;  %v15889_v3 = vld [vmem:[%s20092_s4 + $0x16e0] ss:$16 sps:$4 sm:$0xff]  }
 0xa13   : > { %10237 = vmatpush1.bf16.msra.mxu1 %v15805_v5  ;;  %v15894_v5 = vld [vmem:[%s20092_s4 + $0x160c] ss:$16 sps:$4 sm:$0xff]  }
 0xa14   : > { %10238 = vmatprep.subr.bf16.mxu1 %v15810_v18  ;;  %v10587_v18 = vld [vmem:[#allocation5 + $0x26] sm:$0xff] }
 0xa17   : > { %10239 = vmatpush1.bf16.msra.mxu1 %v15808_v10  ;;  %v15892_v10 = vld [vmem:[%s20092_s4 + $0x1608] ss:$16 sps:$4 sm:$0xff]  }
 0xa18   : > { %10240 = vmatprep.subr.bf16.mxu1 %v15813_v21  ;;  %v10588_v21 = vpack.c.bf16 %v10587_v18, %v10587_v18  ;;  %v15963_v18 = vld [vmem:[%s20092_s4 + $0x17ec] ss:$16 sps:$4 sm:$0xff]  }
 0xa1b   : > { %10241 = vmatpush1.bf16.msra.mxu1 %v15811_v25  ;;  %v15897_v25 = vld [vmem:[%s20092_s4 + $0x162c] ss:$16 sps:$4 sm:$0xff]  }
 0xa1c   : > { %10242 = vmatprep.subr.bf16.mxu1 %v15816_v31  ;;  %v15895_v31 = vld [vmem:[%s20092_s4 + $0x1628] ss:$16 sps:$4 sm:$0xff]  }
 0xa1f   : > { %10243 = vmatpush1.bf16.msra.mxu1 %v15814_v28  ;;  %v15900_v28 = vld [vmem:[%s20092_s4 + $0x164c] ss:$16 sps:$4 sm:$0xff]  }
 0xa20   : > { %10244 = vmatprep.subr.bf16.mxu1 %v15819_v33  ;;  %v15898_v33 = vld [vmem:[%s20092_s4 + $0x1648] ss:$16 sps:$4 sm:$0xff]  }
 0xa23   : > { %10245 = vmatpush1.bf16.msra.mxu1 %v15817_v9  ;;  %v15903_v9 = vld [vmem:[%s20092_s4 + $0x166c] ss:$16 sps:$4 sm:$0xff]  }
 0xa24   : > { %10469 = vmatprep.subr.bf16.mxu1 %v15822_v35  ;;  %v15901_v35 = vld [vmem:[%s20092_s4 + $0x1668] ss:$16 sps:$4 sm:$0xff]  }
 0xa26   : > { %10263 = vmatmul.mubr.bf16.vlgmr.msra.gmra.mrb[0].mxu1 %v10028_v62  ;;  %v15885_v62 = vld [vmem:[%s20092_s4 + $0x16a4] ss:$16 sps:$4 sm:$0xff]  }
 0xa27   : > { %10470 = vmatpush1.bf16.msra.mxu1 %v15820_v15  ;;  %10501 = vmatprep.mubr.bf16.mxu1 %v16057_v44  ;;  %v15906_v15 = vld [vmem:[%s20092_s4 + $0x168c] ss:$16 sps:$4 sm:$0xff]  }
 0xa28   : > { %10471 = vmatprep.subr.bf16.mxu1 %v15825_v16  ;;  %v15904_v16 = vld [vmem:[%s20092_s4 + $0x1688] ss:$16 sps:$4 sm:$0xff]  }
 0xa2b   : > { %10472 = vmatpush1.bf16.msra.mxu1 %v15823_v26  ;;  %v15909_v26 = vld [vmem:[%s20092_s4 + $0x16ac] ss:$16 sps:$4 sm:$0xff]  }
 0xa2c   : > { %10473 = vmatprep.subr.bf16.mxu1 %v15828_v17  ;;  %v15907_v17 = vld [vmem:[%s20092_s4 + $0x16a8] ss:$16 sps:$4 sm:$0xff]  }
 0xa2f   : > { %10474 = vmatpush1.bf16.msra.mxu1 %v15826_v32  ;;  %v15912_v32 = vld [vmem:[%s20092_s4 + $0x16cc] ss:$16 sps:$4 sm:$0xff]  }
 0xa30   : > { %10475 = vmatprep.subr.bf16.mxu1 %v15831_v38  ;;  %v15910_v38 = vld [vmem:[%s20092_s4 + $0x16c8] ss:$16 sps:$4 sm:$0xff]  }
 0xa33   : > { %10476 = vmatpush1.bf16.msra.mxu1 %v15829_v39  ;;  %v15915_v39 = vld [vmem:[%s20092_s4 + $0x16ec] ss:$16 sps:$4 sm:$0xff]  }
 0xa34   : > { %10477 = vmatprep.subr.bf16.mxu1 %v15834_v27  ;;  %v15913_v27 = vld [vmem:[%s20092_s4 + $0x16e8] ss:$16 sps:$4 sm:$0xff]  }
 0xa37   : > { %10478 = vmatpush1.bf16.msra.mxu1 %v15832_v40  ;;  %v15918_v40 = vld [vmem:[%s20092_s4 + $0x1704] ss:$16 sps:$4 sm:$0xff]  }
 0xa38   : > { %10479 = vmatprep.subr.bf16.mxu1 %v15837_v41  ;;  %v15916_v41 = vld [vmem:[%s20092_s4 + $0x1700] ss:$16 sps:$4 sm:$0xff]  }
 0xa3b   : > { %10480 = vmatpush1.bf16.msra.mxu1 %v15835_v50  ;;  %v15921_v50 = vld [vmem:[%s20092_s4 + $0x1724] ss:$16 sps:$4 sm:$0xff]  }
 0xa3c   : > { %10481 = vmatprep.subr.bf16.mxu1 %v15840_v42  ;;  %v16012_v42 = vld [vmem:[%s20093_s5 + $0x40] sm:$0xff]  }
 0xa3d   : > { %13240 = vmatprep.subr.bf16.mxu0 %v16012_v42  ;;  %v15988_v42 = vld [vmem:[%s20092_s4 + $0x1808] ss:$16 sps:$4 sm:$0xff]  }
 0xa3f   : > { %10482 = vmatpush1.bf16.msra.mxu1 %v15838_v43  ;;  %v16013_v43 = vld [vmem:[%s20093_s5] sm:$0xff]  }
 0xa40   : > { %10483 = vmatprep.subr.bf16.mxu1 %v15843_v4  ;;  %v16014_v4 = vld [vmem:[%s20093_s5 + $0x48] sm:$0xff]   ;;  %13241 = vmatpush3.bf16.msra.mxu0 %v16013_v43 }
 0xa41   : > { %13242 = vmatprep.subr.bf16.mxu0 %v16014_v4  ;;  %v15993_v4 = vld [vmem:[%s20092_s4 + $0x182c] ss:$16 sps:$4 sm:$0xff]  }
 0xa43   : > { %10484 = vmatpush1.bf16.msra.mxu1 %v15841_v6  ;;  %v15919_v6 = vld [vmem:[%s20092_s4 + $0x1720] ss:$16 sps:$4 sm:$0xff]  }
 0xa44   : > { %10510 = vmatprep.subr.bf16.mxu1 %v15846_v7  ;;  %v15924_v7 = vld [vmem:[%s20092_s4 + $0x1744] ss:$16 sps:$4 sm:$0xff]   ;;  %13243 = vmatpush3.bf16.msra.mxu0 %v16015_v8  ;;  %v15994_v8 = vld [vmem:[%s20092_s4 + $0x1848] ss:$16 sps:$4 sm:$0xff]  }
 0xa46   : > { %10502 = vmatmul.mubr.bf16.vlgmr.msra.gmra.mrb[4].mxu1 %v10308_v14 }
 0xa47   : > { %10511 = vmatpush1.bf16.msra.mxu1 %v15844_v12  ;;  %10542 = vmatprep.mubr.bf16.mxu1 %v16057_v44  ;;  %v16016_v12 = vld [vmem:[%s20093_s5 + $0x50] sm:$0xff]  }
 0xa48   : > { %10512 = vmatprep.subr.bf16.mxu1 %v15849_v13  ;;  %v15927_v13 = vld [vmem:[%s20092_s4 + $0x1764] ss:$16 sps:$4 sm:$0xff]   ;;  %13244 = vmatprep.subr.bf16.mxu0 %v16016_v12  ;;  %v15999_v12 = vld [vmem:[%s20092_s4 + $0x186c] ss:$16 sps:$4 sm:$0xff]  }
 0xa4b   : > { %10513 = vmatpush1.bf16.msra.mxu1 %v15847_v11  ;;  %v16017_v11 = vld [vmem:[%s20093_s5 + $0x10] sm:$0xff]  }
 0xa4c   : > { %10514 = vmatprep.subr.bf16.mxu1 %v15852_v23  ;;  %v16018_v23 = vld [vmem:[%s20093_s5 + $0x58] sm:$0xff]   ;;  %13245 = vmatpush3.bf16.msra.mxu0 %v16017_v11 }
 0xa4d   : > { %13246 = vmatprep.subr.bf16.mxu0 %v16018_v23  ;;  %v16005_v11 = vld [vmem:[%s20092_s4 + $0x18ac] ss:$16 sps:$4 sm:$0xff]   ;;  %v16003_v23 = vld [vmem:[%s20092_s4 + $0x18a8] ss:$16 sps:$4 sm:$0xff]  }
 0xa4f   : > { %10515 = vmatpush1.bf16.msra.mxu1 %v15850_v37  ;;  %v15925_v37 = vld [vmem:[%s20092_s4 + $0x1760] ss:$16 sps:$4 sm:$0xff]  }
 0xa50   : > { %10516 = vmatprep.subr.bf16.mxu1 %v15855_v51  ;;  %v15930_v51 = vld [vmem:[%s20092_s4 + $0x1784] ss:$16 sps:$4 sm:$0xff]  }
 0xa53   : > { %10517 = vmatpush1.bf16.msra.mxu1 %v15853_v52  ;;  %v16019_v52 = vld [vmem:[%s20093_s5 + $0x18] sm:$0xff]  }
 0xa54   : > { %10518 = vmatprep.subr.bf16.mxu1 %v15858_v53  ;;  %v16020_v53 = vld [vmem:[%s20093_s5 + $0x60] sm:$0xff]   ;;  %13247 = vmatpush3.bf16.msra.mxu0 %v16019_v52  ;;  %v16011_v52 = vld [vmem:[%s20092_s4 + $0x18ec] ss:$16 sps:$4 sm:$0xff]  }
 0xa55   : > { %13248 = vmatprep.subr.bf16.mxu0 %v16020_v53  ;;  %v16009_v53 = vld [vmem:[%s20092_s4 + $0x18e8] ss:$16 sps:$4 sm:$0xff]  }
 0xa57   : > { %10519 = vmatpush1.bf16.msra.mxu1 %v15856_v54  ;;  %v15928_v54 = vld [vmem:[%s20092_s4 + $0x1780] ss:$16 sps:$4 sm:$0xff]  }
 0xa58   : > { %10520 = vmatprep.subr.bf16.mxu1 %v15861_v55  ;;  %v15933_v55 = vld [vmem:[%s20092_s4 + $0x17a4] ss:$16 sps:$4 sm:$0xff]  }
 0xa5b   : > { %10521 = vmatpush1.bf16.msra.mxu1 %v15859_v56  ;;  %v16021_v56 = vld [vmem:[%s20093_s5 + $0x20] sm:$0xff]  }
 0xa5c   : > { %10522 = vmatprep.subr.bf16.mxu1 %v15864_v57  ;;  %v15931_v57 = vld [vmem:[%s20092_s4 + $0x17a0] ss:$16 sps:$4 sm:$0xff]   ;;  %13249 = vmatpush3.bf16.msra.mxu0 %v16021_v56 }
 0xa5d   : > { %v16024_v56 = vld [vmem:[%s20093_s5 + $0x70] sm:$0xff]  }
 0xa5f   : > { %10523 = vmatpush1.bf16.msra.mxu1 %v15862_v58  ;;  %v15936_v58 = vld [vmem:[%s20092_s4 + $0x17c4] ss:$16 sps:$4 sm:$0xff]  }
 0xa60   : > { %10524 = vmatprep.subr.bf16.mxu1 %v15867_v24  ;;  %v15934_v24 = vld [vmem:[%s20092_s4 + $0x17c0] ss:$16 sps:$4 sm:$0xff]  }
 0xa63   : > { %10525 = vmatpush1.bf16.msra.mxu1 %v15865_v30  ;;  %v15939_v30 = vld [vmem:[%s20092_s4 + $0x17e4] ss:$16 sps:$4 sm:$0xff]  }
 0xa64   : > { %10749 = vmatprep.subr.bf16.mxu1 %v15870_v36  ;;  %v15937_v36 = vld [vmem:[%s20092_s4 + $0x17e0] ss:$16 sps:$4 sm:$0xff]  }
 0xa66   : > { %10543 = vmatmul.mubr.bf16.vlgmr.msra.gmra.mrb[0].mxu1 %v10308_v14  ;;  %v15922_v14 = vld [vmem:[%s20092_s4 + $0x1740] ss:$16 sps:$4 sm:$0xff]  }
 0xa67   : > { %10750 = vmatpush1.bf16.msra.mxu1 %v15868_v19  ;;  %10781 = vmatprep.mubr.bf16.mxu1 %v16057_v44  ;;  %v15942_v19 = vld [vmem:[%s20092_s4 + $0x170c] ss:$16 sps:$4 sm:$0xff]  }
 0xa68   : > { %10751 = vmatprep.subr.bf16.mxu1 %v15873_v22  ;;  %v10867_v22 = vld [vmem:[#allocation5 + $0x27] sm:$0xff] }
 0xa6b   : > { %10752 = vmatpush1.bf16.msra.mxu1 %v15871_v45  ;;  %v15940_v45 = vld [vmem:[%s20092_s4 + $0x1708] ss:$16 sps:$4 sm:$0xff]  }
 0xa6c   : > { %10753 = vmatprep.subr.bf16.mxu1 %v15876_v20  ;;  %v10868_v20 = vpack.c.bf16 %v10867_v22, %v10867_v22 }
 0xa6f   : > { %10754 = vmatpush1.bf16.msra.mxu1 %v15874_v46  ;;  %v15945_v46 = vld [vmem:[%s20092_s4 + $0x172c] ss:$16 sps:$4 sm:$0xff]  }
 0xa70   : > { %10755 = vmatprep.subr.bf16.mxu1 %v15879_v47  ;;  %v15943_v47 = vld [vmem:[%s20092_s4 + $0x1728] ss:$16 sps:$4 sm:$0xff]  }
 0xa73   : > { %10756 = vmatpush1.bf16.msra.mxu1 %v15877_v59  ;;  %v15948_v59 = vld [vmem:[%s20092_s4 + $0x174c] ss:$16 sps:$4 sm:$0xff]  }
 0xa74   : > { %10757 = vmatprep.subr.bf16.mxu1 %v15882_v60  ;;  %v15946_v60 = vld [vmem:[%s20092_s4 + $0x1748] ss:$16 sps:$4 sm:$0xff]  }
 0xa77   : > { %10758 = vmatpush1.bf16.msra.mxu1 %v15880_v61  ;;  %v15951_v61 = vld [vmem:[%s20092_s4 + $0x176c] ss:$16 sps:$4 sm:$0xff]  }
 0xa78   : > { %10759 = vmatprep.subr.bf16.mxu1 %v15885_v62  ;;  %v15949_v62 = vld [vmem:[%s20092_s4 + $0x1768] ss:$16 sps:$4 sm:$0xff]  }
 0xa7b   : > { %10760 = vmatpush1.bf16.msra.mxu1 %v15883_v63  ;;  %v15954_v63 = vld [vmem:[%s20092_s4 + $0x178c] ss:$16 sps:$4 sm:$0xff]  }
 0xa7c   : > { %10761 = vmatprep.subr.bf16.mxu1 %v15888_v0  ;;  %v15952_v0 = vld [vmem:[%s20092_s4 + $0x1788] ss:$16 sps:$4 sm:$0xff]  }
 0xa7f   : > { %10762 = vmatpush1.bf16.msra.mxu1 %v15886_v1  ;;  %v15957_v1 = vld [vmem:[%s20092_s4 + $0x17ac] ss:$16 sps:$4 sm:$0xff]  }
 0xa80   : > { %10763 = vmatprep.subr.bf16.mxu1 %v15891_v2  ;;  %v15955_v2 = vld [vmem:[%s20092_s4 + $0x17a8] ss:$16 sps:$4 sm:$0xff]  }
 0xa83   : > { %10764 = vmatpush1.bf16.msra.mxu1 %v15889_v3  ;;  %v15960_v3 = vld [vmem:[%s20092_s4 + $0x17cc] ss:$16 sps:$4 sm:$0xff]  }
 0xa84   : > { %10790 = vmatprep.subr.bf16.mxu1 %v15894_v5  ;;  %v15958_v5 = vld [vmem:[%s20092_s4 + $0x17c8] ss:$16 sps:$4 sm:$0xff]  }
 0xa86   : > { %10782 = vmatmul.mubr.bf16.vlgmr.msra.gmra.mrb[4].mxu1 %v10588_v21 }
 0xa87   : > { %10791 = vmatpush1.bf16.msra.mxu1 %v15892_v10  ;;  %10822 = vmatprep.mubr.bf16.mxu1 %v16057_v44  ;;  %v15961_v10 = vld [vmem:[%s20092_s4 + $0x17e8] ss:$16 sps:$4 sm:$0xff]  }
 0xa88   : > { %10792 = vmatprep.subr.bf16.mxu1 %v15897_v25  ;;  %v15964_v25 = vld [vmem:[%s20092_s4 + $0x1800] ss:$16 sps:$4 sm:$0xff]  }
 0xa8b   : > { %10793 = vmatpush1.bf16.msra.mxu1 %v15895_v31  ;;  %v15969_v31 = vld [vmem:[%s20092_s4 + $0x1824] ss:$16 sps:$4 sm:$0xff]  }
 0xa8c   : > { %10794 = vmatprep.subr.bf16.mxu1 %v15900_v28  ;;  %v15967_v28 = vld [vmem:[%s20092_s4 + $0x1820] ss:$16 sps:$4 sm:$0xff]  }
 0xa8f   : > { %10795 = vmatpush1.bf16.msra.mxu1 %v15898_v33  ;;  %v15972_v33 = vld [vmem:[%s20092_s4 + $0x1844] ss:$16 sps:$4 sm:$0xff]  }
 0xa90   : > { %10796 = vmatprep.subr.bf16.mxu1 %v15903_v9  ;;  %v15970_v9 = vld [vmem:[%s20092_s4 + $0x1840] ss:$16 sps:$4 sm:$0xff]  }
 0xa93   : > { %10797 = vmatpush1.bf16.msra.mxu1 %v15901_v35  ;;  %v15975_v35 = vld [vmem:[%s20092_s4 + $0x1864] ss:$16 sps:$4 sm:$0xff]  }
 0xa94   : > { %10798 = vmatprep.subr.bf16.mxu1 %v15906_v15  ;;  %v15973_v15 = vld [vmem:[%s20092_s4 + $0x1860] ss:$16 sps:$4 sm:$0xff]  }
 0xa97   : > { %10799 = vmatpush1.bf16.msra.mxu1 %v15904_v16  ;;  %v15978_v16 = vld [vmem:[%s20092_s4 + $0x1884] ss:$16 sps:$4 sm:$0xff]  }
 0xa98   : > { %10800 = vmatprep.subr.bf16.mxu1 %v15909_v26  ;;  %v15976_v26 = vld [vmem:[%s20092_s4 + $0x1880] ss:$16 sps:$4 sm:$0xff]  }
 0xa9b   : > { %10801 = vmatpush1.bf16.msra.mxu1 %v15907_v17  ;;  %v15981_v17 = vld [vmem:[%s20092_s4 + $0x18a4] ss:$16 sps:$4 sm:$0xff]  }
 0xa9c   : > { %10802 = vmatprep.subr.bf16.mxu1 %v15912_v32  ;;  %v15979_v32 = vld [vmem:[%s20092_s4 + $0x18a0] ss:$16 sps:$4 sm:$0xff]  }
 0xa9f   : > { %10803 = vmatpush1.bf16.msra.mxu1 %v15910_v38  ;;  %v15984_v38 = vld [vmem:[%s20092_s4 + $0x18c4] ss:$16 sps:$4 sm:$0xff]  }
 0xaa0   : > { %10804 = vmatprep.subr.bf16.mxu1 %v15915_v39  ;;  %v15982_v39 = vld [vmem:[%s20092_s4 + $0x18c0] ss:$16 sps:$4 sm:$0xff]  }
 0xaa3   : > { %10805 = vmatpush1.bf16.msra.mxu1 %v15913_v27  ;;  %v15987_v27 = vld [vmem:[%s20092_s4 + $0x18e4] ss:$16 sps:$4 sm:$0xff]  }
 0xaa4   : > { %11029 = vmatprep.subr.bf16.mxu1 %v15918_v40  ;;  %v15985_v40 = vld [vmem:[%s20092_s4 + $0x18e0] ss:$16 sps:$4 sm:$0xff]  }
 0xaa6   : > { %10823 = vmatmul.mubr.bf16.vlgmr.msra.gmra.mrb[0].mxu1 %v10588_v21  ;;  %v15966_v21 = vld [vmem:[%s20092_s4 + $0x1804] ss:$16 sps:$4 sm:$0xff]  }
 0xaa7   : > { %11030 = vmatpush1.bf16.msra.mxu1 %v15916_v41  ;;  %11061 = vmatprep.mubr.bf16.mxu1 %v16057_v44  ;;  %v15990_v41 = vld [vmem:[%s20092_s4 + $0x180c] ss:$16 sps:$4 sm:$0xff]  }
 0xaa8   : > { %11031 = vmatprep.subr.bf16.mxu1 %v15921_v50  ;;  %v11147_v50 = vld [vmem:[#allocation5 + $0x28] sm:$0xff] }
 0xaa9   : > { %v11148_v43 = vpack.c.bf16 %v11147_v50, %v11147_v50  ;;  %v16040_v50 = vld [vmem:[%s20093_s5 + $0xf0] sm:$0xff]  }
 0xaab   : > { %11032 = vmatpush1.bf16.msra.mxu1 %v15919_v6  ;;  %v15991_v6 = vld [vmem:[%s20092_s4 + $0x1828] ss:$16 sps:$4 sm:$0xff]  }
 0xaac   : > { %11033 = vmatprep.subr.bf16.mxu1 %v15924_v7  ;;  %v15996_v7 = vld [vmem:[%s20092_s4 + $0x184c] ss:$16 sps:$4 sm:$0xff]  }
 0xaaf   : > { %11034 = vmatpush1.bf16.msra.mxu1 %v15922_v14  ;;  %v16002_v14 = vld [vmem:[%s20092_s4 + $0x188c] ss:$16 sps:$4 sm:$0xff]  }
 0xab0   : > { %11035 = vmatprep.subr.bf16.mxu1 %v15927_v13  ;;  %v16000_v13 = vld [vmem:[%s20092_s4 + $0x1888] ss:$16 sps:$4 sm:$0xff]  }
 0xab3   : > { %11036 = vmatpush1.bf16.msra.mxu1 %v15925_v37  ;;  %v16008_v37 = vld [vmem:[%s20092_s4 + $0x18cc] ss:$16 sps:$4 sm:$0xff]  }
 0xab4   : > { %11037 = vmatprep.subr.bf16.mxu1 %v15930_v51  ;;  %v16006_v51 = vld [vmem:[%s20092_s4 + $0x18c8] ss:$16 sps:$4 sm:$0xff]  }
 0xab7   : > { %11038 = vmatpush1.bf16.msra.mxu1 %v15928_v54  ;;  %v16022_v54 = vld [vmem:[%s20093_s5 + $0x68] sm:$0xff]  }
 0xab8   : > { %11039 = vmatprep.subr.bf16.mxu1 %v15933_v55  ;;  %v16023_v55 = vld [vmem:[%s20093_s5 + $0x28] sm:$0xff]   ;;  %13250 = vmatprep.subr.bf16.mxu0 %v16022_v54 }
 0xab9   : > { %13251 = vmatpush3.bf16.msra.mxu0 %v16023_v55 }
 0xaba   : > { %13252 = vmatprep.subr.bf16.mxu0 %v16024_v56 }
 0xabb   : > { %11040 = vmatpush1.bf16.msra.mxu1 %v15931_v57  ;;  %v16025_v57 = vld [vmem:[%s20093_s5 + $0x30] sm:$0xff]  }
 0xabc   : > { %11041 = vmatprep.subr.bf16.mxu1 %v15936_v58  ;;  %v16026_v58 = vld [vmem:[%s20093_s5 + $0x78] sm:$0xff]  }
 0xabd   : > { %13253 = vmatpush3.bf16.msra.mxu0 %v16025_v57 }
 0xabe   : > { %13254 = vmatprep.subr.bf16.mxu0 %v16026_v58 }
 0xabf   : > { %11042 = vmatpush1.bf16.msra.mxu1 %v15934_v24  ;;  %v16027_v24 = vld [vmem:[%s20093_s5 + $0x38] sm:$0xff]  }
 0xac0   : > { %11043 = vmatprep.subr.bf16.mxu1 %v15939_v30  ;;  %v16028_v30 = vld [vmem:[%s20093_s5 + $0xc0] sm:$0xff]  }
 0xac1   : > { %13255 = vmatpush3.bf16.msra.mxu0 %v16027_v24 }
 0xac2   : > { %13262 = vmatprep.subr.bf16.mxu0 %v16028_v30 }
 0xac3   : > { %11044 = vmatpush1.bf16.msra.mxu1 %v15937_v36  ;;  %v11397_v36 = vlaneseq }
 0xac4   : > { %11070 = vmatprep.subr.bf16.mxu1 %v15942_v19 }
 0xac5   : > { %v11398_v19 = vshrl.u32 %v11397_v36, 7  ;;  %v12881_v36 = vld [vmem:[%s20094_s6 + $0x6] ss:$0 sm:$0xff] }
 0xac6   : > { %11062 = vmatmul.mubr.bf16.vlgmr.msra.gmra.mrb[4].mxu1 %v10868_v20 }
 0xac7   : > { %11071 = vmatpush1.bf16.msra.mxu1 %v15940_v45  ;;  %11102 = vmatprep.mubr.bf16.mxu1 %v16057_v44  ;;  %v11399_v22 = vsub.s32 0, %v11398_v19  ;;  %v11395_v45 = vld [vmem:[%s20095_s7] ss:$2 sm:$0xf] }
 0xac8   : > { %11072 = vmatprep.subr.bf16.mxu1 %v15945_v46  ;;  %v12880_v46 = vld [vmem:[%s20095_s7 + $0x1] ss:$2 sm:$0xf] }
 0xacb   : > { %11073 = vmatpush1.bf16.msra.mxu1 %v15943_v47  ;;  %v11400_v47 = vrot.slane %v11395_v45, %v11399_v22 }
 0xacc   : > { %11074 = vmatprep.subr.bf16.mxu1 %v15948_v59 }
 0xacf   : > { %11075 = vmatpush1.bf16.msra.mxu1 %v15946_v60 }
 0xad0   : > { %11076 = vmatprep.subr.bf16.mxu1 %v15951_v61 }
 0xad3   : > { %11077 = vmatpush1.bf16.msra.mxu1 %v15949_v62  ;;  %v11427_v62 = vrot.slane %v12880_v46, %v11399_v22 }
 0xad4   : > { %11078 = vmatprep.subr.bf16.mxu1 %v15954_v63 }
 0xad7   : > { %11079 = vmatpush1.bf16.msra.mxu1 %v15952_v0 }
 0xad8   : > { %11080 = vmatprep.subr.bf16.mxu1 %v15957_v1 }
 0xadb   : > { %11081 = vmatpush1.bf16.msra.mxu1 %v15955_v2 }
 0xadc   : > { %11082 = vmatprep.subr.bf16.mxu1 %v15960_v3 }
 0xadf   : > { %11083 = vmatpush1.bf16.msra.mxu1 %v15958_v5 }
 0xae0   : > { %11084 = vmatprep.subr.bf16.mxu1 %v15963_v18 }
 0xae3   : > { %11085 = vmatpush1.bf16.msra.mxu1 %v15961_v10 }
 0xae4   : > { %11309 = vmatprep.subr.bf16.mxu1 %v15966_v21 }
 0xae6   : > { %11103 = vmatmul.mubr.bf16.vlgmr.msra.gmra.mrb[0].mxu1 %v10868_v20  ;;  %v11403_v20 = vsub.s32 1, %v11398_v19 }
 0xae7   : > { %11310 = vmatpush1.bf16.msra.mxu1 %v15964_v25  ;;  %11341 = vmatprep.mubr.bf16.mxu1 %v16057_v44 }
 0xae8   : > { %11311 = vmatprep.subr.bf16.mxu1 %v15969_v31  ;;  %v11404_v60 = vrot.slane %v11395_v45, %v11403_v20  ;;  %v11431_v1 = vrot.slane %v12880_v46, %v11403_v20 }
 0xaeb   : > { %11312 = vmatpush1.bf16.msra.mxu1 %v15967_v28 }
 0xaec   : > { %11313 = vmatprep.subr.bf16.mxu1 %v15972_v33  ;;  %v16029_v33 = vld [vmem:[%s20093_s5 + $0x80] sm:$0xff]  }
 0xaef   : > { %11314 = vmatpush1.bf16.msra.mxu1 %v15970_v9 }
 0xaf0   : > { %11315 = vmatprep.subr.bf16.mxu1 %v15975_v35  ;;  %v16032_v35 = vld [vmem:[%s20093_s5 + $0xd0] sm:$0xff]  }
 0xaf3   : > { %11316 = vmatpush1.bf16.msra.mxu1 %v15973_v15  ;;  %v16033_v15 = vld [vmem:[%s20093_s5 + $0x90] sm:$0xff]  }
 0xaf4   : > { %11317 = vmatprep.subr.bf16.mxu1 %v15978_v16  ;;  %v16034_v16 = vld [vmem:[%s20093_s5 + $0xd8] sm:$0xff]  }
 0xaf7   : > { %11318 = vmatpush1.bf16.msra.mxu1 %v15976_v26  ;;  %v16035_v26 = vld [vmem:[%s20093_s5 + $0x98] sm:$0xff]  }
 0xaf8   : > { %11319 = vmatprep.subr.bf16.mxu1 %v15981_v17  ;;  %v16036_v17 = vld [vmem:[%s20093_s5 + $0xe0] sm:$0xff]  }
 0xafb   : > { %11320 = vmatpush1.bf16.msra.mxu1 %v15979_v32  ;;  %v16037_v32 = vld [vmem:[%s20093_s5 + $0xa0] sm:$0xff]  }
 0xafc   : > { %11321 = vmatprep.subr.bf16.mxu1 %v15984_v38  ;;  %v11407_v38 = vsub.s32 2, %v11398_v19 }
 0xaff   : > { %11322 = vmatpush1.bf16.msra.mxu1 %v15982_v39  ;;  %v16038_v39 = vld [vmem:[%s20093_s5 + $0xe8] sm:$0xff]  }
 0xb00   : > { %11323 = vmatprep.subr.bf16.mxu1 %v15987_v27  ;;  %v11411_v27 = vsub.s32 3, %v11398_v19 }
 0xb03   : > { %11324 = vmatpush1.bf16.msra.mxu1 %v15985_v40  ;;  %v16039_v40 = vld [vmem:[%s20093_s5 + $0xa8] sm:$0xff]  }
 0xb04   : > { %11350 = vmatprep.subr.bf16.mxu1 %v15990_v41  ;;  %v11408_v41 = vrot.slane %v11395_v45, %v11407_v38 }
 0xb06   : > { %11342 = vmatmul.mubr.bf16.vlgmr.msra.gmra.mrb[4].mxu1 %v11148_v43 }
 0xb07   : > { %11351 = vmatpush1.bf16.msra.mxu1 %v15988_v42  ;;  %11382 = vmatprep.mubr.bf16.mxu1 %v16057_v44  ;;  %v15997_v44 = vld [vmem:[%s20092_s4 + $0x1868] ss:$16 sps:$4 sm:$0xff]  }
 0xb08   : > { %11352 = vmatprep.subr.bf16.mxu1 %v15993_v4 }
 0xb0b   : > { %11353 = vmatpush1.bf16.msra.mxu1 %v15991_v6  ;;  %v11435_v6 = vrot.slane %v12880_v46, %v11407_v38 }
 0xb0c   : > { %11354 = vmatprep.subr.bf16.mxu1 %v15996_v7 }
 0xb0f   : > { %11355 = vmatpush1.bf16.msra.mxu1 %v15994_v8 }
 0xb10   : > { %11356 = vmatprep.subr.bf16.mxu1 %v15999_v12  ;;  %v11439_v12 = vrot.slane %v12880_v46, %v11411_v27 }
 0xb13   : > { %11357 = vmatpush1.bf16.msra.mxu1 %v15997_v44 }
 0xb14   : > { %11358 = vmatprep.subr.bf16.mxu1 %v16002_v14  ;;  %v16041_v14 = vld [vmem:[%s20093_s5 + $0xb0] sm:$0xff]  }
 0xb17   : > { %11359 = vmatpush1.bf16.msra.mxu1 %v16000_v13 }
 0xb18   : > { %11360 = vmatprep.subr.bf16.mxu1 %v16005_v11 }
 0xb1b   : > { %11361 = vmatpush1.bf16.msra.mxu1 %v16003_v23  ;;  %v16042_v23 = vld [vmem:[%s20093_s5 + $0xf8] sm:$0xff]  }
 0xb1c   : > { %11362 = vmatprep.subr.bf16.mxu1 %v16008_v37 }
 0xb1f   : > { %11363 = vmatpush1.bf16.msra.mxu1 %v16006_v51 }
 0xb20   : > { %11364 = vmatprep.subr.bf16.mxu1 %v16011_v52 }
 0xb23   : > { %11365 = vmatpush1.bf16.msra.mxu1 %v16009_v53 }
 0xb26   : > { %11383 = vmatmul.mubr.bf16.vlgmr.msra.gmra.mrb[0].mxu1 %v11148_v43  ;;  %v11412_v43 = vrot.slane %v11395_v45, %v11411_v27 }
 0xbd9   : > { %v11343_v59 = vpop.f32.mrb[4].mxu1 }
 0xbda   : > { %v14076_v61 = vadd.f32 %v11343_v59, %v18734_v29  ;;  %v11345_v63 = vpop.f32.mrb[5].mxu1  ;;  %v16030_v29 = vld [vmem:[%s20093_s5 + $0xc8] sm:$0xff]  }
 0xbdb   : > { %v14077_v0 = vadd.f32 %v11345_v63, %v18736_v34  ;;  %v11347_v2 = vpop.f32.mrb[6].mxu1  ;;  %v16031_v34 = vld [vmem:[%s20093_s5 + $0x88] sm:$0xff]  }
 0xbdc   : > { %v11417_v3 = vmul.f32 %v14076_v61, %v11400_v47  ;;  %v11348_v5 = vpop.f32.mrb[7].mxu1 }
 0xbdd   : > { %v11418_v18 = vmul.f32 %v14077_v0, %v11404_v60 }
 0xbde   : > { %v11444_v10 = vadd.f32 %v11427_v62, %v11417_v3 }
 0xbdf   : > { %v11445_v21 = vadd.f32 %v11431_v1, %v11418_v18 }
 0xbe0   : > { %v11448_v25 = vmax.f32 %v11444_v10, 0.0 }
 0xbe1   : > { %v11449_v31 = vmax.f32 %v11445_v21, 0.0 }
 0xbe2   : > { %v11452_v9 = vpack.c.bf16 %v11448_v25, %v11448_v25 }
 0xbe3   : > { %v11453_v28 = vpack.c.bf16 %v11449_v31, %v11449_v31 }
 0xbe5   : > { %11749 = vmatprep.mubr.bf16.mxu0 %v11453_v28 }
 0xbe6   : > { %11750 = vmatmul.mubr.bf16.vlgmr.msra.gmra.mrb[48].mxu0 %v11452_v9 }
 0xbe7   : > { %13263 = vmatpush3.bf16.msra.mxu0 %v16029_v33 }
 0xbe8   : > { %13264 = vmatprep.subr.bf16.mxu0 %v16030_v29 }
 0xbeb   : > { %13265 = vmatpush3.bf16.msra.mxu0 %v16031_v34 }
 0xbec   : > { %13266 = vmatprep.subr.bf16.mxu0 %v16032_v35 }
 0xbef   : > { %13267 = vmatpush3.bf16.msra.mxu0 %v16033_v15 }
 0xbf0   : > { %13268 = vmatprep.subr.bf16.mxu0 %v16034_v16 }
 0xbf3   : > { %13269 = vmatpush3.bf16.msra.mxu0 %v16035_v26 }
 0xbf4   : > { %13270 = vmatprep.subr.bf16.mxu0 %v16036_v17 }
 0xbf7   : > { %13271 = vmatpush3.bf16.msra.mxu0 %v16037_v32 }
 0xbf8   : > { %13272 = vmatprep.subr.bf16.mxu0 %v16038_v39 }
 0xbf9   : > { %v11384_v42 = vpop.f32.mrb[0].mxu1 }
 0xbfa   : > { %v14078_v4 = vadd.f32 %v11384_v42, %v18681_v48  ;;  %v11386_v7 = vpop.f32.mrb[1].mxu1 }
 0xbfb   : > { %v14079_v8 = vadd.f32 %v11386_v7, %v18683_v49  ;;  %v11388_v44 = vpop.f32.mrb[2].mxu1  ;;  %13273 = vmatpush3.bf16.msra.mxu0 %v16039_v40  ;;  %v16043_v49 = vld [vmem:[%s20093_s5 + $0xb8] sm:$0xff]  }
 0xbfc   : > { %v11419_v13 = vmul.f32 %v14078_v4, %v11408_v41  ;;  %v11389_v11 = vpop.f32.mrb[3].mxu1  ;;  %13274 = vmatprep.subr.bf16.mxu0 %v16040_v50 }
 0xbfd   : > { %v11420_v37 = vmul.f32 %v14079_v8, %v11412_v43 }
 0xbfe   : > { %v11446_v48 = vadd.f32 %v11435_v6, %v11419_v13 }
 0xbff   : > { %v11447_v51 = vadd.f32 %v11439_v12, %v11420_v37  ;;  %13275 = vmatpush3.bf16.msra.mxu0 %v16041_v14 }
 0xc00   : > { %v11450_v52 = vmax.f32 %v11446_v48, 0.0  ;;  %13276 = vmatprep.subr.bf16.mxu0 %v16042_v23 }
 0xc01   : > { %v11451_v53 = vmax.f32 %v11447_v51, 0.0 }
 0xc02   : > { %v11454_v55 = vpack.c.bf16 %v11450_v52, %v11450_v52 }
 0xc03   : > { %13277 = vmatpush3.bf16.msra.mxu0 %v16043_v49  ;;  %v11455_v54 = vpack.c.bf16 %v11451_v53, %v11451_v53 }
 0xc05   : > { %11789 = vmatprep.mubr.bf16.mxu0 %v11455_v54 }
 0xc06   : > { %11790 = vmatmul.mubr.bf16.vlgmr.msra.gmra.mrb[52].mxu0 %v11454_v55 }
 0xcb9   : > { %v13256_v56 = vpop.f32.mrb[48].mxu0 }
 0xcba   : > { %v13257_v57 = vpop.f32.mrb[49].mxu0 }
 0xcbb   : > { %v13258_v58 = vadd.f32 %v13257_v57, %v13256_v56  ;;  %v13259_v24 = vpop.f32.mrb[50].mxu0 }
 0xcbc   : > { %v13260_v30 = vpop.f32.mrb[51].mxu0 }
 0xcbd   : > { %v11752_v45 = vadd.f32 %v13258_v58, %v12881_v36 }
 0xcd9   : > { %v13278_v19 = vpop.f32.mrb[52].mxu0 }
 0xcda   : > { %v13279_v22 = vpop.f32.mrb[53].mxu0 }
 0xcdb   : > { %v13280_v20 = vadd.f32 %v13279_v22, %v13278_v19  ;;  %v13281_v46 = vpop.f32.mrb[54].mxu0 }
 0xcdc   : > { %v13282_v47 = vpop.f32.mrb[55].mxu0 }
 0xcdd   : > { %v11792_v59 = vadd.f32 %v13280_v20, %v11752_v45 }
 0xcdf   : > { %11797 = vst [vmem:[%s303_s14] sm:$0xff] %v11792_v59 }
 0xce0 PF: > { %s18_s27 = sadd.s32 1, %s16053_s27  }
 0xce1   : > { %p15_p4 = scmp.ge.s32.totalorder %s18_s27, 4  }
 0xce3   :  { %17 = sbr.rel (!%p15_p4) target bundleno = 1 (0x1), region = 83 }

</bundles_post_ra>
